<compile_context>
chip_gen: v7x
topology: tpu7x:2x2x1
jax: 0.10.0
libtpu: 0.0.40
codegen_flags: <defaults>
</compile_context>

<pallas_src>
import functools

import jax
import jax.numpy as jnp
from jax.experimental import pallas as pl
from jax.experimental.pallas import tpu as pltpu

LANE = 128


def _num_tensorcores_per_chip():
    """v7x has 2 TensorCores per chip; v5e/v6e have 1 (grid split only helps with 2 TCs)."""
    try:
        kind = jax.devices()[0].device_kind.lower()
    except Exception:
        return 1
    return 2 if ("v7" in kind or "7x" in kind) else 1


# --------------------------- conv + maxpool kernel ---------------------------

def _conv_maxpool_kernel(x_ref, w_ref, b_ref, o_ref, *, kh, seq, p):
    """Fused Conv2d((kh, C)) + full-height MaxPool for `bb` sequences.

    x_ref: (bb*seq, C) bf16   sequences zero-padded to `seq` rows, laid back to back
    w_ref: (C, kh*n)  bf16    wide weight: conv tap r lives in lanes [r*n, (r+1)*n)
    b_ref: (1, n) f32
    o_ref: (1, bb, n) f32     per-sequence channel-wise max of the conv
    """
    bb = o_ref.shape[1]
    n = o_ref.shape[2]
    total = bb * seq
    # ONE wide matmul for all taps (fills the 256-wide MXU on v6e/v7x), f32 accumulation.
    y = jnp.dot(x_ref[...], w_ref[...], preferred_element_type=jnp.float32)   # (total, kh*n)
    # Window sum: shift tap r up by r rows with a sublane roll (XLU slot, vreg-aligned lane
    # slices) instead of kh*bb sublane-misaligned row slices.  Rolled/wrapped rows only land
    # in the padded tail (window positions >= p per sequence), which the max discards.
    acc = y[:, :n]
    for r in range(1, kh):
        acc = acc + pltpu.roll(y[:, r * n:(r + 1) * n], shift=total - r, axis=0)
    # Per-sequence max over the p valid window positions; all bases b*seq are 8-aligned.
    maxes = [jnp.max(acc[b * seq:b * seq + p, :], axis=0, keepdims=True) for b in range(bb)]
    # bias after the max is valid: max is monotone and the bias is a per-channel constant.
    o_ref[0] = jnp.concatenate(maxes, axis=0) + b_ref[...]


def conv_maxpool(x, w_wide, b_pad, *, kh=5, num_blocks=1):
    """x: (B, S, C) f32, w_wide: (C, kh*LANE) bf16, b_pad: (1, LANE) f32 -> (B, LANE) f32."""
    B, S, C = x.shape
    p = S - kh + 1                               # valid window positions per sequence
    Sp = ((S + 15) // 16) * 16                   # pad each sequence to the bf16 sublane tile
    if Sp > S:
        x = jnp.pad(x, ((0, 0), (0, Sp - S), (0, 0)))
    if B % num_blocks != 0:
        num_blocks = 1
    Bb = B // num_blocks
    kern = functools.partial(_conv_maxpool_kernel, kh=kh, seq=Sp, p=p)
    out = pl.pallas_call(
        kern,
        out_shape=jax.ShapeDtypeStruct((num_blocks, Bb, LANE), jnp.float32),
        grid=(num_blocks,),
        in_specs=[pl.BlockSpec((Bb * Sp, C), lambda i: (i, 0)),
                  pl.BlockSpec((C, kh * LANE), lambda i: (0, 0)),
                  pl.BlockSpec((1, LANE), lambda i: (0, 0))],
        out_specs=pl.BlockSpec((1, Bb, LANE), lambda i: (i, 0, 0)),
        compiler_params=pltpu.CompilerParams(dimension_semantics=("parallel",)),
    )(x.reshape(B * Sp, C).astype(jnp.bfloat16), w_wide, b_pad)
    return out.reshape(B, LANE)


# ------------- fused input_linear -> BiLSTM -> out/gold -> log_softmax -------------

def _sigmoid(x):
    return 1.0 / (1.0 + jnp.exp(-x))


def _lstm_head_kernel(cat_ref, mask_ref, inw_ref, inb_ref, wg_ref, bg_ref,
                      uf_ref, bhf_ref, ub_ref, bhb_ref,
                      outw_ref, outb_ref, gw_ref, gb_ref, o_ref,
                      *, batch, steps, hidden):
    """Whole post-CNN path in one kernel.

    Rows are time-major: row t*batch + b == (sequence b, timestep t).
    mask_ref[row, 0] = 1.0 while t < length[b] (pack_padded_sequence semantics), else 0.0.
    Output o_ref: (steps*batch, 128) log-softmax scores (gold columns padded with -1e30 bias).
    """
    B, A, H = batch, steps, hidden
    f32 = jnp.float32

    # input_linear followed by BOTH directions' gate pre-projections (W_ih_f | W_ih_b).
    t0 = jnp.dot(cat_ref[...], inw_ref[...], preferred_element_type=f32) + inb_ref[...]
    xg = jnp.dot(t0, wg_ref[...], preferred_element_type=f32) + bg_ref[...]   # (A*B, 8H)
    xg_f = xg[:, :4 * H]
    xg_b = xg[:, 4 * H:]

    def cell(x_t, h, c, u_ref, bh_ref):
        g = x_t + jnp.dot(h, u_ref[...], preferred_element_type=f32) + bh_ref[...]
        i = _sigmoid(g[:, 0 * H:1 * H])
        f = _sigmoid(g[:, 1 * H:2 * H])
        gg = jnp.tanh(g[:, 2 * H:3 * H])
        o = _sigmoid(g[:, 3 * H:4 * H])
        c_new = f * c + i * gg
        h_new = o * jnp.tanh(c_new)
        return h_new, c_new

    zeros = jnp.zeros((B, H), f32)
    outs_f = [None] * A
    outs_b = [None] * A

    h, c = zeros, zeros
    for t in range(A):                                   # forward direction (A is tiny -> unroll)
        m = mask_ref[t * B:(t + 1) * B, :]
        h_new, c_new = cell(xg_f[t * B:(t + 1) * B, :], h, c, uf_ref, bhf_ref)
        h = m * h_new + (1.0 - m) * h
        c = m * c_new + (1.0 - m) * c
        outs_f[t] = m * h_new                            # padded slots output 0 (pad_packed)

    h, c = zeros, zeros
    for t in range(A - 1, -1, -1):                       # backward direction
        m = mask_ref[t * B:(t + 1) * B, :]
        h_new, c_new = cell(xg_b[t * B:(t + 1) * B, :], h, c, ub_ref, bhb_ref)
        h = m * h_new + (1.0 - m) * h
        c = m * c_new + (1.0 - m) * c
        outs_b[t] = m * h_new

    lstm_out = jnp.concatenate(
        [jnp.concatenate([outs_f[t], outs_b[t]], axis=1) for t in range(A)], axis=0)  # (A*B, 2H)

    # out_linear -> out_gold_linear -> log_softmax (all lane-padded to 128; padded gold
    # columns carry bias -1e30 so they contribute exp(.) == 0).
    t1 = jnp.dot(lstm_out, outw_ref[...], preferred_element_type=f32) + outb_ref[...]
    logits = jnp.dot(t1, gw_ref[...], preferred_element_type=f32) + gb_ref[...]
    mx = jnp.max(logits, axis=-1, keepdims=True)
    z = logits - mx
    lse = jnp.log(jnp.sum(jnp.exp(z), axis=-1, keepdims=True))
    o_ref[...] = z - lse


def lstm_head(cat_tm, mask_tm, pp, batch, steps, hidden):
    AB = batch * steps
    args = [cat_tm, mask_tm, pp["in_w"], pp["in_b"], pp["w_gates"], pp["b_gates"],
            pp["u_hh_f"], pp["b_hh_f"], pp["u_hh_b"], pp["b_hh_b"],
            pp["out_w"], pp["out_b"], pp["gold_w"], pp["gold_b"]]
    kern = functools.partial(_lstm_head_kernel, batch=batch, steps=steps, hidden=hidden)
    return pl.pallas_call(
        kern,
        out_shape=jax.ShapeDtypeStruct((AB, LANE), jnp.float32),
        grid=(1,),
        in_specs=[pl.BlockSpec(a.shape, lambda i: (0, 0)) for a in args],
        out_specs=pl.BlockSpec((AB, LANE), lambda i: (0, 0)),
    )(*args)


# ------------------------------- forward (JAX glue) --------------------------------

def forward(pp, q_s, q, q_p, answer, a_m, a_p, a_f, *, num_blocks=1, gold_size=8):
    B, L = q.shape
    A = answer.shape[1]
    Ncnn = 100                                            # conv output channels (hard-coded in module)
    H = pp["u_hh_f"].shape[0]

    # ---- question_cnn ----
    q_embed = pp["word_emb"][q]                           # (B, L, We)
    q_p_embed = pp["pos_emb"][q_p]                        # (B, L, Pe)
    q_s_embed = pp["word_emb"][q_s].reshape(B, -1)        # (B, S*We)
    # tiny (Bx300)@(300x100) linear: deliberately left to XLA (a pallas_call here is pure
    # launch overhead); it fuses with the concat/broadcast below.
    q_s_lin = q_s_embed @ pp["q_s_w"] + pp["q_s_b"]       # (B, We)
    q_s_exp = jnp.broadcast_to(q_s_lin[:, None, :], (B, L, q_s_lin.shape[-1]))
    q_input = jnp.concatenate([q_embed, q_s_exp, q_p_embed], -1)            # (B, L, 250)
    q_cnn = conv_maxpool(q_input, pp["q_cnn_w"], pp["q_cnn_b"],
                         num_blocks=num_blocks)[:, :Ncnn]                   # (B, 100)

    # ---- answer_cnn (all B*A answers in one fused conv+maxpool) ----
    a_embed = pp["word_emb"][answer]                      # (B, A, L, We)
    a_p_embed = pp["pos_emb"][a_p]                        # (B, A, L, Pe)
    a_input = jnp.concatenate([a_embed, a_p_embed], -1).reshape(B * A, L, -1)
    a_cnn = conv_maxpool(a_input, pp["a_cnn_w"], pp["a_cnn_b"],
                         num_blocks=num_blocks)[:, :Ncnn]                   # (B*A, 100)

    # ---- fused input_linear -> gate projections -> BiLSTM -> out/gold head (one kernel) ----
    q_exp = jnp.broadcast_to(q_cnn[:, None, :], (B, A, Ncnn))
    cat = jnp.concatenate([a_cnn.reshape(B, A, Ncnn), q_exp, a_f.astype(jnp.float32)], -1)
    cat_tm = jnp.transpose(cat, (1, 0, 2)).reshape(A * B, -1)               # time-major rows t*B+b
    # pack_padded_sequence semantics (assumes padding is contiguous at the end of each row)
    lengths = jnp.sum((a_m == 0).astype(jnp.int32), axis=1)                 # (B,)
    mask_tm = (jnp.arange(A)[:, None] < lengths[None, :]).astype(jnp.float32).reshape(A * B, 1)
    scores_tm = lstm_head(cat_tm, mask_tm, pp, B, A, H)                     # (A*B, 128)
    scores = jnp.transpose(scores_tm.reshape(A, B, LANE), (1, 0, 2))[:, :, :gold_size]
    return scores                                                            # (B, A, gold)


# ----------------------------- parameter init / prep ------------------------------

def init_params(key, cfg):
    ks = jax.random.split(key, 24)
    We, Pe = cfg["word_embed_dim"], cfg["pos_embed_dim"]
    H = cfg["lstm_state_size"] // 2

    def u(k, shape, fan_in):
        s = 1.0 / jnp.sqrt(jnp.float32(fan_in))
        return jax.random.uniform(k, shape, jnp.float32, -s, s)

    return {
        "word_emb": 0.1 * jax.random.normal(ks[0], (cfg["word_size"], We), jnp.float32),
        "pos_emb": 0.1 * jax.random.normal(ks[1], (cfg["pos_size"], Pe), jnp.float32),
        "q_s_w": u(ks[2], (cfg["max_subject_length"] * We, We), cfg["max_subject_length"] * We),
        "q_s_b": u(ks[3], (We,), cfg["max_subject_length"] * We),
        # Conv2d(1,100,(5,250)) weight as (taps, in_channels, out_channels)
        "q_cnn_w": u(ks[4], (5, 250, 100), 5 * 250),
        "q_cnn_b": u(ks[5], (100,), 5 * 250),
        # Conv2d(1,100,(5,150)) weight as (taps, in_channels, out_channels)
        "a_cnn_w": u(ks[6], (5, 150, 100), 5 * 150),
        "a_cnn_b": u(ks[7], (100,), 5 * 150),
        "in_w": u(ks[8], (300, cfg["lstm_input_size"]), 300),
        "in_b": u(ks[9], (cfg["lstm_input_size"],), 300),
        "w_ih_f": u(ks[10], (cfg["lstm_input_size"], 4 * H), H),
        "b_ih_f": u(ks[11], (4 * H,), H),
        "u_hh_f": u(ks[12], (H, 4 * H), H),
        "b_hh_f": u(ks[13], (4 * H,), H),
        "w_ih_b": u(ks[14], (cfg["lstm_input_size"], 4 * H), H),
        "b_ih_b": u(ks[15], (4 * H,), H),
        "u_hh_b": u(ks[16], (H, 4 * H), H),
        "b_hh_b": u(ks[17], (4 * H,), H),
        "out_w": u(ks[18], (cfg["lstm_state_size"], cfg["lstm_linear_size"]), cfg["lstm_state_size"]),
        "out_b": u(ks[19], (cfg["lstm_linear_size"],), cfg["lstm_state_size"]),
        "gold_w": u(ks[20], (cfg["lstm_linear_size"], cfg["gold_size"]), cfg["lstm_linear_size"]),
        "gold_b": u(ks[21], (cfg["gold_size"],), cfg["lstm_linear_size"]),
    }


def prepare_params(p):
    """Hoist all padding / concatenation / tap packing out of the jitted forward."""
    def conv_pack(w, b):
        kh, c, n = w.shape
        wp = jnp.pad(w, ((0, 0), (0, 0), (0, LANE - n)))              # lane-pad out channels
        wp = jnp.transpose(wp, (1, 0, 2)).reshape(c, kh * LANE)       # tap r -> lanes [r*128,(r+1)*128)
        bp = jnp.pad(b, (0, LANE - n)).reshape(1, LANE).astype(jnp.float32)
        return wp.astype(jnp.bfloat16), bp

    qw, qb = conv_pack(p["q_cnn_w"], p["q_cnn_b"])
    aw, ab = conv_pack(p["a_cnn_w"], p["a_cnn_b"])
    lin = p["out_w"].shape[1]
    g = p["gold_w"].shape[1]
    return {
        "word_emb": p["word_emb"], "pos_emb": p["pos_emb"],
        "q_s_w": p["q_s_w"], "q_s_b": p["q_s_b"],
        "q_cnn_w": qw, "q_cnn_b": qb, "a_cnn_w": aw, "a_cnn_b": ab,
        "in_w": p["in_w"], "in_b": p["in_b"].reshape(1, -1),
        "w_gates": jnp.concatenate([p["w_ih_f"], p["w_ih_b"]], axis=1),          # (in, 8H)
        "b_gates": jnp.concatenate([p["b_ih_f"], p["b_ih_b"]], axis=0).reshape(1, -1),
        "u_hh_f": p["u_hh_f"], "b_hh_f": p["b_hh_f"].reshape(1, -1),
        "u_hh_b": p["u_hh_b"], "b_hh_b": p["b_hh_b"].reshape(1, -1),
        "out_w": jnp.pad(p["out_w"], ((0, 0), (0, LANE - lin))),                 # lane-dense head
        "out_b": jnp.pad(p["out_b"], (0, LANE - lin)).reshape(1, LANE),
        "gold_w": jnp.pad(p["gold_w"], ((0, LANE - lin), (0, LANE - g))),
        "gold_b": jnp.pad(p["gold_b"], (0, LANE - g), constant_values=-1e30).reshape(1, LANE),
    }


# ---------------------------------- main -----------------------------------

if __name__ == "__main__":
    # Config implied by the module's hard-coded conv/pool shapes:
    #   word_embed_dim*2 + pos_embed_dim = 250, word_embed_dim + pos_embed_dim = 150,
    #   q CNN pool kernel (96,1) => max_length = 100, a_f feature dim = 300 - 200 = 100.
    cfg = dict(
        word_size=100, pos_size=20, gold_size=8,
        max_length=100, max_subject_length=3,
        word_embed_dim=100, pos_embed_dim=50,
        lstm_input_size=64, lstm_state_size=64, lstm_linear_size=32,
        num_layers=1, dropout=0.0,
    )
    assert cfg["max_length"] == 100, "pool kernel (96,1) requires sequence length 100"

    B, A, L, S = 2, 4, cfg["max_length"], cfg["max_subject_length"]
    key = jax.random.PRNGKey(0)
    kp, k1, k2, k3, k4, k5, k6 = jax.random.split(key, 7)

    params = init_params(kp, cfg)
    pp = prepare_params(params)

    q_s = jax.random.randint(k1, (B, S), 0, cfg["word_size"], jnp.int32)
    q = jax.random.randint(k2, (B, L), 0, cfg["word_size"], jnp.int32)
    q_p = jax.random.randint(k3, (B, L), 0, cfg["pos_size"], jnp.int32)
    answer = jax.random.randint(k4, (B, A, L), 0, cfg["word_size"], jnp.int32)
    a_p = jax.random.randint(k5, (B, A, L), 0, cfg["pos_size"], jnp.int32)
    a_f = jax.random.randint(k6, (B, A, 100), 0, 2, jnp.int32)      # binary features
    # a_m: 0 = valid answer slot, 1 = padding. lengths = [4, 3].
    a_m = jnp.array([[0, 0, 0, 0],
                     [0, 0, 0, 1]], jnp.int32)

    fwd = jax.jit(functools.partial(forward,
                                    num_blocks=_num_tensorcores_per_chip(),
                                    gold_size=cfg["gold_size"]))
    scores = fwd(pp, q_s, q, q_p, answer, a_m, a_p, a_f)
    scores = jax.block_until_ready(scores)
    assert scores.shape == (B, A, cfg["gold_size"])
    assert bool(jnp.all(jnp.isfinite(scores)))
    print("KERNEL_OK")
</pallas_src>

<mosaic_0001>
module attributes {stable_mosaic.version = 11 : i64} {
  func.func @_conv_maxpool_kernel(%arg0: i32, %arg1: memref<896x150xbf16, #tpu.memory_space<vmem>>, %arg2: memref<150x640xbf16, #tpu.memory_space<vmem>>, %arg3: memref<1x128xf32, #tpu.memory_space<vmem>>, %arg4: memref<1x8x128xf32, #tpu.memory_space<vmem>>) attributes {dimension_semantics = [#tpu.dimension_semantics<parallel>], iteration_bounds = array<i64: 1>, scalar_prefetch = 0 : i64, scratch_operands = 0 : i64, tpu.core_type = #tpu.core_type<tc>, window_params = [{transform_indices = @transform_0, window_bounds = array<i64: 896, 150>}, {pipeline_mode = #tpu.pipeline_mode<synchronous>, transform_indices = @transform_1, window_bounds = array<i64: 150, 640>}, {pipeline_mode = #tpu.pipeline_mode<synchronous>, transform_indices = @transform_2, window_bounds = array<i64: 1, 128>}, {transform_indices = @transform_3, window_bounds = array<i64: 1, 8, 128>}]} {
    %c0 = arith.constant 0 : index
    %c0_0 = arith.constant 0 : index
    %0 = vector.load %arg1[%c0, %c0_0] : memref<896x150xbf16, #tpu.memory_space<vmem>>, vector<896x150xbf16>
    %c0_1 = arith.constant 0 : index
    %c0_2 = arith.constant 0 : index
    %1 = vector.load %arg2[%c0_1, %c0_2] : memref<150x640xbf16, #tpu.memory_space<vmem>>, vector<150x640xbf16>
    %cst = arith.constant dense<0.000000e+00> : vector<896x640xf32>
    %2 = tpu.matmul %0, %1, %cst {dimension_numbers = #tpu.dot_dimension_numbers<[1], [0], [0], [1], [0, 0, 1, 1], [], []>} : vector<896x150xbf16>, vector<150x640xbf16>, vector<896x640xf32> -> vector<896x640xf32>
    %3 = vector.extract_strided_slice %2 {offsets = [0, 0], sizes = [896, 128], strides = [1, 1]} : vector<896x640xf32> to vector<896x128xf32>
    %4 = vector.extract_strided_slice %2 {offsets = [0, 128], sizes = [896, 128], strides = [1, 1]} : vector<896x640xf32> to vector<896x128xf32>
    %c895_i32 = arith.constant 895 : i32
    %5 = tpu.dynamic_rotate %4 by %c895_i32 dim 0 : vector<896x128xf32>, i32 -> vector<896x128xf32>
    %6 = arith.addf %3, %5 : vector<896x128xf32>
    %7 = vector.extract_strided_slice %2 {offsets = [0, 256], sizes = [896, 128], strides = [1, 1]} : vector<896x640xf32> to vector<896x128xf32>
    %c894_i32 = arith.constant 894 : i32
    %8 = tpu.dynamic_rotate %7 by %c894_i32 dim 0 : vector<896x128xf32>, i32 -> vector<896x128xf32>
    %9 = arith.addf %6, %8 : vector<896x128xf32>
    %10 = vector.extract_strided_slice %2 {offsets = [0, 384], sizes = [896, 128], strides = [1, 1]} : vector<896x640xf32> to vector<896x128xf32>
    %c893_i32 = arith.constant 893 : i32
    %11 = tpu.dynamic_rotate %10 by %c893_i32 dim 0 : vector<896x128xf32>, i32 -> vector<896x128xf32>
    %12 = arith.addf %9, %11 : vector<896x128xf32>
    %13 = vector.extract_strided_slice %2 {offsets = [0, 512], sizes = [896, 128], strides = [1, 1]} : vector<896x640xf32> to vector<896x128xf32>
    %c892_i32 = arith.constant 892 : i32
    %14 = tpu.dynamic_rotate %13 by %c892_i32 dim 0 : vector<896x128xf32>, i32 -> vector<896x128xf32>
    %15 = arith.addf %12, %14 : vector<896x128xf32>
    %16 = vector.extract_strided_slice %15 {offsets = [0, 0], sizes = [96, 128], strides = [1, 1]} : vector<896x128xf32> to vector<96x128xf32>
    %cst_3 = arith.constant dense<0xFF800000> : vector<128xf32>
    %17 = vector.multi_reduction <maximumf>, %16, %cst_3 [0] : vector<96x128xf32> to vector<128xf32>
    %18 = vector.shape_cast %17 : vector<128xf32> to vector<1x128xf32>
    %19 = vector.extract_strided_slice %15 {offsets = [112, 0], sizes = [96, 128], strides = [1, 1]} : vector<896x128xf32> to vector<96x128xf32>
    %cst_4 = arith.constant dense<0xFF800000> : vector<128xf32>
    %20 = vector.multi_reduction <maximumf>, %19, %cst_4 [0] : vector<96x128xf32> to vector<128xf32>
    %21 = vector.shape_cast %20 : vector<128xf32> to vector<1x128xf32>
    %22 = vector.extract_strided_slice %15 {offsets = [224, 0], sizes = [96, 128], strides = [1, 1]} : vector<896x128xf32> to vector<96x128xf32>
    %cst_5 = arith.constant dense<0xFF800000> : vector<128xf32>
    %23 = vector.multi_reduction <maximumf>, %22, %cst_5 [0] : vector<96x128xf32> to vector<128xf32>
    %24 = vector.shape_cast %23 : vector<128xf32> to vector<1x128xf32>
    %25 = vector.extract_strided_slice %15 {offsets = [336, 0], sizes = [96, 128], strides = [1, 1]} : vector<896x128xf32> to vector<96x128xf32>
    %cst_6 = arith.constant dense<0xFF800000> : vector<128xf32>
    %26 = vector.multi_reduction <maximumf>, %25, %cst_6 [0] : vector<96x128xf32> to vector<128xf32>
    %27 = vector.shape_cast %26 : vector<128xf32> to vector<1x128xf32>
    %28 = vector.extract_strided_slice %15 {offsets = [448, 0], sizes = [96, 128], strides = [1, 1]} : vector<896x128xf32> to vector<96x128xf32>
    %cst_7 = arith.constant dense<0xFF800000> : vector<128xf32>
    %29 = vector.multi_reduction <maximumf>, %28, %cst_7 [0] : vector<96x128xf32> to vector<128xf32>
    %30 = vector.shape_cast %29 : vector<128xf32> to vector<1x128xf32>
    %31 = vector.extract_strided_slice %15 {offsets = [560, 0], sizes = [96, 128], strides = [1, 1]} : vector<896x128xf32> to vector<96x128xf32>
    %cst_8 = arith.constant dense<0xFF800000> : vector<128xf32>
    %32 = vector.multi_reduction <maximumf>, %31, %cst_8 [0] : vector<96x128xf32> to vector<128xf32>
    %33 = vector.shape_cast %32 : vector<128xf32> to vector<1x128xf32>
    %34 = vector.extract_strided_slice %15 {offsets = [672, 0], sizes = [96, 128], strides = [1, 1]} : vector<896x128xf32> to vector<96x128xf32>
    %cst_9 = arith.constant dense<0xFF800000> : vector<128xf32>
    %35 = vector.multi_reduction <maximumf>, %34, %cst_9 [0] : vector<96x128xf32> to vector<128xf32>
    %36 = vector.shape_cast %35 : vector<128xf32> to vector<1x128xf32>
    %37 = vector.extract_strided_slice %15 {offsets = [784, 0], sizes = [96, 128], strides = [1, 1]} : vector<896x128xf32> to vector<96x128xf32>
    %cst_10 = arith.constant dense<0xFF800000> : vector<128xf32>
    %38 = vector.multi_reduction <maximumf>, %37, %cst_10 [0] : vector<96x128xf32> to vector<128xf32>
    %39 = vector.shape_cast %38 : vector<128xf32> to vector<1x128xf32>
    %40 = tpu.concatenate %18, %21, %24, %27, %30, %33, %36, %39 in 0 : vector<1x128xf32>, vector<1x128xf32>, vector<1x128xf32>, vector<1x128xf32>, vector<1x128xf32>, vector<1x128xf32>, vector<1x128xf32>, vector<1x128xf32> -> vector<8x128xf32>
    %c0_11 = arith.constant 0 : index
    %c0_12 = arith.constant 0 : index
    %41 = vector.load %arg3[%c0_11, %c0_12] : memref<1x128xf32, #tpu.memory_space<vmem>>, vector<1x128xf32>
    %42 = vector.broadcast %41 : vector<1x128xf32> to vector<8x128xf32>
    %43 = arith.addf %40, %42 : vector<8x128xf32>
    %c0_13 = arith.constant 0 : index
    %c0_14 = arith.constant 0 : index
    %c0_15 = arith.constant 0 : index
    %44 = vector.load %arg4[%c0_13, %c0_14, %c0_15] : memref<1x8x128xf32, #tpu.memory_space<vmem>>, vector<1x8x128xf32>
    %45 = vector.shape_cast %44 : vector<1x8x128xf32> to vector<8x128xf32>
    %46 = vector.shape_cast %43 : vector<8x128xf32> to vector<1x8x128xf32>
    tpu.vector_store %arg4[%c0_13, %c0_14, %c0_15], %46 {strides = array<i32>} : memref<1x8x128xf32, #tpu.memory_space<vmem>>, vector<1x8x128xf32>,
    return
  }
  func.func @transform_0(%arg0: i32) -> (i32, i32) {
    %c0_i32 = arith.constant 0 : i32
    %c0_i32_0 = arith.constant 0 : i32
    return %arg0, %c0_i32 : i32, i32
  }
  func.func @transform_1(%arg0: i32) -> (i32, i32) {
    %c0_i32 = arith.constant 0 : i32
    %c0_i32_0 = arith.constant 0 : i32
    %c0_i32_1 = arith.constant 0 : i32
    return %c0_i32, %c0_i32_0 : i32, i32
  }
  func.func @transform_2(%arg0: i32) -> (i32, i32) {
    %c0_i32 = arith.constant 0 : i32
    %c0_i32_0 = arith.constant 0 : i32
    %c0_i32_1 = arith.constant 0 : i32
    return %c0_i32, %c0_i32_0 : i32, i32
  }
  func.func @transform_3(%arg0: i32) -> (i32, i32, i32) {
    %c0_i32 = arith.constant 0 : i32
    %c0_i32_0 = arith.constant 0 : i32
    %c0_i32_1 = arith.constant 0 : i32
    return %arg0, %c0_i32, %c0_i32_0 : i32, i32, i32
  }
}

module attributes {stable_mosaic.version = 11 : i64} {
  func.func @_conv_maxpool_kernel(%arg0: i32, %arg1: memref<224x250xbf16, #tpu.memory_space<vmem>>, %arg2: memref<250x640xbf16, #tpu.memory_space<vmem>>, %arg3: memref<1x128xf32, #tpu.memory_space<vmem>>, %arg4: memref<1x2x128xf32, #tpu.memory_space<vmem>>) attributes {dimension_semantics = [#tpu.dimension_semantics<parallel>], iteration_bounds = array<i64: 1>, scalar_prefetch = 0 : i64, scratch_operands = 0 : i64, tpu.core_type = #tpu.core_type<tc>, window_params = [{transform_indices = @transform_0, window_bounds = array<i64: 224, 250>}, {pipeline_mode = #tpu.pipeline_mode<synchronous>, transform_indices = @transform_1, window_bounds = array<i64: 250, 640>}, {pipeline_mode = #tpu.pipeline_mode<synchronous>, transform_indices = @transform_2, window_bounds = array<i64: 1, 128>}, {transform_indices = @transform_3, window_bounds = array<i64: 1, 2, 128>}]} {
    %c0 = arith.constant 0 : index
    %c0_0 = arith.constant 0 : index
    %0 = vector.load %arg1[%c0, %c0_0] : memref<224x250xbf16, #tpu.memory_space<vmem>>, vector<224x250xbf16>
    %c0_1 = arith.constant 0 : index
    %c0_2 = arith.constant 0 : index
    %1 = vector.load %arg2[%c0_1, %c0_2] : memref<250x640xbf16, #tpu.memory_space<vmem>>, vector<250x640xbf16>
    %cst = arith.constant dense<0.000000e+00> : vector<224x640xf32>
    %2 = tpu.matmul %0, %1, %cst {dimension_numbers = #tpu.dot_dimension_numbers<[1], [0], [0], [1], [0, 0, 1, 1], [], []>} : vector<224x250xbf16>, vector<250x640xbf16>, vector<224x640xf32> -> vector<224x640xf32>
    %3 = vector.extract_strided_slice %2 {offsets = [0, 0], sizes = [224, 128], strides = [1, 1]} : vector<224x640xf32> to vector<224x128xf32>
    %4 = vector.extract_strided_slice %2 {offsets = [0, 128], sizes = [224, 128], strides = [1, 1]} : vector<224x640xf32> to vector<224x128xf32>
    %c223_i32 = arith.constant 223 : i32
    %5 = tpu.dynamic_rotate %4 by %c223_i32 dim 0 : vector<224x128xf32>, i32 -> vector<224x128xf32>
    %6 = arith.addf %3, %5 : vector<224x128xf32>
    %7 = vector.extract_strided_slice %2 {offsets = [0, 256], sizes = [224, 128], strides = [1, 1]} : vector<224x640xf32> to vector<224x128xf32>
    %c222_i32 = arith.constant 222 : i32
    %8 = tpu.dynamic_rotate %7 by %c222_i32 dim 0 : vector<224x128xf32>, i32 -> vector<224x128xf32>
    %9 = arith.addf %6, %8 : vector<224x128xf32>
    %10 = vector.extract_strided_slice %2 {offsets = [0, 384], sizes = [224, 128], strides = [1, 1]} : vector<224x640xf32> to vector<224x128xf32>
    %c221_i32 = arith.constant 221 : i32
    %11 = tpu.dynamic_rotate %10 by %c221_i32 dim 0 : vector<224x128xf32>, i32 -> vector<224x128xf32>
    %12 = arith.addf %9, %11 : vector<224x128xf32>
    %13 = vector.extract_strided_slice %2 {offsets = [0, 512], sizes = [224, 128], strides = [1, 1]} : vector<224x640xf32> to vector<224x128xf32>
    %c220_i32 = arith.constant 220 : i32
    %14 = tpu.dynamic_rotate %13 by %c220_i32 dim 0 : vector<224x128xf32>, i32 -> vector<224x128xf32>
    %15 = arith.addf %12, %14 : vector<224x128xf32>
    %16 = vector.extract_strided_slice %15 {offsets = [0, 0], sizes = [96, 128], strides = [1, 1]} : vector<224x128xf32> to vector<96x128xf32>
    %cst_3 = arith.constant dense<0xFF800000> : vector<128xf32>
    %17 = vector.multi_reduction <maximumf>, %16, %cst_3 [0] : vector<96x128xf32> to vector<128xf32>
    %18 = vector.shape_cast %17 : vector<128xf32> to vector<1x128xf32>
    %19 = vector.extract_strided_slice %15 {offsets = [112, 0], sizes = [96, 128], strides = [1, 1]} : vector<224x128xf32> to vector<96x128xf32>
    %cst_4 = arith.constant dense<0xFF800000> : vector<128xf32>
    %20 = vector.multi_reduction <maximumf>, %19, %cst_4 [0] : vector<96x128xf32> to vector<128xf32>
    %21 = vector.shape_cast %20 : vector<128xf32> to vector<1x128xf32>
    %22 = tpu.concatenate %18, %21 in 0 : vector<1x128xf32>, vector<1x128xf32> -> vector<2x128xf32>
    %c0_5 = arith.constant 0 : index
    %c0_6 = arith.constant 0 : index
    %23 = vector.load %arg3[%c0_5, %c0_6] : memref<1x128xf32, #tpu.memory_space<vmem>>, vector<1x128xf32>
    %24 = vector.broadcast %23 : vector<1x128xf32> to vector<2x128xf32>
    %25 = arith.addf %22, %24 : vector<2x128xf32>
    %c0_7 = arith.constant 0 : index
    %c0_8 = arith.constant 0 : index
    %c0_9 = arith.constant 0 : index
    %26 = vector.load %arg4[%c0_7, %c0_8, %c0_9] : memref<1x2x128xf32, #tpu.memory_space<vmem>>, vector<1x2x128xf32>
    %27 = vector.shape_cast %26 : vector<1x2x128xf32> to vector<2x128xf32>
    %28 = vector.shape_cast %25 : vector<2x128xf32> to vector<1x2x128xf32>
    tpu.vector_store %arg4[%c0_7, %c0_8, %c0_9], %28 {strides = array<i32>} : memref<1x2x128xf32, #tpu.memory_space<vmem>>, vector<1x2x128xf32>,
    return
  }
  func.func @transform_0(%arg0: i32) -> (i32, i32) {
    %c0_i32 = arith.constant 0 : i32
    %c0_i32_0 = arith.constant 0 : i32
    return %arg0, %c0_i32 : i32, i32
  }
  func.func @transform_1(%arg0: i32) -> (i32, i32) {
    %c0_i32 = arith.constant 0 : i32
    %c0_i32_0 = arith.constant 0 : i32
    %c0_i32_1 = arith.constant 0 : i32
    return %c0_i32, %c0_i32_0 : i32, i32
  }
  func.func @transform_2(%arg0: i32) -> (i32, i32) {
    %c0_i32 = arith.constant 0 : i32
    %c0_i32_0 = arith.constant 0 : i32
    %c0_i32_1 = arith.constant 0 : i32
    return %c0_i32, %c0_i32_0 : i32, i32
  }
  func.func @transform_3(%arg0: i32) -> (i32, i32, i32) {
    %c0_i32 = arith.constant 0 : i32
    %c0_i32_0 = arith.constant 0 : i32
    %c0_i32_1 = arith.constant 0 : i32
    return %arg0, %c0_i32, %c0_i32_0 : i32, i32, i32
  }
}

module attributes {stable_mosaic.version = 11 : i64} {
  func.func @_lstm_head_kernel(%arg0: i32, %arg1: memref<8x300xf32, #tpu.memory_space<vmem>>, %arg2: memref<8x1xf32, #tpu.memory_space<vmem>>, %arg3: memref<300x64xf32, #tpu.memory_space<vmem>>, %arg4: memref<1x64xf32, #tpu.memory_space<vmem>>, %arg5: memref<64x256xf32, #tpu.memory_space<vmem>>, %arg6: memref<1x256xf32, #tpu.memory_space<vmem>>, %arg7: memref<32x128xf32, #tpu.memory_space<vmem>>, %arg8: memref<1x128xf32, #tpu.memory_space<vmem>>, %arg9: memref<32x128xf32, #tpu.memory_space<vmem>>, %arg10: memref<1x128xf32, #tpu.memory_space<vmem>>, %arg11: memref<64x128xf32, #tpu.memory_space<vmem>>, %arg12: memref<1x128xf32, #tpu.memory_space<vmem>>, %arg13: memref<128x128xf32, #tpu.memory_space<vmem>>, %arg14: memref<1x128xf32, #tpu.memory_space<vmem>>, %arg15: memref<8x128xf32, #tpu.memory_space<vmem>>) attributes {dimension_semantics = [#tpu.dimension_semantics<arbitrary>], iteration_bounds = array<i64: 1>, scalar_prefetch = 0 : i64, scratch_operands = 0 : i64, tpu.core_type = #tpu.core_type<tc>, window_params = [{pipeline_mode = #tpu.pipeline_mode<synchronous>, transform_indices = @transform_0, window_bounds = array<i64: 8, 300>}, {pipeline_mode = #tpu.pipeline_mode<synchronous>, transform_indices = @transform_1, window_bounds = array<i64: 8, 1>}, {pipeline_mode = #tpu.pipeline_mode<synchronous>, transform_indices = @transform_2, window_bounds = array<i64: 300, 64>}, {pipeline_mode = #tpu.pipeline_mode<synchronous>, transform_indices = @transform_3, window_bounds = array<i64: 1, 64>}, {pipeline_mode = #tpu.pipeline_mode<synchronous>, transform_indices = @transform_4, window_bounds = array<i64: 64, 256>}, {pipeline_mode = #tpu.pipeline_mode<synchronous>, transform_indices = @transform_5, window_bounds = array<i64: 1, 256>}, {pipeline_mode = #tpu.pipeline_mode<synchronous>, transform_indices = @transform_6, window_bounds = array<i64: 32, 128>}, {pipeline_mode = #tpu.pipeline_mode<synchronous>, transform_indices = @transform_7, window_bounds = array<i64: 1, 128>}, {pipeline_mode = #tpu.pipeline_mode<synchronous>, transform_indices = @transform_8, window_bounds = array<i64: 32, 128>}, {pipeline_mode = #tpu.pipeline_mode<synchronous>, transform_indices = @transform_9, window_bounds = array<i64: 1, 128>}, {pipeline_mode = #tpu.pipeline_mode<synchronous>, transform_indices = @transform_10, window_bounds = array<i64: 64, 128>}, {pipeline_mode = #tpu.pipeline_mode<synchronous>, transform_indices = @transform_11, window_bounds = array<i64: 1, 128>}, {pipeline_mode = #tpu.pipeline_mode<synchronous>, transform_indices = @transform_12, window_bounds = array<i64: 128, 128>}, {pipeline_mode = #tpu.pipeline_mode<synchronous>, transform_indices = @transform_13, window_bounds = array<i64: 1, 128>}, {pipeline_mode = #tpu.pipeline_mode<synchronous>, transform_indices = @transform_14, window_bounds = array<i64: 8, 128>}]} {
    %c0 = arith.constant 0 : index
    %c0_0 = arith.constant 0 : index
    %0 = vector.load %arg1[%c0, %c0_0] : memref<8x300xf32, #tpu.memory_space<vmem>>, vector<8x300xf32>
    %c0_1 = arith.constant 0 : index
    %c0_2 = arith.constant 0 : index
    %1 = vector.load %arg3[%c0_1, %c0_2] : memref<300x64xf32, #tpu.memory_space<vmem>>, vector<300x64xf32>
    %cst = arith.constant dense<0.000000e+00> : vector<8x64xf32>
    %2 = tpu.matmul %0, %1, %cst {dimension_numbers = #tpu.dot_dimension_numbers<[1], [0], [0], [1], [0, 0, 1, 1], [], []>} : vector<8x300xf32>, vector<300x64xf32>, vector<8x64xf32> -> vector<8x64xf32>
    %c0_3 = arith.constant 0 : index
    %c0_4 = arith.constant 0 : index
    %3 = vector.load %arg4[%c0_3, %c0_4] : memref<1x64xf32, #tpu.memory_space<vmem>>, vector<1x64xf32>
    %4 = vector.broadcast %3 : vector<1x64xf32> to vector<8x64xf32>
    %5 = arith.addf %2, %4 : vector<8x64xf32>
    %c0_5 = arith.constant 0 : index
    %c0_6 = arith.constant 0 : index
    %6 = vector.load %arg5[%c0_5, %c0_6] : memref<64x256xf32, #tpu.memory_space<vmem>>, vector<64x256xf32>
    %cst_7 = arith.constant dense<0.000000e+00> : vector<8x256xf32>
    %7 = tpu.matmul %5, %6, %cst_7 {dimension_numbers = #tpu.dot_dimension_numbers<[1], [0], [0], [1], [0, 0, 1, 1], [], []>} : vector<8x64xf32>, vector<64x256xf32>, vector<8x256xf32> -> vector<8x256xf32>
    %c0_8 = arith.constant 0 : index
    %c0_9 = arith.constant 0 : index
    %8 = vector.load %arg6[%c0_8, %c0_9] : memref<1x256xf32, #tpu.memory_space<vmem>>, vector<1x256xf32>
    %9 = vector.broadcast %8 : vector<1x256xf32> to vector<8x256xf32>
    %10 = arith.addf %7, %9 : vector<8x256xf32>
    %11 = vector.extract_strided_slice %10 {offsets = [0, 0], sizes = [8, 128], strides = [1, 1]} : vector<8x256xf32> to vector<8x128xf32>
    %12 = vector.extract_strided_slice %10 {offsets = [0, 128], sizes = [8, 128], strides = [1, 1]} : vector<8x256xf32> to vector<8x128xf32>
    %cst_10 = arith.constant 0.000000e+00 : f32
    %13 = vector.broadcast %cst_10 : f32 to vector<2x32xf32>
    %c0_11 = arith.constant 0 : index
    %c0_12 = arith.constant 0 : index
    %14 = vector.load %arg2[%c0_11, %c0_12] : memref<8x1xf32, #tpu.memory_space<vmem>>, vector<2x1xf32>
    %15 = vector.extract_strided_slice %11 {offsets = [0, 0], sizes = [2, 128], strides = [1, 1]} : vector<8x128xf32> to vector<2x128xf32>
    %c0_13 = arith.constant 0 : index
    %c0_14 = arith.constant 0 : index
    %16 = vector.load %arg7[%c0_13, %c0_14] : memref<32x128xf32, #tpu.memory_space<vmem>>, vector<32x128xf32>
    %cst_15 = arith.constant dense<0.000000e+00> : vector<2x128xf32>
    %17 = tpu.matmul %13, %16, %cst_15 {dimension_numbers = #tpu.dot_dimension_numbers<[1], [0], [0], [1], [0, 0, 1, 1], [], []>} : vector<2x32xf32>, vector<32x128xf32>, vector<2x128xf32> -> vector<2x128xf32>
    %18 = arith.addf %15, %17 : vector<2x128xf32>
    %c0_16 = arith.constant 0 : index
    %c0_17 = arith.constant 0 : index
    %19 = vector.load %arg8[%c0_16, %c0_17] : memref<1x128xf32, #tpu.memory_space<vmem>>, vector<1x128xf32>
    %20 = vector.broadcast %19 : vector<1x128xf32> to vector<2x128xf32>
    %21 = arith.addf %18, %20 : vector<2x128xf32>
    %22 = vector.extract_strided_slice %21 {offsets = [0, 0], sizes = [2, 32], strides = [1, 1]} : vector<2x128xf32> to vector<2x32xf32>
    %cst_18 = arith.constant 0.000000e+00 : f32
    %23 = vector.broadcast %cst_18 : f32 to vector<2x32xf32>
    %24 = arith.subf %23, %22 : vector<2x32xf32>
    %25 = math.exp %24 : vector<2x32xf32>
    %cst_19 = arith.constant 1.000000e+00 : f32
    %26 = vector.broadcast %cst_19 : f32 to vector<2x32xf32>
    %27 = arith.addf %26, %25 : vector<2x32xf32>
    %cst_20 = arith.constant 1.000000e+00 : f32
    %28 = vector.broadcast %cst_20 : f32 to vector<2x32xf32>
    %29 = arith.divf %28, %27 : vector<2x32xf32>
    %30 = vector.extract_strided_slice %21 {offsets = [0, 32], sizes = [2, 32], strides = [1, 1]} : vector<2x128xf32> to vector<2x32xf32>
    %cst_21 = arith.constant 0.000000e+00 : f32
    %31 = vector.broadcast %cst_21 : f32 to vector<2x32xf32>
    %32 = arith.subf %31, %30 : vector<2x32xf32>
    %33 = math.exp %32 : vector<2x32xf32>
    %cst_22 = arith.constant 1.000000e+00 : f32
    %34 = vector.broadcast %cst_22 : f32 to vector<2x32xf32>
    %35 = arith.addf %34, %33 : vector<2x32xf32>
    %cst_23 = arith.constant 1.000000e+00 : f32
    %36 = vector.broadcast %cst_23 : f32 to vector<2x32xf32>
    %37 = arith.divf %36, %35 : vector<2x32xf32>
    %38 = vector.extract_strided_slice %21 {offsets = [0, 64], sizes = [2, 32], strides = [1, 1]} : vector<2x128xf32> to vector<2x32xf32>
    %39 = math.tanh %38 : vector<2x32xf32>
    %40 = vector.extract_strided_slice %21 {offsets = [0, 96], sizes = [2, 32], strides = [1, 1]} : vector<2x128xf32> to vector<2x32xf32>
    %cst_24 = arith.constant 0.000000e+00 : f32
    %41 = vector.broadcast %cst_24 : f32 to vector<2x32xf32>
    %42 = arith.subf %41, %40 : vector<2x32xf32>
    %43 = math.exp %42 : vector<2x32xf32>
    %cst_25 = arith.constant 1.000000e+00 : f32
    %44 = vector.broadcast %cst_25 : f32 to vector<2x32xf32>
    %45 = arith.addf %44, %43 : vector<2x32xf32>
    %cst_26 = arith.constant 1.000000e+00 : f32
    %46 = vector.broadcast %cst_26 : f32 to vector<2x32xf32>
    %47 = arith.divf %46, %45 : vector<2x32xf32>
    %48 = arith.mulf %37, %13 : vector<2x32xf32>
    %49 = arith.mulf %29, %39 : vector<2x32xf32>
    %50 = arith.addf %48, %49 : vector<2x32xf32>
    %51 = math.tanh %50 : vector<2x32xf32>
    %52 = arith.mulf %47, %51 : vector<2x32xf32>
    %53 = vector.broadcast %14 : vector<2x1xf32> to vector<2x32xf32>
    %54 = arith.mulf %53, %52 : vector<2x32xf32>
    %cst_27 = arith.constant 1.000000e+00 : f32
    %55 = vector.broadcast %cst_27 : f32 to vector<2x1xf32>
    %56 = arith.subf %55, %14 : vector<2x1xf32>
    %57 = vector.broadcast %56 : vector<2x1xf32> to vector<2x32xf32>
    %58 = arith.mulf %57, %13 : vector<2x32xf32>
    %59 = arith.addf %54, %58 : vector<2x32xf32>
    %60 = vector.broadcast %14 : vector<2x1xf32> to vector<2x32xf32>
    %61 = arith.mulf %60, %50 : vector<2x32xf32>
    %cst_28 = arith.constant 1.000000e+00 : f32
    %62 = vector.broadcast %cst_28 : f32 to vector<2x1xf32>
    %63 = arith.subf %62, %14 : vector<2x1xf32>
    %64 = vector.broadcast %63 : vector<2x1xf32> to vector<2x32xf32>
    %65 = arith.mulf %64, %13 : vector<2x32xf32>
    %66 = arith.addf %61, %65 : vector<2x32xf32>
    %67 = vector.broadcast %14 : vector<2x1xf32> to vector<2x32xf32>
    %68 = arith.mulf %67, %52 : vector<2x32xf32>
    %c2 = arith.constant 2 : index
    %c0_29 = arith.constant 0 : index
    %69 = vector.load %arg2[%c2, %c0_29] : memref<8x1xf32, #tpu.memory_space<vmem>>, vector<2x1xf32>
    %70 = vector.extract_strided_slice %11 {offsets = [2, 0], sizes = [2, 128], strides = [1, 1]} : vector<8x128xf32> to vector<2x128xf32>
    %c0_30 = arith.constant 0 : index
    %c0_31 = arith.constant 0 : index
    %71 = vector.load %arg7[%c0_30, %c0_31] : memref<32x128xf32, #tpu.memory_space<vmem>>, vector<32x128xf32>
    %cst_32 = arith.constant dense<0.000000e+00> : vector<2x128xf32>
    %72 = tpu.matmul %59, %71, %cst_32 {dimension_numbers = #tpu.dot_dimension_numbers<[1], [0], [0], [1], [0, 0, 1, 1], [], []>} : vector<2x32xf32>, vector<32x128xf32>, vector<2x128xf32> -> vector<2x128xf32>
    %73 = arith.addf %70, %72 : vector<2x128xf32>
    %c0_33 = arith.constant 0 : index
    %c0_34 = arith.constant 0 : index
    %74 = vector.load %arg8[%c0_33, %c0_34] : memref<1x128xf32, #tpu.memory_space<vmem>>, vector<1x128xf32>
    %75 = vector.broadcast %74 : vector<1x128xf32> to vector<2x128xf32>
    %76 = arith.addf %73, %75 : vector<2x128xf32>
    %77 = vector.extract_strided_slice %76 {offsets = [0, 0], sizes = [2, 32], strides = [1, 1]} : vector<2x128xf32> to vector<2x32xf32>
    %cst_35 = arith.constant 0.000000e+00 : f32
    %78 = vector.broadcast %cst_35 : f32 to vector<2x32xf32>
    %79 = arith.subf %78, %77 : vector<2x32xf32>
    %80 = math.exp %79 : vector<2x32xf32>
    %cst_36 = arith.constant 1.000000e+00 : f32
    %81 = vector.broadcast %cst_36 : f32 to vector<2x32xf32>
    %82 = arith.addf %81, %80 : vector<2x32xf32>
    %cst_37 = arith.constant 1.000000e+00 : f32
    %83 = vector.broadcast %cst_37 : f32 to vector<2x32xf32>
    %84 = arith.divf %83, %82 : vector<2x32xf32>
    %85 = vector.extract_strided_slice %76 {offsets = [0, 32], sizes = [2, 32], strides = [1, 1]} : vector<2x128xf32> to vector<2x32xf32>
    %cst_38 = arith.constant 0.000000e+00 : f32
    %86 = vector.broadcast %cst_38 : f32 to vector<2x32xf32>
    %87 = arith.subf %86, %85 : vector<2x32xf32>
    %88 = math.exp %87 : vector<2x32xf32>
    %cst_39 = arith.constant 1.000000e+00 : f32
    %89 = vector.broadcast %cst_39 : f32 to vector<2x32xf32>
    %90 = arith.addf %89, %88 : vector<2x32xf32>
    %cst_40 = arith.constant 1.000000e+00 : f32
    %91 = vector.broadcast %cst_40 : f32 to vector<2x32xf32>
    %92 = arith.divf %91, %90 : vector<2x32xf32>
    %93 = vector.extract_strided_slice %76 {offsets = [0, 64], sizes = [2, 32], strides = [1, 1]} : vector<2x128xf32> to vector<2x32xf32>
    %94 = math.tanh %93 : vector<2x32xf32>
    %95 = vector.extract_strided_slice %76 {offsets = [0, 96], sizes = [2, 32], strides = [1, 1]} : vector<2x128xf32> to vector<2x32xf32>
    %cst_41 = arith.constant 0.000000e+00 : f32
    %96 = vector.broadcast %cst_41 : f32 to vector<2x32xf32>
    %97 = arith.subf %96, %95 : vector<2x32xf32>
    %98 = math.exp %97 : vector<2x32xf32>
    %cst_42 = arith.constant 1.000000e+00 : f32
    %99 = vector.broadcast %cst_42 : f32 to vector<2x32xf32>
    %100 = arith.addf %99, %98 : vector<2x32xf32>
    %cst_43 = arith.constant 1.000000e+00 : f32
    %101 = vector.broadcast %cst_43 : f32 to vector<2x32xf32>
    %102 = arith.divf %101, %100 : vector<2x32xf32>
    %103 = arith.mulf %92, %66 : vector<2x32xf32>
    %104 = arith.mulf %84, %94 : vector<2x32xf32>
    %105 = arith.addf %103, %104 : vector<2x32xf32>
    %106 = math.tanh %105 : vector<2x32xf32>
    %107 = arith.mulf %102, %106 : vector<2x32xf32>
    %108 = vector.broadcast %69 : vector<2x1xf32> to vector<2x32xf32>
    %109 = arith.mulf %108, %107 : vector<2x32xf32>
    %cst_44 = arith.constant 1.000000e+00 : f32
    %110 = vector.broadcast %cst_44 : f32 to vector<2x1xf32>
    %111 = arith.subf %110, %69 : vector<2x1xf32>
    %112 = vector.broadcast %111 : vector<2x1xf32> to vector<2x32xf32>
    %113 = arith.mulf %112, %59 : vector<2x32xf32>
    %114 = arith.addf %109, %113 : vector<2x32xf32>
    %115 = vector.broadcast %69 : vector<2x1xf32> to vector<2x32xf32>
    %116 = arith.mulf %115, %105 : vector<2x32xf32>
    %cst_45 = arith.constant 1.000000e+00 : f32
    %117 = vector.broadcast %cst_45 : f32 to vector<2x1xf32>
    %118 = arith.subf %117, %69 : vector<2x1xf32>
    %119 = vector.broadcast %118 : vector<2x1xf32> to vector<2x32xf32>
    %120 = arith.mulf %119, %66 : vector<2x32xf32>
    %121 = arith.addf %116, %120 : vector<2x32xf32>
    %122 = vector.broadcast %69 : vector<2x1xf32> to vector<2x32xf32>
    %123 = arith.mulf %122, %107 : vector<2x32xf32>
    %c4 = arith.constant 4 : index
    %c0_46 = arith.constant 0 : index
    %124 = vector.load %arg2[%c4, %c0_46] : memref<8x1xf32, #tpu.memory_space<vmem>>, vector<2x1xf32>
    %125 = vector.extract_strided_slice %11 {offsets = [4, 0], sizes = [2, 128], strides = [1, 1]} : vector<8x128xf32> to vector<2x128xf32>
    %c0_47 = arith.constant 0 : index
    %c0_48 = arith.constant 0 : index
    %126 = vector.load %arg7[%c0_47, %c0_48] : memref<32x128xf32, #tpu.memory_space<vmem>>, vector<32x128xf32>
    %cst_49 = arith.constant dense<0.000000e+00> : vector<2x128xf32>
    %127 = tpu.matmul %114, %126, %cst_49 {dimension_numbers = #tpu.dot_dimension_numbers<[1], [0], [0], [1], [0, 0, 1, 1], [], []>} : vector<2x32xf32>, vector<32x128xf32>, vector<2x128xf32> -> vector<2x128xf32>
    %128 = arith.addf %125, %127 : vector<2x128xf32>
    %c0_50 = arith.constant 0 : index
    %c0_51 = arith.constant 0 : index
    %129 = vector.load %arg8[%c0_50, %c0_51] : memref<1x128xf32, #tpu.memory_space<vmem>>, vector<1x128xf32>
    %130 = vector.broadcast %129 : vector<1x128xf32> to vector<2x128xf32>
    %131 = arith.addf %128, %130 : vector<2x128xf32>
    %132 = vector.extract_strided_slice %131 {offsets = [0, 0], sizes = [2, 32], strides = [1, 1]} : vector<2x128xf32> to vector<2x32xf32>
    %cst_52 = arith.constant 0.000000e+00 : f32
    %133 = vector.broadcast %cst_52 : f32 to vector<2x32xf32>
    %134 = arith.subf %133, %132 : vector<2x32xf32>
    %135 = math.exp %134 : vector<2x32xf32>
    %cst_53 = arith.constant 1.000000e+00 : f32
    %136 = vector.broadcast %cst_53 : f32 to vector<2x32xf32>
    %137 = arith.addf %136, %135 : vector<2x32xf32>
    %cst_54 = arith.constant 1.000000e+00 : f32
    %138 = vector.broadcast %cst_54 : f32 to vector<2x32xf32>
    %139 = arith.divf %138, %137 : vector<2x32xf32>
    %140 = vector.extract_strided_slice %131 {offsets = [0, 32], sizes = [2, 32], strides = [1, 1]} : vector<2x128xf32> to vector<2x32xf32>
    %cst_55 = arith.constant 0.000000e+00 : f32
    %141 = vector.broadcast %cst_55 : f32 to vector<2x32xf32>
    %142 = arith.subf %141, %140 : vector<2x32xf32>
    %143 = math.exp %142 : vector<2x32xf32>
    %cst_56 = arith.constant 1.000000e+00 : f32
    %144 = vector.broadcast %cst_56 : f32 to vector<2x32xf32>
    %145 = arith.addf %144, %143 : vector<2x32xf32>
    %cst_57 = arith.constant 1.000000e+00 : f32
    %146 = vector.broadcast %cst_57 : f32 to vector<2x32xf32>
    %147 = arith.divf %146, %145 : vector<2x32xf32>
    %148 = vector.extract_strided_slice %131 {offsets = [0, 64], sizes = [2, 32], strides = [1, 1]} : vector<2x128xf32> to vector<2x32xf32>
    %149 = math.tanh %148 : vector<2x32xf32>
    %150 = vector.extract_strided_slice %131 {offsets = [0, 96], sizes = [2, 32], strides = [1, 1]} : vector<2x128xf32> to vector<2x32xf32>
    %cst_58 = arith.constant 0.000000e+00 : f32
    %151 = vector.broadcast %cst_58 : f32 to vector<2x32xf32>
    %152 = arith.subf %151, %150 : vector<2x32xf32>
    %153 = math.exp %152 : vector<2x32xf32>
    %cst_59 = arith.constant 1.000000e+00 : f32
    %154 = vector.broadcast %cst_59 : f32 to vector<2x32xf32>
    %155 = arith.addf %154, %153 : vector<2x32xf32>
    %cst_60 = arith.constant 1.000000e+00 : f32
    %156 = vector.broadcast %cst_60 : f32 to vector<2x32xf32>
    %157 = arith.divf %156, %155 : vector<2x32xf32>
    %158 = arith.mulf %147, %121 : vector<2x32xf32>
    %159 = arith.mulf %139, %149 : vector<2x32xf32>
    %160 = arith.addf %158, %159 : vector<2x32xf32>
    %161 = math.tanh %160 : vector<2x32xf32>
    %162 = arith.mulf %157, %161 : vector<2x32xf32>
    %163 = vector.broadcast %124 : vector<2x1xf32> to vector<2x32xf32>
    %164 = arith.mulf %163, %162 : vector<2x32xf32>
    %cst_61 = arith.constant 1.000000e+00 : f32
    %165 = vector.broadcast %cst_61 : f32 to vector<2x1xf32>
    %166 = arith.subf %165, %124 : vector<2x1xf32>
    %167 = vector.broadcast %166 : vector<2x1xf32> to vector<2x32xf32>
    %168 = arith.mulf %167, %114 : vector<2x32xf32>
    %169 = arith.addf %164, %168 : vector<2x32xf32>
    %170 = vector.broadcast %124 : vector<2x1xf32> to vector<2x32xf32>
    %171 = arith.mulf %170, %160 : vector<2x32xf32>
    %cst_62 = arith.constant 1.000000e+00 : f32
    %172 = vector.broadcast %cst_62 : f32 to vector<2x1xf32>
    %173 = arith.subf %172, %124 : vector<2x1xf32>
    %174 = vector.broadcast %173 : vector<2x1xf32> to vector<2x32xf32>
    %175 = arith.mulf %174, %121 : vector<2x32xf32>
    %176 = arith.addf %171, %175 : vector<2x32xf32>
    %177 = vector.broadcast %124 : vector<2x1xf32> to vector<2x32xf32>
    %178 = arith.mulf %177, %162 : vector<2x32xf32>
    %c6 = arith.constant 6 : index
    %c0_63 = arith.constant 0 : index
    %179 = vector.load %arg2[%c6, %c0_63] : memref<8x1xf32, #tpu.memory_space<vmem>>, vector<2x1xf32>
    %180 = vector.extract_strided_slice %11 {offsets = [6, 0], sizes = [2, 128], strides = [1, 1]} : vector<8x128xf32> to vector<2x128xf32>
    %c0_64 = arith.constant 0 : index
    %c0_65 = arith.constant 0 : index
    %181 = vector.load %arg7[%c0_64, %c0_65] : memref<32x128xf32, #tpu.memory_space<vmem>>, vector<32x128xf32>
    %cst_66 = arith.constant dense<0.000000e+00> : vector<2x128xf32>
    %182 = tpu.matmul %169, %181, %cst_66 {dimension_numbers = #tpu.dot_dimension_numbers<[1], [0], [0], [1], [0, 0, 1, 1], [], []>} : vector<2x32xf32>, vector<32x128xf32>, vector<2x128xf32> -> vector<2x128xf32>
    %183 = arith.addf %180, %182 : vector<2x128xf32>
    %c0_67 = arith.constant 0 : index
    %c0_68 = arith.constant 0 : index
    %184 = vector.load %arg8[%c0_67, %c0_68] : memref<1x128xf32, #tpu.memory_space<vmem>>, vector<1x128xf32>
    %185 = vector.broadcast %184 : vector<1x128xf32> to vector<2x128xf32>
    %186 = arith.addf %183, %185 : vector<2x128xf32>
    %187 = vector.extract_strided_slice %186 {offsets = [0, 0], sizes = [2, 32], strides = [1, 1]} : vector<2x128xf32> to vector<2x32xf32>
    %cst_69 = arith.constant 0.000000e+00 : f32
    %188 = vector.broadcast %cst_69 : f32 to vector<2x32xf32>
    %189 = arith.subf %188, %187 : vector<2x32xf32>
    %190 = math.exp %189 : vector<2x32xf32>
    %cst_70 = arith.constant 1.000000e+00 : f32
    %191 = vector.broadcast %cst_70 : f32 to vector<2x32xf32>
    %192 = arith.addf %191, %190 : vector<2x32xf32>
    %cst_71 = arith.constant 1.000000e+00 : f32
    %193 = vector.broadcast %cst_71 : f32 to vector<2x32xf32>
    %194 = arith.divf %193, %192 : vector<2x32xf32>
    %195 = vector.extract_strided_slice %186 {offsets = [0, 32], sizes = [2, 32], strides = [1, 1]} : vector<2x128xf32> to vector<2x32xf32>
    %cst_72 = arith.constant 0.000000e+00 : f32
    %196 = vector.broadcast %cst_72 : f32 to vector<2x32xf32>
    %197 = arith.subf %196, %195 : vector<2x32xf32>
    %198 = math.exp %197 : vector<2x32xf32>
    %cst_73 = arith.constant 1.000000e+00 : f32
    %199 = vector.broadcast %cst_73 : f32 to vector<2x32xf32>
    %200 = arith.addf %199, %198 : vector<2x32xf32>
    %cst_74 = arith.constant 1.000000e+00 : f32
    %201 = vector.broadcast %cst_74 : f32 to vector<2x32xf32>
    %202 = arith.divf %201, %200 : vector<2x32xf32>
    %203 = vector.extract_strided_slice %186 {offsets = [0, 64], sizes = [2, 32], strides = [1, 1]} : vector<2x128xf32> to vector<2x32xf32>
    %204 = math.tanh %203 : vector<2x32xf32>
    %205 = vector.extract_strided_slice %186 {offsets = [0, 96], sizes = [2, 32], strides = [1, 1]} : vector<2x128xf32> to vector<2x32xf32>
    %cst_75 = arith.constant 0.000000e+00 : f32
    %206 = vector.broadcast %cst_75 : f32 to vector<2x32xf32>
    %207 = arith.subf %206, %205 : vector<2x32xf32>
    %208 = math.exp %207 : vector<2x32xf32>
    %cst_76 = arith.constant 1.000000e+00 : f32
    %209 = vector.broadcast %cst_76 : f32 to vector<2x32xf32>
    %210 = arith.addf %209, %208 : vector<2x32xf32>
    %cst_77 = arith.constant 1.000000e+00 : f32
    %211 = vector.broadcast %cst_77 : f32 to vector<2x32xf32>
    %212 = arith.divf %211, %210 : vector<2x32xf32>
    %213 = arith.mulf %202, %176 : vector<2x32xf32>
    %214 = arith.mulf %194, %204 : vector<2x32xf32>
    %215 = arith.addf %213, %214 : vector<2x32xf32>
    %216 = math.tanh %215 : vector<2x32xf32>
    %217 = arith.mulf %212, %216 : vector<2x32xf32>
    %218 = vector.broadcast %179 : vector<2x1xf32> to vector<2x32xf32>
    %219 = arith.mulf %218, %217 : vector<2x32xf32>
    %c6_78 = arith.constant 6 : index
    %c0_79 = arith.constant 0 : index
    %220 = vector.load %arg2[%c6_78, %c0_79] : memref<8x1xf32, #tpu.memory_space<vmem>>, vector<2x1xf32>
    %221 = vector.extract_strided_slice %12 {offsets = [6, 0], sizes = [2, 128], strides = [1, 1]} : vector<8x128xf32> to vector<2x128xf32>
    %c0_80 = arith.constant 0 : index
    %c0_81 = arith.constant 0 : index
    %222 = vector.load %arg9[%c0_80, %c0_81] : memref<32x128xf32, #tpu.memory_space<vmem>>, vector<32x128xf32>
    %cst_82 = arith.constant dense<0.000000e+00> : vector<2x128xf32>
    %223 = tpu.matmul %13, %222, %cst_82 {dimension_numbers = #tpu.dot_dimension_numbers<[1], [0], [0], [1], [0, 0, 1, 1], [], []>} : vector<2x32xf32>, vector<32x128xf32>, vector<2x128xf32> -> vector<2x128xf32>
    %224 = arith.addf %221, %223 : vector<2x128xf32>
    %c0_83 = arith.constant 0 : index
    %c0_84 = arith.constant 0 : index
    %225 = vector.load %arg10[%c0_83, %c0_84] : memref<1x128xf32, #tpu.memory_space<vmem>>, vector<1x128xf32>
    %226 = vector.broadcast %225 : vector<1x128xf32> to vector<2x128xf32>
    %227 = arith.addf %224, %226 : vector<2x128xf32>
    %228 = vector.extract_strided_slice %227 {offsets = [0, 0], sizes = [2, 32], strides = [1, 1]} : vector<2x128xf32> to vector<2x32xf32>
    %cst_85 = arith.constant 0.000000e+00 : f32
    %229 = vector.broadcast %cst_85 : f32 to vector<2x32xf32>
    %230 = arith.subf %229, %228 : vector<2x32xf32>
    %231 = math.exp %230 : vector<2x32xf32>
    %cst_86 = arith.constant 1.000000e+00 : f32
    %232 = vector.broadcast %cst_86 : f32 to vector<2x32xf32>
    %233 = arith.addf %232, %231 : vector<2x32xf32>
    %cst_87 = arith.constant 1.000000e+00 : f32
    %234 = vector.broadcast %cst_87 : f32 to vector<2x32xf32>
    %235 = arith.divf %234, %233 : vector<2x32xf32>
    %236 = vector.extract_strided_slice %227 {offsets = [0, 32], sizes = [2, 32], strides = [1, 1]} : vector<2x128xf32> to vector<2x32xf32>
    %cst_88 = arith.constant 0.000000e+00 : f32
    %237 = vector.broadcast %cst_88 : f32 to vector<2x32xf32>
    %238 = arith.subf %237, %236 : vector<2x32xf32>
    %239 = math.exp %238 : vector<2x32xf32>
    %cst_89 = arith.constant 1.000000e+00 : f32
    %240 = vector.broadcast %cst_89 : f32 to vector<2x32xf32>
    %241 = arith.addf %240, %239 : vector<2x32xf32>
    %cst_90 = arith.constant 1.000000e+00 : f32
    %242 = vector.broadcast %cst_90 : f32 to vector<2x32xf32>
    %243 = arith.divf %242, %241 : vector<2x32xf32>
    %244 = vector.extract_strided_slice %227 {offsets = [0, 64], sizes = [2, 32], strides = [1, 1]} : vector<2x128xf32> to vector<2x32xf32>
    %245 = math.tanh %244 : vector<2x32xf32>
    %246 = vector.extract_strided_slice %227 {offsets = [0, 96], sizes = [2, 32], strides = [1, 1]} : vector<2x128xf32> to vector<2x32xf32>
    %cst_91 = arith.constant 0.000000e+00 : f32
    %247 = vector.broadcast %cst_91 : f32 to vector<2x32xf32>
    %248 = arith.subf %247, %246 : vector<2x32xf32>
    %249 = math.exp %248 : vector<2x32xf32>
    %cst_92 = arith.constant 1.000000e+00 : f32
    %250 = vector.broadcast %cst_92 : f32 to vector<2x32xf32>
    %251 = arith.addf %250, %249 : vector<2x32xf32>
    %cst_93 = arith.constant 1.000000e+00 : f32
    %252 = vector.broadcast %cst_93 : f32 to vector<2x32xf32>
    %253 = arith.divf %252, %251 : vector<2x32xf32>
    %254 = arith.mulf %243, %13 : vector<2x32xf32>
    %255 = arith.mulf %235, %245 : vector<2x32xf32>
    %256 = arith.addf %254, %255 : vector<2x32xf32>
    %257 = math.tanh %256 : vector<2x32xf32>
    %258 = arith.mulf %253, %257 : vector<2x32xf32>
    %259 = vector.broadcast %220 : vector<2x1xf32> to vector<2x32xf32>
    %260 = arith.mulf %259, %258 : vector<2x32xf32>
    %cst_94 = arith.constant 1.000000e+00 : f32
    %261 = vector.broadcast %cst_94 : f32 to vector<2x1xf32>
    %262 = arith.subf %261, %220 : vector<2x1xf32>
    %263 = vector.broadcast %262 : vector<2x1xf32> to vector<2x32xf32>
    %264 = arith.mulf %263, %13 : vector<2x32xf32>
    %265 = arith.addf %260, %264 : vector<2x32xf32>
    %266 = vector.broadcast %220 : vector<2x1xf32> to vector<2x32xf32>
    %267 = arith.mulf %266, %256 : vector<2x32xf32>
    %cst_95 = arith.constant 1.000000e+00 : f32
    %268 = vector.broadcast %cst_95 : f32 to vector<2x1xf32>
    %269 = arith.subf %268, %220 : vector<2x1xf32>
    %270 = vector.broadcast %269 : vector<2x1xf32> to vector<2x32xf32>
    %271 = arith.mulf %270, %13 : vector<2x32xf32>
    %272 = arith.addf %267, %271 : vector<2x32xf32>
    %273 = vector.broadcast %220 : vector<2x1xf32> to vector<2x32xf32>
    %274 = arith.mulf %273, %258 : vector<2x32xf32>
    %c4_96 = arith.constant 4 : index
    %c0_97 = arith.constant 0 : index
    %275 = vector.load %arg2[%c4_96, %c0_97] : memref<8x1xf32, #tpu.memory_space<vmem>>, vector<2x1xf32>
    %276 = vector.extract_strided_slice %12 {offsets = [4, 0], sizes = [2, 128], strides = [1, 1]} : vector<8x128xf32> to vector<2x128xf32>
    %c0_98 = arith.constant 0 : index
    %c0_99 = arith.constant 0 : index
    %277 = vector.load %arg9[%c0_98, %c0_99] : memref<32x128xf32, #tpu.memory_space<vmem>>, vector<32x128xf32>
    %cst_100 = arith.constant dense<0.000000e+00> : vector<2x128xf32>
    %278 = tpu.matmul %265, %277, %cst_100 {dimension_numbers = #tpu.dot_dimension_numbers<[1], [0], [0], [1], [0, 0, 1, 1], [], []>} : vector<2x32xf32>, vector<32x128xf32>, vector<2x128xf32> -> vector<2x128xf32>
    %279 = arith.addf %276, %278 : vector<2x128xf32>
    %c0_101 = arith.constant 0 : index
    %c0_102 = arith.constant 0 : index
    %280 = vector.load %arg10[%c0_101, %c0_102] : memref<1x128xf32, #tpu.memory_space<vmem>>, vector<1x128xf32>
    %281 = vector.broadcast %280 : vector<1x128xf32> to vector<2x128xf32>
    %282 = arith.addf %279, %281 : vector<2x128xf32>
    %283 = vector.extract_strided_slice %282 {offsets = [0, 0], sizes = [2, 32], strides = [1, 1]} : vector<2x128xf32> to vector<2x32xf32>
    %cst_103 = arith.constant 0.000000e+00 : f32
    %284 = vector.broadcast %cst_103 : f32 to vector<2x32xf32>
    %285 = arith.subf %284, %283 : vector<2x32xf32>
    %286 = math.exp %285 : vector<2x32xf32>
    %cst_104 = arith.constant 1.000000e+00 : f32
    %287 = vector.broadcast %cst_104 : f32 to vector<2x32xf32>
    %288 = arith.addf %287, %286 : vector<2x32xf32>
    %cst_105 = arith.constant 1.000000e+00 : f32
    %289 = vector.broadcast %cst_105 : f32 to vector<2x32xf32>
    %290 = arith.divf %289, %288 : vector<2x32xf32>
    %291 = vector.extract_strided_slice %282 {offsets = [0, 32], sizes = [2, 32], strides = [1, 1]} : vector<2x128xf32> to vector<2x32xf32>
    %cst_106 = arith.constant 0.000000e+00 : f32
    %292 = vector.broadcast %cst_106 : f32 to vector<2x32xf32>
    %293 = arith.subf %292, %291 : vector<2x32xf32>
    %294 = math.exp %293 : vector<2x32xf32>
    %cst_107 = arith.constant 1.000000e+00 : f32
    %295 = vector.broadcast %cst_107 : f32 to vector<2x32xf32>
    %296 = arith.addf %295, %294 : vector<2x32xf32>
    %cst_108 = arith.constant 1.000000e+00 : f32
    %297 = vector.broadcast %cst_108 : f32 to vector<2x32xf32>
    %298 = arith.divf %297, %296 : vector<2x32xf32>
    %299 = vector.extract_strided_slice %282 {offsets = [0, 64], sizes = [2, 32], strides = [1, 1]} : vector<2x128xf32> to vector<2x32xf32>
    %300 = math.tanh %299 : vector<2x32xf32>
    %301 = vector.extract_strided_slice %282 {offsets = [0, 96], sizes = [2, 32], strides = [1, 1]} : vector<2x128xf32> to vector<2x32xf32>
    %cst_109 = arith.constant 0.000000e+00 : f32
    %302 = vector.broadcast %cst_109 : f32 to vector<2x32xf32>
    %303 = arith.subf %302, %301 : vector<2x32xf32>
    %304 = math.exp %303 : vector<2x32xf32>
    %cst_110 = arith.constant 1.000000e+00 : f32
    %305 = vector.broadcast %cst_110 : f32 to vector<2x32xf32>
    %306 = arith.addf %305, %304 : vector<2x32xf32>
    %cst_111 = arith.constant 1.000000e+00 : f32
    %307 = vector.broadcast %cst_111 : f32 to vector<2x32xf32>
    %308 = arith.divf %307, %306 : vector<2x32xf32>
    %309 = arith.mulf %298, %272 : vector<2x32xf32>
    %310 = arith.mulf %290, %300 : vector<2x32xf32>
    %311 = arith.addf %309, %310 : vector<2x32xf32>
    %312 = math.tanh %311 : vector<2x32xf32>
    %313 = arith.mulf %308, %312 : vector<2x32xf32>
    %314 = vector.broadcast %275 : vector<2x1xf32> to vector<2x32xf32>
    %315 = arith.mulf %314, %313 : vector<2x32xf32>
    %cst_112 = arith.constant 1.000000e+00 : f32
    %316 = vector.broadcast %cst_112 : f32 to vector<2x1xf32>
    %317 = arith.subf %316, %275 : vector<2x1xf32>
    %318 = vector.broadcast %317 : vector<2x1xf32> to vector<2x32xf32>
    %319 = arith.mulf %318, %265 : vector<2x32xf32>
    %320 = arith.addf %315, %319 : vector<2x32xf32>
    %321 = vector.broadcast %275 : vector<2x1xf32> to vector<2x32xf32>
    %322 = arith.mulf %321, %311 : vector<2x32xf32>
    %cst_113 = arith.constant 1.000000e+00 : f32
    %323 = vector.broadcast %cst_113 : f32 to vector<2x1xf32>
    %324 = arith.subf %323, %275 : vector<2x1xf32>
    %325 = vector.broadcast %324 : vector<2x1xf32> to vector<2x32xf32>
    %326 = arith.mulf %325, %272 : vector<2x32xf32>
    %327 = arith.addf %322, %326 : vector<2x32xf32>
    %328 = vector.broadcast %275 : vector<2x1xf32> to vector<2x32xf32>
    %329 = arith.mulf %328, %313 : vector<2x32xf32>
    %c2_114 = arith.constant 2 : index
    %c0_115 = arith.constant 0 : index
    %330 = vector.load %arg2[%c2_114, %c0_115] : memref<8x1xf32, #tpu.memory_space<vmem>>, vector<2x1xf32>
    %331 = vector.extract_strided_slice %12 {offsets = [2, 0], sizes = [2, 128], strides = [1, 1]} : vector<8x128xf32> to vector<2x128xf32>
    %c0_116 = arith.constant 0 : index
    %c0_117 = arith.constant 0 : index
    %332 = vector.load %arg9[%c0_116, %c0_117] : memref<32x128xf32, #tpu.memory_space<vmem>>, vector<32x128xf32>
    %cst_118 = arith.constant dense<0.000000e+00> : vector<2x128xf32>
    %333 = tpu.matmul %320, %332, %cst_118 {dimension_numbers = #tpu.dot_dimension_numbers<[1], [0], [0], [1], [0, 0, 1, 1], [], []>} : vector<2x32xf32>, vector<32x128xf32>, vector<2x128xf32> -> vector<2x128xf32>
    %334 = arith.addf %331, %333 : vector<2x128xf32>
    %c0_119 = arith.constant 0 : index
    %c0_120 = arith.constant 0 : index
    %335 = vector.load %arg10[%c0_119, %c0_120] : memref<1x128xf32, #tpu.memory_space<vmem>>, vector<1x128xf32>
    %336 = vector.broadcast %335 : vector<1x128xf32> to vector<2x128xf32>
    %337 = arith.addf %334, %336 : vector<2x128xf32>
    %338 = vector.extract_strided_slice %337 {offsets = [0, 0], sizes = [2, 32], strides = [1, 1]} : vector<2x128xf32> to vector<2x32xf32>
    %cst_121 = arith.constant 0.000000e+00 : f32
    %339 = vector.broadcast %cst_121 : f32 to vector<2x32xf32>
    %340 = arith.subf %339, %338 : vector<2x32xf32>
    %341 = math.exp %340 : vector<2x32xf32>
    %cst_122 = arith.constant 1.000000e+00 : f32
    %342 = vector.broadcast %cst_122 : f32 to vector<2x32xf32>
    %343 = arith.addf %342, %341 : vector<2x32xf32>
    %cst_123 = arith.constant 1.000000e+00 : f32
    %344 = vector.broadcast %cst_123 : f32 to vector<2x32xf32>
    %345 = arith.divf %344, %343 : vector<2x32xf32>
    %346 = vector.extract_strided_slice %337 {offsets = [0, 32], sizes = [2, 32], strides = [1, 1]} : vector<2x128xf32> to vector<2x32xf32>
    %cst_124 = arith.constant 0.000000e+00 : f32
    %347 = vector.broadcast %cst_124 : f32 to vector<2x32xf32>
    %348 = arith.subf %347, %346 : vector<2x32xf32>
    %349 = math.exp %348 : vector<2x32xf32>
    %cst_125 = arith.constant 1.000000e+00 : f32
    %350 = vector.broadcast %cst_125 : f32 to vector<2x32xf32>
    %351 = arith.addf %350, %349 : vector<2x32xf32>
    %cst_126 = arith.constant 1.000000e+00 : f32
    %352 = vector.broadcast %cst_126 : f32 to vector<2x32xf32>
    %353 = arith.divf %352, %351 : vector<2x32xf32>
    %354 = vector.extract_strided_slice %337 {offsets = [0, 64], sizes = [2, 32], strides = [1, 1]} : vector<2x128xf32> to vector<2x32xf32>
    %355 = math.tanh %354 : vector<2x32xf32>
    %356 = vector.extract_strided_slice %337 {offsets = [0, 96], sizes = [2, 32], strides = [1, 1]} : vector<2x128xf32> to vector<2x32xf32>
    %cst_127 = arith.constant 0.000000e+00 : f32
    %357 = vector.broadcast %cst_127 : f32 to vector<2x32xf32>
    %358 = arith.subf %357, %356 : vector<2x32xf32>
    %359 = math.exp %358 : vector<2x32xf32>
    %cst_128 = arith.constant 1.000000e+00 : f32
    %360 = vector.broadcast %cst_128 : f32 to vector<2x32xf32>
    %361 = arith.addf %360, %359 : vector<2x32xf32>
    %cst_129 = arith.constant 1.000000e+00 : f32
    %362 = vector.broadcast %cst_129 : f32 to vector<2x32xf32>
    %363 = arith.divf %362, %361 : vector<2x32xf32>
    %364 = arith.mulf %353, %327 : vector<2x32xf32>
    %365 = arith.mulf %345, %355 : vector<2x32xf32>
    %366 = arith.addf %364, %365 : vector<2x32xf32>
    %367 = math.tanh %366 : vector<2x32xf32>
    %368 = arith.mulf %363, %367 : vector<2x32xf32>
    %369 = vector.broadcast %330 : vector<2x1xf32> to vector<2x32xf32>
    %370 = arith.mulf %369, %368 : vector<2x32xf32>
    %cst_130 = arith.constant 1.000000e+00 : f32
    %371 = vector.broadcast %cst_130 : f32 to vector<2x1xf32>
    %372 = arith.subf %371, %330 : vector<2x1xf32>
    %373 = vector.broadcast %372 : vector<2x1xf32> to vector<2x32xf32>
    %374 = arith.mulf %373, %320 : vector<2x32xf32>
    %375 = arith.addf %370, %374 : vector<2x32xf32>
    %376 = vector.broadcast %330 : vector<2x1xf32> to vector<2x32xf32>
    %377 = arith.mulf %376, %366 : vector<2x32xf32>
    %cst_131 = arith.constant 1.000000e+00 : f32
    %378 = vector.broadcast %cst_131 : f32 to vector<2x1xf32>
    %379 = arith.subf %378, %330 : vector<2x1xf32>
    %380 = vector.broadcast %379 : vector<2x1xf32> to vector<2x32xf32>
    %381 = arith.mulf %380, %327 : vector<2x32xf32>
    %382 = arith.addf %377, %381 : vector<2x32xf32>
    %383 = vector.broadcast %330 : vector<2x1xf32> to vector<2x32xf32>
    %384 = arith.mulf %383, %368 : vector<2x32xf32>
    %c0_132 = arith.constant 0 : index
    %c0_133 = arith.constant 0 : index
    %385 = vector.load %arg2[%c0_132, %c0_133] : memref<8x1xf32, #tpu.memory_space<vmem>>, vector<2x1xf32>
    %386 = vector.extract_strided_slice %12 {offsets = [0, 0], sizes = [2, 128], strides = [1, 1]} : vector<8x128xf32> to vector<2x128xf32>
    %c0_134 = arith.constant 0 : index
    %c0_135 = arith.constant 0 : index
    %387 = vector.load %arg9[%c0_134, %c0_135] : memref<32x128xf32, #tpu.memory_space<vmem>>, vector<32x128xf32>
    %cst_136 = arith.constant dense<0.000000e+00> : vector<2x128xf32>
    %388 = tpu.matmul %375, %387, %cst_136 {dimension_numbers = #tpu.dot_dimension_numbers<[1], [0], [0], [1], [0, 0, 1, 1], [], []>} : vector<2x32xf32>, vector<32x128xf32>, vector<2x128xf32> -> vector<2x128xf32>
    %389 = arith.addf %386, %388 : vector<2x128xf32>
    %c0_137 = arith.constant 0 : index
    %c0_138 = arith.constant 0 : index
    %390 = vector.load %arg10[%c0_137, %c0_138] : memref<1x128xf32, #tpu.memory_space<vmem>>, vector<1x128xf32>
    %391 = vector.broadcast %390 : vector<1x128xf32> to vector<2x128xf32>
    %392 = arith.addf %389, %391 : vector<2x128xf32>
    %393 = vector.extract_strided_slice %392 {offsets = [0, 0], sizes = [2, 32], strides = [1, 1]} : vector<2x128xf32> to vector<2x32xf32>
    %cst_139 = arith.constant 0.000000e+00 : f32
    %394 = vector.broadcast %cst_139 : f32 to vector<2x32xf32>
    %395 = arith.subf %394, %393 : vector<2x32xf32>
    %396 = math.exp %395 : vector<2x32xf32>
    %cst_140 = arith.constant 1.000000e+00 : f32
    %397 = vector.broadcast %cst_140 : f32 to vector<2x32xf32>
    %398 = arith.addf %397, %396 : vector<2x32xf32>
    %cst_141 = arith.constant 1.000000e+00 : f32
    %399 = vector.broadcast %cst_141 : f32 to vector<2x32xf32>
    %400 = arith.divf %399, %398 : vector<2x32xf32>
    %401 = vector.extract_strided_slice %392 {offsets = [0, 32], sizes = [2, 32], strides = [1, 1]} : vector<2x128xf32> to vector<2x32xf32>
    %cst_142 = arith.constant 0.000000e+00 : f32
    %402 = vector.broadcast %cst_142 : f32 to vector<2x32xf32>
    %403 = arith.subf %402, %401 : vector<2x32xf32>
    %404 = math.exp %403 : vector<2x32xf32>
    %cst_143 = arith.constant 1.000000e+00 : f32
    %405 = vector.broadcast %cst_143 : f32 to vector<2x32xf32>
    %406 = arith.addf %405, %404 : vector<2x32xf32>
    %cst_144 = arith.constant 1.000000e+00 : f32
    %407 = vector.broadcast %cst_144 : f32 to vector<2x32xf32>
    %408 = arith.divf %407, %406 : vector<2x32xf32>
    %409 = vector.extract_strided_slice %392 {offsets = [0, 64], sizes = [2, 32], strides = [1, 1]} : vector<2x128xf32> to vector<2x32xf32>
    %410 = math.tanh %409 : vector<2x32xf32>
    %411 = vector.extract_strided_slice %392 {offsets = [0, 96], sizes = [2, 32], strides = [1, 1]} : vector<2x128xf32> to vector<2x32xf32>
    %cst_145 = arith.constant 0.000000e+00 : f32
    %412 = vector.broadcast %cst_145 : f32 to vector<2x32xf32>
    %413 = arith.subf %412, %411 : vector<2x32xf32>
    %414 = math.exp %413 : vector<2x32xf32>
    %cst_146 = arith.constant 1.000000e+00 : f32
    %415 = vector.broadcast %cst_146 : f32 to vector<2x32xf32>
    %416 = arith.addf %415, %414 : vector<2x32xf32>
    %cst_147 = arith.constant 1.000000e+00 : f32
    %417 = vector.broadcast %cst_147 : f32 to vector<2x32xf32>
    %418 = arith.divf %417, %416 : vector<2x32xf32>
    %419 = arith.mulf %408, %382 : vector<2x32xf32>
    %420 = arith.mulf %400, %410 : vector<2x32xf32>
    %421 = arith.addf %419, %420 : vector<2x32xf32>
    %422 = math.tanh %421 : vector<2x32xf32>
    %423 = arith.mulf %418, %422 : vector<2x32xf32>
    %424 = vector.broadcast %385 : vector<2x1xf32> to vector<2x32xf32>
    %425 = arith.mulf %424, %423 : vector<2x32xf32>
    %426 = tpu.concatenate %68, %425 in 1 : vector<2x32xf32>, vector<2x32xf32> -> vector<2x64xf32>
    %427 = tpu.concatenate %123, %384 in 1 : vector<2x32xf32>, vector<2x32xf32> -> vector<2x64xf32>
    %428 = tpu.concatenate %178, %329 in 1 : vector<2x32xf32>, vector<2x32xf32> -> vector<2x64xf32>
    %429 = tpu.concatenate %219, %274 in 1 : vector<2x32xf32>, vector<2x32xf32> -> vector<2x64xf32>
    %430 = tpu.concatenate %426, %427, %428, %429 in 0 : vector<2x64xf32>, vector<2x64xf32>, vector<2x64xf32>, vector<2x64xf32> -> vector<8x64xf32>
    %c0_148 = arith.constant 0 : index
    %c0_149 = arith.constant 0 : index
    %431 = vector.load %arg11[%c0_148, %c0_149] : memref<64x128xf32, #tpu.memory_space<vmem>>, vector<64x128xf32>
    %cst_150 = arith.constant dense<0.000000e+00> : vector<8x128xf32>
    %432 = tpu.matmul %430, %431, %cst_150 {dimension_numbers = #tpu.dot_dimension_numbers<[1], [0], [0], [1], [0, 0, 1, 1], [], []>} : vector<8x64xf32>, vector<64x128xf32>, vector<8x128xf32> -> vector<8x128xf32>
    %c0_151 = arith.constant 0 : index
    %c0_152 = arith.constant 0 : index
    %433 = vector.load %arg12[%c0_151, %c0_152] : memref<1x128xf32, #tpu.memory_space<vmem>>, vector<1x128xf32>
    %434 = vector.broadcast %433 : vector<1x128xf32> to vector<8x128xf32>
    %435 = arith.addf %432, %434 : vector<8x128xf32>
    %c0_153 = arith.constant 0 : index
    %c0_154 = arith.constant 0 : index
    %436 = vector.load %arg13[%c0_153, %c0_154] : memref<128x128xf32, #tpu.memory_space<vmem>>, vector<128x128xf32>
    %cst_155 = arith.constant dense<0.000000e+00> : vector<8x128xf32>
    %437 = tpu.matmul %435, %436, %cst_155 {dimension_numbers = #tpu.dot_dimension_numbers<[1], [0], [0], [1], [0, 0, 1, 1], [], []>} : vector<8x128xf32>, vector<128x128xf32>, vector<8x128xf32> -> vector<8x128xf32>
    %c0_156 = arith.constant 0 : index
    %c0_157 = arith.constant 0 : index
    %438 = vector.load %arg14[%c0_156, %c0_157] : memref<1x128xf32, #tpu.memory_space<vmem>>, vector<1x128xf32>
    %439 = vector.broadcast %438 : vector<1x128xf32> to vector<8x128xf32>
    %440 = arith.addf %437, %439 : vector<8x128xf32>
    %cst_158 = arith.constant dense<0xFF800000> : vector<8xf32>
    %441 = vector.multi_reduction <maximumf>, %440, %cst_158 [1] : vector<8x128xf32> to vector<8xf32>
    %442 = vector.shape_cast %441 : vector<8xf32> to vector<8x1xf32>
    %443 = vector.broadcast %442 : vector<8x1xf32> to vector<8x128xf32>
    %444 = arith.subf %440, %443 : vector<8x128xf32>
    %445 = math.exp %444 : vector<8x128xf32>
    %cst_159 = arith.constant dense<0.000000e+00> : vector<8xf32>
    %446 = vector.multi_reduction <add>, %445, %cst_159 [1] : vector<8x128xf32> to vector<8xf32>
    %447 = vector.shape_cast %446 : vector<8xf32> to vector<8x1xf32>
    %448 = math.log %447 : vector<8x1xf32>
    %449 = vector.broadcast %448 : vector<8x1xf32> to vector<8x128xf32>
    %450 = arith.subf %444, %449 : vector<8x128xf32>
    %c0_160 = arith.constant 0 : index
    %c0_161 = arith.constant 0 : index
    %451 = vector.load %arg15[%c0_160, %c0_161] : memref<8x128xf32, #tpu.memory_space<vmem>>, vector<8x128xf32>
    tpu.vector_store %arg15[%c0_160, %c0_161], %450 {strides = array<i32>} : memref<8x128xf32, #tpu.memory_space<vmem>>, vector<8x128xf32>,
    return
  }
  func.func @transform_0(%arg0: i32) -> (i32, i32) {
    %c0_i32 = arith.constant 0 : i32
    %c0_i32_0 = arith.constant 0 : i32
    %c0_i32_1 = arith.constant 0 : i32
    return %c0_i32, %c0_i32_0 : i32, i32
  }
  func.func @transform_1(%arg0: i32) -> (i32, i32) {
    %c0_i32 = arith.constant 0 : i32
    %c0_i32_0 = arith.constant 0 : i32
    %c0_i32_1 = arith.constant 0 : i32
    return %c0_i32, %c0_i32_0 : i32, i32
  }
  func.func @transform_2(%arg0: i32) -> (i32, i32) {
    %c0_i32 = arith.constant 0 : i32
    %c0_i32_0 = arith.constant 0 : i32
    %c0_i32_1 = arith.constant 0 : i32
    return %c0_i32, %c0_i32_0 : i32, i32
  }
  func.func @transform_3(%arg0: i32) -> (i32, i32) {
    %c0_i32 = arith.constant 0 : i32
    %c0_i32_0 = arith.constant 0 : i32
    %c0_i32_1 = arith.constant 0 : i32
    return %c0_i32, %c0_i32_0 : i32, i32
  }
  func.func @transform_4(%arg0: i32) -> (i32, i32) {
    %c0_i32 = arith.constant 0 : i32
    %c0_i32_0 = arith.constant 0 : i32
    %c0_i32_1 = arith.constant 0 : i32
    return %c0_i32, %c0_i32_0 : i32, i32
  }
  func.func @transform_5(%arg0: i32) -> (i32, i32) {
    %c0_i32 = arith.constant 0 : i32
    %c0_i32_0 = arith.constant 0 : i32
    %c0_i32_1 = arith.constant 0 : i32
    return %c0_i32, %c0_i32_0 : i32, i32
  }
  func.func @transform_6(%arg0: i32) -> (i32, i32) {
    %c0_i32 = arith.constant 0 : i32
    %c0_i32_0 = arith.constant 0 : i32
    %c0_i32_1 = arith.constant 0 : i32
    return %c0_i32, %c0_i32_0 : i32, i32
  }
  func.func @transform_7(%arg0: i32) -> (i32, i32) {
    %c0_i32 = arith.constant 0 : i32
    %c0_i32_0 = arith.constant 0 : i32
    %c0_i32_1 = arith.constant 0 : i32
    return %c0_i32, %c0_i32_0 : i32, i32
  }
  func.func @transform_8(%arg0: i32) -> (i32, i32) {
    %c0_i32 = arith.constant 0 : i32
    %c0_i32_0 = arith.constant 0 : i32
    %c0_i32_1 = arith.constant 0 : i32
    return %c0_i32, %c0_i32_0 : i32, i32
  }
  func.func @transform_9(%arg0: i32) -> (i32, i32) {
    %c0_i32 = arith.constant 0 : i32
    %c0_i32_0 = arith.constant 0 : i32
    %c0_i32_1 = arith.constant 0 : i32
    return %c0_i32, %c0_i32_0 : i32, i32
  }
  func.func @transform_10(%arg0: i32) -> (i32, i32) {
    %c0_i32 = arith.constant 0 : i32
    %c0_i32_0 = arith.constant 0 : i32
    %c0_i32_1 = arith.constant 0 : i32
    return %c0_i32, %c0_i32_0 : i32, i32
  }
  func.func @transform_11(%arg0: i32) -> (i32, i32) {
    %c0_i32 = arith.constant 0 : i32
    %c0_i32_0 = arith.constant 0 : i32
    %c0_i32_1 = arith.constant 0 : i32
    return %c0_i32, %c0_i32_0 : i32, i32
  }
  func.func @transform_12(%arg0: i32) -> (i32, i32) {
    %c0_i32 = arith.constant 0 : i32
    %c0_i32_0 = arith.constant 0 : i32
    %c0_i32_1 = arith.constant 0 : i32
    return %c0_i32, %c0_i32_0 : i32, i32
  }
  func.func @transform_13(%arg0: i32) -> (i32, i32) {
    %c0_i32 = arith.constant 0 : i32
    %c0_i32_0 = arith.constant 0 : i32
    %c0_i32_1 = arith.constant 0 : i32
    return %c0_i32, %c0_i32_0 : i32, i32
  }
  func.func @transform_14(%arg0: i32) -> (i32, i32) {
    %c0_i32 = arith.constant 0 : i32
    %c0_i32_0 = arith.constant 0 : i32
    %c0_i32_1 = arith.constant 0 : i32
    return %c0_i32, %c0_i32_0 : i32, i32
  }
}

</mosaic_0001>

<bundles_post_ra>
// kernel: forward.3
= control target key start
LH: loop header
LB: loop body
LE: loop exit
PB: predicated region body
PF: predicated region fallthrough
CT: control target
= control target key end

     0   :  { %vm676_vm0 = vcmask 998400   ;;  %vm719_vm1 = vcmask 1044480   ;;  %vm1550_vm6 = vcmask 1040384   ;;  %s2770_s1 = inlined_call_operand.vmem [shape: bf16[250,640], index: 1, kind: input, shape index: {}]   ;;  %s2771_s0 = inlined_call_operand.vmem [shape: bf16[224,250], index: 0, kind: input, shape index: {}]   ;;  %s2772_s2 = inlined_call_operand.vmem [shape: f32[1,128], index: 2, kind: input, shape index: {}]   ;;  %s2773_s3 = inlined_call_operand.vmem [shape: f32[1,2,128], index: 3, kind: output, shape index: {}]  }
   0x1   :  { %v1836_v0 = vld [vmem:[%s2770_s1 + $0x4] ss:$20 sps:$4 sm:$0xff]   ;;  %v1838_v1 = vld [vmem:[%s2770_s1 + $0xc] ss:$20 sps:$4 sm:$0xff]   ;;  %v1841_v3 = vld [vmem:[%s2770_s1 + $0x8] ss:$20 sps:$4 sm:$0xff]  }
   0x2   :  { %735 = vmatprep.subr.bf16.mxu0 %v1836_v0  ;;  %v1840_v2 = vld [vmem:[%s2770_s1] ss:$20 sps:$4 sm:$0xff]   ;;  %902 = vmatprep.subr.bf16.mxu1 %v1838_v1  ;;  %v1846_v6 = vld [vmem:[%s2770_s1 + $0x28] ss:$20 sps:$4 sm:$0xff]   ;;  %v1847_v7 = vld [vmem:[%s2770_s1 + $0x30] ss:$20 sps:$4 sm:$0xff]  }
   0x3   :  { %v1842_v4 = vld [vmem:[%s2770_s1 + $0x2c] ss:$20 sps:$4 sm:$0xff]   ;;  %736 = vmatpush1.bf16.msra.mxu0 %v1840_v2  ;;  %903 = vmatpush1.bf16.msra.mxu1 %v1841_v3  ;;  %v1844_v5 = vld [vmem:[%s2770_s1 + $0x34] ss:$20 sps:$4 sm:$0xff]   ;;  %v1850_v9 = vld [vmem:[%s2770_s1 + $0x5c] ss:$20 sps:$4 sm:$0xff]  }
   0x4   :  { %737 = vmatprep.subr.bf16.mxu0 %v1842_v4  ;;  %904 = vmatprep.subr.bf16.mxu1 %v1844_v5  ;;  %v1848_v8 = vld [vmem:[%s2770_s1 + $0x54] ss:$20 sps:$4 sm:$0xff]   ;;  %v1852_v10 = vld [vmem:[%s2770_s1 + $0x50] ss:$20 sps:$4 sm:$0xff]   ;;  %v1853_v11 = vld [vmem:[%s2770_s1 + $0x58] ss:$20 sps:$4 sm:$0xff]  }
   0x5   :  { %v1854_v12 = vld [vmem:[%s2770_s1 + $0x7c] ss:$20 sps:$4 sm:$0xff]   ;;  %v1856_v13 = vld [vmem:[%s2770_s1 + $0x84] ss:$20 sps:$4 sm:$0xff]   ;;  %v1859_v15 = vld [vmem:[%s2770_s1 + $0x80] ss:$20 sps:$4 sm:$0xff]  }
   0x6   :  { %v1858_v14 = vld [vmem:[%s2770_s1 + $0x78] ss:$20 sps:$4 sm:$0xff]   ;;  %v1864_v18 = vld [vmem:[%s2770_s1 + $0xa0] ss:$20 sps:$4 sm:$0xff]   ;;  %v1865_v19 = vld [vmem:[%s2770_s1 + $0xa8] ss:$20 sps:$4 sm:$0xff]  }
   0x7   :  { %738 = vmatpush1.bf16.msra.mxu0 %v1846_v6  ;;  %905 = vmatpush1.bf16.msra.mxu1 %v1847_v7  ;;  %v1860_v16 = vld [vmem:[%s2770_s1 + $0xa4] ss:$20 sps:$4 sm:$0xff]   ;;  %v1862_v17 = vld [vmem:[%s2770_s1 + $0xac] ss:$20 sps:$4 sm:$0xff]   ;;  %v1868_v21 = vld [vmem:[%s2770_s1 + $0xd4] ss:$20 sps:$4 sm:$0xff]  }
   0x8   :  { %739 = vmatprep.subr.bf16.mxu0 %v1848_v8  ;;  %906 = vmatprep.subr.bf16.mxu1 %v1850_v9  ;;  %v1866_v20 = vld [vmem:[%s2770_s1 + $0xcc] ss:$20 sps:$4 sm:$0xff]   ;;  %v1870_v22 = vld [vmem:[%s2770_s1 + $0xc8] ss:$20 sps:$4 sm:$0xff]   ;;  %v1871_v23 = vld [vmem:[%s2770_s1 + $0xd0] ss:$20 sps:$4 sm:$0xff]  }
   0x9   :  { %v1872_v24 = vld [vmem:[%s2770_s1 + $0xf4] ss:$20 sps:$4 sm:$0xff]   ;;  %v1874_v25 = vld [vmem:[%s2770_s1 + $0xfc] ss:$20 sps:$4 sm:$0xff]   ;;  %v1877_v27 = vld [vmem:[%s2770_s1 + $0xf8] ss:$20 sps:$4 sm:$0xff]  }
   0xa   :  { %v1876_v26 = vld [vmem:[%s2770_s1 + $0xf0] ss:$20 sps:$4 sm:$0xff]   ;;  %v1882_v30 = vld [vmem:[%s2770_s1 + $0x118] ss:$20 sps:$4 sm:$0xff]   ;;  %v1883_v31 = vld [vmem:[%s2770_s1 + $0x120] ss:$20 sps:$4 sm:$0xff]  }
   0xb   :  { %740 = vmatpush1.bf16.msra.mxu0 %v1852_v10  ;;  %907 = vmatpush1.bf16.msra.mxu1 %v1853_v11  ;;  %v1878_v28 = vld [vmem:[%s2770_s1 + $0x11c] ss:$20 sps:$4 sm:$0xff]   ;;  %v1880_v29 = vld [vmem:[%s2770_s1 + $0x124] ss:$20 sps:$4 sm:$0xff]   ;;  %v1886_v33 = vld [vmem:[%s2770_s1 + $0x14c] ss:$20 sps:$4 sm:$0xff]  }
   0xc   :  { %741 = vmatprep.subr.bf16.mxu0 %v1854_v12  ;;  %908 = vmatprep.subr.bf16.mxu1 %v1856_v13  ;;  %v1884_v32 = vld [vmem:[%s2770_s1 + $0x144] ss:$20 sps:$4 sm:$0xff]   ;;  %v1888_v34 = vld [vmem:[%s2770_s1 + $0x140] ss:$20 sps:$4 sm:$0xff]   ;;  %v1889_v35 = vld [vmem:[%s2770_s1 + $0x148] ss:$20 sps:$4 sm:$0xff]  }
   0xd   :  { %v1890_v36 = vld [vmem:[%s2770_s1 + $0x16c] ss:$20 sps:$4 sm:$0xff]   ;;  %v1892_v37 = vld [vmem:[%s2770_s1 + $0x174] ss:$20 sps:$4 sm:$0xff]   ;;  %v1895_v39 = vld [vmem:[%s2770_s1 + $0x170] ss:$20 sps:$4 sm:$0xff]  }
   0xe   :  { %v1894_v38 = vld [vmem:[%s2770_s1 + $0x168] ss:$20 sps:$4 sm:$0xff]   ;;  %v1900_v42 = vld [vmem:[%s2770_s1 + $0x190] ss:$20 sps:$4 sm:$0xff]   ;;  %v1901_v43 = vld [vmem:[%s2770_s1 + $0x198] ss:$20 sps:$4 sm:$0xff]  }
   0xf   :  { %742 = vmatpush1.bf16.msra.mxu0 %v1858_v14  ;;  %909 = vmatpush1.bf16.msra.mxu1 %v1859_v15  ;;  %v1896_v40 = vld [vmem:[%s2770_s1 + $0x194] ss:$20 sps:$4 sm:$0xff]   ;;  %v1898_v41 = vld [vmem:[%s2770_s1 + $0x19c] ss:$20 sps:$4 sm:$0xff]   ;;  %v1904_v45 = vld [vmem:[%s2770_s1 + $0x1c4] ss:$20 sps:$4 sm:$0xff]  }
  0x10   :  { %743 = vmatprep.subr.bf16.mxu0 %v1860_v16  ;;  %910 = vmatprep.subr.bf16.mxu1 %v1862_v17  ;;  %v1902_v44 = vld [vmem:[%s2770_s1 + $0x1bc] ss:$20 sps:$4 sm:$0xff]   ;;  %v1906_v46 = vld [vmem:[%s2770_s1 + $0x1b8] ss:$20 sps:$4 sm:$0xff]   ;;  %v1907_v48 = vld [vmem:[%s2770_s1 + $0x1c0] ss:$20 sps:$4 sm:$0xff]  }
  0x11   :  { %v2154_v47 = vld [vmem:[%s2771_s0 + $0x4] ss:$8 sps:$4 sm:$0xff]   ;;  %v1912_v51 = vld [vmem:[%s2770_s1 + $0x1e0] ss:$20 sps:$4 sm:$0xff]   ;;  %v1913_v52 = vld [vmem:[%s2770_s1 + $0x1e8] ss:$20 sps:$4 sm:$0xff]  }
  0x12   :  { %v1908_v49 = vld [vmem:[%s2770_s1 + $0x1e4] ss:$20 sps:$4 sm:$0xff]   ;;  %v1910_v50 = vld [vmem:[%s2770_s1 + $0x1ec] ss:$20 sps:$4 sm:$0xff]   ;;  %1674 = vmatprep.mubr.msk.bf16.mxu0 %vm676_vm0, %v2154_v47  ;;  %1689 = vmatprep.mubr.msk.bf16.mxu1 %vm676_vm0, %v2154_v47  ;;  %v1916_v54 = vld [vmem:[%s2770_s1 + $0x214] ss:$20 sps:$4 sm:$0xff]  }
  0x13   :  { %744 = vmatpush1.bf16.msra.mxu0 %v1864_v18  ;;  %911 = vmatpush1.bf16.msra.mxu1 %v1865_v19  ;;  %v1914_v53 = vld [vmem:[%s2770_s1 + $0x20c] ss:$20 sps:$4 sm:$0xff]   ;;  %v1918_v55 = vld [vmem:[%s2770_s1 + $0x208] ss:$20 sps:$4 sm:$0xff]   ;;  %v1919_v56 = vld [vmem:[%s2770_s1 + $0x210] ss:$20 sps:$4 sm:$0xff]  }
  0x14   :  { %745 = vmatprep.subr.bf16.mxu0 %v1866_v20  ;;  %912 = vmatprep.subr.bf16.mxu1 %v1868_v21  ;;  %v1920_v57 = vld [vmem:[%s2770_s1 + $0x234] ss:$20 sps:$4 sm:$0xff]   ;;  %v1922_v58 = vld [vmem:[%s2770_s1 + $0x23c] ss:$20 sps:$4 sm:$0xff]   ;;  %v1925_v60 = vld [vmem:[%s2770_s1 + $0x238] ss:$20 sps:$4 sm:$0xff]  }
  0x15   :  { %v1924_v59 = vld [vmem:[%s2770_s1 + $0x230] ss:$20 sps:$4 sm:$0xff]   ;;  %v1930_v63 = vld [vmem:[%s2770_s1 + $0x258] ss:$20 sps:$4 sm:$0x1f]  }
  0x16   :  { %v1926_v61 = vld [vmem:[%s2770_s1 + $0x25c] ss:$20 sps:$4 sm:$0x1f]   ;;  %v1928_v62 = vld [vmem:[%s2770_s1 + $0x264] ss:$20 sps:$4 sm:$0x1f]  }
  0x17   :  { %746 = vmatpush1.bf16.msra.mxu0 %v1870_v22  ;;  %913 = vmatpush1.bf16.msra.mxu1 %v1871_v23  ;;  %v1931_v0 = vld [vmem:[%s2770_s1 + $0x260] ss:$20 sps:$4 sm:$0x1f]   ;;  %v721_v1 = vsel %vm719_vm1, %v1930_v63, 0  ;;  %v1935_v3 = vld [vmem:[%s2770_s1 + $0x150] ss:$20 sps:$4 sm:$0xff]  }
  0x18   :  { %747 = vmatprep.subr.bf16.mxu0 %v1872_v24  ;;  %914 = vmatprep.subr.bf16.mxu1 %v1874_v25  ;;  %v727_v2 = vsel %vm719_vm1, %v1931_v0, 0  ;;  %v2221_v4 = vld [vmem:[%s2771_s0] ss:$8 sps:$4 sm:$0xff]   ;;  %v1936_v5 = vld [vmem:[%s2770_s1 + $0x10] ss:$20 sps:$4 sm:$0xff]  }
  0x19   :  { %v2229_v6 = vld [vmem:[%s2771_s0 + $0x14] ss:$8 sps:$4 sm:$0xff]   ;;  %v1940_v7 = vld [vmem:[%s2770_s1 + $0x178] ss:$20 sps:$4 sm:$0xff]   ;;  %v1964_v15 = vld [vmem:[%s2770_s1 + $0x1f0] ss:$20 sps:$4 sm:$0xff]  }
  0x1a   :  { %v1943_v8 = vld [vmem:[%s2770_s1 + $0x38] ss:$20 sps:$4 sm:$0xff]   ;;  %v1948_v9 = vld [vmem:[%s2770_s1 + $0x1a0] ss:$20 sps:$4 sm:$0xff]   ;;  %v1956_v13 = vld [vmem:[%s2770_s1 + $0x1c8] ss:$20 sps:$4 sm:$0xff]  }
  0x1b   :  { %748 = vmatpush1.bf16.msra.mxu0 %v1876_v26  ;;  %915 = vmatpush1.bf16.msra.mxu1 %v1877_v27  ;;  %v2249_v10 = vld [vmem:[%s2771_s0 + $0x10] ss:$8 sps:$4 sm:$0xff]   ;;  %v2254_v11 = vld [vmem:[%s2771_s0 + $0x24] ss:$8 sps:$4 sm:$0xff]   ;;  %v1949_v12 = vld [vmem:[%s2770_s1 + $0x60] ss:$20 sps:$4 sm:$0xff]  }
  0x1c   :  { %749 = vmatprep.subr.bf16.mxu0 %v1878_v28  ;;  %916 = vmatprep.subr.bf16.mxu1 %v1880_v29  ;;  %v1957_v14 = vld [vmem:[%s2770_s1 + $0x88] ss:$20 sps:$4 sm:$0xff]   ;;  %v1965_v18 = vld [vmem:[%s2770_s1 + $0xb0] ss:$20 sps:$4 sm:$0xff]   ;;  %v1969_v19 = vld [vmem:[%s2770_s1 + $0x218] ss:$20 sps:$4 sm:$0xff]  }
  0x1d   :  { %v2277_v16 = vld [vmem:[%s2771_s0 + $0x20] ss:$8 sps:$4 sm:$0xff]   ;;  %v2282_v17 = vld [vmem:[%s2771_s0 + $0x34] ss:$8 sps:$4 sm:$0xff]   ;;  %v1972_v20 = vld [vmem:[%s2770_s1 + $0xd8] ss:$20 sps:$4 sm:$0xff]  }
  0x1e   :  { %v1977_v21 = vld [vmem:[%s2770_s1 + $0x240] ss:$20 sps:$4 sm:$0xff]   ;;  %v2305_v22 = vld [vmem:[%s2771_s0 + $0x30] ss:$8 sps:$4 sm:$0xff]   ;;  %v2310_v23 = vld [vmem:[%s2771_s0 + $0x44] ss:$8 sps:$4 sm:$0xff]  }
  0x1f   :  { %750 = vmatpush1.bf16.msra.mxu0 %v1882_v30  ;;  %917 = vmatpush1.bf16.msra.mxu1 %v1883_v31  ;;  %v1978_v24 = vld [vmem:[%s2770_s1 + $0x100] ss:$20 sps:$4 sm:$0xff]   ;;  %v1985_v25 = vld [vmem:[%s2770_s1 + $0x268] ss:$20 sps:$4 sm:$0x1f]  }
  0x20   :  { %751 = vmatprep.subr.bf16.mxu0 %v1884_v32  ;;  %918 = vmatprep.subr.bf16.mxu1 %v1886_v33  ;;  %v1986_v26 = vld [vmem:[%s2770_s1 + $0x128] ss:$20 sps:$4 sm:$0xff]   ;;  %v2348_v29 = vld [vmem:[%s2771_s0 + $0x50] ss:$8 sps:$4 sm:$0xff]   ;;  %v2353_v30 = vld [vmem:[%s2771_s0 + $0x64] ss:$8 sps:$4 sm:$0xff]  }
  0x21   :  { %v2332_v27 = vld [vmem:[%s2771_s0 + $0x40] ss:$8 sps:$4 sm:$0xff]   ;;  %v2337_v28 = vld [vmem:[%s2771_s0 + $0x54] ss:$8 sps:$4 sm:$0xff]   ;;  %v1963_v33 = vld [vmem:[%s2771_s0 + $0x70] ss:$8 sps:$4 sm:$0xff]  }
  0x22   :  { %v2364_v31 = vld [vmem:[%s2771_s0 + $0x60] ss:$8 sps:$4 sm:$0xff]   ;;  %v1961_v32 = vld [vmem:[%s2771_s0 + $0x74] ss:$8 sps:$4 sm:$0xff]  }
  0x23   :  { %752 = vmatpush1.bf16.msra.mxu0 %v1888_v34  ;;  %919 = vmatpush1.bf16.msra.mxu1 %v1889_v35  ;;  %v1966_v34 = vld [vmem:[%s2771_s0 + $0x84] ss:$8 sps:$4 sm:$0xff]   ;;  %v1968_v35 = vld [vmem:[%s2771_s0 + $0x80] ss:$8 sps:$4 sm:$0xff]  }
  0x24   :  { %753 = vmatprep.subr.bf16.mxu0 %v1890_v36  ;;  %920 = vmatprep.subr.bf16.mxu1 %v1892_v37  ;;  %v1970_v36 = vld [vmem:[%s2771_s0 + $0x94] ss:$8 sps:$4 sm:$0xff]   ;;  %v1973_v37 = vld [vmem:[%s2771_s0 + $0x90] ss:$8 sps:$4 sm:$0xff]  }
  0x27   :  { %754 = vmatpush1.bf16.msra.mxu0 %v1894_v38  ;;  %921 = vmatpush1.bf16.msra.mxu1 %v1895_v39  ;;  %v1974_v38 = vld [vmem:[%s2771_s0 + $0xa4] ss:$8 sps:$4 sm:$0xff]   ;;  %v1976_v39 = vld [vmem:[%s2771_s0 + $0xa0] ss:$8 sps:$4 sm:$0xff]  }
  0x28   :  { %755 = vmatprep.subr.bf16.mxu0 %v1896_v40  ;;  %922 = vmatprep.subr.bf16.mxu1 %v1898_v41  ;;  %v1979_v40 = vld [vmem:[%s2771_s0 + $0xb4] ss:$8 sps:$4 sm:$0xff]   ;;  %v1981_v41 = vld [vmem:[%s2771_s0 + $0xb0] ss:$8 sps:$4 sm:$0xff]  }
  0x2b   :  { %756 = vmatpush1.bf16.msra.mxu0 %v1900_v42  ;;  %923 = vmatpush1.bf16.msra.mxu1 %v1901_v43  ;;  %v1982_v42 = vld [vmem:[%s2771_s0 + $0xc4] ss:$8 sps:$4 sm:$0xff]   ;;  %v1984_v43 = vld [vmem:[%s2771_s0 + $0xc0] ss:$8 sps:$4 sm:$0xff]  }
  0x2c   :  { %757 = vmatprep.subr.bf16.mxu0 %v1902_v44  ;;  %924 = vmatprep.subr.bf16.mxu1 %v1904_v45  ;;  %v1987_v44 = vld [vmem:[%s2771_s0 + $0xd4] ss:$8 sps:$4 sm:$0xff]   ;;  %v1989_v45 = vld [vmem:[%s2771_s0 + $0xd0] ss:$8 sps:$4 sm:$0xff]  }
  0x2f   :  { %758 = vmatpush1.bf16.msra.mxu0 %v1906_v46  ;;  %925 = vmatpush1.bf16.msra.mxu1 %v1907_v48  ;;  %v1240_v46 = vlaneseq }
  0x30   :  { %759 = vmatprep.subr.bf16.mxu0 %v1908_v49  ;;  %926 = vmatprep.subr.bf16.mxu1 %v1910_v50 }
  0x33   :  { %760 = vmatpush1.bf16.msra.mxu0 %v1912_v51  ;;  %927 = vmatpush1.bf16.msra.mxu1 %v1913_v52 }
  0x34   :  { %761 = vmatprep.subr.bf16.mxu0 %v1914_v53  ;;  %928 = vmatprep.subr.bf16.mxu1 %v1916_v54 }
  0x37   :  { %762 = vmatpush1.bf16.msra.mxu0 %v1918_v55  ;;  %929 = vmatpush1.bf16.msra.mxu1 %v1919_v56 }
  0x38   :  { %763 = vmatprep.subr.bf16.mxu0 %v1920_v57  ;;  %930 = vmatprep.subr.bf16.mxu1 %v1922_v58 }
  0x3b   :  { %764 = vmatpush1.bf16.msra.mxu0 %v1924_v59  ;;  %931 = vmatpush1.bf16.msra.mxu1 %v1925_v60 }
  0x3c   :  { %1673 = vmatprep.subr.msk.bf16.mxu0 %vm719_vm1, %v1926_v61  ;;  %1688 = vmatprep.subr.msk.bf16.mxu1 %vm719_vm1, %v1928_v62 }
  0x3f   :  { %766 = vmatpush1.bf16.msra.mxu0 %v721_v1  ;;  %933 = vmatpush1.bf16.msra.mxu1 %v727_v2 }
  0x40   :  { %1718 = vmatprep.subr.bf16.mxu0 %v1935_v3  ;;  %1818 = vmatprep.subr.bf16.mxu1 %v1935_v3 }
  0x42   :  { %768 = vmatmul.mubr.bf16.vlgmr.msra.gmra.mrb[0].mxu0 %v2221_v4  ;;  %935 = vmatmul.mubr.bf16.vlgmr.msra.gmra.mrb[0].mxu1 %v2221_v4 }
  0x43   :  { %1719 = vmatpush3.bf16.msra.mxu0 %v1936_v5  ;;  %1826 = vmatpush3.bf16.msra.mxu1 %v1936_v5 }
  0x44   :  { %1675 = vmatprep.mubr.msk.bf16.mxu0 %vm676_vm0, %v2229_v6  ;;  %1690 = vmatprep.mubr.msk.bf16.mxu1 %vm676_vm0, %v2229_v6 }
  0x45   :  { %1720 = vmatprep.subr.bf16.mxu0 %v1940_v7  ;;  %1819 = vmatprep.subr.bf16.mxu1 %v1940_v7 }
  0x47   :  { %1721 = vmatpush3.bf16.msra.mxu0 %v1943_v8  ;;  %1827 = vmatpush3.bf16.msra.mxu1 %v1943_v8 }
  0x48   :  { %1722 = vmatprep.subr.bf16.mxu0 %v1948_v9  ;;  %1820 = vmatprep.subr.bf16.mxu1 %v1948_v9 }
  0x4a   :  { %778 = vmatmul.mubr.bf16.gmra.mrb[4].mxu0 %v2249_v10  ;;  %945 = vmatmul.mubr.bf16.gmra.mrb[4].mxu1 %v2249_v10 }
  0x4b   :  { %1676 = vmatprep.mubr.msk.bf16.mxu0 %vm676_vm0, %v2254_v11  ;;  %1691 = vmatprep.mubr.msk.bf16.mxu1 %vm676_vm0, %v2254_v11 }
  0x4c   :  { %1723 = vmatpush3.bf16.msra.mxu0 %v1949_v12  ;;  %1828 = vmatpush3.bf16.msra.mxu1 %v1949_v12 }
  0x4d   :  { %1724 = vmatprep.subr.bf16.mxu0 %v1956_v13  ;;  %1821 = vmatprep.subr.bf16.mxu1 %v1956_v13 }
  0x50   :  { %1725 = vmatpush3.bf16.msra.mxu0 %v1957_v14  ;;  %1829 = vmatpush3.bf16.msra.mxu1 %v1957_v14 }
  0x51   :  { %1726 = vmatprep.subr.bf16.mxu0 %v1964_v15  ;;  %1822 = vmatprep.subr.bf16.mxu1 %v1964_v15 }
  0x52   :  { %788 = vmatmul.mubr.bf16.gmra.mrb[8].mxu0 %v2277_v16  ;;  %955 = vmatmul.mubr.bf16.gmra.mrb[8].mxu1 %v2277_v16 }
  0x53   :  { %1677 = vmatprep.mubr.msk.bf16.mxu0 %vm676_vm0, %v2282_v17  ;;  %1692 = vmatprep.mubr.msk.bf16.mxu1 %vm676_vm0, %v2282_v17 }
  0x54   :  { %1727 = vmatpush3.bf16.msra.mxu0 %v1965_v18  ;;  %1830 = vmatpush3.bf16.msra.mxu1 %v1965_v18 }
  0x55   :  { %1728 = vmatprep.subr.bf16.mxu0 %v1969_v19  ;;  %1823 = vmatprep.subr.bf16.mxu1 %v1969_v19 }
  0x58   :  { %1729 = vmatpush3.bf16.msra.mxu0 %v1972_v20  ;;  %1831 = vmatpush3.bf16.msra.mxu1 %v1972_v20 }
  0x59   :  { %1730 = vmatprep.subr.bf16.mxu0 %v1977_v21  ;;  %1824 = vmatprep.subr.bf16.mxu1 %v1977_v21 }
  0x5a   :  { %798 = vmatmul.mubr.bf16.gmra.mrb[12].mxu0 %v2305_v22  ;;  %965 = vmatmul.mubr.bf16.gmra.mrb[12].mxu1 %v2305_v22 }
  0x5b   :  { %1678 = vmatprep.mubr.msk.bf16.mxu0 %vm676_vm0, %v2310_v23  ;;  %1693 = vmatprep.mubr.msk.bf16.mxu1 %vm676_vm0, %v2310_v23 }
  0x5c   :  { %1731 = vmatpush3.bf16.msra.mxu0 %v1978_v24  ;;  %1832 = vmatpush3.bf16.msra.mxu1 %v1978_v24 }
  0x5d   :  { %1834 = vmatprep.subr.msk.bf16.mxu0 %vm719_vm1, %v1985_v25  ;;  %1835 = vmatprep.subr.msk.bf16.mxu1 %vm719_vm1, %v1985_v25 }
  0x60   :  { %1733 = vmatpush3.bf16.msra.mxu0 %v1986_v26  ;;  %1833 = vmatpush3.bf16.msra.mxu1 %v1986_v26 }
  0x62   :  { %808 = vmatmul.mubr.bf16.gmra.mrb[16].mxu0 %v2332_v27  ;;  %975 = vmatmul.mubr.bf16.gmra.mrb[16].mxu1 %v2332_v27 }
  0x63   :  { %1679 = vmatprep.mubr.msk.bf16.mxu0 %vm676_vm0, %v2337_v28  ;;  %1694 = vmatprep.mubr.msk.bf16.mxu1 %vm676_vm0, %v2337_v28 }
  0x6a   :  { %818 = vmatmul.mubr.bf16.gmra.mrb[20].mxu0 %v2348_v29  ;;  %985 = vmatmul.mubr.bf16.gmra.mrb[20].mxu1 %v2348_v29 }
  0x6b   :  { %1680 = vmatprep.mubr.msk.bf16.mxu0 %vm676_vm0, %v2353_v30  ;;  %1695 = vmatprep.mubr.msk.bf16.mxu1 %vm676_vm0, %v2353_v30 }
  0x72   :  { %828 = vmatmul.mubr.bf16.gmra.mrb[24].mxu0 %v2364_v31  ;;  %995 = vmatmul.mubr.bf16.gmra.mrb[24].mxu1 %v2364_v31 }
  0x73   :  { %1681 = vmatprep.mubr.msk.bf16.mxu0 %vm676_vm0, %v1961_v32  ;;  %1696 = vmatprep.mubr.msk.bf16.mxu1 %vm676_vm0, %v1961_v32 }
  0x7a   :  { %835 = vmatmul.mubr.bf16.gmra.mrb[28].mxu0 %v1963_v33  ;;  %1003 = vmatmul.mubr.bf16.gmra.mrb[28].mxu1 %v1963_v33 }
  0x7b   :  { %1682 = vmatprep.mubr.msk.bf16.mxu0 %vm676_vm0, %v1966_v34  ;;  %1697 = vmatprep.mubr.msk.bf16.mxu1 %vm676_vm0, %v1966_v34 }
  0x82   :  { %845 = vmatmul.mubr.bf16.gmra.mrb[32].mxu0 %v1968_v35  ;;  %1013 = vmatmul.mubr.bf16.gmra.mrb[32].mxu1 %v1968_v35 }
  0x83   :  { %1683 = vmatprep.mubr.msk.bf16.mxu0 %vm676_vm0, %v1970_v36  ;;  %1698 = vmatprep.mubr.msk.bf16.mxu1 %vm676_vm0, %v1970_v36 }
  0x8a   :  { %855 = vmatmul.mubr.bf16.gmra.mrb[36].mxu0 %v1973_v37  ;;  %1023 = vmatmul.mubr.bf16.gmra.mrb[36].mxu1 %v1973_v37 }
  0x8b   :  { %1684 = vmatprep.mubr.msk.bf16.mxu0 %vm676_vm0, %v1974_v38  ;;  %1699 = vmatprep.mubr.msk.bf16.mxu1 %vm676_vm0, %v1974_v38 }
  0x92   :  { %865 = vmatmul.mubr.bf16.gmra.mrb[40].mxu0 %v1976_v39  ;;  %1033 = vmatmul.mubr.bf16.gmra.mrb[40].mxu1 %v1976_v39 }
  0x93   :  { %1685 = vmatprep.mubr.msk.bf16.mxu0 %vm676_vm0, %v1979_v40  ;;  %1700 = vmatprep.mubr.msk.bf16.mxu1 %vm676_vm0, %v1979_v40 }
  0x9a   :  { %875 = vmatmul.mubr.bf16.gmra.mrb[44].mxu0 %v1981_v41  ;;  %1043 = vmatmul.mubr.bf16.gmra.mrb[44].mxu1 %v1981_v41 }
  0x9b   :  { %1686 = vmatprep.mubr.msk.bf16.mxu0 %vm676_vm0, %v1982_v42  ;;  %1701 = vmatprep.mubr.msk.bf16.mxu1 %vm676_vm0, %v1982_v42 }
  0xa2   :  { %885 = vmatmul.mubr.bf16.gmra.mrb[48].mxu0 %v1984_v43  ;;  %1053 = vmatmul.mubr.bf16.gmra.mrb[48].mxu1 %v1984_v43 }
  0xa3   :  { %1687 = vmatprep.mubr.msk.bf16.mxu0 %vm676_vm0, %v1987_v44  ;;  %1702 = vmatprep.mubr.msk.bf16.mxu1 %vm676_vm0, %v1987_v44 }
  0xaa   :  { %895 = vmatmul.mubr.bf16.gmra.mrb[52].mxu0 %v1989_v45  ;;  %1063 = vmatmul.mubr.bf16.gmra.mrb[52].mxu1 %v1989_v45 }
  0xab   :  { %1703 = vmatprep.mubr.msk.bf16.mxu0 %vm676_vm0, %v2154_v47  ;;  %1710 = vmatprep.mubr.msk.bf16.mxu1 %vm676_vm0, %v1961_v32  ;;  %v2452_v47 = vshrl.u32 %v1240_v46, 7 }
  0xad   :  { %vm1317_vm2 = vcmp.lt.s32.totalorder %v2452_v47, 6  ;;  %vm1242_vm3 = vcmp.lt.s32.totalorder %v2452_v47, 7  ;;  %vm1392_vm4 = vcmp.lt.s32.totalorder %v2452_v47, 5  ;;  %vm1467_vm5 = vcmp.lt.s32.totalorder %v2452_v47, 4 }
  0xb2   :  { %1104 = vmatmul.mubr.bf16.vlgmr.msra.gmra.mrb[56].mxu0 %v2221_v4  ;;  %1159 = vmatmul.mubr.bf16.vlgmr.msra.gmra.mrb[56].mxu1 %v1963_v33 }
  0xb3   :  { %1704 = vmatprep.mubr.msk.bf16.mxu0 %vm676_vm0, %v2229_v6  ;;  %1711 = vmatprep.mubr.msk.bf16.mxu1 %vm676_vm0, %v1966_v34 }
  0xba   :  { %1112 = vmatmul.mubr.bf16.gmra.mrb[60].mxu0 %v2249_v10  ;;  %1167 = vmatmul.mubr.bf16.gmra.mrb[60].mxu1 %v1968_v35 }
  0xbb   :  { %1705 = vmatprep.mubr.msk.bf16.mxu0 %vm676_vm0, %v2254_v11  ;;  %1712 = vmatprep.mubr.msk.bf16.mxu1 %vm676_vm0, %v1970_v36 }
  0xc2   :  { %1120 = vmatmul.mubr.bf16.gmra.mrb[64].mxu0 %v2277_v16  ;;  %1175 = vmatmul.mubr.bf16.gmra.mrb[64].mxu1 %v1973_v37 }
  0xc3   :  { %1706 = vmatprep.mubr.msk.bf16.mxu0 %vm676_vm0, %v2282_v17  ;;  %1713 = vmatprep.mubr.msk.bf16.mxu1 %vm676_vm0, %v1974_v38 }
  0xca   :  { %1128 = vmatmul.mubr.bf16.gmra.mrb[68].mxu0 %v2305_v22  ;;  %1183 = vmatmul.mubr.bf16.gmra.mrb[68].mxu1 %v1976_v39 }
  0xcb   :  { %1707 = vmatprep.mubr.msk.bf16.mxu0 %vm676_vm0, %v2310_v23  ;;  %1714 = vmatprep.mubr.msk.bf16.mxu1 %vm676_vm0, %v1979_v40 }
  0xd2   :  { %1136 = vmatmul.mubr.bf16.gmra.mrb[72].mxu0 %v2332_v27  ;;  %1191 = vmatmul.mubr.bf16.gmra.mrb[72].mxu1 %v1981_v41 }
  0xd3   :  { %1708 = vmatprep.mubr.msk.bf16.mxu0 %vm676_vm0, %v2337_v28  ;;  %1715 = vmatprep.mubr.msk.bf16.mxu1 %vm676_vm0, %v1982_v42 }
  0xda   :  { %1144 = vmatmul.mubr.bf16.gmra.mrb[76].mxu0 %v2348_v29  ;;  %1199 = vmatmul.mubr.bf16.gmra.mrb[76].mxu1 %v1984_v43 }
  0xdb   :  { %1709 = vmatprep.mubr.msk.bf16.mxu0 %vm676_vm0, %v2353_v30  ;;  %1716 = vmatprep.mubr.msk.bf16.mxu1 %vm676_vm0, %v1987_v44 }
  0xe2   :  { %1152 = vmatmul.mubr.bf16.gmra.mrb[80].mxu0 %v2364_v31  ;;  %1207 = vmatmul.mubr.bf16.gmra.mrb[80].mxu1 %v1989_v45 }
 0x115   :  { %v769_v48 = vpop.f32.mrb[0].mxu0  ;;  %v936_v49 = vpop.f32.mrb[0].mxu1 }
 0x116   :  { %v771_v50 = vpop.f32.mrb[1].mxu0  ;;  %v938_v51 = vpop.f32.mrb[1].mxu1  ;;  %v1291_v54 = vrot.slane %v936_v49, 2 }
 0x117   :  { %v773_v52 = vpop.f32.mrb[2].mxu0  ;;  %v940_v53 = vpop.f32.mrb[2].mxu1  ;;  %v1214_v58 = vrot.slane %v771_v50, 1  ;;  %v1366_v59 = vrot.slane %v938_v51, 3 }
 0x118   :  { %v1292_v55 = vrot.slane %v940_v53, 2  ;;  %v775_v56 = vpop.f32.mrb[3].mxu0  ;;  %v942_v57 = vpop.f32.mrb[3].mxu1 }
 0x119   :  { %v1215_v60 = vrot.slane %v775_v56, 1  ;;  %v1367_v61 = vrot.slane %v942_v57, 3 }
 0x11a   :  { %v1341_v62 = vsel %vm1317_vm2, %v1291_v54, %v1292_v55 }
 0x11b   :  { %v1266_v63 = vsel %vm1242_vm3, %v1214_v58, %v1215_v60  ;;  %v1416_v0 = vsel %vm1392_vm4, %v1366_v59, %v1367_v61 }
 0x11c   :  { %v1267_v1 = vadd.f32 %v1266_v63, %v769_v48 }
 0x11d   :  { %v779_v2 = vpop.f32.mrb[4].mxu0  ;;  %v946_v3 = vpop.f32.mrb[4].mxu1 }
 0x11e   :  { %v1342_v4 = vadd.f32 %v1341_v62, %v1267_v1  ;;  %v1293_v5 = vrot.slane %v946_v3, 2  ;;  %v781_v6 = vpop.f32.mrb[5].mxu0  ;;  %v948_v7 = vpop.f32.mrb[5].mxu1 }
 0x11f   :  { %v1216_v8 = vrot.slane %v781_v6, 1  ;;  %v1368_v9 = vrot.slane %v948_v7, 3  ;;  %v783_v10 = vpop.f32.mrb[6].mxu0  ;;  %v950_v11 = vpop.f32.mrb[6].mxu1 }
 0x120   :  { %v2463_v12 = vadd.f32 %v1416_v0, %v1342_v4  ;;  %v1340_v13 = vsel %vm1317_vm2, %v1292_v55, %v1293_v5  ;;  %v1294_v14 = vrot.slane %v950_v11, 2  ;;  %v785_v15 = vpop.f32.mrb[7].mxu0  ;;  %v952_v16 = vpop.f32.mrb[7].mxu1 }
 0x121   :  { %v1265_v17 = vsel %vm1242_vm3, %v1215_v60, %v1216_v8  ;;  %v1415_v18 = vsel %vm1392_vm4, %v1367_v61, %v1368_v9  ;;  %v1217_v19 = vrot.slane %v785_v15, 1  ;;  %v1369_v20 = vrot.slane %v952_v16, 3 }
 0x122   :  { %v1268_v21 = vadd.f32 %v1265_v17, %v773_v52  ;;  %v1339_v22 = vsel %vm1317_vm2, %v1293_v5, %v1294_v14 }
 0x123   :  { %v1264_v23 = vsel %vm1242_vm3, %v1216_v8, %v1217_v19  ;;  %v1414_v24 = vsel %vm1392_vm4, %v1368_v9, %v1369_v20 }
 0x124   :  { %v1343_v25 = vadd.f32 %v1340_v13, %v1268_v21  ;;  %v1269_v26 = vadd.f32 %v1264_v23, %v779_v2 }
 0x125   :  { %v789_v27 = vpop.f32.mrb[8].mxu0  ;;  %v956_v28 = vpop.f32.mrb[8].mxu1 }
 0x126   :  { %v2477_v29 = vadd.f32 %v1415_v18, %v1343_v25  ;;  %v1344_v30 = vadd.f32 %v1339_v22, %v1269_v26  ;;  %v1295_v31 = vrot.slane %v956_v28, 2  ;;  %v791_v32 = vpop.f32.mrb[9].mxu0  ;;  %v958_v33 = vpop.f32.mrb[9].mxu1 }
 0x127   :  { %v1218_v34 = vrot.slane %v791_v32, 1  ;;  %v1370_v35 = vrot.slane %v958_v33, 3  ;;  %v793_v36 = vpop.f32.mrb[10].mxu0  ;;  %v960_v37 = vpop.f32.mrb[10].mxu1 }
 0x128   :  { %v2479_v38 = vadd.f32 %v1414_v24, %v1344_v30  ;;  %v1338_v39 = vsel %vm1317_vm2, %v1294_v14, %v1295_v31  ;;  %v1296_v40 = vrot.slane %v960_v37, 2  ;;  %v795_v41 = vpop.f32.mrb[11].mxu0  ;;  %v962_v42 = vpop.f32.mrb[11].mxu1 }
 0x129   :  { %v1263_v43 = vsel %vm1242_vm3, %v1217_v19, %v1218_v34  ;;  %v1413_v44 = vsel %vm1392_vm4, %v1369_v20, %v1370_v35  ;;  %v1219_v45 = vrot.slane %v795_v41, 1  ;;  %v1371_v46 = vrot.slane %v962_v42, 3 }
 0x12a   :  { %v1270_v48 = vadd.f32 %v1263_v43, %v783_v10  ;;  %v1337_v49 = vsel %vm1317_vm2, %v1295_v31, %v1296_v40 }
 0x12b   :  { %v1262_v50 = vsel %vm1242_vm3, %v1218_v34, %v1219_v45  ;;  %v1412_v51 = vsel %vm1392_vm4, %v1370_v35, %v1371_v46 }
 0x12c   :  { %v1345_v52 = vadd.f32 %v1338_v39, %v1270_v48  ;;  %v1271_v53 = vadd.f32 %v1262_v50, %v789_v27 }
 0x12d   :  { %v799_v54 = vpop.f32.mrb[12].mxu0  ;;  %v966_v55 = vpop.f32.mrb[12].mxu1 }
 0x12e   :  { %v2493_v56 = vadd.f32 %v1413_v44, %v1345_v52  ;;  %v1346_v57 = vadd.f32 %v1337_v49, %v1271_v53  ;;  %v1297_v58 = vrot.slane %v966_v55, 2  ;;  %v801_v59 = vpop.f32.mrb[13].mxu0  ;;  %v968_v60 = vpop.f32.mrb[13].mxu1 }
 0x12f   :  { %v1220_v61 = vrot.slane %v801_v59, 1  ;;  %v1372_v62 = vrot.slane %v968_v60, 3  ;;  %v803_v63 = vpop.f32.mrb[14].mxu0  ;;  %v970_v0 = vpop.f32.mrb[14].mxu1 }
 0x130   :  { %v2495_v1 = vadd.f32 %v1412_v51, %v1346_v57  ;;  %v1336_v2 = vsel %vm1317_vm2, %v1296_v40, %v1297_v58  ;;  %v1298_v3 = vrot.slane %v970_v0, 2  ;;  %v805_v4 = vpop.f32.mrb[15].mxu0  ;;  %v972_v5 = vpop.f32.mrb[15].mxu1 }
 0x131   :  { %v1261_v6 = vsel %vm1242_vm3, %v1219_v45, %v1220_v61  ;;  %v1411_v7 = vsel %vm1392_vm4, %v1371_v46, %v1372_v62  ;;  %v1221_v8 = vrot.slane %v805_v4, 1  ;;  %v1373_v9 = vrot.slane %v972_v5, 3 }
 0x132   :  { %v1272_v10 = vadd.f32 %v1261_v6, %v793_v36  ;;  %v1335_v11 = vsel %vm1317_vm2, %v1297_v58, %v1298_v3 }
 0x133   :  { %v1260_v13 = vsel %vm1242_vm3, %v1220_v61, %v1221_v8  ;;  %v1410_v14 = vsel %vm1392_vm4, %v1372_v62, %v1373_v9 }
 0x134   :  { %v1347_v15 = vadd.f32 %v1336_v2, %v1272_v10  ;;  %v1273_v16 = vadd.f32 %v1260_v13, %v799_v54 }
 0x135   :  { %v809_v17 = vpop.f32.mrb[16].mxu0  ;;  %v976_v18 = vpop.f32.mrb[16].mxu1 }
 0x136   :  { %v2509_v19 = vadd.f32 %v1411_v7, %v1347_v15  ;;  %v1348_v20 = vadd.f32 %v1335_v11, %v1273_v16  ;;  %v1299_v21 = vrot.slane %v976_v18, 2  ;;  %v811_v22 = vpop.f32.mrb[17].mxu0  ;;  %v978_v23 = vpop.f32.mrb[17].mxu1 }
 0x137   :  { %v1222_v24 = vrot.slane %v811_v22, 1  ;;  %v1374_v25 = vrot.slane %v978_v23, 3  ;;  %v813_v26 = vpop.f32.mrb[18].mxu0  ;;  %v980_v27 = vpop.f32.mrb[18].mxu1 }
 0x138   :  { %v2511_v28 = vadd.f32 %v1410_v14, %v1348_v20  ;;  %v1334_v30 = vsel %vm1317_vm2, %v1298_v3, %v1299_v21  ;;  %v1300_v31 = vrot.slane %v980_v27, 2  ;;  %v815_v32 = vpop.f32.mrb[19].mxu0  ;;  %v982_v33 = vpop.f32.mrb[19].mxu1 }
 0x139   :  { %v1259_v34 = vsel %vm1242_vm3, %v1221_v8, %v1222_v24  ;;  %v1409_v35 = vsel %vm1392_vm4, %v1373_v9, %v1374_v25  ;;  %v1223_v36 = vrot.slane %v815_v32, 1  ;;  %v1375_v37 = vrot.slane %v982_v33, 3 }
 0x13a   :  { %v1274_v39 = vadd.f32 %v1259_v34, %v803_v63  ;;  %v1333_v40 = vsel %vm1317_vm2, %v1299_v21, %v1300_v31 }
 0x13b   :  { %v1258_v41 = vsel %vm1242_vm3, %v1222_v24, %v1223_v36  ;;  %v1408_v42 = vsel %vm1392_vm4, %v1374_v25, %v1375_v37 }
 0x13c   :  { %v1349_v43 = vadd.f32 %v1334_v30, %v1274_v39  ;;  %v1275_v44 = vadd.f32 %v1258_v41, %v809_v17 }
 0x13d   :  { %v819_v45 = vpop.f32.mrb[20].mxu0  ;;  %v986_v46 = vpop.f32.mrb[20].mxu1 }
 0x13e   :  { %v2525_v48 = vadd.f32 %v1409_v35, %v1349_v43  ;;  %v1350_v49 = vadd.f32 %v1333_v40, %v1275_v44  ;;  %v1301_v50 = vrot.slane %v986_v46, 2  ;;  %v821_v51 = vpop.f32.mrb[21].mxu0  ;;  %v988_v52 = vpop.f32.mrb[21].mxu1 }
 0x13f   :  { %v1224_v53 = vrot.slane %v821_v51, 1  ;;  %v1376_v54 = vrot.slane %v988_v52, 3  ;;  %v823_v55 = vpop.f32.mrb[22].mxu0  ;;  %v990_v57 = vpop.f32.mrb[22].mxu1 }
 0x140   :  { %v2527_v58 = vadd.f32 %v1408_v42, %v1350_v49  ;;  %v1332_v59 = vsel %vm1317_vm2, %v1300_v31, %v1301_v50  ;;  %v1302_v60 = vrot.slane %v990_v57, 2  ;;  %v825_v61 = vpop.f32.mrb[23].mxu0  ;;  %v992_v62 = vpop.f32.mrb[23].mxu1 }
 0x141   :  { %v1257_v63 = vsel %vm1242_vm3, %v1223_v36, %v1224_v53  ;;  %v1407_v0 = vsel %vm1392_vm4, %v1375_v37, %v1376_v54  ;;  %v1225_v2 = vrot.slane %v825_v61, 1  ;;  %v1377_v3 = vrot.slane %v992_v62, 3 }
 0x142   :  { %v1276_v4 = vadd.f32 %v1257_v63, %v813_v26  ;;  %v1331_v5 = vsel %vm1317_vm2, %v1301_v50, %v1302_v60 }
 0x143   :  { %v1256_v6 = vsel %vm1242_vm3, %v1224_v53, %v1225_v2  ;;  %v1406_v7 = vsel %vm1392_vm4, %v1376_v54, %v1377_v3 }
 0x144   :  { %v1351_v8 = vadd.f32 %v1332_v59, %v1276_v4  ;;  %v1277_v9 = vadd.f32 %v1256_v6, %v819_v45 }
 0x145   :  { %v829_v10 = vpop.f32.mrb[24].mxu0  ;;  %v996_v11 = vpop.f32.mrb[24].mxu1 }
 0x146   :  { %v2541_v13 = vadd.f32 %v1407_v0, %v1351_v8  ;;  %v1352_v14 = vadd.f32 %v1331_v5, %v1277_v9  ;;  %v1303_v15 = vrot.slane %v996_v11, 2  ;;  %v830_v16 = vpop.f32.mrb[25].mxu0  ;;  %v998_v17 = vpop.f32.mrb[25].mxu1 }
 0x147   :  { %v1226_v18 = vrot.slane %v830_v16, 1  ;;  %v1378_v20 = vrot.slane %v998_v17, 3  ;;  %v832_v21 = vpop.f32.mrb[26].mxu0  ;;  %v1000_v22 = vpop.f32.mrb[26].mxu1 }
 0x148   :  { %v2543_v23 = vadd.f32 %v1406_v7, %v1352_v14  ;;  %v1330_v24 = vsel %vm1317_vm2, %v1302_v60, %v1303_v15  ;;  %v833_v25 = vpop.f32.mrb[27].mxu0  ;;  %v1001_v26 = vpop.f32.mrb[27].mxu1 }
 0x149   :  { %v1255_v27 = vsel %vm1242_vm3, %v1225_v2, %v1226_v18  ;;  %v1405_v30 = vsel %vm1392_vm4, %v1377_v3, %v1378_v20 }
 0x14a   :  { %v1278_v31 = vadd.f32 %v1255_v27, %v823_v55 }
 0x14c   :  { %v1353_v32 = vadd.f32 %v1330_v24, %v1278_v31 }
 0x14d   :  { %v836_v33 = vpop.f32.mrb[28].mxu0  ;;  %v1004_v34 = vpop.f32.mrb[28].mxu1 }
 0x14e   :  { %v2551_v35 = vadd.f32 %v1405_v30, %v1353_v32  ;;  %v838_v36 = vpop.f32.mrb[29].mxu0  ;;  %v1006_v37 = vpop.f32.mrb[29].mxu1  ;;  %v1304_v41 = vrot.slane %v1004_v34, 2 }
 0x14f   :  { %v840_v39 = vpop.f32.mrb[30].mxu0  ;;  %v1008_v40 = vpop.f32.mrb[30].mxu1  ;;  %v1227_v45 = vrot.slane %v838_v36, 1  ;;  %v1379_v46 = vrot.slane %v1006_v37, 3 }
 0x150   :  { %v1305_v42 = vrot.slane %v1008_v40, 2  ;;  %v842_v43 = vpop.f32.mrb[31].mxu0  ;;  %v1010_v44 = vpop.f32.mrb[31].mxu1 }
 0x151   :  { %v1228_v49 = vrot.slane %v842_v43, 1  ;;  %v1380_v50 = vrot.slane %v1010_v44, 3 }
 0x152   :  { %v1329_v51 = vsel %vm1317_vm2, %v1304_v41, %v1305_v42 }
 0x153   :  { %v1254_v52 = vsel %vm1242_vm3, %v1227_v45, %v1228_v49  ;;  %v1404_v53 = vsel %vm1392_vm4, %v1379_v46, %v1380_v50 }
 0x154   :  { %v1279_v54 = vadd.f32 %v1254_v52, %v836_v33 }
 0x155   :  { %v846_v55 = vpop.f32.mrb[32].mxu0  ;;  %v1014_v57 = vpop.f32.mrb[32].mxu1 }
 0x156   :  { %v1354_v59 = vadd.f32 %v1329_v51, %v1279_v54  ;;  %v1306_v60 = vrot.slane %v1014_v57, 2  ;;  %v848_v61 = vpop.f32.mrb[33].mxu0  ;;  %v1016_v62 = vpop.f32.mrb[33].mxu1 }
 0x157   :  { %v1229_v63 = vrot.slane %v848_v61, 1  ;;  %v1381_v0 = vrot.slane %v1016_v62, 3  ;;  %v850_v2 = vpop.f32.mrb[34].mxu0  ;;  %v1018_v3 = vpop.f32.mrb[34].mxu1 }
 0x158   :  { %v2559_v4 = vadd.f32 %v1404_v53, %v1354_v59  ;;  %v1328_v5 = vsel %vm1317_vm2, %v1305_v42, %v1306_v60  ;;  %v1307_v6 = vrot.slane %v1018_v3, 2  ;;  %v852_v7 = vpop.f32.mrb[35].mxu0  ;;  %v1020_v8 = vpop.f32.mrb[35].mxu1 }
 0x159   :  { %v1253_v9 = vsel %vm1242_vm3, %v1228_v49, %v1229_v63  ;;  %v1403_v10 = vsel %vm1392_vm4, %v1380_v50, %v1381_v0  ;;  %v1230_v11 = vrot.slane %v852_v7, 1  ;;  %v1382_v14 = vrot.slane %v1020_v8, 3 }
 0x15a   :  { %v1280_v15 = vadd.f32 %v1253_v9, %v840_v39  ;;  %v1327_v16 = vsel %vm1317_vm2, %v1306_v60, %v1307_v6 }
 0x15b   :  { %v1252_v17 = vsel %vm1242_vm3, %v1229_v63, %v1230_v11  ;;  %v1402_v18 = vsel %vm1392_vm4, %v1381_v0, %v1382_v14 }
 0x15c   :  { %v1355_v20 = vadd.f32 %v1328_v5, %v1280_v15  ;;  %v1281_v21 = vadd.f32 %v1252_v17, %v846_v55 }
 0x15d   :  { %v856_v22 = vpop.f32.mrb[36].mxu0  ;;  %v1024_v24 = vpop.f32.mrb[36].mxu1 }
 0x15e   :  { %v2573_v25 = vadd.f32 %v1403_v10, %v1355_v20  ;;  %v1356_v26 = vadd.f32 %v1327_v16, %v1281_v21  ;;  %v1308_v27 = vrot.slane %v1024_v24, 2  ;;  %v858_v30 = vpop.f32.mrb[37].mxu0  ;;  %v1026_v31 = vpop.f32.mrb[37].mxu1 }
 0x15f   :  { %v1231_v32 = vrot.slane %v858_v30, 1  ;;  %v1383_v33 = vrot.slane %v1026_v31, 3  ;;  %v860_v34 = vpop.f32.mrb[38].mxu0  ;;  %v1028_v36 = vpop.f32.mrb[38].mxu1 }
 0x160   :  { %v2575_v37 = vadd.f32 %v1402_v18, %v1356_v26  ;;  %v1326_v39 = vsel %vm1317_vm2, %v1307_v6, %v1308_v27  ;;  %v1309_v40 = vrot.slane %v1028_v36, 2  ;;  %v862_v41 = vpop.f32.mrb[39].mxu0  ;;  %v1030_v42 = vpop.f32.mrb[39].mxu1 }
 0x161   :  { %v1251_v43 = vsel %vm1242_vm3, %v1230_v11, %v1231_v32  ;;  %v1401_v44 = vsel %vm1392_vm4, %v1382_v14, %v1383_v33  ;;  %v1232_v45 = vrot.slane %v862_v41, 1  ;;  %v1384_v46 = vrot.slane %v1030_v42, 3 }
 0x162   :  { %v1282_v49 = vadd.f32 %v1251_v43, %v850_v2  ;;  %v1325_v50 = vsel %vm1317_vm2, %v1308_v27, %v1309_v40 }
 0x163   :  { %v1250_v51 = vsel %vm1242_vm3, %v1231_v32, %v1232_v45  ;;  %v1400_v52 = vsel %vm1392_vm4, %v1383_v33, %v1384_v46 }
 0x164   :  { %v1357_v53 = vadd.f32 %v1326_v39, %v1282_v49  ;;  %v1283_v54 = vadd.f32 %v1250_v51, %v856_v22 }
 0x165   :  { %v866_v55 = vpop.f32.mrb[40].mxu0  ;;  %v1034_v57 = vpop.f32.mrb[40].mxu1 }
 0x166   :  { %v2589_v59 = vadd.f32 %v1401_v44, %v1357_v53  ;;  %v1358_v60 = vadd.f32 %v1325_v50, %v1283_v54  ;;  %v1310_v61 = vrot.slane %v1034_v57, 2  ;;  %v868_v62 = vpop.f32.mrb[41].mxu0  ;;  %v1036_v63 = vpop.f32.mrb[41].mxu1 }
 0x167   :  { %v1233_v0 = vrot.slane %v868_v62, 1  ;;  %v1385_v2 = vrot.slane %v1036_v63, 3  ;;  %v870_v3 = vpop.f32.mrb[42].mxu0  ;;  %v1038_v5 = vpop.f32.mrb[42].mxu1 }
 0x168   :  { %v2591_v6 = vadd.f32 %v1400_v52, %v1358_v60  ;;  %v1324_v7 = vsel %vm1317_vm2, %v1309_v40, %v1310_v61  ;;  %v1311_v8 = vrot.slane %v1038_v5, 2  ;;  %v872_v9 = vpop.f32.mrb[43].mxu0  ;;  %v1040_v10 = vpop.f32.mrb[43].mxu1 }
 0x169   :  { %v1249_v11 = vsel %vm1242_vm3, %v1232_v45, %v1233_v0  ;;  %v1399_v14 = vsel %vm1392_vm4, %v1384_v46, %v1385_v2  ;;  %v1234_v15 = vrot.slane %v872_v9, 1  ;;  %v1386_v16 = vrot.slane %v1040_v10, 3 }
 0x16a   :  { %v1284_v17 = vadd.f32 %v1249_v11, %v860_v34  ;;  %v1323_v18 = vsel %vm1317_vm2, %v1310_v61, %v1311_v8 }
 0x16b   :  { %v1248_v20 = vsel %vm1242_vm3, %v1233_v0, %v1234_v15  ;;  %v1398_v21 = vsel %vm1392_vm4, %v1385_v2, %v1386_v16 }
 0x16c   :  { %v1359_v22 = vadd.f32 %v1324_v7, %v1284_v17  ;;  %v1285_v24 = vadd.f32 %v1248_v20, %v866_v55 }
 0x16d   :  { %v876_v26 = vpop.f32.mrb[44].mxu0  ;;  %v1044_v27 = vpop.f32.mrb[44].mxu1 }
 0x16e   :  { %v2605_v30 = vadd.f32 %v1399_v14, %v1359_v22  ;;  %v1360_v31 = vadd.f32 %v1323_v18, %v1285_v24  ;;  %v1312_v32 = vrot.slane %v1044_v27, 2  ;;  %v878_v33 = vpop.f32.mrb[45].mxu0  ;;  %v1046_v36 = vpop.f32.mrb[45].mxu1 }
 0x16f   :  { %v1235_v34 = vrot.slane %v878_v33, 1  ;;  %v1387_v39 = vrot.slane %v1046_v36, 3  ;;  %v880_v40 = vpop.f32.mrb[46].mxu0  ;;  %v1048_v41 = vpop.f32.mrb[46].mxu1 }
 0x170   :  { %v2607_v42 = vadd.f32 %v1398_v21, %v1360_v31  ;;  %v1322_v43 = vsel %vm1317_vm2, %v1311_v8, %v1312_v32  ;;  %v1313_v44 = vrot.slane %v1048_v41, 2  ;;  %v882_v45 = vpop.f32.mrb[47].mxu0  ;;  %v1050_v46 = vpop.f32.mrb[47].mxu1 }
 0x171   :  { %v1247_v49 = vsel %vm1242_vm3, %v1234_v15, %v1235_v34  ;;  %v1397_v50 = vsel %vm1392_vm4, %v1386_v16, %v1387_v39  ;;  %v1236_v51 = vrot.slane %v882_v45, 1  ;;  %v1388_v52 = vrot.slane %v1050_v46, 3 }
 0x172   :  { %v1286_v53 = vadd.f32 %v1247_v49, %v870_v3  ;;  %v1321_v54 = vsel %vm1317_vm2, %v1312_v32, %v1313_v44 }
 0x173   :  { %v1246_v55 = vsel %vm1242_vm3, %v1235_v34, %v1236_v51  ;;  %v1396_v57 = vsel %vm1392_vm4, %v1387_v39, %v1388_v52 }
 0x174   :  { %v1361_v60 = vadd.f32 %v1322_v43, %v1286_v53  ;;  %v1287_v61 = vadd.f32 %v1246_v55, %v876_v26 }
 0x175   :  { %v886_v62 = vpop.f32.mrb[48].mxu0  ;;  %v1054_v63 = vpop.f32.mrb[48].mxu1 }
 0x176   :  { %v2621_v0 = vadd.f32 %v1397_v50, %v1361_v60  ;;  %v1362_v2 = vadd.f32 %v1321_v54, %v1287_v61  ;;  %v1314_v5 = vrot.slane %v1054_v63, 2  ;;  %v888_v7 = vpop.f32.mrb[49].mxu0  ;;  %v1056_v8 = vpop.f32.mrb[49].mxu1 }
 0x177   :  { %v1237_v3 = vrot.slane %v888_v7, 1  ;;  %v1389_v9 = vrot.slane %v1056_v8, 3  ;;  %v890_v10 = vpop.f32.mrb[50].mxu0  ;;  %v1058_v11 = vpop.f32.mrb[50].mxu1 }
 0x178   :  { %v2623_v14 = vadd.f32 %v1396_v57, %v1362_v2  ;;  %v1320_v15 = vsel %vm1317_vm2, %v1313_v44, %v1314_v5  ;;  %v1315_v16 = vrot.slane %v1058_v11, 2  ;;  %v892_v17 = vpop.f32.mrb[51].mxu0  ;;  %v1060_v18 = vpop.f32.mrb[51].mxu1 }
 0x179   :  { %v1245_v20 = vsel %vm1242_vm3, %v1236_v51, %v1237_v3  ;;  %v1395_v21 = vsel %vm1392_vm4, %v1388_v52, %v1389_v9  ;;  %v1238_v22 = vrot.slane %v892_v17, 1  ;;  %v1390_v24 = vrot.slane %v1060_v18, 3 }
 0x17a   :  { %v1288_v26 = vadd.f32 %v1245_v20, %v880_v40  ;;  %v1319_v27 = vsel %vm1317_vm2, %v1314_v5, %v1315_v16 }
 0x17b   :  { %v1244_v31 = vsel %vm1242_vm3, %v1237_v3, %v1238_v22  ;;  %v1394_v32 = vsel %vm1392_vm4, %v1389_v9, %v1390_v24 }
 0x17c   :  { %v1363_v33 = vadd.f32 %v1320_v15, %v1288_v26  ;;  %v1289_v36 = vadd.f32 %v1244_v31, %v886_v62 }
 0x17d   :  { %v896_v34 = vpop.f32.mrb[52].mxu0  ;;  %v1064_v39 = vpop.f32.mrb[52].mxu1 }
 0x17e   :  { %v2637_v41 = vadd.f32 %v1395_v21, %v1363_v33  ;;  %v1364_v43 = vadd.f32 %v1319_v27, %v1289_v36  ;;  %v1316_v44 = vrot.slane %v1064_v39, 2  ;;  %v897_v45 = vpop.f32.mrb[53].mxu0  ;;  %v1066_v46 = vpop.f32.mrb[53].mxu1 }
 0x17f   :  { %v1239_v40 = vrot.slane %v897_v45, 1  ;;  %v1391_v49 = vrot.slane %v1066_v46, 3  ;;  %v899_v50 = vpop.f32.mrb[54].mxu0  ;;  %v1068_v51 = vpop.f32.mrb[54].mxu1 }
 0x180   :  { %v2639_v52 = vadd.f32 %v1394_v32, %v1364_v43  ;;  %v1318_v53 = vsel %vm1317_vm2, %v1315_v16, %v1316_v44  ;;  %v900_v54 = vpop.f32.mrb[55].mxu0  ;;  %v1069_v55 = vpop.f32.mrb[55].mxu1 }
 0x181   :  { %v1243_v57 = vsel %vm1242_vm3, %v1238_v22, %v1239_v40  ;;  %v1393_v60 = vsel %vm1392_vm4, %v1390_v24, %v1391_v49 }
 0x182   :  { %v1290_v61 = vadd.f32 %v1243_v57, %v890_v10 }
 0x184   :  { %v1365_v62 = vadd.f32 %v1318_v53, %v1290_v61 }
 0x185   :  { %v1734_v63 = vpop.f32.mrb[56].mxu0  ;;  %v1776_v2 = vpop.f32.mrb[56].mxu1 }
 0x186   :  { %v2647_v5 = vadd.f32 %v1393_v60, %v1365_v62  ;;  %v1735_v7 = vpop.f32.mrb[57].mxu0  ;;  %v1777_v8 = vpop.f32.mrb[57].mxu1 }
 0x187   :  { %v1736_v3 = vadd.f32 %v1735_v7, %v1734_v63  ;;  %v1778_v9 = vadd.f32 %v1777_v8, %v1776_v2  ;;  %v1737_v11 = vpop.f32.mrb[58].mxu0  ;;  %v1779_v15 = vpop.f32.mrb[58].mxu1 }
 0x188   :  { %v1738_v16 = vpop.f32.mrb[59].mxu0  ;;  %v1780_v17 = vpop.f32.mrb[59].mxu1 }
 0x189   :  { %v1739_v18 = vadd.f32 %v1738_v16, %v1737_v11  ;;  %v1781_v20 = vadd.f32 %v1780_v17, %v1779_v15  ;;  %v1441_v21 = vrot.slane %v1736_v3, 4  ;;  %v1454_v22 = vrot.slane %v1778_v9, 4 }
 0x18b   :  { %v1442_v10 = vrot.slane %v1739_v18, 4  ;;  %v1455_v24 = vrot.slane %v1781_v20, 4 }
 0x18d   :  { %v1491_v26 = vsel %vm1467_vm5, %v1441_v21, %v1442_v10  ;;  %v1479_v27 = vsel %vm1467_vm5, %v1454_v22, %v1455_v24  ;;  %v1740_v31 = vpop.f32.mrb[60].mxu0  ;;  %v1782_v32 = vpop.f32.mrb[60].mxu1 }
 0x18e   :  { %v2655_v33 = vadd.f32 %v1491_v26, %v2463_v12  ;;  %v2658_v36 = vadd.f32 %v1479_v27, %v2559_v4  ;;  %v1741_v34 = vpop.f32.mrb[61].mxu0  ;;  %v1783_v39 = vpop.f32.mrb[61].mxu1 }
 0x18f   :  { %v1742_v43 = vadd.f32 %v1741_v34, %v1740_v31  ;;  %v1784_v44 = vadd.f32 %v1783_v39, %v1782_v32  ;;  %v1743_v45 = vpop.f32.mrb[62].mxu0  ;;  %v1785_v46 = vpop.f32.mrb[62].mxu1 }
 0x190   :  { %v1744_v40 = vpop.f32.mrb[63].mxu0  ;;  %v1786_v49 = vpop.f32.mrb[63].mxu1 }
 0x191   :  { %v1443_v50 = vrot.slane %v1742_v43, 4  ;;  %v1456_v51 = vrot.slane %v1784_v44, 4  ;;  %v1745_v53 = vadd.f32 %v1744_v40, %v1743_v45  ;;  %v1787_v54 = vadd.f32 %v1786_v49, %v1785_v46 }
 0x193   :  { %v1490_v55 = vsel %vm1467_vm5, %v1442_v10, %v1443_v50  ;;  %v1478_v12 = vsel %vm1467_vm5, %v1455_v24, %v1456_v51  ;;  %v1444_v4 = vrot.slane %v1745_v53, 4  ;;  %v1457_v57 = vrot.slane %v1787_v54, 4 }
 0x194   :  { %v2665_v60 = vadd.f32 %v1490_v55, %v2477_v29  ;;  %v2668_v61 = vadd.f32 %v1478_v12, %v2573_v25 }
 0x195   :  { %v1489_v62 = vsel %vm1467_vm5, %v1443_v50, %v1444_v4  ;;  %v1477_v63 = vsel %vm1467_vm5, %v1456_v51, %v1457_v57  ;;  %v1746_v2 = vpop.f32.mrb[64].mxu0  ;;  %v1788_v7 = vpop.f32.mrb[64].mxu1 }
 0x196   :  { %v2675_v8 = vadd.f32 %v1489_v62, %v2479_v38  ;;  %v2678_v3 = vadd.f32 %v1477_v63, %v2575_v37  ;;  %v1747_v9 = vpop.f32.mrb[65].mxu0  ;;  %v1789_v29 = vpop.f32.mrb[65].mxu1 }
 0x197   :  { %v1748_v11 = vadd.f32 %v1747_v9, %v1746_v2  ;;  %v1790_v15 = vadd.f32 %v1789_v29, %v1788_v7  ;;  %v1749_v25 = vpop.f32.mrb[66].mxu0  ;;  %v1791_v16 = vpop.f32.mrb[66].mxu1 }
 0x198   :  { %v1750_v17 = vpop.f32.mrb[67].mxu0  ;;  %v1792_v18 = vpop.f32.mrb[67].mxu1 }
 0x199   :  { %v1445_v20 = vrot.slane %v1748_v11, 4  ;;  %v1458_v21 = vrot.slane %v1790_v15, 4  ;;  %v1751_v22 = vadd.f32 %v1750_v17, %v1749_v25  ;;  %v1793_v10 = vadd.f32 %v1792_v18, %v1791_v16 }
 0x19b   :  { %v1488_v24 = vsel %vm1467_vm5, %v1444_v4, %v1445_v20  ;;  %v1476_v38 = vsel %vm1467_vm5, %v1457_v57, %v1458_v21  ;;  %v1446_v37 = vrot.slane %v1751_v22, 4  ;;  %v1459_v26 = vrot.slane %v1793_v10, 4 }
 0x19c   :  { %v2685_v27 = vadd.f32 %v1488_v24, %v2493_v56  ;;  %v2688_v31 = vadd.f32 %v1476_v38, %v2589_v59 }
 0x19d   :  { %v1487_v32 = vsel %vm1467_vm5, %v1445_v20, %v1446_v37  ;;  %v1475_v34 = vsel %vm1467_vm5, %v1458_v21, %v1459_v26  ;;  %v1752_v39 = vpop.f32.mrb[68].mxu0  ;;  %v1794_v43 = vpop.f32.mrb[68].mxu1 }
 0x19e   :  { %v2695_v44 = vadd.f32 %v1487_v32, %v2495_v1  ;;  %v2698_v45 = vadd.f32 %v1475_v34, %v2591_v6  ;;  %v1753_v46 = vpop.f32.mrb[69].mxu0  ;;  %v1795_v56 = vpop.f32.mrb[69].mxu1 }
 0x19f   :  { %v1754_v40 = vadd.f32 %v1753_v46, %v1752_v39  ;;  %v1796_v49 = vadd.f32 %v1795_v56, %v1794_v43  ;;  %v1755_v59 = vpop.f32.mrb[70].mxu0  ;;  %v1797_v50 = vpop.f32.mrb[70].mxu1 }
 0x1a0   :  { %v1516_v51 = vmax.f32 %v2655_v33, %v2695_v44  ;;  %v1533_v53 = vmax.f32 %v2658_v36, %v2698_v45  ;;  %v1756_v54 = vpop.f32.mrb[71].mxu0  ;;  %v1798_v55 = vpop.f32.mrb[71].mxu1 }
 0x1a1   :  { %v1447_v12 = vrot.slane %v1754_v40, 4  ;;  %v1460_v1 = vrot.slane %v1796_v49, 4  ;;  %v1757_v4 = vadd.f32 %v1756_v54, %v1755_v59  ;;  %v1799_v57 = vadd.f32 %v1798_v55, %v1797_v50 }
 0x1a3   :  { %v1486_v6 = vsel %vm1467_vm5, %v1446_v37, %v1447_v12  ;;  %v1474_v62 = vsel %vm1467_vm5, %v1459_v26, %v1460_v1  ;;  %v1448_v63 = vrot.slane %v1757_v4, 4  ;;  %v1461_v2 = vrot.slane %v1799_v57, 4 }
 0x1a4   :  { %v2709_v7 = vadd.f32 %v1486_v6, %v2509_v19  ;;  %v2712_v33 = vadd.f32 %v1474_v62, %v2605_v30 }
 0x1a5   :  { %v1485_v36 = vsel %vm1467_vm5, %v1447_v12, %v1448_v63  ;;  %v1473_v9 = vsel %vm1467_vm5, %v1460_v1, %v1461_v2  ;;  %v1758_v29 = vpop.f32.mrb[72].mxu0  ;;  %v1800_v11 = vpop.f32.mrb[72].mxu1 }
 0x1a6   :  { %v1517_v15 = vmax.f32 %v2665_v60, %v2709_v7  ;;  %v1534_v25 = vmax.f32 %v2668_v61, %v2712_v33  ;;  %v2723_v19 = vadd.f32 %v1485_v36, %v2511_v28  ;;  %v2726_v30 = vadd.f32 %v1473_v9, %v2607_v42  ;;  %v1759_v16 = vpop.f32.mrb[73].mxu0  ;;  %v1801_v17 = vpop.f32.mrb[73].mxu1 }
 0x1a7   :  { %v1760_v18 = vadd.f32 %v1759_v16, %v1758_v29  ;;  %v1802_v20 = vadd.f32 %v1801_v17, %v1800_v11  ;;  %v1761_v21 = vpop.f32.mrb[74].mxu0  ;;  %v1803_v22 = vpop.f32.mrb[74].mxu1 }
 0x1a8   :  { %v1518_v10 = vmax.f32 %v2675_v8, %v2723_v19  ;;  %v1535_v60 = vmax.f32 %v2678_v3, %v2726_v30  ;;  %v1762_v24 = vpop.f32.mrb[75].mxu0  ;;  %v1804_v61 = vpop.f32.mrb[75].mxu1 }
 0x1a9   :  { %v1449_v38 = vrot.slane %v1760_v18, 4  ;;  %v1462_v28 = vrot.slane %v1802_v20, 4  ;;  %v1763_v37 = vadd.f32 %v1762_v24, %v1761_v21  ;;  %v1805_v26 = vadd.f32 %v1804_v61, %v1803_v22 }
 0x1ab   :  { %v1484_v42 = vsel %vm1467_vm5, %v1448_v63, %v1449_v38  ;;  %v1472_v32 = vsel %vm1467_vm5, %v1461_v2, %v1462_v28  ;;  %v1450_v34 = vrot.slane %v1763_v37, 4  ;;  %v1463_v39 = vrot.slane %v1805_v26, 4 }
 0x1ac   :  { %v1499_v43 = vadd.f32 %v1484_v42, %v2525_v48  ;;  %v1511_v8 = vadd.f32 %v1472_v32, %v2621_v0 }
 0x1ad   :  { %v1483_v3 = vsel %vm1467_vm5, %v1449_v38, %v1450_v34  ;;  %v1471_v44 = vsel %vm1467_vm5, %v1462_v28, %v1463_v39  ;;  %v1764_v45 = vpop.f32.mrb[76].mxu0  ;;  %v1806_v46 = vpop.f32.mrb[76].mxu1 }
 0x1ae   :  { %v1519_v56 = vmax.f32 %v2685_v27, %v1499_v43  ;;  %v1536_v40 = vmax.f32 %v2688_v31, %v1511_v8  ;;  %v1500_v49 = vadd.f32 %v1483_v3, %v2527_v58  ;;  %v1512_v59 = vadd.f32 %v1471_v44, %v2623_v14  ;;  %v1765_v50 = vpop.f32.mrb[77].mxu0  ;;  %v1807_v48 = vpop.f32.mrb[77].mxu1 }
 0x1af   :  { %v1766_v54 = vadd.f32 %v1765_v50, %v1764_v45  ;;  %v1808_v0 = vadd.f32 %v1807_v48, %v1806_v46  ;;  %v1767_v55 = vpop.f32.mrb[78].mxu0  ;;  %v1809_v12 = vpop.f32.mrb[78].mxu1 }
 0x1b0   :  { %v1520_v1 = vmax.f32 %v1516_v51, %v1500_v49  ;;  %v1537_v4 = vmax.f32 %v1533_v53, %v1512_v59  ;;  %v1768_v57 = vpop.f32.mrb[79].mxu0  ;;  %v1810_v6 = vpop.f32.mrb[79].mxu1 }
 0x1b1   :  { %v1451_v62 = vrot.slane %v1766_v54, 4  ;;  %v1464_v63 = vrot.slane %v1808_v0, 4  ;;  %v1769_v2 = vadd.f32 %v1768_v57, %v1767_v55  ;;  %v1811_v27 = vadd.f32 %v1810_v6, %v1809_v12 }
 0x1b3   :  { %v1482_v31 = vsel %vm1467_vm5, %v1450_v34, %v1451_v62  ;;  %v1470_v58 = vsel %vm1467_vm5, %v1463_v39, %v1464_v63  ;;  %v1452_v14 = vrot.slane %v1769_v2, 4  ;;  %v1465_v7 = vrot.slane %v1811_v27, 4 }
 0x1b4   :  { %v1501_v33 = vadd.f32 %v1482_v31, %v2541_v13  ;;  %v1513_v36 = vadd.f32 %v1470_v58, %v2637_v41 }
 0x1b5   :  { %v1481_v51 = vsel %vm1467_vm5, %v1451_v62, %v1452_v14  ;;  %v1469_v53 = vsel %vm1467_vm5, %v1464_v63, %v1465_v7  ;;  %v1770_v9 = vpop.f32.mrb[80].mxu0  ;;  %v1812_v29 = vpop.f32.mrb[80].mxu1 }
 0x1b6   :  { %v1521_v11 = vmax.f32 %v1517_v15, %v1501_v33  ;;  %v1538_v19 = vmax.f32 %v1534_v25, %v1513_v36  ;;  %v1502_v30 = vadd.f32 %v1481_v51, %v2543_v23  ;;  %v1514_v16 = vadd.f32 %v1469_v53, %v2639_v52  ;;  %v1771_v17 = vpop.f32.mrb[81].mxu0  ;;  %v1813_v18 = vpop.f32.mrb[81].mxu1 }
 0x1b7   :  { %v1772_v20 = vadd.f32 %v1771_v17, %v1770_v9  ;;  %v1814_v13 = vadd.f32 %v1813_v18, %v1812_v29  ;;  %v1773_v21 = vpop.f32.mrb[82].mxu0  ;;  %v1815_v41 = vpop.f32.mrb[82].mxu1 }
 0x1b8   :  { %v1524_v22 = vmax.f32 %v1520_v1, %v1521_v11  ;;  %v1541_v24 = vmax.f32 %v1537_v4, %v1538_v19  ;;  %v1522_v61 = vmax.f32 %v1518_v10, %v1502_v30  ;;  %v1539_v38 = vmax.f32 %v1535_v60, %v1514_v16  ;;  %v1774_v28 = vpop.f32.mrb[83].mxu0  ;;  %v1816_v37 = vpop.f32.mrb[83].mxu1 }
 0x1b9   :  { %v1453_v26 = vrot.slane %v1772_v20, 4  ;;  %v1466_v42 = vrot.slane %v1814_v13, 4 }
 0x1bb   :  { %v1480_v15 = vsel %vm1467_vm5, %v1452_v14, %v1453_v26  ;;  %v1468_v23 = vsel %vm1467_vm5, %v1465_v7, %v1466_v42 }
 0x1bc   :  { %v1503_v52 = vadd.f32 %v1480_v15, %v2551_v35  ;;  %v1515_v25 = vadd.f32 %v1468_v23, %v2647_v5  ;;  %v1717_v5 = vld [vmem:[%s2772_s2] ss:$0 sm:$0xff] }
 0x1be   :  { %v1523_v32 = vmax.f32 %v1519_v56, %v1503_v52  ;;  %v1540_v34 = vmax.f32 %v1536_v40, %v1515_v25 }
 0x1c0   :  { %v1525_v39 = vmax.f32 %v1522_v61, %v1523_v32  ;;  %v1542_v43 = vmax.f32 %v1539_v38, %v1540_v34 }
 0x1c2   :  { %v1526_v10 = vmax.f32 %v1524_v22, %v1525_v39  ;;  %v1543_v60 = vmax.f32 %v1541_v24, %v1542_v43 }
 0x1c4   :  { %v1527_v8 = vrot.slane %v1526_v10, 4  ;;  %v1544_v3 = vrot.slane %v1543_v60, 4 }
 0x1c6   :  { %v1528_v44 = vmax.f32 %v1526_v10, %v1527_v8  ;;  %v1545_v45 = vmax.f32 %v1543_v60, %v1544_v3 }
 0x1c8   :  { %v1529_v46 = vrot.slane %v1528_v44, 2  ;;  %v1546_v49 = vrot.slane %v1545_v45, 2 }
 0x1ca   :  { %v1530_v59 = vmax.f32 %v1528_v44, %v1529_v46  ;;  %v1547_v50 = vmax.f32 %v1545_v45, %v1546_v49 }
 0x1cc   :  { %v1531_v47 = vrot.slane %v1530_v59, 1  ;;  %v1548_v48 = vrot.slane %v1547_v50, 1 }
 0x1ce   :  { %v1532_v35 = vmax.f32 %v1530_v59, %v1531_v47  ;;  %v1549_v54 = vmax.f32 %v1547_v50, %v1548_v48 }
 0x1d0   :  { %v1551_v56 = vsel %vm1550_vm6, %v1532_v35, %v1549_v54 }
 0x1d1   :  { %v1559_v40 = vadd.f32 %v1717_v5, %v1551_v56 }
 0x1d3   :  { %1560 = vst [vmem:[%s2773_s3] sm:$0x3] %v1559_v40 }

// kernel: forward.4
= control target key start
LH: loop header
LB: loop body
LE: loop exit
PB: predicated region body
PF: predicated region fallthrough
CT: control target
= control target key end

     0   :  { %vm935_vm0 = vcmask 179200   ;;  %vm1104_vm1 = vcmask 1042432   ;;  %v4757_v29 = vmov 0   ;;  %vm4065_vm6 = vcmask 1040384   ;;  %s7178_s1 = inlined_call_operand.vmem [shape: bf16[150,640], index: 1, kind: input, shape index: {}]   ;;  %s7179_s0 = inlined_call_operand.vmem [shape: bf16[896,150], index: 0, kind: input, shape index: {}]   ;;  %s7180_s2 = inlined_call_operand.vmem [shape: f32[1,128], index: 2, kind: input, shape index: {}]   ;;  %s7181_s3 = inlined_call_operand.vmem [shape: f32[1,8,128], index: 3, kind: output, shape index: {}]  }
   0x1   :  { %v4445_v0 = vld [vmem:[%s7178_s1 + $0x4] ss:$20 sps:$4 sm:$0xff]   ;;  %v4447_v1 = vld [vmem:[%s7178_s1] ss:$20 sps:$4 sm:$0xff]   ;;  %v4450_v3 = vld [vmem:[%s7178_s1 + $0x28] ss:$20 sps:$4 sm:$0xff]  }
   0x2   :  { %1120 = vmatprep.subr.bf16.mxu0 %v4445_v0  ;;  %4424 = vmatprep.subr.bf16.mxu1 %v4445_v0  ;;  %v4448_v2 = vld [vmem:[%s7178_s1 + $0x2c] ss:$20 sps:$4 sm:$0xff]   ;;  %v4451_v4 = vld [vmem:[%s7178_s1 + $0x54] ss:$20 sps:$4 sm:$0xff]   ;;  %v4453_v5 = vld [vmem:[%s7178_s1 + $0x50] ss:$20 sps:$4 sm:$0xff]  }
   0x3   :  { %1121 = vmatpush1.bf16.msra.mxu0 %v4447_v1  ;;  %4434 = vmatpush1.bf16.msra.mxu1 %v4447_v1  ;;  %v4454_v6 = vld [vmem:[%s7178_s1 + $0x7c] ss:$20 sps:$4 sm:$0xff]   ;;  %v4456_v7 = vld [vmem:[%s7178_s1 + $0x78] ss:$20 sps:$4 sm:$0xff]   ;;  %v4459_v11 = vld [vmem:[%s7178_s1 + $0xa0] ss:$20 sps:$4 sm:$0xff]  }
   0x4   :  { %1122 = vmatprep.subr.bf16.mxu0 %v4448_v2  ;;  %4425 = vmatprep.subr.bf16.mxu1 %v4448_v2  ;;  %v4457_v8 = vld [vmem:[%s7178_s1 + $0xa4] ss:$20 sps:$4 sm:$0xff]   ;;  %v4460_v12 = vld [vmem:[%s7178_s1 + $0xcc] ss:$20 sps:$4 sm:$0xff]   ;;  %v4462_v13 = vld [vmem:[%s7178_s1 + $0xc8] ss:$20 sps:$4 sm:$0xff]  }
   0x5   :  { %v4808_v9 = vld [vmem:[%s7179_s0 + $0x4] ss:$8 sps:$4 sm:$0xff]   ;;  %v4463_v14 = vld [vmem:[%s7178_s1 + $0xf4] ss:$20 sps:$4 sm:$0xff]   ;;  %v4466_v16 = vld [vmem:[%s7178_s1 + $0x11c] ss:$20 sps:$4 sm:$0xff]  }
   0x6   :  { %v4476_v10 = vld [vmem:[%s7179_s0 + $0x1c4] ss:$8 sps:$4 sm:$0xff]   ;;  %4254 = vmatprep.mubr.msk.bf16.mxu0 %vm935_vm0, %v4808_v9  ;;  %v4471_v20 = vld [vmem:[%s7178_s1 + $0x140] ss:$20 sps:$4 sm:$0xff]   ;;  %v4480_v27 = vld [vmem:[%s7178_s1 + $0x8] ss:$20 sps:$4 sm:$0xff]  }
   0x7   :  { %1123 = vmatpush1.bf16.msra.mxu0 %v4450_v3  ;;  %4435 = vmatpush1.bf16.msra.mxu1 %v4450_v3  ;;  %v4465_v15 = vld [vmem:[%s7178_s1 + $0xf0] ss:$20 sps:$4 sm:$0xff]   ;;  %v4468_v17 = vld [vmem:[%s7178_s1 + $0x118] ss:$20 sps:$4 sm:$0xff]   ;;  %v4852_v24 = vld [vmem:[%s7179_s0] ss:$8 sps:$4 sm:$0xff]  }
   0x8   :  { %1124 = vmatprep.subr.bf16.mxu0 %v4451_v4  ;;  %4426 = vmatprep.subr.bf16.mxu1 %v4451_v4  ;;  %v4469_v18 = vld [vmem:[%s7178_s1 + $0x144] ss:$20 sps:$4 sm:$0xff]   ;;  %v181_v19 = vld [vmem:[%s7178_s1 + $0x168] sm:$0x77]  ;;  %v4870_v30 = vld [vmem:[%s7179_s0 + $0x14] ss:$8 sps:$4 sm:$0xff]  }
   0x9   :  { %4282 = vmatprep.mubr.msk.bf16.mxu1 %vm935_vm0, %v4476_v10  ;;  %v4249_v21 = vcombine.high %v181_v19, %v181_v19  ;;  %v4248_v22 = vcombine.low %v181_v19, %v181_v19  ;;  %v4482_v25 = vld [vmem:[%s7178_s1 + $0xc] ss:$20 sps:$4 sm:$0xff]   ;;  %v4483_v28 = vld [vmem:[%s7178_s1 + $0x10] ss:$20 sps:$4 sm:$0xff]   ;;  %v4486_v31 = vld [vmem:[%s7179_s0 + $0x1d4] ss:$8 sps:$4 sm:$0xff]  }
   0xa   :  { %v4479_v26 = vld [vmem:[%s7179_s0 + $0x1c0] ss:$8 sps:$4 sm:$0xff]   ;;  %v4500_v33 = vld [vmem:[%s7178_s1 + $0x30] ss:$20 sps:$4 sm:$0xff]   ;;  %v4505_v34 = vld [vmem:[%s7178_s1 + $0x38] ss:$20 sps:$4 sm:$0xff]  }
   0xb   :  { %1125 = vmatpush1.bf16.msra.mxu0 %v4453_v5  ;;  %4436 = vmatpush1.bf16.msra.mxu1 %v4453_v5  ;;  %v1106_v23 = vsel %vm1104_vm1, %v4248_v22, 0  ;;  %v4502_v32 = vld [vmem:[%s7178_s1 + $0x34] ss:$20 sps:$4 sm:$0xff]   ;;  %v4891_v35 = vld [vmem:[%s7179_s0 + $0x10] ss:$8 sps:$4 sm:$0xff]   ;;  %vm4067_vm7 = vcmask 1041408  }
   0xc   :  { %1126 = vmatprep.subr.bf16.mxu0 %v4454_v6  ;;  %4427 = vmatprep.subr.bf16.mxu1 %v4454_v6  ;;  %v4520_v36 = vld [vmem:[%s7178_s1 + $0x5c] ss:$20 sps:$4 sm:$0xff]   ;;  %v4903_v38 = vld [vmem:[%s7179_s0 + $0x24] ss:$8 sps:$4 sm:$0xff]   ;;  %v4527_v41 = vld [vmem:[%s7178_s1 + $0x60] ss:$20 sps:$4 sm:$0xff]  }
   0xd   :  { %v4489_v37 = vld [vmem:[%s7179_s0 + $0x1d0] ss:$8 sps:$4 sm:$0xff]   ;;  %v4492_v39 = vld [vmem:[%s7179_s0 + $0x1e4] ss:$8 sps:$4 sm:$0xff]   ;;  %v4540_v43 = vld [vmem:[%s7178_s1 + $0x80] ss:$20 sps:$4 sm:$0xff]  }
   0xe   :  { %v4518_v40 = vld [vmem:[%s7178_s1 + $0x58] ss:$20 sps:$4 sm:$0xff]   ;;  %v4549_v44 = vld [vmem:[%s7178_s1 + $0x88] ss:$20 sps:$4 sm:$0xff]   ;;  %v4569_v51 = vld [vmem:[%s7178_s1 + $0xb0] ss:$20 sps:$4 sm:$0xff]  }
   0xf   :  { %1127 = vmatpush1.bf16.msra.mxu0 %v4456_v7  ;;  %4437 = vmatpush1.bf16.msra.mxu1 %v4456_v7  ;;  %v4542_v42 = vld [vmem:[%s7178_s1 + $0x84] ss:$20 sps:$4 sm:$0xff]   ;;  %v4931_v45 = vld [vmem:[%s7179_s0 + $0x20] ss:$8 sps:$4 sm:$0xff]   ;;  %v4940_v47 = vld [vmem:[%s7179_s0 + $0x34] ss:$8 sps:$4 sm:$0xff]  }
  0x10   :  { %1128 = vmatprep.subr.bf16.mxu0 %v4457_v8  ;;  %4428 = vmatprep.subr.bf16.mxu1 %v4457_v8  ;;  %v4495_v46 = vld [vmem:[%s7179_s0 + $0x1e0] ss:$8 sps:$4 sm:$0xff]   ;;  %v4498_v49 = vld [vmem:[%s7179_s0 + $0x1f4] ss:$8 sps:$4 sm:$0xff]   ;;  %v4962_v52 = vld [vmem:[%s7179_s0 + $0x30] ss:$8 sps:$4 sm:$0xff]  }
  0x11   :  { %v4564_v48 = vld [vmem:[%s7178_s1 + $0xac] ss:$20 sps:$4 sm:$0xff]   ;;  %v4562_v50 = vld [vmem:[%s7178_s1 + $0xa8] ss:$20 sps:$4 sm:$0xff]   ;;  %v4504_v53 = vld [vmem:[%s7179_s0 + $0x1f0] ss:$8 sps:$4 sm:$0xff]  }
  0x12   :  { %v4971_v54 = vld [vmem:[%s7179_s0 + $0x44] ss:$8 sps:$4 sm:$0xff]   ;;  %v4586_v57 = vld [vmem:[%s7178_s1 + $0xd4] ss:$20 sps:$4 sm:$0xff]   ;;  %v4606_v0 = vld [vmem:[%s7178_s1 + $0xfc] ss:$20 sps:$4 sm:$0xff]  }
  0x13   :  { %1129 = vmatpush1.bf16.msra.mxu0 %v4459_v11  ;;  %4438 = vmatpush1.bf16.msra.mxu1 %v4459_v11  ;;  %v4508_v55 = vld [vmem:[%s7179_s0 + $0x204] ss:$8 sps:$4 sm:$0xff]   ;;  %v4992_v59 = vld [vmem:[%s7179_s0 + $0x40] ss:$8 sps:$4 sm:$0xff]   ;;  %v5001_v61 = vld [vmem:[%s7179_s0 + $0x54] ss:$8 sps:$4 sm:$0xff]  }
  0x14   :  { %1130 = vmatprep.subr.bf16.mxu0 %v4460_v12  ;;  %4429 = vmatprep.subr.bf16.mxu1 %v4460_v12  ;;  %v4584_v56 = vld [vmem:[%s7178_s1 + $0xd0] ss:$20 sps:$4 sm:$0xff]   ;;  %v4587_v58 = vld [vmem:[%s7178_s1 + $0xd8] ss:$20 sps:$4 sm:$0xff]   ;;  %v4511_v60 = vld [vmem:[%s7179_s0 + $0x200] ss:$8 sps:$4 sm:$0xff]  }
  0x15   :  { %v4514_v62 = vld [vmem:[%s7179_s0 + $0x214] ss:$8 sps:$4 sm:$0xff]   ;;  %v4604_v63 = vld [vmem:[%s7178_s1 + $0xf8] ss:$20 sps:$4 sm:$0xff]   ;;  %v5049_v8 = vld [vmem:[%s7179_s0 + $0x60] ss:$8 sps:$4 sm:$0xff]  }
  0x16   :  { %v4609_v1 = vld [vmem:[%s7178_s1 + $0x100] ss:$20 sps:$4 sm:$0xff]   ;;  %v5022_v2 = vld [vmem:[%s7179_s0 + $0x50] ss:$8 sps:$4 sm:$0xff]   ;;  %v5030_v4 = vld [vmem:[%s7179_s0 + $0x64] ss:$8 sps:$4 sm:$0xff]  }
  0x17   :  { %1131 = vmatpush1.bf16.msra.mxu0 %v4462_v13  ;;  %4439 = vmatpush1.bf16.msra.mxu1 %v4462_v13  ;;  %v4517_v3 = vld [vmem:[%s7179_s0 + $0x210] ss:$8 sps:$4 sm:$0xff]   ;;  %v4523_v5 = vld [vmem:[%s7179_s0 + $0x224] ss:$8 sps:$4 sm:$0xff]   ;;  %v4622_v6 = vld [vmem:[%s7178_s1 + $0x120] ss:$20 sps:$4 sm:$0xff]  }
  0x18   :  { %1132 = vmatprep.subr.bf16.mxu0 %v4463_v14  ;;  %4430 = vmatprep.subr.bf16.mxu1 %v4463_v14  ;;  %v4624_v7 = vld [vmem:[%s7178_s1 + $0x124] ss:$20 sps:$4 sm:$0xff]   ;;  %v4526_v10 = vld [vmem:[%s7179_s0 + $0x220] ss:$8 sps:$4 sm:$0xff]   ;;  %v5057_v11 = vld [vmem:[%s7179_s0 + $0x74] ss:$8 sps:$4 sm:$0xff]  }
  0x19   :  { %v4631_v12 = vld [vmem:[%s7178_s1 + $0x128] ss:$20 sps:$4 sm:$0xff]   ;;  %v5073_v14 = vld [vmem:[%s7179_s0 + $0x70] ss:$8 sps:$4 sm:$0xff]   ;;  %v4536_v19 = vld [vmem:[%s7179_s0 + $0x244] ss:$8 sps:$4 sm:$0xff]  }
  0x1a   :  { %v4530_v13 = vld [vmem:[%s7179_s0 + $0x234] ss:$8 sps:$4 sm:$0xff]   ;;  %v4539_v22 = vld [vmem:[%s7179_s0 + $0x240] ss:$8 sps:$4 sm:$0xff]   ;;  %vm4070_vm8 = vcmask 1043456   ;;  %vm4072_vm9 = vcmask 1044480  }
  0x1b   :  { %1133 = vmatpush1.bf16.msra.mxu0 %v4465_v15  ;;  %4440 = vmatpush1.bf16.msra.mxu1 %v4465_v15  ;;  %v4644_v15 = vld [vmem:[%s7178_s1 + $0x148] ss:$20 sps:$4 sm:$0xff]   ;;  %vm4074_vm10 = vcmask 1045504   ;;  %vm4076_vm11 = vcmask 1046528  }
  0x1c   :  { %1134 = vmatprep.subr.bf16.mxu0 %v4466_v16  ;;  %4431 = vmatprep.subr.bf16.mxu1 %v4466_v16  ;;  %v4646_v16 = vld [vmem:[%s7178_s1 + $0x14c] ss:$20 sps:$4 sm:$0xff]  }
  0x1f   :  { %1135 = vmatpush1.bf16.msra.mxu0 %v4468_v17  ;;  %4441 = vmatpush1.bf16.msra.mxu1 %v4468_v17  ;;  %v4533_v17 = vld [vmem:[%s7179_s0 + $0x230] ss:$8 sps:$4 sm:$0xff]  }
  0x20   :  { %1136 = vmatprep.subr.bf16.mxu0 %v4469_v18  ;;  %4432 = vmatprep.subr.bf16.mxu1 %v4469_v18  ;;  %v5087_v18 = vld [vmem:[%s7179_s0 + $0x84] ss:$8 sps:$4 sm:$0xff]  }
  0x23   :  { %1137 = vmatpush1.bf16.msra.mxu0 %v4471_v20  ;;  %4442 = vmatpush1.bf16.msra.mxu1 %v4471_v20  ;;  %v4653_v20 = vld [vmem:[%s7178_s1 + $0x150] ss:$20 sps:$4 sm:$0xff]  }
  0x24   :  { %4253 = vmatprep.subr.msk.bf16.mxu0 %vm1104_vm1, %v4249_v21  ;;  %4433 = vmatprep.subr.msk.bf16.mxu1 %vm1104_vm1, %v4249_v21  ;;  %v5102_v21 = vld [vmem:[%s7179_s0 + $0x80] ss:$8 sps:$4 sm:$0xff]  }
  0x27   :  { %1139 = vmatpush1.bf16.msra.mxu0 %v1106_v23  ;;  %4443 = vmatpush1.bf16.msra.mxu1 %v1106_v23  ;;  %v5110_v23 = vld [vmem:[%s7179_s0 + $0x94] ss:$8 sps:$4 sm:$0xff]  }
  0x28   :  { %1689 = vmatprep.subr.bf16.mxu1 %v4482_v25  ;;  %2266 = vmatprep.subr.bf16.mxu0 %v4757_v29  ;;  %v4545_v25 = vld [vmem:[%s7179_s0 + $0x254] ss:$8 sps:$4 sm:$0xff]  }
  0x2a   :  { %1153 = vmatmul.mubr.bf16.vlgmr.msra.gmra.mrb[0].mxu0 %v4852_v24  ;;  %1421 = vmatmul.mubr.bf16.vlgmr.msra.gmra.mrb[0].mxu1 %v4479_v26  ;;  %v5123_v26 = vld [vmem:[%s7179_s0 + $0x90] ss:$8 sps:$4 sm:$0xff]  }
  0x2b   :  { %1690 = vmatpush1.bf16.msra.mxu1 %v4480_v27  ;;  %2267 = vmatpush1.bf16.msra.mxu0 %v4483_v28  ;;  %v4548_v27 = vld [vmem:[%s7179_s0 + $0x250] ss:$8 sps:$4 sm:$0xff]   ;;  %v5131_v28 = vld [vmem:[%s7179_s0 + $0xa4] ss:$8 sps:$4 sm:$0xff]  }
  0x2c   :  { %4255 = vmatprep.mubr.msk.bf16.mxu0 %vm935_vm0, %v4870_v30  ;;  %4283 = vmatprep.mubr.msk.bf16.mxu1 %vm935_vm0, %v4486_v31  ;;  %v182_v31 = vld [vmem:[%s7178_s1 + $0x170] sm:$0x77] }
  0x2d   :  { %1691 = vmatprep.subr.bf16.mxu1 %v4502_v32  ;;  %2268 = vmatprep.subr.bf16.mxu0 %v4757_v29  ;;  %v4251_v32 = vcombine.high %v182_v31, %v182_v31 }
  0x2f   :  { %1692 = vmatpush1.bf16.msra.mxu1 %v4500_v33  ;;  %2269 = vmatpush1.bf16.msra.mxu0 %v4505_v34  ;;  %v4250_v33 = vcombine.low %v182_v31, %v182_v31  ;;  %v4672_v34 = vld [vmem:[%s7178_s1 + $0x178] ss:$0 sps:$4 sm:$0x77]  }
  0x30   :  { %1693 = vmatprep.subr.bf16.mxu1 %v4520_v36  ;;  %2270 = vmatprep.subr.bf16.mxu0 %v4757_v29  ;;  %v4621_v31 = vld [vmem:[%s7179_s0 + $0x2f0] ss:$8 sps:$4 sm:$0xff]  }
  0x31   :  { %v1112_v36 = vsel %vm1104_vm1, %v4250_v33, 0  ;;  %v4627_v33 = vld [vmem:[%s7179_s0 + $0x304] ss:$8 sps:$4 sm:$0xff]  }
  0x32   :  { %1163 = vmatmul.mubr.bf16.gmra.mrb[4].mxu0 %v4891_v35  ;;  %1431 = vmatmul.mubr.bf16.gmra.mrb[4].mxu1 %v4489_v37  ;;  %v1118_v37 = vsel %vm1104_vm1, %v4672_v34, 0  ;;  %v4629_v34 = vld [vmem:[%s7179_s0 + $0x140] ss:$8 sps:$4 sm:$0xff]  }
  0x33   :  { %4256 = vmatprep.mubr.msk.bf16.mxu0 %vm935_vm0, %v4903_v38  ;;  %4284 = vmatprep.mubr.msk.bf16.mxu1 %vm935_vm0, %v4492_v39  ;;  %v5152_v39 = vld [vmem:[%s7179_s0 + $0xa0] ss:$8 sps:$4 sm:$0xff]  }
  0x34   :  { %1694 = vmatpush1.bf16.msra.mxu1 %v4518_v40  ;;  %2271 = vmatpush1.bf16.msra.mxu0 %v4527_v41  ;;  %v4555_v40 = vld [vmem:[%s7179_s0 + $0x260] ss:$8 sps:$4 sm:$0xff]   ;;  %v5160_v41 = vld [vmem:[%s7179_s0 + $0xb4] ss:$8 sps:$4 sm:$0xff]  }
  0x35   :  { %1695 = vmatprep.subr.bf16.mxu1 %v4542_v42  ;;  %2272 = vmatprep.subr.bf16.mxu0 %v4757_v29  ;;  %v4558_v42 = vld [vmem:[%s7179_s0 + $0x274] ss:$8 sps:$4 sm:$0xff]  }
  0x38   :  { %1696 = vmatpush1.bf16.msra.mxu1 %v4540_v43  ;;  %2273 = vmatpush1.bf16.msra.mxu0 %v4549_v44  ;;  %v5172_v43 = vld [vmem:[%s7179_s0 + $0xb0] ss:$8 sps:$4 sm:$0xff]  }
  0x39   :  { %1697 = vmatprep.subr.bf16.mxu1 %v4564_v48  ;;  %2274 = vmatprep.subr.bf16.mxu0 %v4757_v29  ;;  %v4561_v44 = vld [vmem:[%s7179_s0 + $0x270] ss:$8 sps:$4 sm:$0xff]   ;;  %v4567_v48 = vld [vmem:[%s7179_s0 + $0x284] ss:$8 sps:$4 sm:$0xff]  }
  0x3a   :  { %1173 = vmatmul.mubr.bf16.gmra.mrb[8].mxu0 %v4931_v45  ;;  %1441 = vmatmul.mubr.bf16.gmra.mrb[8].mxu1 %v4495_v46  ;;  %v5180_v46 = vld [vmem:[%s7179_s0 + $0xc4] ss:$8 sps:$4 sm:$0xff]  }
  0x3b   :  { %4257 = vmatprep.mubr.msk.bf16.mxu0 %vm935_vm0, %v4940_v47  ;;  %4285 = vmatprep.mubr.msk.bf16.mxu1 %vm935_vm0, %v4498_v49  ;;  %v5192_v49 = vld [vmem:[%s7179_s0 + $0xc0] ss:$8 sps:$4 sm:$0xff]  }
  0x3c   :  { %1698 = vmatpush1.bf16.msra.mxu1 %v4562_v50  ;;  %2275 = vmatpush1.bf16.msra.mxu0 %v4569_v51  ;;  %v4571_v50 = vld [vmem:[%s7179_s0 + $0x280] ss:$8 sps:$4 sm:$0xff]   ;;  %v5200_v51 = vld [vmem:[%s7179_s0 + $0xd4] ss:$8 sps:$4 sm:$0xff]  }
  0x3d   :  { %2276 = vmatprep.subr.bf16.mxu0 %v4757_v29  ;;  %1699 = vmatprep.subr.bf16.mxu1 %v4586_v57  ;;  %v5220_v57 = vld [vmem:[%s7179_s0 + $0xe4] ss:$8 sps:$4 sm:$0xff]  }
  0x40   :  { %2277 = vmatpush1.bf16.msra.mxu0 %v4587_v58  ;;  %1700 = vmatpush1.bf16.msra.mxu1 %v4584_v56  ;;  %v4577_v56 = vld [vmem:[%s7179_s0 + $0x290] ss:$8 sps:$4 sm:$0xff]   ;;  %v4580_v58 = vld [vmem:[%s7179_s0 + $0x2a4] ss:$8 sps:$4 sm:$0xff]  }
  0x41   :  { %2278 = vmatprep.subr.bf16.mxu0 %v4757_v29  ;;  %1701 = vmatprep.subr.bf16.mxu1 %v4606_v0  ;;  %v4590_v0 = vld [vmem:[%s7179_s0 + $0x2b4] ss:$8 sps:$4 sm:$0xff]  }
  0x42   :  { %1183 = vmatmul.mubr.bf16.gmra.mrb[12].mxu0 %v4962_v52  ;;  %1451 = vmatmul.mubr.bf16.gmra.mrb[12].mxu1 %v4504_v53  ;;  %v4574_v53 = vld [vmem:[%s7179_s0 + $0x294] ss:$8 sps:$4 sm:$0xff]  }
  0x43   :  { %4258 = vmatprep.mubr.msk.bf16.mxu0 %vm935_vm0, %v4971_v54  ;;  %4286 = vmatprep.mubr.msk.bf16.mxu1 %vm935_vm0, %v4508_v55  ;;  %v5212_v55 = vld [vmem:[%s7179_s0 + $0xd0] ss:$8 sps:$4 sm:$0xff]  }
  0x44   :  { %1702 = vmatpush1.bf16.msra.mxu1 %v4604_v63  ;;  %2279 = vmatpush1.bf16.msra.mxu0 %v4609_v1  ;;  %v5240_v63 = vld [vmem:[%s7179_s0 + $0xf4] ss:$8 sps:$4 sm:$0xff]   ;;  %v5252_v1 = vld [vmem:[%s7179_s0 + $0xf0] ss:$8 sps:$4 sm:$0xff]  }
  0x45   :  { %2280 = vmatprep.subr.bf16.mxu0 %v4757_v29  ;;  %1703 = vmatprep.subr.bf16.mxu1 %v4624_v7  ;;  %v5272_v7 = vld [vmem:[%s7179_s0 + $0x100] ss:$8 sps:$4 sm:$0xff]  }
  0x48   :  { %1704 = vmatpush1.bf16.msra.mxu1 %v4622_v6  ;;  %2281 = vmatpush1.bf16.msra.mxu0 %v4631_v12  ;;  %v4596_v6 = vld [vmem:[%s7179_s0 + $0x2c4] ss:$8 sps:$4 sm:$0xff]   ;;  %v5280_v12 = vld [vmem:[%s7179_s0 + $0x114] ss:$8 sps:$4 sm:$0xff]  }
  0x49   :  { %2282 = vmatprep.subr.bf16.mxu0 %v4757_v29  ;;  %1705 = vmatprep.subr.bf16.mxu1 %v4646_v16  ;;  %v4608_v16 = vld [vmem:[%s7179_s0 + $0x2d0] ss:$8 sps:$4 sm:$0xff]  }
  0x4a   :  { %1193 = vmatmul.mubr.bf16.gmra.mrb[16].mxu0 %v4992_v59  ;;  %1461 = vmatmul.mubr.bf16.gmra.mrb[16].mxu1 %v4511_v60  ;;  %v5232_v60 = vld [vmem:[%s7179_s0 + $0xe0] ss:$8 sps:$4 sm:$0xff]  }
  0x4b   :  { %4259 = vmatprep.mubr.msk.bf16.mxu0 %vm935_vm0, %v5001_v61  ;;  %4287 = vmatprep.mubr.msk.bf16.mxu1 %vm935_vm0, %v4514_v62  ;;  %v4583_v62 = vld [vmem:[%s7179_s0 + $0x2a0] ss:$8 sps:$4 sm:$0xff]  }
  0x4c   :  { %1706 = vmatpush1.bf16.msra.mxu1 %v4644_v15  ;;  %2283 = vmatpush1.bf16.msra.mxu0 %v4653_v20  ;;  %v5292_v15 = vld [vmem:[%s7179_s0 + $0x110] ss:$8 sps:$4 sm:$0xff]   ;;  %v4614_v20 = vld [vmem:[%s7179_s0 + $0x120] ss:$8 sps:$4 sm:$0xff]  }
  0x4d   :  { %2284 = vmatprep.subr.bf16.mxu0 %v4757_v29  ;;  %v4552_v29 = vld [vmem:[%s7179_s0 + $0x264] ss:$8 sps:$4 sm:$0xff]   ;;  %4310 = vmatprep.subr.msk.bf16.mxu1 %vm1104_vm1, %v4251_v32 }
  0x4e   :  { %v4625_v32 = vld [vmem:[%s7179_s0 + $0x144] ss:$8 sps:$4 sm:$0xff]  }
  0x50   :  { %1708 = vmatpush1.bf16.msra.mxu1 %v1112_v36  ;;  %2285 = vmatpush1.bf16.msra.mxu0 %v1118_v37  ;;  %v4630_v36 = vld [vmem:[%s7179_s0 + $0x300] ss:$8 sps:$4 sm:$0xff]   ;;  %v4632_v37 = vld [vmem:[%s7179_s0 + $0x154] ss:$8 sps:$4 sm:$0xff]  }
  0x52   :  { %1203 = vmatmul.mubr.bf16.gmra.mrb[20].mxu0 %v5022_v2  ;;  %1471 = vmatmul.mubr.bf16.gmra.mrb[20].mxu1 %v4517_v3  ;;  %v4593_v3 = vld [vmem:[%s7179_s0 + $0x2b0] ss:$8 sps:$4 sm:$0xff]  }
  0x53   :  { %4260 = vmatprep.mubr.msk.bf16.mxu0 %vm935_vm0, %v5030_v4  ;;  %4288 = vmatprep.mubr.msk.bf16.mxu1 %vm935_vm0, %v4523_v5  ;;  %v5260_v5 = vld [vmem:[%s7179_s0 + $0x104] ss:$8 sps:$4 sm:$0xff]  }
  0x5a   :  { %1213 = vmatmul.mubr.bf16.gmra.mrb[24].mxu0 %v5049_v8  ;;  %1481 = vmatmul.mubr.bf16.gmra.mrb[24].mxu1 %v4526_v10  ;;  %v4599_v10 = vld [vmem:[%s7179_s0 + $0x2c0] ss:$8 sps:$4 sm:$0xff]  }
  0x5b   :  { %4261 = vmatprep.mubr.msk.bf16.mxu0 %vm935_vm0, %v5057_v11  ;;  %4289 = vmatprep.mubr.msk.bf16.mxu1 %vm935_vm0, %v4530_v13  ;;  %v4602_v13 = vld [vmem:[%s7179_s0 + $0x2d4] ss:$8 sps:$4 sm:$0xff]  }
  0x62   :  { %1220 = vmatmul.mubr.bf16.gmra.mrb[28].mxu0 %v5073_v14  ;;  %1488 = vmatmul.mubr.bf16.gmra.mrb[28].mxu1 %v4533_v17  ;;  %v5300_v17 = vld [vmem:[%s7179_s0 + $0x124] ss:$8 sps:$4 sm:$0xff]  }
  0x63   :  { %4262 = vmatprep.mubr.msk.bf16.mxu0 %vm935_vm0, %v5087_v18  ;;  %4290 = vmatprep.mubr.msk.bf16.mxu1 %vm935_vm0, %v4536_v19  ;;  %v4612_v19 = vld [vmem:[%s7179_s0 + $0x2e4] ss:$8 sps:$4 sm:$0xff]  }
  0x6a   :  { %1230 = vmatmul.mubr.bf16.gmra.mrb[32].mxu0 %v5102_v21  ;;  %1498 = vmatmul.mubr.bf16.gmra.mrb[32].mxu1 %v4539_v22  ;;  %v4615_v22 = vld [vmem:[%s7179_s0 + $0x2e0] ss:$8 sps:$4 sm:$0xff]  }
  0x6b   :  { %4263 = vmatprep.mubr.msk.bf16.mxu0 %vm935_vm0, %v5110_v23  ;;  %4291 = vmatprep.mubr.msk.bf16.mxu1 %vm935_vm0, %v4545_v25  ;;  %v4616_v25 = vld [vmem:[%s7179_s0 + $0x134] ss:$8 sps:$4 sm:$0xff]  }
  0x72   :  { %1240 = vmatmul.mubr.bf16.gmra.mrb[36].mxu0 %v5123_v26  ;;  %1508 = vmatmul.mubr.bf16.gmra.mrb[36].mxu1 %v4548_v27  ;;  %v4618_v27 = vld [vmem:[%s7179_s0 + $0x2f4] ss:$8 sps:$4 sm:$0xff]  }
  0x73   :  { %4264 = vmatprep.mubr.msk.bf16.mxu0 %vm935_vm0, %v5131_v28  ;;  %4292 = vmatprep.mubr.msk.bf16.mxu1 %vm935_vm0, %v4552_v29  ;;  %v4620_v29 = vld [vmem:[%s7179_s0 + $0x130] ss:$8 sps:$4 sm:$0xff]  }
  0x7a   :  { %1250 = vmatmul.mubr.bf16.gmra.mrb[40].mxu0 %v5152_v39  ;;  %1518 = vmatmul.mubr.bf16.gmra.mrb[40].mxu1 %v4555_v40  ;;  %v4634_v40 = vld [vmem:[%s7179_s0 + $0x314] ss:$8 sps:$4 sm:$0xff]  }
  0x7b   :  { %4265 = vmatprep.mubr.msk.bf16.mxu0 %vm935_vm0, %v5160_v41  ;;  %4293 = vmatprep.mubr.msk.bf16.mxu1 %vm935_vm0, %v4558_v42  ;;  %v4636_v42 = vld [vmem:[%s7179_s0 + $0x150] ss:$8 sps:$4 sm:$0xff]  }
  0x82   :  { %1260 = vmatmul.mubr.bf16.gmra.mrb[44].mxu0 %v5172_v43  ;;  %1528 = vmatmul.mubr.bf16.gmra.mrb[44].mxu1 %v4561_v44  ;;  %v4637_v44 = vld [vmem:[%s7179_s0 + $0x310] ss:$8 sps:$4 sm:$0xff]  }
  0x83   :  { %4266 = vmatprep.mubr.msk.bf16.mxu0 %vm935_vm0, %v5180_v46  ;;  %4294 = vmatprep.mubr.msk.bf16.mxu1 %vm935_vm0, %v4567_v48  ;;  %v4638_v48 = vld [vmem:[%s7179_s0 + $0x164] ss:$8 sps:$4 sm:$0xff]  }
  0x8a   :  { %1270 = vmatmul.mubr.bf16.gmra.mrb[48].mxu0 %v5192_v49  ;;  %1538 = vmatmul.mubr.bf16.gmra.mrb[48].mxu1 %v4571_v50  ;;  %v4640_v50 = vld [vmem:[%s7179_s0 + $0x324] ss:$8 sps:$4 sm:$0xff]  }
  0x8b   :  { %4267 = vmatprep.mubr.msk.bf16.mxu0 %vm935_vm0, %v5200_v51  ;;  %4295 = vmatprep.mubr.msk.bf16.mxu1 %vm935_vm0, %v4574_v53  ;;  %v4642_v53 = vld [vmem:[%s7179_s0 + $0x160] ss:$8 sps:$4 sm:$0xff]  }
  0x92   :  { %1280 = vmatmul.mubr.bf16.gmra.mrb[52].mxu0 %v5212_v55  ;;  %1548 = vmatmul.mubr.bf16.gmra.mrb[52].mxu1 %v4577_v56  ;;  %v4643_v56 = vld [vmem:[%s7179_s0 + $0x320] ss:$8 sps:$4 sm:$0xff]  }
  0x93   :  { %4268 = vmatprep.mubr.msk.bf16.mxu0 %vm935_vm0, %v5220_v57  ;;  %4296 = vmatprep.mubr.msk.bf16.mxu1 %vm935_vm0, %v4580_v58  ;;  %v4647_v58 = vld [vmem:[%s7179_s0 + $0x174] ss:$8 sps:$4 sm:$0xff]  }
  0x9a   :  { %1287 = vmatmul.mubr.bf16.gmra.mrb[56].mxu0 %v5232_v60  ;;  %1555 = vmatmul.mubr.bf16.gmra.mrb[56].mxu1 %v4583_v62  ;;  %v4649_v62 = vld [vmem:[%s7179_s0 + $0x334] ss:$8 sps:$4 sm:$0xff]  }
  0x9b   :  { %4269 = vmatprep.mubr.msk.bf16.mxu0 %vm935_vm0, %v5240_v63  ;;  %4297 = vmatprep.mubr.msk.bf16.mxu1 %vm935_vm0, %v4590_v0  ;;  %v4651_v0 = vld [vmem:[%s7179_s0 + $0x170] ss:$8 sps:$4 sm:$0xff]  }
  0xa2   :  { %1297 = vmatmul.mubr.bf16.gmra.mrb[60].mxu0 %v5252_v1  ;;  %1565 = vmatmul.mubr.bf16.gmra.mrb[60].mxu1 %v4593_v3  ;;  %v4652_v3 = vld [vmem:[%s7179_s0 + $0x330] ss:$8 sps:$4 sm:$0xff]  }
  0xa3   :  { %4270 = vmatprep.mubr.msk.bf16.mxu0 %vm935_vm0, %v5260_v5  ;;  %4298 = vmatprep.mubr.msk.bf16.mxu1 %vm935_vm0, %v4596_v6  ;;  %v4654_v6 = vld [vmem:[%s7179_s0 + $0x184] ss:$8 sps:$4 sm:$0xff]  }
  0xaa   :  { %1307 = vmatmul.mubr.bf16.gmra.mrb[64].mxu0 %v5272_v7  ;;  %1575 = vmatmul.mubr.bf16.gmra.mrb[64].mxu1 %v4599_v10  ;;  %v4656_v10 = vld [vmem:[%s7179_s0 + $0x344] ss:$8 sps:$4 sm:$0xff]  }
  0xab   :  { %4271 = vmatprep.mubr.msk.bf16.mxu0 %vm935_vm0, %v5280_v12  ;;  %4299 = vmatprep.mubr.msk.bf16.mxu1 %vm935_vm0, %v4602_v13  ;;  %v4658_v13 = vld [vmem:[%s7179_s0 + $0x180] ss:$8 sps:$4 sm:$0xff]  }
  0xb2   :  { %1317 = vmatmul.mubr.bf16.gmra.mrb[68].mxu0 %v5292_v15  ;;  %1585 = vmatmul.mubr.bf16.gmra.mrb[68].mxu1 %v4608_v16  ;;  %v4659_v16 = vld [vmem:[%s7179_s0 + $0x340] ss:$8 sps:$4 sm:$0xff]  }
  0xb3   :  { %4272 = vmatprep.mubr.msk.bf16.mxu0 %vm935_vm0, %v5300_v17  ;;  %4300 = vmatprep.mubr.msk.bf16.mxu1 %vm935_vm0, %v4612_v19  ;;  %v4660_v19 = vld [vmem:[%s7179_s0 + $0x194] ss:$8 sps:$4 sm:$0xff]  }
  0xba   :  { %1327 = vmatmul.mubr.bf16.gmra.mrb[72].mxu0 %v4614_v20  ;;  %1595 = vmatmul.mubr.bf16.gmra.mrb[72].mxu1 %v4615_v22  ;;  %v4662_v20 = vld [vmem:[%s7179_s0 + $0x354] ss:$8 sps:$4 sm:$0xff]   ;;  %v4664_v22 = vld [vmem:[%s7179_s0 + $0x190] ss:$8 sps:$4 sm:$0xff]  }
  0xbb   :  { %4273 = vmatprep.mubr.msk.bf16.mxu0 %vm935_vm0, %v4616_v25  ;;  %4301 = vmatprep.mubr.msk.bf16.mxu1 %vm935_vm0, %v4618_v27  ;;  %v4665_v25 = vld [vmem:[%s7179_s0 + $0x350] ss:$8 sps:$4 sm:$0xff]   ;;  %v4668_v27 = vld [vmem:[%s7179_s0 + $0x1a4] ss:$8 sps:$4 sm:$0xff]  }
  0xc2   :  { %1337 = vmatmul.mubr.bf16.gmra.mrb[76].mxu0 %v4620_v29  ;;  %1605 = vmatmul.mubr.bf16.gmra.mrb[76].mxu1 %v4621_v31  ;;  %v4670_v29 = vld [vmem:[%s7179_s0 + $0x364] ss:$8 sps:$4 sm:$0xff]   ;;  %v4673_v31 = vld [vmem:[%s7179_s0 + $0x1a0] ss:$8 sps:$4 sm:$0xff]  }
  0xc3   :  { %4274 = vmatprep.mubr.msk.bf16.mxu0 %vm935_vm0, %v4625_v32  ;;  %4302 = vmatprep.mubr.msk.bf16.mxu1 %vm935_vm0, %v4627_v33  ;;  %v4674_v32 = vld [vmem:[%s7179_s0 + $0x360] ss:$8 sps:$4 sm:$0xff]   ;;  %v4675_v33 = vld [vmem:[%s7179_s0 + $0x1b4] ss:$8 sps:$4 sm:$0xff]  }
  0xca   :  { %1347 = vmatmul.mubr.bf16.gmra.mrb[80].mxu0 %v4629_v34  ;;  %1615 = vmatmul.mubr.bf16.gmra.mrb[80].mxu1 %v4630_v36  ;;  %v4677_v34 = vld [vmem:[%s7179_s0 + $0x374] ss:$8 sps:$4 sm:$0xff]   ;;  %v2843_v36 = vlaneseq }
  0xcb   :  { %4275 = vmatprep.mubr.msk.bf16.mxu0 %vm935_vm0, %v4632_v37  ;;  %4303 = vmatprep.mubr.msk.bf16.mxu1 %vm935_vm0, %v4634_v40 }
  0xcc   :  { %v5435_v37 = vshrl.u32 %v2843_v36, 7 }
  0xce   :  { %vm2845_vm2 = vcmp.lt.s32.totalorder %v5435_v37, 7  ;;  %vm3142_vm3 = vcmp.lt.s32.totalorder %v5435_v37, 6  ;;  %vm3736_vm4 = vcmp.lt.s32.totalorder %v5435_v37, 4  ;;  %vm3439_vm5 = vcmp.lt.s32.totalorder %v5435_v37, 5 }
  0xd2   :  { %1354 = vmatmul.mubr.bf16.gmra.mrb[84].mxu0 %v4636_v42  ;;  %1622 = vmatmul.mubr.bf16.gmra.mrb[84].mxu1 %v4637_v44 }
  0xd3   :  { %4276 = vmatprep.mubr.msk.bf16.mxu0 %vm935_vm0, %v4638_v48  ;;  %4304 = vmatprep.mubr.msk.bf16.mxu1 %vm935_vm0, %v4640_v50  ;;  %v4679_v50 = vld [vmem:[%s7179_s0 + $0x1b0] ss:$8 sps:$4 sm:$0xff]  }
  0xda   :  { %1364 = vmatmul.mubr.bf16.gmra.mrb[88].mxu0 %v4642_v53  ;;  %1632 = vmatmul.mubr.bf16.gmra.mrb[88].mxu1 %v4643_v56  ;;  %v4680_v53 = vld [vmem:[%s7179_s0 + $0x370] ss:$8 sps:$4 sm:$0xff]  }
  0xdb   :  { %4277 = vmatprep.mubr.msk.bf16.mxu0 %vm935_vm0, %v4647_v58  ;;  %4305 = vmatprep.mubr.msk.bf16.mxu1 %vm935_vm0, %v4649_v62 }
  0xe2   :  { %1374 = vmatmul.mubr.bf16.gmra.mrb[92].mxu0 %v4651_v0  ;;  %1642 = vmatmul.mubr.bf16.gmra.mrb[92].mxu1 %v4652_v3 }
  0xe3   :  { %4278 = vmatprep.mubr.msk.bf16.mxu0 %vm935_vm0, %v4654_v6  ;;  %4306 = vmatprep.mubr.msk.bf16.mxu1 %vm935_vm0, %v4656_v10 }
  0xea   :  { %1384 = vmatmul.mubr.bf16.gmra.mrb[96].mxu0 %v4658_v13  ;;  %1652 = vmatmul.mubr.bf16.gmra.mrb[96].mxu1 %v4659_v16 }
  0xeb   :  { %4279 = vmatprep.mubr.msk.bf16.mxu0 %vm935_vm0, %v4660_v19  ;;  %4307 = vmatprep.mubr.msk.bf16.mxu1 %vm935_vm0, %v4662_v20 }
  0xf2   :  { %1394 = vmatmul.mubr.bf16.gmra.mrb[100].mxu0 %v4664_v22  ;;  %1662 = vmatmul.mubr.bf16.gmra.mrb[100].mxu1 %v4665_v25 }
  0xf3   :  { %4280 = vmatprep.mubr.msk.bf16.mxu0 %vm935_vm0, %v4668_v27  ;;  %4308 = vmatprep.mubr.msk.bf16.mxu1 %vm935_vm0, %v4670_v29 }
  0xfa   :  { %1404 = vmatmul.mubr.bf16.gmra.mrb[104].mxu0 %v4673_v31  ;;  %1672 = vmatmul.mubr.bf16.gmra.mrb[104].mxu1 %v4674_v32 }
  0xfb   :  { %4281 = vmatprep.mubr.msk.bf16.mxu0 %vm935_vm0, %v4675_v33  ;;  %4309 = vmatprep.mubr.msk.bf16.mxu1 %vm935_vm0, %v4677_v34 }
  0xfd   :  { %v1154_v40 = vpop.f32.mrb[0].mxu0  ;;  %v1422_v42 = vpop.f32.mrb[0].mxu1 }
  0xfe   :  { %v1156_v44 = vpop.f32.mrb[1].mxu0  ;;  %v1424_v48 = vpop.f32.mrb[1].mxu1 }
  0xff   :  { %v2739_v56 = vrot.slane %v1156_v44, 1  ;;  %v1158_v58 = vpop.f32.mrb[2].mxu0  ;;  %v1426_v62 = vpop.f32.mrb[2].mxu1  ;;  %v2791_v6 = vrot.slane %v1424_v48, 1 }
 0x100   :  { %v1160_v0 = vpop.f32.mrb[3].mxu0  ;;  %v1428_v3 = vpop.f32.mrb[3].mxu1 }
 0x101   :  { %v2740_v10 = vrot.slane %v1160_v0, 1  ;;  %v2792_v13 = vrot.slane %v1428_v3, 1 }
 0x102   :  { %1414 = vmatmul.mubr.bf16.gmra.mrb[108].mxu0 %v4679_v50  ;;  %1682 = vmatmul.mubr.bf16.gmra.mrb[108].mxu1 %v4680_v53 }
 0x103   :  { %v2941_v16 = vsel %vm2845_vm2, %v2739_v56, %v2740_v10  ;;  %v2893_v19 = vsel %vm2845_vm2, %v2791_v6, %v2792_v13  ;;  %4311 = vmatprep.mubr.msk.bf16.mxu1 %vm935_vm0, %v4808_v9  ;;  %4367 = vmatprep.mubr.msk.bf16.mxu0 %vm935_vm0, %v4808_v9 }
 0x104   :  { %v5452_v20 = vadd.f32 %v2941_v16, %v1154_v40  ;;  %v5454_v22 = vadd.f32 %v2893_v19, %v1422_v42 }
 0x105   :  { %v1164_v25 = vpop.f32.mrb[4].mxu0  ;;  %v1432_v27 = vpop.f32.mrb[4].mxu1 }
 0x106   :  { %7182 = vst [vmem:[#allocation2_spill] sm:$0xff] %v5454_v22  ;;  %v1166_v29 = vpop.f32.mrb[5].mxu0  ;;  %v1434_v31 = vpop.f32.mrb[5].mxu1 }
 0x107   :  { %v2741_v32 = vrot.slane %v1166_v29, 1  ;;  %v2793_v33 = vrot.slane %v1434_v31, 1  ;;  %v1168_v34 = vpop.f32.mrb[6].mxu0  ;;  %v1436_v36 = vpop.f32.mrb[6].mxu1 }
 0x108   :  { %v1170_v44 = vpop.f32.mrb[7].mxu0  ;;  %v1438_v48 = vpop.f32.mrb[7].mxu1 }
 0x109   :  { %v2940_v50 = vsel %vm2845_vm2, %v2740_v10, %v2741_v32  ;;  %v2892_v9 = vsel %vm2845_vm2, %v2792_v13, %v2793_v33  ;;  %v2742_v40 = vrot.slane %v1170_v44, 1  ;;  %v2794_v53 = vrot.slane %v1438_v48, 1 }
 0x10a   :  { %1722 = vmatmul.mubr.bf16.vlgmr.msra.gmra.mrb[112].mxu1 %v4852_v24  ;;  %2299 = vmatmul.mubr.bf16.vlgmr.msra.gmra.mrb[112].mxu0 %v4852_v24  ;;  %v5462_v42 = vadd.f32 %v2940_v50, %v1158_v58  ;;  %v5464_v56 = vadd.f32 %v2892_v9, %v1426_v62 }
 0x10b   :  { %v2939_v0 = vsel %vm2845_vm2, %v2741_v32, %v2742_v40  ;;  %v2891_v3 = vsel %vm2845_vm2, %v2793_v33, %v2794_v53  ;;  %4312 = vmatprep.mubr.msk.bf16.mxu1 %vm935_vm0, %v4870_v30  ;;  %4368 = vmatprep.mubr.msk.bf16.mxu0 %vm935_vm0, %v4870_v30 }
 0x10c   :  { %7183 = vst [vmem:[#allocation3_spill] sm:$0xff] %v5464_v56  ;;  %v5474_v6 = vadd.f32 %v2939_v0, %v1164_v25  ;;  %v5476_v10 = vadd.f32 %v2891_v3, %v1432_v27 }
 0x10d   :  { %v1174_v24 = vpop.f32.mrb[8].mxu0  ;;  %v1442_v58 = vpop.f32.mrb[8].mxu1 }
 0x10e   :  { %7184 = vst [vmem:[#allocation4_spill] sm:$0xff] %v5476_v10  ;;  %v1176_v62 = vpop.f32.mrb[9].mxu0  ;;  %v1444_v13 = vpop.f32.mrb[9].mxu1 }
 0x10f   :  { %v2743_v16 = vrot.slane %v1176_v62, 1  ;;  %v2795_v19 = vrot.slane %v1444_v13, 1  ;;  %v1178_v29 = vpop.f32.mrb[10].mxu0  ;;  %v1446_v31 = vpop.f32.mrb[10].mxu1 }
 0x110   :  { %v1180_v32 = vpop.f32.mrb[11].mxu0  ;;  %v1448_v33 = vpop.f32.mrb[11].mxu1 }
 0x111   :  { %v2938_v44 = vsel %vm2845_vm2, %v2742_v40, %v2743_v16  ;;  %v2890_v30 = vsel %vm2845_vm2, %v2794_v53, %v2795_v19  ;;  %v2744_v25 = vrot.slane %v1180_v32, 1  ;;  %v2796_v48 = vrot.slane %v1448_v33, 1 }
 0x112   :  { %1732 = vmatmul.mubr.bf16.gmra.mrb[116].mxu1 %v4891_v35  ;;  %2307 = vmatmul.mubr.bf16.gmra.mrb[116].mxu0 %v4891_v35  ;;  %v5484_v27 = vadd.f32 %v2938_v44, %v1168_v34  ;;  %v5486_v50 = vadd.f32 %v2890_v30, %v1436_v36 }
 0x113   :  { %v2937_v9 = vsel %vm2845_vm2, %v2743_v16, %v2744_v25  ;;  %v2889_v0 = vsel %vm2845_vm2, %v2795_v19, %v2796_v48  ;;  %4313 = vmatprep.mubr.msk.bf16.mxu1 %vm935_vm0, %v4903_v38  ;;  %4369 = vmatprep.mubr.msk.bf16.mxu0 %vm935_vm0, %v4903_v38 }
 0x114   :  { %7185 = vst [vmem:[#allocation5_spill] sm:$0xff] %v5486_v50  ;;  %v5496_v40 = vadd.f32 %v2937_v9, %v1174_v24  ;;  %v5498_v53 = vadd.f32 %v2889_v0, %v1442_v58 }
 0x115   :  { %v1184_v35 = vpop.f32.mrb[12].mxu0  ;;  %v1452_v34 = vpop.f32.mrb[12].mxu1 }
 0x116   :  { %7186 = vst [vmem:[#allocation6_spill] sm:$0xff] %v5498_v53  ;;  %v1186_v36 = vpop.f32.mrb[13].mxu0  ;;  %v1454_v3 = vpop.f32.mrb[13].mxu1 }
 0x117   :  { %v2745_v62 = vrot.slane %v1186_v36, 1  ;;  %v2797_v13 = vrot.slane %v1454_v3, 1  ;;  %v1188_v16 = vpop.f32.mrb[14].mxu0  ;;  %v1456_v32 = vpop.f32.mrb[14].mxu1 }
 0x118   :  { %v1190_v33 = vpop.f32.mrb[15].mxu0  ;;  %v1458_v19 = vpop.f32.mrb[15].mxu1 }
 0x119   :  { %v2936_v44 = vsel %vm2845_vm2, %v2744_v25, %v2745_v62  ;;  %v2888_v38 = vsel %vm2845_vm2, %v2796_v48, %v2797_v13  ;;  %v2746_v24 = vrot.slane %v1190_v33, 1  ;;  %v2798_v30 = vrot.slane %v1458_v19, 1 }
 0x11a   :  { %1742 = vmatmul.mubr.bf16.gmra.mrb[120].mxu1 %v4931_v45  ;;  %2315 = vmatmul.mubr.bf16.gmra.mrb[120].mxu0 %v4931_v45  ;;  %v5506_v58 = vadd.f32 %v2936_v44, %v1178_v29  ;;  %v5508_v9 = vadd.f32 %v2888_v38, %v1446_v31 }
 0x11b   :  { %v2935_v0 = vsel %vm2845_vm2, %v2745_v62, %v2746_v24  ;;  %v2887_v36 = vsel %vm2845_vm2, %v2797_v13, %v2798_v30  ;;  %4314 = vmatprep.mubr.msk.bf16.mxu1 %vm935_vm0, %v4940_v47  ;;  %4370 = vmatprep.mubr.msk.bf16.mxu0 %vm935_vm0, %v4940_v47 }
 0x11c   :  { %7187 = vst [vmem:[#allocation7_spill] sm:$0xff] %v5508_v9  ;;  %v5518_v25 = vadd.f32 %v2935_v0, %v1184_v35  ;;  %v5520_v48 = vadd.f32 %v2887_v36, %v1452_v34 }
 0x11d   :  { %v1194_v45 = vpop.f32.mrb[16].mxu0  ;;  %v1462_v29 = vpop.f32.mrb[16].mxu1 }
 0x11e   :  { %7188 = vst [vmem:[#allocation8_spill] sm:$0xff] %v5520_v48  ;;  %v1196_v31 = vpop.f32.mrb[17].mxu0  ;;  %v1464_v3 = vpop.f32.mrb[17].mxu1 }
 0x11f   :  { %v2747_v33 = vrot.slane %v1196_v31, 1  ;;  %v2799_v19 = vrot.slane %v1464_v3, 1  ;;  %v1198_v62 = vpop.f32.mrb[18].mxu0  ;;  %v1466_v44 = vpop.f32.mrb[18].mxu1 }
 0x120   :  { %v1200_v38 = vpop.f32.mrb[19].mxu0  ;;  %v1468_v13 = vpop.f32.mrb[19].mxu1 }
 0x121   :  { %v2934_v9 = vsel %vm2845_vm2, %v2746_v24, %v2747_v33  ;;  %v2886_v47 = vsel %vm2845_vm2, %v2798_v30, %v2799_v19  ;;  %v2748_v35 = vrot.slane %v1200_v38, 1  ;;  %v2800_v0 = vrot.slane %v1468_v13, 1 }
 0x122   :  { %1752 = vmatmul.mubr.bf16.gmra.mrb[124].mxu1 %v4962_v52  ;;  %2323 = vmatmul.mubr.bf16.gmra.mrb[124].mxu0 %v4962_v52  ;;  %v5528_v34 = vadd.f32 %v2934_v9, %v1188_v16  ;;  %v5530_v36 = vadd.f32 %v2886_v47, %v1456_v32 }
 0x123   :  { %v2933_v31 = vsel %vm2845_vm2, %v2747_v33, %v2748_v35  ;;  %v2885_v3 = vsel %vm2845_vm2, %v2799_v19, %v2800_v0  ;;  %4315 = vmatprep.mubr.msk.bf16.mxu1 %vm935_vm0, %v4971_v54  ;;  %4371 = vmatprep.mubr.msk.bf16.mxu0 %vm935_vm0, %v4971_v54 }
 0x124   :  { %7189 = vst [vmem:[#allocation9_spill] sm:$0xff] %v5530_v36  ;;  %v5540_v24 = vadd.f32 %v2933_v31, %v1194_v45  ;;  %v5542_v30 = vadd.f32 %v2885_v3, %v1462_v29 }
 0x125   :  { %v1204_v52 = vpop.f32.mrb[20].mxu0  ;;  %v1472_v16 = vpop.f32.mrb[20].mxu1 }
 0x126   :  { %7190 = vst [vmem:[#allocation10_spill] sm:$0xff] %v5542_v30  ;;  %v1206_v32 = vpop.f32.mrb[21].mxu0  ;;  %v1474_v9 = vpop.f32.mrb[21].mxu1 }
 0x127   :  { %v2749_v38 = vrot.slane %v1206_v32, 1  ;;  %v2801_v13 = vrot.slane %v1474_v9, 1  ;;  %v1208_v33 = vpop.f32.mrb[22].mxu0  ;;  %v1476_v47 = vpop.f32.mrb[22].mxu1 }
 0x128   :  { %v1210_v36 = vpop.f32.mrb[23].mxu0  ;;  %v1478_v19 = vpop.f32.mrb[23].mxu1 }
 0x129   :  { %v2932_v48 = vsel %vm2845_vm2, %v2748_v35, %v2749_v38  ;;  %v2884_v54 = vsel %vm2845_vm2, %v2800_v0, %v2801_v13  ;;  %v2750_v45 = vrot.slane %v1210_v36, 1  ;;  %v2802_v31 = vrot.slane %v1478_v19, 1 }
 0x12a   :  { %1762 = vmatmul.mubr.bf16.gmra.mrb[128].mxu1 %v4992_v59  ;;  %2331 = vmatmul.mubr.bf16.gmra.mrb[128].mxu0 %v4992_v59  ;;  %v5550_v29 = vadd.f32 %v2932_v48, %v1198_v62  ;;  %v5552_v3 = vadd.f32 %v2884_v54, %v1466_v44 }
 0x12b   :  { %v2931_v32 = vsel %vm2845_vm2, %v2749_v38, %v2750_v45  ;;  %v2883_v9 = vsel %vm2845_vm2, %v2801_v13, %v2802_v31  ;;  %4316 = vmatprep.mubr.msk.bf16.mxu1 %vm935_vm0, %v5001_v61  ;;  %4372 = vmatprep.mubr.msk.bf16.mxu0 %vm935_vm0, %v5001_v61 }
 0x12c   :  { %7191 = vst [vmem:[#allocation11_spill] sm:$0xff] %v5552_v3  ;;  %v5562_v35 = vadd.f32 %v2931_v32, %v1204_v52  ;;  %v5564_v0 = vadd.f32 %v2883_v9, %v1472_v16 }
 0x12d   :  { %v1214_v59 = vpop.f32.mrb[24].mxu0  ;;  %v1482_v48 = vpop.f32.mrb[24].mxu1 }
 0x12e   :  { %7192 = vst [vmem:[#allocation12_spill] sm:$0xff] %v5564_v0  ;;  %v1215_v62 = vpop.f32.mrb[25].mxu0  ;;  %v1483_v44 = vpop.f32.mrb[25].mxu1 }
 0x12f   :  { %v2751_v36 = vrot.slane %v1215_v62, 1  ;;  %v2803_v19 = vrot.slane %v1483_v44, 1  ;;  %v1485_v38 = vpop.f32.mrb[26].mxu1  ;;  %v1217_v54 = vpop.f32.mrb[26].mxu0 }
 0x130   :  { %v1486_v3 = vpop.f32.mrb[27].mxu1  ;;  %v1218_v13 = vpop.f32.mrb[27].mxu0 }
 0x131   :  { %v2930_v30 = vsel %vm2845_vm2, %v2750_v45, %v2751_v36  ;;  %v2882_v61 = vsel %vm2845_vm2, %v2802_v31, %v2803_v19 }
 0x132   :  { %1772 = vmatmul.mubr.bf16.gmra.mrb[132].mxu1 %v5022_v2  ;;  %2339 = vmatmul.mubr.bf16.gmra.mrb[132].mxu0 %v5022_v2  ;;  %v5572_v52 = vadd.f32 %v2930_v30, %v1208_v33  ;;  %v5574_v16 = vadd.f32 %v2882_v61, %v1476_v47 }
 0x133   :  { %4317 = vmatprep.mubr.msk.bf16.mxu1 %vm935_vm0, %v5030_v4  ;;  %4373 = vmatprep.mubr.msk.bf16.mxu0 %vm935_vm0, %v5030_v4 }
 0x134   :  { %7193 = vst [vmem:[#allocation13_spill] sm:$0xff] %v5574_v16 }
 0x135   :  { %v1221_v3 = vpop.f32.mrb[28].mxu0  ;;  %v1489_v32 = vpop.f32.mrb[28].mxu1 }
 0x136   :  { %v1223_v45 = vpop.f32.mrb[29].mxu0  ;;  %v1491_v9 = vpop.f32.mrb[29].mxu1 }
 0x137   :  { %v2752_v59 = vrot.slane %v1223_v45, 1  ;;  %v1225_v31 = vpop.f32.mrb[30].mxu0  ;;  %v1493_v48 = vpop.f32.mrb[30].mxu1  ;;  %v2804_v2 = vrot.slane %v1491_v9, 1 }
 0x138   :  { %v1227_v62 = vpop.f32.mrb[31].mxu0  ;;  %v1495_v44 = vpop.f32.mrb[31].mxu1 }
 0x139   :  { %v2753_v30 = vrot.slane %v1227_v62, 1  ;;  %v2805_v33 = vrot.slane %v1495_v44, 1 }
 0x13a   :  { %1782 = vmatmul.mubr.bf16.gmra.mrb[136].mxu1 %v5049_v8  ;;  %2347 = vmatmul.mubr.bf16.gmra.mrb[136].mxu0 %v5049_v8 }
 0x13b   :  { %v2929_v47 = vsel %vm2845_vm2, %v2752_v59, %v2753_v30  ;;  %v2881_v4 = vsel %vm2845_vm2, %v2804_v2, %v2805_v33  ;;  %4318 = vmatprep.mubr.msk.bf16.mxu1 %vm935_vm0, %v5057_v11  ;;  %4374 = vmatprep.mubr.msk.bf16.mxu0 %vm935_vm0, %v5057_v11 }
 0x13c   :  { %v5590_v36 = vadd.f32 %v2929_v47, %v1221_v3  ;;  %v5592_v19 = vadd.f32 %v2881_v4, %v1489_v32 }
 0x13d   :  { %v1231_v38 = vpop.f32.mrb[32].mxu0  ;;  %v1499_v54 = vpop.f32.mrb[32].mxu1 }
 0x13e   :  { %7194 = vst [vmem:[#allocation14_spill] sm:$0xff] %v5592_v19  ;;  %v1233_v13 = vpop.f32.mrb[33].mxu0  ;;  %v1501_v8 = vpop.f32.mrb[33].mxu1 }
 0x13f   :  { %v2754_v61 = vrot.slane %v1233_v13, 1  ;;  %v2806_v45 = vrot.slane %v1501_v8, 1  ;;  %v1235_v9 = vpop.f32.mrb[34].mxu0  ;;  %v1503_v59 = vpop.f32.mrb[34].mxu1 }
 0x140   :  { %v1237_v62 = vpop.f32.mrb[35].mxu0  ;;  %v1505_v44 = vpop.f32.mrb[35].mxu1 }
 0x141   :  { %v2928_v2 = vsel %vm2845_vm2, %v2753_v30, %v2754_v61  ;;  %v2880_v11 = vsel %vm2845_vm2, %v2805_v33, %v2806_v45  ;;  %v2755_v3 = vrot.slane %v1237_v62, 1  ;;  %v2807_v47 = vrot.slane %v1505_v44, 1 }
 0x142   :  { %1790 = vmatmul.mubr.bf16.gmra.mrb[140].mxu1 %v5073_v14  ;;  %2354 = vmatmul.mubr.bf16.gmra.mrb[140].mxu0 %v5073_v14  ;;  %v5600_v32 = vadd.f32 %v2928_v2, %v1225_v31  ;;  %v5602_v4 = vadd.f32 %v2880_v11, %v1493_v48 }
 0x143   :  { %v2927_v13 = vsel %vm2845_vm2, %v2754_v61, %v2755_v3  ;;  %v2879_v8 = vsel %vm2845_vm2, %v2806_v45, %v2807_v47  ;;  %4319 = vmatprep.mubr.msk.bf16.mxu1 %vm935_vm0, %v5087_v18  ;;  %4375 = vmatprep.mubr.msk.bf16.mxu0 %vm935_vm0, %v5087_v18 }
 0x144   :  { %7195 = vst [vmem:[#allocation15_spill] sm:$0xff] %v5602_v4  ;;  %v5612_v30 = vadd.f32 %v2927_v13, %v1231_v38  ;;  %v5614_v33 = vadd.f32 %v2879_v8, %v1499_v54 }
 0x145   :  { %v1241_v14 = vpop.f32.mrb[36].mxu0  ;;  %v1509_v31 = vpop.f32.mrb[36].mxu1 }
 0x146   :  { %7196 = vst [vmem:[#allocation16_spill] sm:$0xff] %v5614_v33  ;;  %v1243_v48 = vpop.f32.mrb[37].mxu0  ;;  %v1511_v62 = vpop.f32.mrb[37].mxu1 }
 0x147   :  { %v2756_v44 = vrot.slane %v1243_v48, 1  ;;  %v2808_v2 = vrot.slane %v1511_v62, 1  ;;  %v1245_v61 = vpop.f32.mrb[38].mxu0  ;;  %v1513_v11 = vpop.f32.mrb[38].mxu1 }
 0x148   :  { %v1247_v4 = vpop.f32.mrb[39].mxu0  ;;  %v1515_v45 = vpop.f32.mrb[39].mxu1 }
 0x149   :  { %v2926_v19 = vsel %vm2845_vm2, %v2755_v3, %v2756_v44  ;;  %v2878_v18 = vsel %vm2845_vm2, %v2807_v47, %v2808_v2  ;;  %v2757_v38 = vrot.slane %v1247_v4, 1  ;;  %v2809_v13 = vrot.slane %v1515_v45, 1 }
 0x14a   :  { %1800 = vmatmul.mubr.bf16.gmra.mrb[144].mxu1 %v5102_v21  ;;  %2362 = vmatmul.mubr.bf16.gmra.mrb[144].mxu0 %v5102_v21  ;;  %v5622_v54 = vadd.f32 %v2926_v19, %v1235_v9  ;;  %v5624_v8 = vadd.f32 %v2878_v18, %v1503_v59 }
 0x14b   :  { %v2925_v48 = vsel %vm2845_vm2, %v2756_v44, %v2757_v38  ;;  %v2877_v62 = vsel %vm2845_vm2, %v2808_v2, %v2809_v13  ;;  %4320 = vmatprep.mubr.msk.bf16.mxu1 %vm935_vm0, %v5110_v23  ;;  %4376 = vmatprep.mubr.msk.bf16.mxu0 %vm935_vm0, %v5110_v23 }
 0x14c   :  { %7197 = vst [vmem:[#allocation17_spill] sm:$0xff] %v5624_v8  ;;  %v5634_v3 = vadd.f32 %v2925_v48, %v1241_v14  ;;  %v5636_v47 = vadd.f32 %v2877_v62, %v1509_v31 }
 0x14d   :  { %v1251_v21 = vpop.f32.mrb[40].mxu0  ;;  %v1519_v19 = vpop.f32.mrb[40].mxu1 }
 0x14e   :  { %7198 = vst [vmem:[#allocation18_spill] sm:$0xff] %v5636_v47  ;;  %v1253_v9 = vpop.f32.mrb[41].mxu0  ;;  %v1521_v59 = vpop.f32.mrb[41].mxu1 }
 0x14f   :  { %v2758_v4 = vrot.slane %v1253_v9, 1  ;;  %v2810_v45 = vrot.slane %v1521_v59, 1  ;;  %v1255_v44 = vpop.f32.mrb[42].mxu0  ;;  %v1523_v18 = vpop.f32.mrb[42].mxu1 }
 0x150   :  { %v1257_v8 = vpop.f32.mrb[43].mxu0  ;;  %v1525_v2 = vpop.f32.mrb[43].mxu1 }
 0x151   :  { %v2924_v33 = vsel %vm2845_vm2, %v2757_v38, %v2758_v4  ;;  %v2876_v23 = vsel %vm2845_vm2, %v2809_v13, %v2810_v45  ;;  %v2759_v14 = vrot.slane %v1257_v8, 1  ;;  %v2811_v48 = vrot.slane %v1525_v2, 1 }
 0x152   :  { %1810 = vmatmul.mubr.bf16.gmra.mrb[148].mxu1 %v5123_v26  ;;  %2370 = vmatmul.mubr.bf16.gmra.mrb[148].mxu0 %v5123_v26  ;;  %v5644_v31 = vadd.f32 %v2924_v33, %v1245_v61  ;;  %v5646_v62 = vadd.f32 %v2876_v23, %v1513_v11 }
 0x153   :  { %v2923_v9 = vsel %vm2845_vm2, %v2758_v4, %v2759_v14  ;;  %v2875_v59 = vsel %vm2845_vm2, %v2810_v45, %v2811_v48  ;;  %4321 = vmatprep.mubr.msk.bf16.mxu1 %vm935_vm0, %v5131_v28  ;;  %4377 = vmatprep.mubr.msk.bf16.mxu0 %vm935_vm0, %v5131_v28 }
 0x154   :  { %7199 = vst [vmem:[#allocation19_spill] sm:$0xff] %v5646_v62  ;;  %v5656_v38 = vadd.f32 %v2923_v9, %v1251_v21  ;;  %v5658_v13 = vadd.f32 %v2875_v59, %v1519_v19 }
 0x155   :  { %v1261_v26 = vpop.f32.mrb[44].mxu0  ;;  %v1529_v33 = vpop.f32.mrb[44].mxu1 }
 0x156   :  { %7200 = vst [vmem:[#allocation20_spill] sm:$0xff] %v5658_v13  ;;  %v1263_v61 = vpop.f32.mrb[45].mxu0  ;;  %v1531_v11 = vpop.f32.mrb[45].mxu1 }
 0x157   :  { %v2760_v8 = vrot.slane %v1263_v61, 1  ;;  %v2812_v2 = vrot.slane %v1531_v11, 1  ;;  %v1265_v4 = vpop.f32.mrb[46].mxu0  ;;  %v1533_v23 = vpop.f32.mrb[46].mxu1 }
 0x158   :  { %v1267_v62 = vpop.f32.mrb[47].mxu0  ;;  %v1535_v45 = vpop.f32.mrb[47].mxu1 }
 0x159   :  { %v2922_v47 = vsel %vm2845_vm2, %v2759_v14, %v2760_v8  ;;  %v2874_v28 = vsel %vm2845_vm2, %v2811_v48, %v2812_v2  ;;  %v2761_v21 = vrot.slane %v1267_v62, 1  ;;  %v2813_v9 = vrot.slane %v1535_v45, 1 }
 0x15a   :  { %1820 = vmatmul.mubr.bf16.gmra.mrb[152].mxu1 %v5152_v39  ;;  %2378 = vmatmul.mubr.bf16.gmra.mrb[152].mxu0 %v5152_v39  ;;  %v5666_v19 = vadd.f32 %v2922_v47, %v1255_v44  ;;  %v5668_v59 = vadd.f32 %v2874_v28, %v1523_v18 }
 0x15b   :  { %v2921_v61 = vsel %vm2845_vm2, %v2760_v8, %v2761_v21  ;;  %v2873_v11 = vsel %vm2845_vm2, %v2812_v2, %v2813_v9  ;;  %4322 = vmatprep.mubr.msk.bf16.mxu1 %vm935_vm0, %v5160_v41  ;;  %4378 = vmatprep.mubr.msk.bf16.mxu0 %vm935_vm0, %v5160_v41 }
 0x15c   :  { %7201 = vst [vmem:[#allocation21_spill] sm:$0xff] %v5668_v59  ;;  %v5678_v14 = vadd.f32 %v2921_v61, %v1261_v26  ;;  %v5680_v48 = vadd.f32 %v2873_v11, %v1529_v33 }
 0x15d   :  { %v1271_v39 = vpop.f32.mrb[48].mxu0  ;;  %v1539_v47 = vpop.f32.mrb[48].mxu1 }
 0x15e   :  { %7202 = vst [vmem:[#allocation22_spill] sm:$0xff] %v5680_v48  ;;  %v1273_v44 = vpop.f32.mrb[49].mxu0  ;;  %v1541_v18 = vpop.f32.mrb[49].mxu1 }
 0x15f   :  { %v2762_v62 = vrot.slane %v1273_v44, 1  ;;  %v2814_v45 = vrot.slane %v1541_v18, 1  ;;  %v1275_v8 = vpop.f32.mrb[50].mxu0  ;;  %v1543_v28 = vpop.f32.mrb[50].mxu1 }
 0x160   :  { %v1277_v59 = vpop.f32.mrb[51].mxu0  ;;  %v1545_v2 = vpop.f32.mrb[51].mxu1 }
 0x161   :  { %v2920_v13 = vsel %vm2845_vm2, %v2761_v21, %v2762_v62  ;;  %v2872_v41 = vsel %vm2845_vm2, %v2813_v9, %v2814_v45  ;;  %v2763_v26 = vrot.slane %v1277_v59, 1  ;;  %v2815_v61 = vrot.slane %v1545_v2, 1 }
 0x162   :  { %1830 = vmatmul.mubr.bf16.gmra.mrb[156].mxu1 %v5172_v43  ;;  %2386 = vmatmul.mubr.bf16.gmra.mrb[156].mxu0 %v5172_v43  ;;  %v5688_v33 = vadd.f32 %v2920_v13, %v1265_v4  ;;  %v5690_v11 = vadd.f32 %v2872_v41, %v1533_v23 }
 0x163   :  { %v2919_v44 = vsel %vm2845_vm2, %v2762_v62, %v2763_v26  ;;  %v2871_v18 = vsel %vm2845_vm2, %v2814_v45, %v2815_v61  ;;  %4323 = vmatprep.mubr.msk.bf16.mxu1 %vm935_vm0, %v5180_v46  ;;  %4379 = vmatprep.mubr.msk.bf16.mxu0 %vm935_vm0, %v5180_v46 }
 0x164   :  { %7203 = vst [vmem:[#allocation23_spill] sm:$0xff] %v5690_v11  ;;  %v5700_v21 = vadd.f32 %v2919_v44, %v1271_v39  ;;  %v5702_v9 = vadd.f32 %v2871_v18, %v1539_v47 }
 0x165   :  { %v1281_v43 = vpop.f32.mrb[52].mxu0  ;;  %v1549_v13 = vpop.f32.mrb[52].mxu1 }
 0x166   :  { %7204 = vst [vmem:[#allocation24_spill] sm:$0xff] %v5702_v9  ;;  %v1282_v4 = vpop.f32.mrb[53].mxu0  ;;  %v1550_v23 = vpop.f32.mrb[53].mxu1 }
 0x167   :  { %v2764_v59 = vrot.slane %v1282_v4, 1  ;;  %v2816_v2 = vrot.slane %v1550_v23, 1  ;;  %v1552_v62 = vpop.f32.mrb[54].mxu1  ;;  %v1284_v41 = vpop.f32.mrb[54].mxu0 }
 0x168   :  { %v1553_v11 = vpop.f32.mrb[55].mxu1  ;;  %v1285_v45 = vpop.f32.mrb[55].mxu0 }
 0x169   :  { %v2918_v48 = vsel %vm2845_vm2, %v2763_v26, %v2764_v59  ;;  %v2870_v46 = vsel %vm2845_vm2, %v2815_v61, %v2816_v2 }
 0x16a   :  { %1840 = vmatmul.mubr.bf16.gmra.mrb[160].mxu1 %v5192_v49  ;;  %2394 = vmatmul.mubr.bf16.gmra.mrb[160].mxu0 %v5192_v49  ;;  %v5710_v39 = vadd.f32 %v2918_v48, %v1275_v8  ;;  %v5712_v47 = vadd.f32 %v2870_v46, %v1543_v28 }
 0x16b   :  { %4324 = vmatprep.mubr.msk.bf16.mxu1 %vm935_vm0, %v5200_v51  ;;  %4380 = vmatprep.mubr.msk.bf16.mxu0 %vm935_vm0, %v5200_v51 }
 0x16c   :  { %7205 = vst [vmem:[#allocation25_spill] sm:$0xff] %v5712_v47 }
 0x16d   :  { %v1288_v11 = vpop.f32.mrb[56].mxu0  ;;  %v1556_v44 = vpop.f32.mrb[56].mxu1 }
 0x16e   :  { %v1290_v26 = vpop.f32.mrb[57].mxu0  ;;  %v1558_v18 = vpop.f32.mrb[57].mxu1 }
 0x16f   :  { %v2765_v43 = vrot.slane %v1290_v26, 1  ;;  %v1292_v61 = vpop.f32.mrb[58].mxu0  ;;  %v1560_v13 = vpop.f32.mrb[58].mxu1  ;;  %v2817_v49 = vrot.slane %v1558_v18, 1 }
 0x170   :  { %v1294_v4 = vpop.f32.mrb[59].mxu0  ;;  %v1562_v23 = vpop.f32.mrb[59].mxu1 }
 0x171   :  { %v2766_v48 = vrot.slane %v1294_v4, 1  ;;  %v2818_v8 = vrot.slane %v1562_v23, 1 }
 0x172   :  { %1850 = vmatmul.mubr.bf16.gmra.mrb[164].mxu1 %v5212_v55  ;;  %2402 = vmatmul.mubr.bf16.gmra.mrb[164].mxu0 %v5212_v55 }
 0x173   :  { %v2917_v28 = vsel %vm2845_vm2, %v2765_v43, %v2766_v48  ;;  %v2869_v51 = vsel %vm2845_vm2, %v2817_v49, %v2818_v8  ;;  %4325 = vmatprep.mubr.msk.bf16.mxu1 %vm935_vm0, %v5220_v57  ;;  %4381 = vmatprep.mubr.msk.bf16.mxu0 %vm935_vm0, %v5220_v57 }
 0x174   :  { %v5728_v59 = vadd.f32 %v2917_v28, %v1288_v11  ;;  %v5730_v2 = vadd.f32 %v2869_v51, %v1556_v44 }
 0x175   :  { %v1298_v62 = vpop.f32.mrb[60].mxu0  ;;  %v1566_v41 = vpop.f32.mrb[60].mxu1 }
 0x176   :  { %7206 = vst [vmem:[#allocation26_spill] sm:$0xff] %v5730_v2  ;;  %v1300_v45 = vpop.f32.mrb[61].mxu0  ;;  %v1568_v55 = vpop.f32.mrb[61].mxu1 }
 0x177   :  { %v2767_v46 = vrot.slane %v1300_v45, 1  ;;  %v2819_v26 = vrot.slane %v1568_v55, 1  ;;  %v1302_v18 = vpop.f32.mrb[62].mxu0  ;;  %v1570_v43 = vpop.f32.mrb[62].mxu1 }
 0x178   :  { %v1304_v4 = vpop.f32.mrb[63].mxu0  ;;  %v1572_v23 = vpop.f32.mrb[63].mxu1 }
 0x179   :  { %v2916_v49 = vsel %vm2845_vm2, %v2766_v48, %v2767_v46  ;;  %v2868_v57 = vsel %vm2845_vm2, %v2818_v8, %v2819_v26  ;;  %v2768_v11 = vrot.slane %v1304_v4, 1  ;;  %v2820_v28 = vrot.slane %v1572_v23, 1 }
 0x17a   :  { %1858 = vmatmul.mubr.bf16.gmra.mrb[168].mxu1 %v5232_v60  ;;  %2409 = vmatmul.mubr.bf16.gmra.mrb[168].mxu0 %v5232_v60  ;;  %v5738_v44 = vadd.f32 %v2916_v49, %v1292_v61  ;;  %v5740_v51 = vadd.f32 %v2868_v57, %v1560_v13 }
 0x17b   :  { %v2915_v45 = vsel %vm2845_vm2, %v2767_v46, %v2768_v11  ;;  %v2867_v55 = vsel %vm2845_vm2, %v2819_v26, %v2820_v28  ;;  %4326 = vmatprep.mubr.msk.bf16.mxu1 %vm935_vm0, %v5240_v63  ;;  %4382 = vmatprep.mubr.msk.bf16.mxu0 %vm935_vm0, %v5240_v63 }
 0x17c   :  { %7207 = vst [vmem:[#allocation27_spill] sm:$0xff] %v5740_v51  ;;  %v5750_v48 = vadd.f32 %v2915_v45, %v1298_v62  ;;  %v5752_v8 = vadd.f32 %v2867_v55, %v1566_v41 }
 0x17d   :  { %v1308_v60 = vpop.f32.mrb[64].mxu0  ;;  %v1576_v61 = vpop.f32.mrb[64].mxu1 }
 0x17e   :  { %7208 = vst [vmem:[#allocation28_spill] sm:$0xff] %v5752_v8  ;;  %v1310_v13 = vpop.f32.mrb[65].mxu0  ;;  %v1578_v4 = vpop.f32.mrb[65].mxu1 }
 0x17f   :  { %v2769_v23 = vrot.slane %v1310_v13, 1  ;;  %v2821_v49 = vrot.slane %v1578_v4, 1  ;;  %v1312_v46 = vpop.f32.mrb[66].mxu0  ;;  %v1580_v57 = vpop.f32.mrb[66].mxu1 }
 0x180   :  { %v1314_v51 = vpop.f32.mrb[67].mxu0  ;;  %v1582_v26 = vpop.f32.mrb[67].mxu1 }
 0x181   :  { %v2914_v2 = vsel %vm2845_vm2, %v2768_v11, %v2769_v23  ;;  %v2866_v63 = vsel %vm2845_vm2, %v2820_v28, %v2821_v49  ;;  %v2770_v62 = vrot.slane %v1314_v51, 1  ;;  %v2822_v45 = vrot.slane %v1582_v26, 1 }
 0x182   :  { %1868 = vmatmul.mubr.bf16.gmra.mrb[172].mxu1 %v5252_v1  ;;  %2417 = vmatmul.mubr.bf16.gmra.mrb[172].mxu0 %v5252_v1  ;;  %v5760_v41 = vadd.f32 %v2914_v2, %v1302_v18  ;;  %v5762_v55 = vadd.f32 %v2866_v63, %v1570_v43 }
 0x183   :  { %v2913_v13 = vsel %vm2845_vm2, %v2769_v23, %v2770_v62  ;;  %v2865_v4 = vsel %vm2845_vm2, %v2821_v49, %v2822_v45  ;;  %4327 = vmatprep.mubr.msk.bf16.mxu1 %vm935_vm0, %v5260_v5  ;;  %4383 = vmatprep.mubr.msk.bf16.mxu0 %vm935_vm0, %v5260_v5 }
 0x184   :  { %7209 = vst [vmem:[#allocation29_spill] sm:$0xff] %v5762_v55  ;;  %v5772_v11 = vadd.f32 %v2913_v13, %v1308_v60  ;;  %v5774_v28 = vadd.f32 %v2865_v4, %v1576_v61 }
 0x185   :  { %v1318_v1 = vpop.f32.mrb[68].mxu0  ;;  %v1586_v2 = vpop.f32.mrb[68].mxu1 }
 0x186   :  { %7210 = vst [vmem:[#allocation30_spill] sm:$0xff] %v5774_v28  ;;  %v1320_v18 = vpop.f32.mrb[69].mxu0  ;;  %v1588_v43 = vpop.f32.mrb[69].mxu1 }
 0x187   :  { %v2771_v51 = vrot.slane %v1320_v18, 1  ;;  %v2823_v26 = vrot.slane %v1588_v43, 1  ;;  %v1322_v23 = vpop.f32.mrb[70].mxu0  ;;  %v1590_v63 = vpop.f32.mrb[70].mxu1 }
 0x188   :  { %v1324_v55 = vpop.f32.mrb[71].mxu0  ;;  %v1592_v49 = vpop.f32.mrb[71].mxu1 }
 0x189   :  { %v2912_v8 = vsel %vm2845_vm2, %v2770_v62, %v2771_v51  ;;  %v2864_v5 = vsel %vm2845_vm2, %v2822_v45, %v2823_v26  ;;  %v2772_v60 = vrot.slane %v1324_v55, 1  ;;  %v2824_v13 = vrot.slane %v1592_v49, 1 }
 0x18a   :  { %1878 = vmatmul.mubr.bf16.gmra.mrb[176].mxu1 %v5272_v7  ;;  %2425 = vmatmul.mubr.bf16.gmra.mrb[176].mxu0 %v5272_v7  ;;  %v5782_v61 = vadd.f32 %v2912_v8, %v1312_v46  ;;  %v5784_v4 = vadd.f32 %v2864_v5, %v1580_v57 }
 0x18b   :  { %v2911_v18 = vsel %vm2845_vm2, %v2771_v51, %v2772_v60  ;;  %v2863_v43 = vsel %vm2845_vm2, %v2823_v26, %v2824_v13  ;;  %4328 = vmatprep.mubr.msk.bf16.mxu1 %vm935_vm0, %v5280_v12  ;;  %4384 = vmatprep.mubr.msk.bf16.mxu0 %vm935_vm0, %v5280_v12 }
 0x18c   :  { %7211 = vst [vmem:[#allocation31_spill] sm:$0xff] %v5784_v4  ;;  %v5794_v62 = vadd.f32 %v2911_v18, %v1318_v1  ;;  %v5796_v45 = vadd.f32 %v2863_v43, %v1586_v2 }
 0x18d   :  { %v1328_v7 = vpop.f32.mrb[72].mxu0  ;;  %v1596_v8 = vpop.f32.mrb[72].mxu1 }
 0x18e   :  { %7212 = vst [vmem:[#allocation32_spill] sm:$0xff] %v5796_v45  ;;  %v1330_v46 = vpop.f32.mrb[73].mxu0  ;;  %v1598_v57 = vpop.f32.mrb[73].mxu1 }
 0x18f   :  { %v2773_v55 = vrot.slane %v1330_v46, 1  ;;  %v2825_v49 = vrot.slane %v1598_v57, 1  ;;  %v1332_v51 = vpop.f32.mrb[74].mxu0  ;;  %v1600_v5 = vpop.f32.mrb[74].mxu1 }
 0x190   :  { %v1334_v4 = vpop.f32.mrb[75].mxu0  ;;  %v1602_v26 = vpop.f32.mrb[75].mxu1 }
 0x191   :  { %v2910_v28 = vsel %vm2845_vm2, %v2772_v60, %v2773_v55  ;;  %v2862_v12 = vsel %vm2845_vm2, %v2824_v13, %v2825_v49  ;;  %v2774_v1 = vrot.slane %v1334_v4, 1  ;;  %v2826_v18 = vrot.slane %v1602_v26, 1  ;;  %v4681_v60 = vld [vmem:[%s7179_s0 + $0x124] ss:$8 sps:$4 sm:$0xff]  }
 0x192   :  { %1888 = vmatmul.mubr.bf16.gmra.mrb[180].mxu1 %v5292_v15  ;;  %2433 = vmatmul.mubr.bf16.gmra.mrb[180].mxu0 %v5292_v15  ;;  %v5804_v2 = vadd.f32 %v2910_v28, %v1322_v23  ;;  %v5806_v43 = vadd.f32 %v2862_v12, %v1590_v63 }
 0x193   :  { %v2909_v46 = vsel %vm2845_vm2, %v2773_v55, %v2774_v1  ;;  %v2861_v57 = vsel %vm2845_vm2, %v2825_v49, %v2826_v18  ;;  %4329 = vmatprep.mubr.msk.bf16.mxu1 %vm935_vm0, %v5300_v17  ;;  %4385 = vmatprep.mubr.msk.bf16.mxu0 %vm935_vm0, %v4681_v60 }
 0x194   :  { %7213 = vst [vmem:[#allocation33_spill] sm:$0xff] %v5806_v43  ;;  %v5818_v15 = vadd.f32 %v2909_v46, %v1328_v7  ;;  %v5820_v28 = vadd.f32 %v2861_v57, %v1596_v8  ;;  %v4682_v8 = vld [vmem:[%s7179_s0 + $0x120] ss:$8 sps:$4 sm:$0xff]  }
 0x195   :  { %v1338_v23 = vpop.f32.mrb[76].mxu0  ;;  %v1606_v63 = vpop.f32.mrb[76].mxu1 }
 0x196   :  { %7214 = vst [vmem:[#allocation34_spill] sm:$0xff] %v5820_v28  ;;  %v1340_v13 = vpop.f32.mrb[77].mxu0  ;;  %v1608_v4 = vpop.f32.mrb[77].mxu1 }
 0x197   :  { %v2775_v55 = vrot.slane %v1340_v13, 1  ;;  %v2827_v26 = vrot.slane %v1608_v4, 1  ;;  %v1342_v49 = vpop.f32.mrb[78].mxu0  ;;  %v1610_v12 = vpop.f32.mrb[78].mxu1 }
 0x198   :  { %v1344_v43 = vpop.f32.mrb[79].mxu0  ;;  %v1612_v17 = vpop.f32.mrb[79].mxu1 }
 0x199   :  { %v2908_v45 = vsel %vm2845_vm2, %v2774_v1, %v2775_v55  ;;  %v2860_v60 = vsel %vm2845_vm2, %v2826_v18, %v2827_v26  ;;  %v2776_v7 = vrot.slane %v1344_v43, 1  ;;  %v2828_v46 = vrot.slane %v1612_v17, 1  ;;  %v4683_v18 = vld [vmem:[%s7179_s0 + $0x134] ss:$8 sps:$4 sm:$0xff]  }
 0x19a   :  { %1898 = vmatmul.mubr.bf16.gmra.mrb[184].mxu1 %v4682_v8  ;;  %2441 = vmatmul.mubr.bf16.gmra.mrb[184].mxu0 %v4682_v8  ;;  %v5829_v57 = vadd.f32 %v2908_v45, %v1332_v51  ;;  %v5831_v13 = vadd.f32 %v2860_v60, %v1600_v5 }
 0x19b   :  { %v2907_v4 = vsel %vm2845_vm2, %v2775_v55, %v2776_v7  ;;  %v2859_v1 = vsel %vm2845_vm2, %v2827_v26, %v2828_v46  ;;  %4330 = vmatprep.mubr.msk.bf16.mxu1 %vm935_vm0, %v4683_v18  ;;  %4386 = vmatprep.mubr.msk.bf16.mxu0 %vm935_vm0, %v4683_v18 }
 0x19c   :  { %7215 = vst [vmem:[#allocation35_spill] sm:$0xff] %v5831_v13  ;;  %v5842_v43 = vadd.f32 %v2907_v4, %v1338_v23  ;;  %v5844_v45 = vadd.f32 %v2859_v1, %v1606_v63  ;;  %v4684_v4 = vld [vmem:[%s7179_s0 + $0x130] ss:$8 sps:$4 sm:$0xff]  }
 0x19d   :  { %v1348_v51 = vpop.f32.mrb[80].mxu0  ;;  %v1616_v5 = vpop.f32.mrb[80].mxu1 }
 0x19e   :  { %7216 = vst [vmem:[#allocation36_spill] sm:$0xff] %v5844_v45  ;;  %v1349_v17 = vpop.f32.mrb[81].mxu0  ;;  %v1617_v60 = vpop.f32.mrb[81].mxu1 }
 0x19f   :  { %v2777_v55 = vrot.slane %v1349_v17, 1  ;;  %v2829_v8 = vrot.slane %v1617_v60, 1  ;;  %v1619_v13 = vpop.f32.mrb[82].mxu1  ;;  %v1351_v26 = vpop.f32.mrb[82].mxu0 }
 0x1a0   :  { %v1620_v28 = vpop.f32.mrb[83].mxu1  ;;  %v1352_v47 = vpop.f32.mrb[83].mxu0 }
 0x1a1   :  { %v2906_v9 = vsel %vm2845_vm2, %v2776_v7, %v2777_v55  ;;  %v2858_v18 = vsel %vm2845_vm2, %v2828_v46, %v2829_v8  ;;  %v4685_v47 = vld [vmem:[%s7179_s0 + $0x144] ss:$8 sps:$4 sm:$0xff]   ;;  %v4686_v55 = vld [vmem:[%s7179_s0 + $0x140] ss:$8 sps:$4 sm:$0xff]  }
 0x1a2   :  { %v5850_v23 = vadd.f32 %v2906_v9, %v1342_v49  ;;  %v5852_v63 = vadd.f32 %v2858_v18, %v1610_v12  ;;  %1908 = vmatmul.mubr.bf16.gmra.mrb[188].mxu1 %v4684_v4  ;;  %2449 = vmatmul.mubr.bf16.gmra.mrb[188].mxu0 %v4684_v4  ;;  %v4687_v18 = vld [vmem:[%s7179_s0 + $0x154] ss:$8 sps:$4 sm:$0xff]  }
 0x1a3   :  { %4331 = vmatprep.mubr.msk.bf16.mxu1 %vm935_vm0, %v4685_v47  ;;  %4387 = vmatprep.mubr.msk.bf16.mxu0 %vm935_vm0, %v4685_v47 }
 0x1a4   :  { %7217 = vst [vmem:[#allocation37_spill] sm:$0xff] %v5852_v63 }
 0x1a5   :  { %v1355_v28 = vpop.f32.mrb[84].mxu0  ;;  %v1623_v7 = vpop.f32.mrb[84].mxu1 }
 0x1a6   :  { %v1357_v9 = vpop.f32.mrb[85].mxu0  ;;  %v1625_v49 = vpop.f32.mrb[85].mxu1 }
 0x1a7   :  { %v2778_v12 = vrot.slane %v1357_v9, 1  ;;  %v1359_v46 = vpop.f32.mrb[86].mxu0  ;;  %v1627_v13 = vpop.f32.mrb[86].mxu1  ;;  %v2830_v5 = vrot.slane %v1625_v49, 1 }
 0x1a8   :  { %v1361_v1 = vpop.f32.mrb[87].mxu0  ;;  %v1629_v51 = vpop.f32.mrb[87].mxu1 }
 0x1a9   :  { %v2779_v17 = vrot.slane %v1361_v1, 1  ;;  %v2831_v60 = vrot.slane %v1629_v51, 1 }
 0x1aa   :  { %1918 = vmatmul.mubr.bf16.gmra.mrb[192].mxu1 %v4686_v55  ;;  %2457 = vmatmul.mubr.bf16.gmra.mrb[192].mxu0 %v4686_v55 }
 0x1ab   :  { %v2905_v8 = vsel %vm2845_vm2, %v2778_v12, %v2779_v17  ;;  %v2857_v26 = vsel %vm2845_vm2, %v2830_v5, %v2831_v60  ;;  %4332 = vmatprep.mubr.msk.bf16.mxu1 %vm935_vm0, %v4687_v18  ;;  %4388 = vmatprep.mubr.msk.bf16.mxu0 %vm935_vm0, %v4687_v18 }
 0x1ac   :  { %v5874_v4 = vadd.f32 %v2905_v8, %v1355_v28  ;;  %v5876_v47 = vadd.f32 %v2857_v26, %v1623_v7 }
 0x1ad   :  { %v1365_v9 = vpop.f32.mrb[88].mxu0  ;;  %v1633_v49 = vpop.f32.mrb[88].mxu1 }
 0x1ae   :  { %7218 = vst [vmem:[#allocation38_spill] sm:$0xff] %v5876_v47  ;;  %v1367_v1 = vpop.f32.mrb[89].mxu0  ;;  %v1635_v51 = vpop.f32.mrb[89].mxu1 }
 0x1af   :  { %v2780_v12 = vrot.slane %v1367_v1, 1  ;;  %v2832_v55 = vrot.slane %v1635_v51, 1  ;;  %v1369_v63 = vpop.f32.mrb[90].mxu0  ;;  %v1637_v5 = vpop.f32.mrb[90].mxu1  ;;  %v4688_v1 = vld [vmem:[%s7179_s0 + $0x150] ss:$8 sps:$4 sm:$0xff]  }
 0x1b0   :  { %v1371_v45 = vpop.f32.mrb[91].mxu0  ;;  %v1639_v16 = vpop.f32.mrb[91].mxu1 }
 0x1b1   :  { %v2904_v0 = vsel %vm2845_vm2, %v2779_v17, %v2780_v12  ;;  %v2856_v18 = vsel %vm2845_vm2, %v2831_v60, %v2832_v55  ;;  %v2781_v28 = vrot.slane %v1371_v45, 1  ;;  %v2833_v8 = vrot.slane %v1639_v16, 1  ;;  %v4689_v16 = vld [vmem:[%s7179_s0 + $0x164] ss:$8 sps:$4 sm:$0xff]  }
 0x1b2   :  { %v5882_v7 = vadd.f32 %v2904_v0, %v1359_v46  ;;  %v5884_v26 = vadd.f32 %v2856_v18, %v1627_v13  ;;  %1926 = vmatmul.mubr.bf16.gmra.mrb[196].mxu1 %v4688_v1  ;;  %2464 = vmatmul.mubr.bf16.gmra.mrb[196].mxu0 %v4688_v1 }
 0x1b3   :  { %v2903_v51 = vsel %vm2845_vm2, %v2780_v12, %v2781_v28  ;;  %v2855_v17 = vsel %vm2845_vm2, %v2832_v55, %v2833_v8  ;;  %4333 = vmatprep.mubr.msk.bf16.mxu1 %vm935_vm0, %v4689_v16  ;;  %4389 = vmatprep.mubr.msk.bf16.mxu0 %vm935_vm0, %v4689_v16 }
 0x1b4   :  { %7219 = vst [vmem:[#allocation39_spill] sm:$0xff] %v5884_v26  ;;  %v5898_v0 = vadd.f32 %v2903_v51, %v1365_v9  ;;  %v5900_v45 = vadd.f32 %v2855_v17, %v1633_v49 }
 0x1b5   :  { %v1375_v46 = vpop.f32.mrb[92].mxu0  ;;  %v1643_v13 = vpop.f32.mrb[92].mxu1 }
 0x1b6   :  { %7220 = vst [vmem:[#allocation40_spill] sm:$0xff] %v5900_v45  ;;  %v1377_v60 = vpop.f32.mrb[93].mxu0  ;;  %v1645_v18 = vpop.f32.mrb[93].mxu1 }
 0x1b7   :  { %v2782_v12 = vrot.slane %v1377_v60, 1  ;;  %v2834_v1 = vrot.slane %v1645_v18, 1  ;;  %v1379_v26 = vpop.f32.mrb[94].mxu0  ;;  %v1647_v55 = vpop.f32.mrb[94].mxu1  ;;  %v4690_v60 = vld [vmem:[%s7179_s0 + $0x160] ss:$8 sps:$4 sm:$0xff]  }
 0x1b8   :  { %v1381_v47 = vpop.f32.mrb[95].mxu0  ;;  %v1649_v53 = vpop.f32.mrb[95].mxu1 }
 0x1b9   :  { %v2902_v50 = vsel %vm2845_vm2, %v2781_v28, %v2782_v12  ;;  %v2854_v16 = vsel %vm2845_vm2, %v2833_v8, %v2834_v1  ;;  %v2783_v9 = vrot.slane %v1381_v47, 1  ;;  %v2835_v51 = vrot.slane %v1649_v53, 1  ;;  %v4691_v53 = vld [vmem:[%s7179_s0 + $0x174] ss:$8 sps:$4 sm:$0xff]  }
 0x1ba   :  { %v5906_v49 = vadd.f32 %v2902_v50, %v1369_v63  ;;  %v5908_v17 = vadd.f32 %v2854_v16, %v1637_v5  ;;  %1936 = vmatmul.mubr.bf16.gmra.mrb[200].mxu1 %v4690_v60  ;;  %2472 = vmatmul.mubr.bf16.gmra.mrb[200].mxu0 %v4690_v60 }
 0x1bb   :  { %v2901_v18 = vsel %vm2845_vm2, %v2782_v12, %v2783_v9  ;;  %v2853_v28 = vsel %vm2845_vm2, %v2834_v1, %v2835_v51  ;;  %4334 = vmatprep.mubr.msk.bf16.mxu1 %vm935_vm0, %v4691_v53  ;;  %4390 = vmatprep.mubr.msk.bf16.mxu0 %vm935_vm0, %v4691_v53 }
 0x1bc   :  { %7221 = vst [vmem:[#allocation41_spill] sm:$0xff] %v5908_v17  ;;  %v5922_v50 = vadd.f32 %v2901_v18, %v1375_v46  ;;  %v5924_v63 = vadd.f32 %v2853_v28, %v1643_v13 }
 0x1bd   :  { %v1385_v47 = vpop.f32.mrb[96].mxu0  ;;  %v1653_v5 = vpop.f32.mrb[96].mxu1 }
 0x1be   :  { %7222 = vst [vmem:[#allocation42_spill] sm:$0xff] %v5924_v63  ;;  %v1387_v8 = vpop.f32.mrb[97].mxu0  ;;  %v1655_v16 = vpop.f32.mrb[97].mxu1 }
 0x1bf   :  { %v2784_v12 = vrot.slane %v1387_v8, 1  ;;  %v2836_v60 = vrot.slane %v1655_v16, 1  ;;  %v1389_v17 = vpop.f32.mrb[98].mxu0  ;;  %v1657_v1 = vpop.f32.mrb[98].mxu1  ;;  %v4692_v8 = vld [vmem:[%s7179_s0 + $0x170] ss:$8 sps:$4 sm:$0xff]  }
 0x1c0   :  { %v1391_v45 = vpop.f32.mrb[99].mxu0  ;;  %v1659_v10 = vpop.f32.mrb[99].mxu1 }
 0x1c1   :  { %v2900_v56 = vsel %vm2845_vm2, %v2783_v9, %v2784_v12  ;;  %v2852_v53 = vsel %vm2845_vm2, %v2835_v51, %v2836_v60  ;;  %v2785_v46 = vrot.slane %v1391_v45, 1  ;;  %v2837_v18 = vrot.slane %v1659_v10, 1  ;;  %v4693_v10 = vld [vmem:[%s7179_s0 + $0x184] ss:$8 sps:$4 sm:$0xff]  }
 0x1c2   :  { %v5930_v13 = vadd.f32 %v2900_v56, %v1379_v26  ;;  %v5932_v28 = vadd.f32 %v2852_v53, %v1647_v55  ;;  %1946 = vmatmul.mubr.bf16.gmra.mrb[204].mxu1 %v4692_v8  ;;  %2480 = vmatmul.mubr.bf16.gmra.mrb[204].mxu0 %v4692_v8 }
 0x1c3   :  { %v2899_v16 = vsel %vm2845_vm2, %v2784_v12, %v2785_v46  ;;  %v2851_v9 = vsel %vm2845_vm2, %v2836_v60, %v2837_v18  ;;  %4335 = vmatprep.mubr.msk.bf16.mxu1 %vm935_vm0, %v4693_v10  ;;  %4391 = vmatprep.mubr.msk.bf16.mxu0 %vm935_vm0, %v4693_v10 }
 0x1c4   :  { %7223 = vst [vmem:[#allocation43_spill] sm:$0xff] %v5930_v13  ;;  %7224 = vst [vmem:[#allocation44_spill] sm:$0xff] %v5932_v28  ;;  %v5946_v56 = vadd.f32 %v2899_v16, %v1385_v47  ;;  %v5948_v26 = vadd.f32 %v2851_v9, %v1653_v5 }
 0x1c5   :  { %v1395_v45 = vpop.f32.mrb[100].mxu0  ;;  %v1663_v55 = vpop.f32.mrb[100].mxu1 }
 0x1c6   :  { %7225 = vst [vmem:[#allocation45_spill] sm:$0xff] %v5946_v56  ;;  %7226 = vst [vmem:[#allocation46_spill] sm:$0xff] %v5948_v26  ;;  %v1397_v51 = vpop.f32.mrb[101].mxu0  ;;  %v1665_v53 = vpop.f32.mrb[101].mxu1 }
 0x1c7   :  { %v2786_v12 = vrot.slane %v1397_v51, 1  ;;  %v2838_v8 = vrot.slane %v1665_v53, 1  ;;  %v1399_v28 = vpop.f32.mrb[102].mxu0  ;;  %v1667_v60 = vpop.f32.mrb[102].mxu1  ;;  %v4694_v51 = vld [vmem:[%s7179_s0 + $0x180] ss:$8 sps:$4 sm:$0xff]  }
 0x1c8   :  { %v1401_v63 = vpop.f32.mrb[103].mxu0  ;;  %v1669_v22 = vpop.f32.mrb[103].mxu1 }
 0x1c9   :  { %v2898_v13 = vsel %vm2845_vm2, %v2785_v46, %v2786_v12  ;;  %v2850_v10 = vsel %vm2845_vm2, %v2837_v18, %v2838_v8  ;;  %v2787_v47 = vrot.slane %v1401_v63, 1  ;;  %v2839_v16 = vrot.slane %v1669_v22, 1  ;;  %v4695_v22 = vld [vmem:[%s7179_s0 + $0x194] ss:$8 sps:$4 sm:$0xff]  }
 0x1ca   :  { %v5954_v5 = vadd.f32 %v2898_v13, %v1389_v17  ;;  %v5956_v9 = vadd.f32 %v2850_v10, %v1657_v1  ;;  %1956 = vmatmul.mubr.bf16.gmra.mrb[208].mxu1 %v4694_v51  ;;  %2488 = vmatmul.mubr.bf16.gmra.mrb[208].mxu0 %v4694_v51 }
 0x1cb   :  { %v2897_v53 = vsel %vm2845_vm2, %v2786_v12, %v2787_v47  ;;  %v2849_v46 = vsel %vm2845_vm2, %v2838_v8, %v2839_v16  ;;  %4336 = vmatprep.mubr.msk.bf16.mxu1 %vm935_vm0, %v4695_v22  ;;  %4392 = vmatprep.mubr.msk.bf16.mxu0 %vm935_vm0, %v4695_v22 }
 0x1cc   :  { %7227 = vst [vmem:[#allocation47_spill] sm:$0xff] %v5954_v5  ;;  %7228 = vst [vmem:[#allocation48_spill] sm:$0xff] %v5956_v9  ;;  %v5970_v17 = vadd.f32 %v2897_v53, %v1395_v45  ;;  %v5972_v63 = vadd.f32 %v2849_v46, %v1663_v55 }
 0x1cd   :  { %v1405_v1 = vpop.f32.mrb[104].mxu0  ;;  %v1673_v18 = vpop.f32.mrb[104].mxu1 }
 0x1ce   :  { %7229 = vst [vmem:[#allocation49_spill] sm:$0xff] %v5970_v17  ;;  %7230 = vst [vmem:[#allocation50_spill] sm:$0xff] %v5972_v63  ;;  %v1407_v13 = vpop.f32.mrb[105].mxu0  ;;  %v1675_v10 = vpop.f32.mrb[105].mxu1 }
 0x1cf   :  { %v2788_v12 = vrot.slane %v1407_v13, 1  ;;  %v2840_v51 = vrot.slane %v1675_v10, 1  ;;  %v1409_v9 = vpop.f32.mrb[106].mxu0  ;;  %v1677_v8 = vpop.f32.mrb[106].mxu1  ;;  %v4696_v13 = vld [vmem:[%s7179_s0 + $0x190] ss:$8 sps:$4 sm:$0xff]  }
 0x1d0   :  { %v1411_v26 = vpop.f32.mrb[107].mxu0  ;;  %v1679_v5 = vpop.f32.mrb[107].mxu1 }
 0x1d1   :  { %v2896_v56 = vsel %vm2845_vm2, %v2787_v47, %v2788_v12  ;;  %v2848_v22 = vsel %vm2845_vm2, %v2839_v16, %v2840_v51  ;;  %v2789_v45 = vrot.slane %v1411_v26, 1  ;;  %v2841_v53 = vrot.slane %v1679_v5, 1  ;;  %v4697_v26 = vld [vmem:[%s7179_s0 + $0x1a4] ss:$8 sps:$4 sm:$0xff]  }
 0x1d2   :  { %v5978_v55 = vadd.f32 %v2896_v56, %v1399_v28  ;;  %v5980_v46 = vadd.f32 %v2848_v22, %v1667_v60  ;;  %1966 = vmatmul.mubr.bf16.gmra.mrb[212].mxu1 %v4696_v13  ;;  %2496 = vmatmul.mubr.bf16.gmra.mrb[212].mxu0 %v4696_v13 }
 0x1d3   :  { %v2895_v10 = vsel %vm2845_vm2, %v2788_v12, %v2789_v45  ;;  %v2847_v47 = vsel %vm2845_vm2, %v2840_v51, %v2841_v53  ;;  %4337 = vmatprep.mubr.msk.bf16.mxu1 %vm935_vm0, %v4697_v26  ;;  %4393 = vmatprep.mubr.msk.bf16.mxu0 %vm935_vm0, %v4697_v26 }
 0x1d4   :  { %7231 = vst [vmem:[#allocation51_spill] sm:$0xff] %v5978_v55  ;;  %7232 = vst [vmem:[#allocation52_spill] sm:$0xff] %v5980_v46  ;;  %v5994_v28 = vadd.f32 %v2895_v10, %v1405_v1  ;;  %v5996_v56 = vadd.f32 %v2847_v47, %v1673_v18  ;;  %v4698_v10 = vld [vmem:[%s7179_s0 + $0x1a0] ss:$8 sps:$4 sm:$0xff]  }
 0x1d5   :  { %v1415_v60 = vpop.f32.mrb[108].mxu0  ;;  %v1683_v16 = vpop.f32.mrb[108].mxu1 }
 0x1d6   :  { %7233 = vst [vmem:[#allocation53_spill] sm:$0xff] %v5996_v56  ;;  %v1416_v5 = vpop.f32.mrb[109].mxu0  ;;  %v1684_v22 = vpop.f32.mrb[109].mxu1 }
 0x1d7   :  { %v2790_v12 = vrot.slane %v1416_v5, 1  ;;  %v2842_v13 = vrot.slane %v1684_v22, 1  ;;  %v1686_v46 = vpop.f32.mrb[110].mxu1  ;;  %v1418_v51 = vpop.f32.mrb[110].mxu0 }
 0x1d8   :  { %v1687_v63 = vpop.f32.mrb[111].mxu1  ;;  %v1419_v55 = vpop.f32.mrb[111].mxu0 }
 0x1d9   :  { %v2894_v17 = vsel %vm2845_vm2, %v2789_v45, %v2790_v12  ;;  %v2846_v26 = vsel %vm2845_vm2, %v2841_v53, %v2842_v13  ;;  %v4699_v63 = vld [vmem:[%s7179_s0 + $0x1b4] ss:$8 sps:$4 sm:$0xff]  }
 0x1da   :  { %v6002_v1 = vadd.f32 %v2894_v17, %v1409_v9  ;;  %v6004_v18 = vadd.f32 %v2846_v26, %v1677_v8  ;;  %1976 = vmatmul.mubr.bf16.gmra.mrb[216].mxu1 %v4698_v10  ;;  %2504 = vmatmul.mubr.bf16.gmra.mrb[216].mxu0 %v4698_v10  ;;  %v4700_v10 = vld [vmem:[%s7179_s0 + $0x1b0] ss:$8 sps:$4 sm:$0xff]  }
 0x1db   :  { %4338 = vmatprep.mubr.msk.bf16.mxu1 %vm935_vm0, %v4699_v63  ;;  %4394 = vmatprep.mubr.msk.bf16.mxu0 %vm935_vm0, %v4699_v63 }
 0x1dc   :  { %7234 = vst [vmem:[#allocation54_spill] sm:$0xff] %v6002_v1  ;;  %7235 = vst [vmem:[#allocation55_spill] sm:$0xff] %v6004_v18 }
 0x1dd   :  { %v1723_v45 = vpop.f32.mrb[112].mxu1  ;;  %v2300_v53 = vpop.f32.mrb[112].mxu0 }
 0x1de   :  { %v1725_v9 = vpop.f32.mrb[113].mxu1  ;;  %v3632_v17 = vrot.slane %v2300_v53, 4  ;;  %v2302_v8 = vpop.f32.mrb[113].mxu0  ;;  %v3038_v47 = vrot.slane %v1723_v45, 2  ;;  %v4701_v53 = vld [vmem:[%s7179_s0 + $0x1c4] ss:$8 sps:$4 sm:$0xff]  }
 0x1df   :  { %v1727_v55 = vpop.f32.mrb[114].mxu1  ;;  %v2303_v46 = vpop.f32.mrb[114].mxu0  ;;  %v3335_v12 = vrot.slane %v1725_v9, 3 }
 0x1e0   :  { %v3039_v60 = vrot.slane %v1727_v55, 2  ;;  %v1729_v16 = vpop.f32.mrb[115].mxu1  ;;  %v3633_v5 = vrot.slane %v2303_v46, 4  ;;  %v2305_v22 = vpop.f32.mrb[115].mxu0 }
 0x1e1   :  { %v3336_v13 = vrot.slane %v1729_v16, 3 }
 0x1e2   :  { %v3238_v51 = vsel %vm3142_vm3, %v3038_v47, %v3039_v60  ;;  %v3832_v26 = vsel %vm3736_vm4, %v3632_v17, %v3633_v5  ;;  %1986 = vmatmul.mubr.bf16.gmra.mrb[220].mxu1 %v4700_v10  ;;  %2512 = vmatmul.mubr.bf16.gmra.mrb[220].mxu0 %v4700_v10 }
 0x1e3   :  { %v3239_v63 = vadd.f32 %v3238_v51, %v5452_v20  ;;  %v3535_v45 = vsel %vm3439_vm5, %v3335_v12, %v3336_v13  ;;  %4339 = vmatprep.mubr.msk.bf16.mxu1 %vm935_vm0, %v4701_v53  ;;  %4395 = vmatprep.mubr.msk.bf16.mxu0 %vm935_vm0, %v4701_v53 }
 0x1e5   :  { %v3536_v9 = vadd.f32 %v3535_v45, %v3239_v63  ;;  %v1733_v17 = vpop.f32.mrb[116].mxu1  ;;  %v2308_v8 = vpop.f32.mrb[116].mxu0 }
 0x1e6   :  { %v3040_v55 = vrot.slane %v1733_v17, 2  ;;  %v3634_v46 = vrot.slane %v2308_v8, 4  ;;  %v1735_v47 = vpop.f32.mrb[117].mxu1  ;;  %v2310_v16 = vpop.f32.mrb[117].mxu0 }
 0x1e7   :  { %v6032_v22 = vadd.f32 %v3832_v26, %v3536_v9  ;;  %v3337_v20 = vrot.slane %v1735_v47, 3  ;;  %v1737_v51 = vpop.f32.mrb[118].mxu1  ;;  %v2311_v12 = vpop.f32.mrb[118].mxu0 }
 0x1e8   :  { %v3237_v10 = vsel %vm3142_vm3, %v3039_v60, %v3040_v55  ;;  %v3831_v18 = vsel %vm3736_vm4, %v3633_v5, %v3634_v46  ;;  %v3041_v56 = vrot.slane %v1737_v51, 2  ;;  %v1739_v53 = vpop.f32.mrb[119].mxu1  ;;  %v3635_v63 = vrot.slane %v2311_v12, 4  ;;  %v2313_v45 = vpop.f32.mrb[119].mxu0  ;;  %v4702_v60 = vld [vmem:[%s7179_s0 + $0x1c0] ss:$8 sps:$4 sm:$0xff]  }
 0x1e9   :  { %v3240_v17 = vadd.f32 %v3237_v10, %v5462_v42  ;;  %v3534_v8 = vsel %vm3439_vm5, %v3336_v13, %v3337_v20  ;;  %v3338_v26 = vrot.slane %v1739_v53, 3  ;;  %v4703_v13 = vld [vmem:[%s7179_s0 + $0x1d4] ss:$8 sps:$4 sm:$0xff]  }
 0x1ea   :  { %v3236_v9 = vsel %vm3142_vm3, %v3040_v55, %v3041_v56  ;;  %v3830_v47 = vsel %vm3736_vm4, %v3634_v46, %v3635_v63  ;;  %1994 = vmatmul.mubr.bf16.gmra.mrb[224].mxu1 %v4702_v60  ;;  %2519 = vmatmul.mubr.bf16.gmra.mrb[224].mxu0 %v4702_v60 }
 0x1eb   :  { %v3537_v5 = vadd.f32 %v3534_v8, %v3240_v17  ;;  %v3241_v16 = vadd.f32 %v3236_v9, %v5474_v6  ;;  %v3533_v42 = vsel %vm3439_vm5, %v3337_v20, %v3338_v26  ;;  %4340 = vmatprep.mubr.msk.bf16.mxu1 %vm935_vm0, %v4703_v13  ;;  %4396 = vmatprep.mubr.msk.bf16.mxu0 %vm935_vm0, %v4703_v13 }
 0x1ed   :  { %v6056_v55 = vadd.f32 %v3831_v18, %v3537_v5  ;;  %v3538_v46 = vadd.f32 %v3533_v42, %v3241_v16  ;;  %v1743_v51 = vpop.f32.mrb[120].mxu1  ;;  %v2316_v12 = vpop.f32.mrb[120].mxu0 }
 0x1ee   :  { %v3042_v10 = vrot.slane %v1743_v51, 2  ;;  %v3636_v53 = vrot.slane %v2316_v12, 4  ;;  %v1745_v45 = vpop.f32.mrb[121].mxu1  ;;  %v2318_v6 = vpop.f32.mrb[121].mxu0 }
 0x1ef   :  { %v6058_v17 = vadd.f32 %v3830_v47, %v3538_v46  ;;  %v3339_v20 = vrot.slane %v1745_v45, 3  ;;  %v1747_v8 = vpop.f32.mrb[122].mxu1  ;;  %v2319_v9 = vpop.f32.mrb[122].mxu0 }
 0x1f0   :  { %v3235_v60 = vsel %vm3142_vm3, %v3041_v56, %v3042_v10  ;;  %v3829_v13 = vsel %vm3736_vm4, %v3635_v63, %v3636_v53  ;;  %v3043_v18 = vrot.slane %v1747_v8, 2  ;;  %v1749_v5 = vpop.f32.mrb[123].mxu1  ;;  %v3637_v16 = vrot.slane %v2319_v9, 4  ;;  %v2321_v42 = vpop.f32.mrb[123].mxu0  ;;  %v4704_v56 = vld [vmem:[%s7179_s0 + $0x1d0] ss:$8 sps:$4 sm:$0xff]  }
 0x1f1   :  { %v3242_v51 = vadd.f32 %v3235_v60, %v5484_v27  ;;  %v3532_v12 = vsel %vm3439_vm5, %v3338_v26, %v3339_v20  ;;  %v3340_v47 = vrot.slane %v1749_v5, 3  ;;  %v4705_v26 = vld [vmem:[%s7179_s0 + $0x1e4] ss:$8 sps:$4 sm:$0xff]  }
 0x1f2   :  { %v3234_v46 = vsel %vm3142_vm3, %v3042_v10, %v3043_v18  ;;  %v3828_v45 = vsel %vm3736_vm4, %v3636_v53, %v3637_v16  ;;  %2004 = vmatmul.mubr.bf16.gmra.mrb[228].mxu1 %v4704_v56  ;;  %2527 = vmatmul.mubr.bf16.gmra.mrb[228].mxu0 %v4704_v56 }
 0x1f3   :  { %v3539_v63 = vadd.f32 %v3532_v12, %v3242_v51  ;;  %v3243_v6 = vadd.f32 %v3234_v46, %v5496_v40  ;;  %v3531_v27 = vsel %vm3439_vm5, %v3339_v20, %v3340_v47  ;;  %4341 = vmatprep.mubr.msk.bf16.mxu1 %vm935_vm0, %v4705_v26  ;;  %4397 = vmatprep.mubr.msk.bf16.mxu0 %vm935_vm0, %v4705_v26 }
 0x1f5   :  { %v6082_v10 = vadd.f32 %v3829_v13, %v3539_v63  ;;  %v3540_v53 = vadd.f32 %v3531_v27, %v3243_v6  ;;  %v1753_v8 = vpop.f32.mrb[124].mxu1  ;;  %v2324_v9 = vpop.f32.mrb[124].mxu0 }
 0x1f6   :  { %v3044_v60 = vrot.slane %v1753_v8, 2  ;;  %v3638_v5 = vrot.slane %v2324_v9, 4  ;;  %v1755_v42 = vpop.f32.mrb[125].mxu1  ;;  %v2326_v40 = vpop.f32.mrb[125].mxu0 }
 0x1f7   :  { %v6084_v51 = vadd.f32 %v3828_v45, %v3540_v53  ;;  %v3341_v20 = vrot.slane %v1755_v42, 3  ;;  %v1757_v12 = vpop.f32.mrb[126].mxu1  ;;  %v2327_v46 = vpop.f32.mrb[126].mxu0 }
 0x1f8   :  { %v3233_v56 = vsel %vm3142_vm3, %v3043_v18, %v3044_v60  ;;  %v3827_v26 = vsel %vm3736_vm4, %v3637_v16, %v3638_v5  ;;  %v3045_v13 = vrot.slane %v1757_v12, 2  ;;  %v1759_v63 = vpop.f32.mrb[127].mxu1  ;;  %v3639_v6 = vrot.slane %v2327_v46, 4  ;;  %v2329_v27 = vpop.f32.mrb[127].mxu0  ;;  %v4706_v16 = vld [vmem:[%s7179_s0 + $0x1e0] ss:$8 sps:$4 sm:$0xff]  }
 0x1f9   :  { %v3244_v9 = vadd.f32 %v3233_v56, %v5506_v58  ;;  %v3530_v45 = vsel %vm3439_vm5, %v3340_v47, %v3341_v20  ;;  %v3342_v53 = vrot.slane %v1759_v63, 3  ;;  %v4707_v47 = vld [vmem:[%s7179_s0 + $0x1f4] ss:$8 sps:$4 sm:$0xff]  }
 0x1fa   :  { %v3232_v42 = vsel %vm3142_vm3, %v3044_v60, %v3045_v13  ;;  %v3826_v18 = vsel %vm3736_vm4, %v3638_v5, %v3639_v6  ;;  %2014 = vmatmul.mubr.bf16.gmra.mrb[232].mxu1 %v4706_v16  ;;  %2535 = vmatmul.mubr.bf16.gmra.mrb[232].mxu0 %v4706_v16 }
 0x1fb   :  { %v3541_v40 = vadd.f32 %v3530_v45, %v3244_v9  ;;  %v3245_v12 = vadd.f32 %v3232_v42, %v5518_v25  ;;  %v3529_v58 = vsel %vm3439_vm5, %v3341_v20, %v3342_v53  ;;  %4342 = vmatprep.mubr.msk.bf16.mxu1 %vm935_vm0, %v4707_v47  ;;  %4398 = vmatprep.mubr.msk.bf16.mxu0 %vm935_vm0, %v4707_v47 }
 0x1fd   :  { %v6110_v60 = vadd.f32 %v3827_v26, %v3541_v40  ;;  %v3542_v5 = vadd.f32 %v3529_v58, %v3245_v12  ;;  %v1763_v46 = vpop.f32.mrb[128].mxu1  ;;  %v2332_v56 = vpop.f32.mrb[128].mxu0 }
 0x1fe   :  { %v3046_v63 = vrot.slane %v1763_v46, 2  ;;  %v3640_v27 = vrot.slane %v2332_v56, 4  ;;  %v1765_v9 = vpop.f32.mrb[129].mxu1  ;;  %v2334_v25 = vpop.f32.mrb[129].mxu0 }
 0x1ff   :  { %v6114_v45 = vadd.f32 %v3826_v18, %v3542_v5  ;;  %v3343_v42 = vrot.slane %v1765_v9, 3  ;;  %v1767_v16 = vpop.f32.mrb[130].mxu1  ;;  %v2335_v8 = vpop.f32.mrb[130].mxu0 }
 0x200   :  { %v3231_v47 = vsel %vm3142_vm3, %v3045_v13, %v3046_v63  ;;  %v3825_v26 = vsel %vm3736_vm4, %v3639_v6, %v3640_v27  ;;  %v3047_v40 = vrot.slane %v1767_v16, 2  ;;  %v1769_v12 = vpop.f32.mrb[131].mxu1  ;;  %v3641_v58 = vrot.slane %v2335_v8, 4  ;;  %v2337_v46 = vpop.f32.mrb[131].mxu0  ;;  %v4708_v6 = vld [vmem:[%s7179_s0 + $0x1f0] ss:$8 sps:$4 sm:$0xff]  }
 0x201   :  { %v3246_v25 = vadd.f32 %v3231_v47, %v5528_v34  ;;  %v3528_v18 = vsel %vm3439_vm5, %v3342_v53, %v3343_v42  ;;  %v3344_v5 = vrot.slane %v1769_v12, 3  ;;  %v4709_v53 = vld [vmem:[%s7179_s0 + $0x204] ss:$8 sps:$4 sm:$0xff]  }
 0x202   :  { %v3230_v9 = vsel %vm3142_vm3, %v3046_v63, %v3047_v40  ;;  %v3824_v13 = vsel %vm3736_vm4, %v3640_v27, %v3641_v58  ;;  %2024 = vmatmul.mubr.bf16.gmra.mrb[236].mxu1 %v4708_v6  ;;  %2543 = vmatmul.mubr.bf16.gmra.mrb[236].mxu0 %v4708_v6 }
 0x203   :  { %v3543_v8 = vadd.f32 %v3528_v18, %v3246_v25  ;;  %v3247_v16 = vadd.f32 %v3230_v9, %v5540_v24  ;;  %v3527_v34 = vsel %vm3439_vm5, %v3343_v42, %v3344_v5  ;;  %4343 = vmatprep.mubr.msk.bf16.mxu1 %vm935_vm0, %v4709_v53  ;;  %4399 = vmatprep.mubr.msk.bf16.mxu0 %vm935_vm0, %v4709_v53 }
 0x205   :  { %v6140_v63 = vadd.f32 %v3825_v26, %v3543_v8  ;;  %v3544_v27 = vadd.f32 %v3527_v34, %v3247_v16  ;;  %v1773_v47 = vpop.f32.mrb[132].mxu1  ;;  %v2340_v12 = vpop.f32.mrb[132].mxu0 }
 0x206   :  { %v3048_v46 = vrot.slane %v1773_v47, 2  ;;  %v3642_v25 = vrot.slane %v2340_v12, 4  ;;  %v1775_v18 = vpop.f32.mrb[133].mxu1  ;;  %v2342_v24 = vpop.f32.mrb[133].mxu0  ;;  %v7236_v47 = vmax.f32 %v6032_v22, %v6084_v51 }
 0x207   :  { %v3932_v42 = vmax.f32 %v6082_v10, %v6140_v63  ;;  %v3841_v9 = vadd.f32 %v3824_v13, %v3544_v27  ;;  %v3345_v6 = vrot.slane %v1775_v18, 3  ;;  %v1777_v56 = vpop.f32.mrb[134].mxu1  ;;  %v2343_v20 = vpop.f32.mrb[134].mxu0 }
 0x208   :  { %v3229_v1 = vsel %vm3142_vm3, %v3047_v40, %v3048_v46  ;;  %v3823_v26 = vsel %vm3736_vm4, %v3641_v58, %v3642_v25  ;;  %v3049_v8 = vrot.slane %v1777_v56, 2  ;;  %v1779_v16 = vpop.f32.mrb[135].mxu1  ;;  %v3643_v34 = vrot.slane %v2343_v20, 4  ;;  %v2345_v53 = vpop.f32.mrb[135].mxu0  ;;  %v4710_v20 = vld [vmem:[%s7179_s0 + $0x200] ss:$8 sps:$4 sm:$0xff]  }
 0x209   :  { %v6151_v12 = vmax.f32 %v7236_v47, %v3841_v9  ;;  %v3248_v10 = vadd.f32 %v3229_v1, %v5550_v29  ;;  %v3526_v13 = vsel %vm3439_vm5, %v3344_v5, %v3345_v6  ;;  %v3346_v63 = vrot.slane %v1779_v16, 3  ;;  %v4711_v1 = vld [vmem:[%s7179_s0 + $0x214] ss:$8 sps:$4 sm:$0xff]  }
 0x20a   :  { %v3228_v40 = vsel %vm3142_vm3, %v3048_v46, %v3049_v8  ;;  %v3822_v58 = vsel %vm3736_vm4, %v3642_v25, %v3643_v34  ;;  %2034 = vmatmul.mubr.bf16.gmra.mrb[240].mxu1 %v4710_v20  ;;  %2551 = vmatmul.mubr.bf16.gmra.mrb[240].mxu0 %v4710_v20 }
 0x20b   :  { %v3545_v22 = vadd.f32 %v3526_v13, %v3248_v10  ;;  %v3249_v51 = vadd.f32 %v3228_v40, %v5562_v35  ;;  %v3525_v29 = vsel %vm3439_vm5, %v3345_v6, %v3346_v63  ;;  %4344 = vmatprep.mubr.msk.bf16.mxu1 %vm935_vm0, %v4711_v1  ;;  %4400 = vmatprep.mubr.msk.bf16.mxu0 %vm935_vm0, %v4711_v1 }
 0x20c   :  { %v7237_v35 = vmax.f32 %v6056_v55, %v6110_v60 }
 0x20d   :  { %v3842_v56 = vadd.f32 %v3823_v26, %v3545_v22  ;;  %v3546_v5 = vadd.f32 %v3525_v29, %v3249_v51  ;;  %v1783_v27 = vpop.f32.mrb[136].mxu1  ;;  %v2348_v46 = vpop.f32.mrb[136].mxu0  ;;  %v7238_v51 = vmax.f32 %v6058_v17, %v6114_v45 }
 0x20e   :  { %v3050_v25 = vrot.slane %v1783_v27, 2  ;;  %v3644_v18 = vrot.slane %v2348_v46, 4  ;;  %v1785_v24 = vpop.f32.mrb[137].mxu1  ;;  %v2350_v9 = vpop.f32.mrb[137].mxu0 }
 0x20f   :  { %v3934_v6 = vmax.f32 %v7237_v35, %v3842_v56  ;;  %v3843_v16 = vadd.f32 %v3822_v58, %v3546_v5  ;;  %v3347_v53 = vrot.slane %v1785_v24, 3  ;;  %v1787_v47 = vpop.f32.mrb[138].mxu1  ;;  %v2351_v10 = vpop.f32.mrb[138].mxu0 }
 0x210   :  { %v3227_v13 = vsel %vm3142_vm3, %v3049_v8, %v3050_v25  ;;  %v3821_v26 = vsel %vm3736_vm4, %v3643_v34, %v3644_v18  ;;  %v1788_v40 = vpop.f32.mrb[139].mxu1  ;;  %v2352_v20 = vpop.f32.mrb[139].mxu0  ;;  %v4712_v8 = vld [vmem:[%s7179_s0 + $0x210] ss:$8 sps:$4 sm:$0xff]  }
 0x211   :  { %v3937_v22 = vmax.f32 %v6151_v12, %v3934_v6  ;;  %v3935_v29 = vmax.f32 %v7238_v51, %v3843_v16  ;;  %v3250_v55 = vadd.f32 %v3227_v13, %v5572_v52  ;;  %v3524_v60 = vsel %vm3439_vm5, %v3346_v63, %v3347_v53  ;;  %v4713_v12 = vld [vmem:[%s7179_s0 + $0x224] ss:$8 sps:$4 sm:$0xff]   ;;  %v4715_v40 = vld [vmem:[%s7179_s0 + $0x234] ss:$8 sps:$4 sm:$0xff]  }
 0x212   :  { %2044 = vmatmul.mubr.bf16.gmra.mrb[244].mxu1 %v4712_v8  ;;  %2559 = vmatmul.mubr.bf16.gmra.mrb[244].mxu0 %v4712_v8 }
 0x213   :  { %v3547_v34 = vadd.f32 %v3524_v60, %v3250_v55  ;;  %4345 = vmatprep.mubr.msk.bf16.mxu1 %vm935_vm0, %v4713_v12  ;;  %4401 = vmatprep.mubr.msk.bf16.mxu0 %vm935_vm0, %v4713_v12 }
 0x215   :  { %v3844_v17 = vadd.f32 %v3821_v26, %v3547_v34  ;;  %v1791_v52 = vpop.f32.mrb[140].mxu1  ;;  %v2355_v45 = vpop.f32.mrb[140].mxu0 }
 0x216   :  { %v1793_v58 = vpop.f32.mrb[141].mxu1  ;;  %v3645_v63 = vrot.slane %v2355_v45, 4  ;;  %v2357_v1 = vpop.f32.mrb[141].mxu0  ;;  %v3051_v46 = vrot.slane %v1791_v52, 2 }
 0x217   :  { %v3936_v56 = vmax.f32 %v3932_v42, %v3844_v17  ;;  %v1795_v5 = vpop.f32.mrb[142].mxu1  ;;  %v2358_v27 = vpop.f32.mrb[142].mxu0  ;;  %v3348_v6 = vrot.slane %v1793_v58, 3  ;;  %v4714_v42 = vld [vmem:[%s7179_s0 + $0x220] ss:$8 sps:$4 sm:$0xff]  }
 0x218   :  { %v3052_v25 = vrot.slane %v1795_v5, 2  ;;  %v1797_v18 = vpop.f32.mrb[143].mxu1  ;;  %v3646_v24 = vrot.slane %v2358_v27, 4  ;;  %v2360_v9 = vpop.f32.mrb[143].mxu0 }
 0x219   :  { %v3938_v35 = vmax.f32 %v3935_v29, %v3936_v56  ;;  %v3349_v16 = vrot.slane %v1797_v18, 3 }
 0x21a   :  { %v3226_v53 = vsel %vm3142_vm3, %v3051_v46, %v3052_v25  ;;  %v3820_v47 = vsel %vm3736_vm4, %v3645_v63, %v3646_v24  ;;  %2054 = vmatmul.mubr.bf16.gmra.mrb[248].mxu1 %v4714_v42  ;;  %2567 = vmatmul.mubr.bf16.gmra.mrb[248].mxu0 %v4714_v42 }
 0x21b   :  { %v6200_v10 = vmax.f32 %v3937_v22, %v3938_v35  ;;  %v3251_v13 = vadd.f32 %v3226_v53, %v5590_v36  ;;  %v3523_v26 = vsel %vm3439_vm5, %v3348_v6, %v3349_v16  ;;  %4346 = vmatprep.mubr.msk.bf16.mxu1 %vm935_vm0, %v4715_v40  ;;  %4402 = vmatprep.mubr.msk.bf16.mxu0 %vm935_vm0, %v4715_v40  ;;  %v4717_v6 = vld [vmem:[%s7179_s0 + $0x244] ss:$8 sps:$4 sm:$0xff]  }
 0x21d   :  { %v3548_v20 = vadd.f32 %v3523_v26, %v3251_v13  ;;  %v1801_v51 = vpop.f32.mrb[144].mxu1  ;;  %v2363_v29 = vpop.f32.mrb[144].mxu0 }
 0x21e   :  { %v3053_v55 = vrot.slane %v1801_v51, 2  ;;  %v3647_v60 = vrot.slane %v2363_v29, 4  ;;  %v1803_v22 = vpop.f32.mrb[145].mxu1  ;;  %v2365_v8 = vpop.f32.mrb[145].mxu0 }
 0x21f   :  { %v6210_v34 = vadd.f32 %v3820_v47, %v3548_v20  ;;  %v3350_v36 = vrot.slane %v1803_v22, 3  ;;  %v1805_v12 = vpop.f32.mrb[146].mxu1  ;;  %v2366_v17 = vpop.f32.mrb[146].mxu0 }
 0x220   :  { %v3225_v52 = vsel %vm3142_vm3, %v3052_v25, %v3053_v55  ;;  %v3819_v45 = vsel %vm3736_vm4, %v3646_v24, %v3647_v60  ;;  %v3054_v58 = vrot.slane %v1805_v12, 2  ;;  %v1807_v63 = vpop.f32.mrb[147].mxu1  ;;  %v3648_v1 = vrot.slane %v2366_v17, 4  ;;  %v2368_v56 = vpop.f32.mrb[147].mxu0  ;;  %v4716_v25 = vld [vmem:[%s7179_s0 + $0x230] ss:$8 sps:$4 sm:$0xff]  }
 0x221   :  { %v3252_v5 = vadd.f32 %v3225_v52, %v5600_v32  ;;  %v3522_v27 = vsel %vm3439_vm5, %v3349_v16, %v3350_v36  ;;  %v3351_v46 = vrot.slane %v1807_v63, 3 }
 0x222   :  { %v3224_v18 = vsel %vm3142_vm3, %v3053_v55, %v3054_v58  ;;  %v3818_v9 = vsel %vm3736_vm4, %v3647_v60, %v3648_v1  ;;  %2062 = vmatmul.mubr.bf16.gmra.mrb[252].mxu1 %v4716_v25  ;;  %2574 = vmatmul.mubr.bf16.gmra.mrb[252].mxu0 %v4716_v25 }
 0x223   :  { %v3549_v24 = vadd.f32 %v3522_v27, %v3252_v5  ;;  %v3253_v35 = vadd.f32 %v3224_v18, %v5612_v30  ;;  %v3521_v32 = vsel %vm3439_vm5, %v3350_v36, %v3351_v46  ;;  %4347 = vmatprep.mubr.msk.bf16.mxu1 %vm935_vm0, %v4717_v6  ;;  %4403 = vmatprep.mubr.msk.bf16.mxu0 %vm935_vm0, %v4717_v6 }
 0x225   :  { %v6234_v16 = vadd.f32 %v3819_v45, %v3549_v24  ;;  %v3550_v53 = vadd.f32 %v3521_v32, %v3253_v35  ;;  %v1811_v47 = vpop.f32.mrb[148].mxu1  ;;  %v2371_v42 = vpop.f32.mrb[148].mxu0 }
 0x226   :  { %v3055_v13 = vrot.slane %v1811_v47, 2  ;;  %v3649_v26 = vrot.slane %v2371_v42, 4  ;;  %v1813_v40 = vpop.f32.mrb[149].mxu1  ;;  %v2373_v30 = vpop.f32.mrb[149].mxu0 }
 0x227   :  { %v6236_v20 = vadd.f32 %v3818_v9, %v3550_v53  ;;  %v3352_v51 = vrot.slane %v1813_v40, 3  ;;  %v1815_v29 = vpop.f32.mrb[150].mxu1  ;;  %v2374_v55 = vpop.f32.mrb[150].mxu0 }
 0x228   :  { %v3223_v60 = vsel %vm3142_vm3, %v3054_v58, %v3055_v13  ;;  %v3817_v22 = vsel %vm3736_vm4, %v3648_v1, %v3649_v26  ;;  %v3056_v8 = vrot.slane %v1815_v29, 2  ;;  %v1817_v36 = vpop.f32.mrb[151].mxu1  ;;  %v3650_v12 = vrot.slane %v2374_v55, 4  ;;  %v2376_v17 = vpop.f32.mrb[151].mxu0  ;;  %v4718_v58 = vld [vmem:[%s7179_s0 + $0x240] ss:$8 sps:$4 sm:$0xff]  }
 0x229   :  { %v3254_v52 = vadd.f32 %v3223_v60, %v5622_v54  ;;  %v3520_v45 = vsel %vm3439_vm5, %v3351_v46, %v3352_v51  ;;  %v3353_v63 = vrot.slane %v1817_v36, 3  ;;  %v4719_v46 = vld [vmem:[%s7179_s0 + $0x254] ss:$8 sps:$4 sm:$0xff]  }
 0x22a   :  { %v3222_v56 = vsel %vm3142_vm3, %v3055_v13, %v3056_v8  ;;  %v3816_v5 = vsel %vm3736_vm4, %v3649_v26, %v3650_v12  ;;  %2072 = vmatmul.mubr.bf16.gmra.mrb[0].mxu1 %v4718_v58  ;;  %2582 = vmatmul.mubr.bf16.gmra.mrb[0].mxu0 %v4718_v58 }
 0x22b   :  { %v3551_v1 = vadd.f32 %v3520_v45, %v3254_v52  ;;  %v3255_v27 = vadd.f32 %v3222_v56, %v5634_v3  ;;  %v3519_v54 = vsel %vm3439_vm5, %v3352_v51, %v3353_v63  ;;  %4348 = vmatprep.mubr.msk.bf16.mxu1 %vm935_vm0, %v4719_v46  ;;  %4404 = vmatprep.mubr.msk.bf16.mxu0 %vm935_vm0, %v4719_v46 }
 0x22d   :  { %v6260_v18 = vadd.f32 %v3817_v22, %v3551_v1  ;;  %v3552_v9 = vadd.f32 %v3519_v54, %v3255_v27  ;;  %v1821_v25 = vpop.f32.mrb[152].mxu1  ;;  %v2379_v24 = vpop.f32.mrb[152].mxu0 }
 0x22e   :  { %v3057_v35 = vrot.slane %v1821_v25, 2  ;;  %v3651_v32 = vrot.slane %v2379_v24, 4  ;;  %v1823_v6 = vpop.f32.mrb[153].mxu1  ;;  %v2381_v3 = vpop.f32.mrb[153].mxu0 }
 0x22f   :  { %v6262_v53 = vadd.f32 %v3816_v5, %v3552_v9  ;;  %v3354_v47 = vrot.slane %v1823_v6, 3  ;;  %v1825_v42 = vpop.f32.mrb[154].mxu1  ;;  %v2382_v13 = vpop.f32.mrb[154].mxu0 }
 0x230   :  { %v3221_v26 = vsel %vm3142_vm3, %v3056_v8, %v3057_v35  ;;  %v3815_v40 = vsel %vm3736_vm4, %v3650_v12, %v3651_v32  ;;  %v3058_v30 = vrot.slane %v1825_v42, 2  ;;  %v1827_v51 = vpop.f32.mrb[155].mxu1  ;;  %v3652_v29 = vrot.slane %v2382_v13, 4  ;;  %v2384_v55 = vpop.f32.mrb[155].mxu0  ;;  %v4720_v12 = vld [vmem:[%s7179_s0 + $0x250] ss:$8 sps:$4 sm:$0xff]  }
 0x231   :  { %v3946_v60 = vmax.f32 %v6210_v34, %v6262_v53  ;;  %v3256_v22 = vadd.f32 %v3221_v26, %v5644_v31  ;;  %v3518_v36 = vsel %vm3439_vm5, %v3353_v63, %v3354_v47  ;;  %v3355_v17 = vrot.slane %v1827_v51, 3  ;;  %v4721_v63 = vld [vmem:[%s7179_s0 + $0x264] ss:$8 sps:$4 sm:$0xff]  }
 0x232   :  { %v3220_v52 = vsel %vm3142_vm3, %v3057_v35, %v3058_v30  ;;  %v3814_v8 = vsel %vm3736_vm4, %v3651_v32, %v3652_v29  ;;  %2082 = vmatmul.mubr.bf16.gmra.mrb[4].mxu1 %v4720_v12  ;;  %2590 = vmatmul.mubr.bf16.gmra.mrb[4].mxu0 %v4720_v12 }
 0x233   :  { %v3553_v45 = vadd.f32 %v3518_v36, %v3256_v22  ;;  %v3257_v56 = vadd.f32 %v3220_v52, %v5656_v38  ;;  %v3517_v31 = vsel %vm3439_vm5, %v3354_v47, %v3355_v17  ;;  %4349 = vmatprep.mubr.msk.bf16.mxu1 %vm935_vm0, %v4721_v63  ;;  %4405 = vmatprep.mubr.msk.bf16.mxu0 %vm935_vm0, %v4721_v63 }
 0x235   :  { %v6288_v5 = vadd.f32 %v3815_v40, %v3553_v45  ;;  %v3554_v58 = vadd.f32 %v3517_v31, %v3257_v56  ;;  %v1831_v1 = vpop.f32.mrb[156].mxu1  ;;  %v2387_v27 = vpop.f32.mrb[156].mxu0 }
 0x236   :  { %v3059_v54 = vrot.slane %v1831_v1, 2  ;;  %v3653_v46 = vrot.slane %v2387_v27, 4  ;;  %v1833_v9 = vpop.f32.mrb[157].mxu1  ;;  %v2389_v38 = vpop.f32.mrb[157].mxu0 }
 0x237   :  { %v3947_v25 = vmax.f32 %v6234_v16, %v6288_v5  ;;  %v6292_v24 = vadd.f32 %v3814_v8, %v3554_v58  ;;  %v3356_v35 = vrot.slane %v1833_v9, 3  ;;  %v1835_v32 = vpop.f32.mrb[158].mxu1  ;;  %v2390_v6 = vpop.f32.mrb[158].mxu0 }
 0x238   :  { %v3219_v3 = vsel %vm3142_vm3, %v3058_v30, %v3059_v54  ;;  %v3813_v47 = vsel %vm3736_vm4, %v3652_v29, %v3653_v46  ;;  %v3060_v42 = vrot.slane %v1835_v32, 2  ;;  %v1837_v13 = vpop.f32.mrb[159].mxu1  ;;  %v3654_v26 = vrot.slane %v2390_v6, 4  ;;  %v2392_v40 = vpop.f32.mrb[159].mxu0  ;;  %v4722_v29 = vld [vmem:[%s7179_s0 + $0x260] ss:$8 sps:$4 sm:$0xff]  }
 0x239   :  { %v3948_v51 = vmax.f32 %v6236_v20, %v6292_v24  ;;  %v3258_v55 = vadd.f32 %v3219_v3, %v5666_v19  ;;  %v3516_v22 = vsel %vm3439_vm5, %v3355_v17, %v3356_v35  ;;  %v3357_v36 = vrot.slane %v1837_v13, 3  ;;  %v4723_v17 = vld [vmem:[%s7179_s0 + $0x274] ss:$8 sps:$4 sm:$0xff]  }
 0x23a   :  { %v3218_v52 = vsel %vm3142_vm3, %v3059_v54, %v3060_v42  ;;  %v3812_v30 = vsel %vm3736_vm4, %v3653_v46, %v3654_v26  ;;  %2092 = vmatmul.mubr.bf16.gmra.mrb[8].mxu1 %v4722_v29  ;;  %2598 = vmatmul.mubr.bf16.gmra.mrb[8].mxu0 %v4722_v29 }
 0x23b   :  { %v3555_v8 = vadd.f32 %v3516_v22, %v3258_v55  ;;  %v3259_v12 = vadd.f32 %v3218_v52, %v5678_v14  ;;  %v3515_v19 = vsel %vm3439_vm5, %v3356_v35, %v3357_v36  ;;  %4350 = vmatprep.mubr.msk.bf16.mxu1 %vm935_vm0, %v4723_v17  ;;  %4406 = vmatprep.mubr.msk.bf16.mxu0 %vm935_vm0, %v4723_v17 }
 0x23d   :  { %v6318_v45 = vadd.f32 %v3813_v47, %v3555_v8  ;;  %v3556_v56 = vadd.f32 %v3515_v19, %v3259_v12  ;;  %v1841_v31 = vpop.f32.mrb[160].mxu1  ;;  %v2395_v63 = vpop.f32.mrb[160].mxu0 }
 0x23e   :  { %v3061_v58 = vrot.slane %v1841_v31, 2  ;;  %v3655_v1 = vrot.slane %v2395_v63, 4  ;;  %v1843_v27 = vpop.f32.mrb[161].mxu1  ;;  %v2397_v14 = vpop.f32.mrb[161].mxu0 }
 0x23f   :  { %v3949_v54 = vmax.f32 %v6260_v18, %v6318_v45  ;;  %v3853_v46 = vadd.f32 %v3812_v30, %v3556_v56  ;;  %v3358_v9 = vrot.slane %v1843_v27, 3  ;;  %v1845_v38 = vpop.f32.mrb[162].mxu1  ;;  %v2398_v35 = vpop.f32.mrb[162].mxu0  ;;  %v4724_v30 = vld [vmem:[%s7179_s0 + $0x270] ss:$8 sps:$4 sm:$0xff]  }
 0x240   :  { %v3217_v32 = vsel %vm3142_vm3, %v3060_v42, %v3061_v58  ;;  %v3811_v6 = vsel %vm3736_vm4, %v3654_v26, %v3655_v1  ;;  %v3062_v3 = vrot.slane %v1845_v38, 2  ;;  %v1847_v47 = vpop.f32.mrb[163].mxu1  ;;  %v3656_v13 = vrot.slane %v2398_v35, 4  ;;  %v2400_v40 = vpop.f32.mrb[163].mxu0 }
 0x241   :  { %v6329_v55 = vmax.f32 %v3946_v60, %v3853_v46  ;;  %v3260_v18 = vadd.f32 %v3217_v32, %v5688_v33  ;;  %v3514_v22 = vsel %vm3439_vm5, %v3357_v36, %v3358_v9  ;;  %v3359_v52 = vrot.slane %v1847_v47, 3  ;;  %v4725_v60 = vld [vmem:[%s7179_s0 + $0x284] ss:$8 sps:$4 sm:$0xff]   ;;  %v4726_v32 = vld [vmem:[%s7179_s0 + $0x280] ss:$8 sps:$4 sm:$0xff]  }
 0x242   :  { %v3216_v42 = vsel %vm3142_vm3, %v3061_v58, %v3062_v3  ;;  %v3810_v26 = vsel %vm3736_vm4, %v3655_v1, %v3656_v13  ;;  %2102 = vmatmul.mubr.bf16.gmra.mrb[12].mxu1 %v4724_v30  ;;  %2606 = vmatmul.mubr.bf16.gmra.mrb[12].mxu0 %v4724_v30 }
 0x243   :  { %v3557_v34 = vadd.f32 %v3514_v22, %v3260_v18  ;;  %v3261_v53 = vadd.f32 %v3216_v42, %v5700_v21  ;;  %v3513_v33 = vsel %vm3439_vm5, %v3358_v9, %v3359_v52  ;;  %4351 = vmatprep.mubr.msk.bf16.mxu1 %vm935_vm0, %v4725_v60  ;;  %4407 = vmatprep.mubr.msk.bf16.mxu0 %vm935_vm0, %v4725_v60 }
 0x245   :  { %v3854_v36 = vadd.f32 %v3811_v6, %v3557_v34  ;;  %v3558_v29 = vadd.f32 %v3513_v33, %v3261_v53  ;;  %v1851_v8 = vpop.f32.mrb[164].mxu1  ;;  %v2403_v12 = vpop.f32.mrb[164].mxu0 }
 0x246   :  { %v3063_v19 = vrot.slane %v1851_v8, 2  ;;  %v3657_v17 = vrot.slane %v2403_v12, 4  ;;  %v1853_v45 = vpop.f32.mrb[165].mxu1  ;;  %v2405_v56 = vpop.f32.mrb[165].mxu0 }
 0x247   :  { %v3951_v21 = vmax.f32 %v3947_v25, %v3854_v36  ;;  %v3855_v31 = vadd.f32 %v3810_v26, %v3558_v29  ;;  %v3360_v63 = vrot.slane %v1853_v45, 3  ;;  %v1855_v58 = vpop.f32.mrb[166].mxu1  ;;  %v2406_v1 = vpop.f32.mrb[166].mxu0  ;;  %v3940_v25 = vrot.slane %v6200_v10, 4 }
 0x248   :  { %v3215_v27 = vsel %vm3142_vm3, %v3062_v3, %v3063_v19  ;;  %v3809_v14 = vsel %vm3736_vm4, %v3656_v13, %v3657_v17  ;;  %v1856_v46 = vpop.f32.mrb[167].mxu1  ;;  %v2407_v9 = vpop.f32.mrb[167].mxu0  ;;  %v4727_v3 = vld [vmem:[%s7179_s0 + $0x294] ss:$8 sps:$4 sm:$0xff]   ;;  %v4729_v17 = vld [vmem:[%s7179_s0 + $0x2a4] ss:$8 sps:$4 sm:$0xff]  }
 0x249   :  { %v3954_v38 = vmax.f32 %v6329_v55, %v3951_v21  ;;  %v3952_v35 = vmax.f32 %v3948_v51, %v3855_v31  ;;  %v3262_v16 = vadd.f32 %v3215_v27, %v5710_v39  ;;  %v3512_v5 = vsel %vm3439_vm5, %v3359_v52, %v3360_v63 }
 0x24a   :  { %2112 = vmatmul.mubr.bf16.gmra.mrb[16].mxu1 %v4726_v32  ;;  %2614 = vmatmul.mubr.bf16.gmra.mrb[16].mxu0 %v4726_v32  ;;  %v3941_v51 = vmax.f32 %v6200_v10, %v3940_v25 }
 0x24b   :  { %v3559_v6 = vadd.f32 %v3512_v5, %v3262_v16  ;;  %4352 = vmatprep.mubr.msk.bf16.mxu1 %vm935_vm0, %v4727_v3  ;;  %4408 = vmatprep.mubr.msk.bf16.mxu0 %vm935_vm0, %v4727_v3 }
 0x24c   :  { %v3942_v36 = vrot.slane %v3941_v51, 2 }
 0x24d   :  { %v3856_v39 = vadd.f32 %v3809_v14, %v3559_v6  ;;  %v1859_v20 = vpop.f32.mrb[168].mxu1  ;;  %v2410_v24 = vpop.f32.mrb[168].mxu0 }
 0x24e   :  { %v1861_v47 = vpop.f32.mrb[169].mxu1  ;;  %v3658_v13 = vrot.slane %v2410_v24, 4  ;;  %v2412_v40 = vpop.f32.mrb[169].mxu0  ;;  %v3064_v52 = vrot.slane %v1859_v20, 2  ;;  %v3943_v63 = vmax.f32 %v3941_v51, %v3942_v36 }
 0x24f   :  { %v3953_v55 = vmax.f32 %v3949_v54, %v3856_v39  ;;  %v1863_v18 = vpop.f32.mrb[170].mxu1  ;;  %v2413_v22 = vpop.f32.mrb[170].mxu0  ;;  %v3361_v33 = vrot.slane %v1861_v47, 3  ;;  %v4728_v54 = vld [vmem:[%s7179_s0 + $0x290] ss:$8 sps:$4 sm:$0xff]  }
 0x250   :  { %v3065_v42 = vrot.slane %v1863_v18, 2  ;;  %v1865_v26 = vpop.f32.mrb[171].mxu1  ;;  %v3659_v30 = vrot.slane %v2413_v22, 4  ;;  %v2415_v34 = vpop.f32.mrb[171].mxu0  ;;  %v3944_v47 = vrot.slane %v3943_v63, 1 }
 0x251   :  { %v3955_v53 = vmax.f32 %v3952_v35, %v3953_v55  ;;  %v3362_v60 = vrot.slane %v1865_v26, 3  ;;  %v4730_v55 = vld [vmem:[%s7179_s0 + $0x2a0] ss:$8 sps:$4 sm:$0xff]  }
 0x252   :  { %v3214_v29 = vsel %vm3142_vm3, %v3064_v52, %v3065_v42  ;;  %v3808_v10 = vsel %vm3736_vm4, %v3658_v13, %v3659_v30  ;;  %2122 = vmatmul.mubr.bf16.gmra.mrb[20].mxu1 %v4728_v54  ;;  %2622 = vmatmul.mubr.bf16.gmra.mrb[20].mxu0 %v4728_v54 }
 0x253   :  { %v3956_v8 = vmax.f32 %v3954_v38, %v3955_v53  ;;  %v3263_v12 = vadd.f32 %v3214_v29, %v5728_v59  ;;  %v3511_v19 = vsel %vm3439_vm5, %v3361_v33, %v3362_v60  ;;  %4353 = vmatprep.mubr.msk.bf16.mxu1 %vm935_vm0, %v4729_v17  ;;  %4409 = vmatprep.mubr.msk.bf16.mxu0 %vm935_vm0, %v4729_v17 }
 0x255   :  { %v3957_v45 = vrot.slane %v3956_v8, 4  ;;  %v3560_v56 = vadd.f32 %v3511_v19, %v3263_v12  ;;  %v1869_v21 = vpop.f32.mrb[172].mxu1  ;;  %v2418_v31 = vpop.f32.mrb[172].mxu0 }
 0x256   :  { %v3066_v58 = vrot.slane %v1869_v21, 2  ;;  %v3660_v1 = vrot.slane %v2418_v31, 4  ;;  %v1871_v27 = vpop.f32.mrb[173].mxu1  ;;  %v2420_v59 = vpop.f32.mrb[173].mxu0 }
 0x257   :  { %v3958_v14 = vmax.f32 %v3956_v8, %v3957_v45  ;;  %v6388_v46 = vadd.f32 %v3808_v10, %v3560_v56  ;;  %v3363_v9 = vrot.slane %v1871_v27, 3  ;;  %v1873_v38 = vpop.f32.mrb[174].mxu1  ;;  %v2421_v35 = vpop.f32.mrb[174].mxu0  ;;  %v3945_v10 = vmax.f32 %v3943_v63, %v3944_v47 }
 0x258   :  { %v3213_v16 = vsel %vm3142_vm3, %v3065_v42, %v3066_v58  ;;  %v3807_v5 = vsel %vm3736_vm4, %v3659_v30, %v3660_v1  ;;  %v3067_v25 = vrot.slane %v1873_v38, 2  ;;  %v1875_v32 = vpop.f32.mrb[175].mxu1  ;;  %v3661_v6 = vrot.slane %v2421_v35, 4  ;;  %v2423_v3 = vpop.f32.mrb[175].mxu0  ;;  %v4731_v42 = vld [vmem:[%s7179_s0 + $0x2b4] ss:$8 sps:$4 sm:$0xff]  }
 0x259   :  { %v3959_v39 = vrot.slane %v3958_v14, 2  ;;  %v3264_v20 = vadd.f32 %v3213_v16, %v5738_v44  ;;  %v3510_v24 = vsel %vm3439_vm5, %v3362_v60, %v3363_v9  ;;  %v3364_v51 = vrot.slane %v1875_v32, 3  ;;  %v4732_v35 = vld [vmem:[%s7179_s0 + $0x2b0] ss:$8 sps:$4 sm:$0xff]  }
 0x25a   :  { %v3212_v13 = vsel %vm3142_vm3, %v3066_v58, %v3067_v25  ;;  %v3806_v40 = vsel %vm3736_vm4, %v3660_v1, %v3661_v6  ;;  %2130 = vmatmul.mubr.bf16.gmra.mrb[24].mxu1 %v4730_v55  ;;  %2629 = vmatmul.mubr.bf16.gmra.mrb[24].mxu0 %v4730_v55 }
 0x25b   :  { %v3960_v18 = vmax.f32 %v3958_v14, %v3959_v39  ;;  %v3561_v22 = vadd.f32 %v3510_v24, %v3264_v20  ;;  %v3265_v44 = vadd.f32 %v3212_v13, %v5750_v48  ;;  %v3509_v52 = vsel %vm3439_vm5, %v3363_v9, %v3364_v51  ;;  %4354 = vmatprep.mubr.msk.bf16.mxu1 %vm935_vm0, %v4731_v42 }
 0x25c   :  { %4410 = vmatprep.mubr.msk.bf16.mxu0 %vm935_vm0, %v4731_v42 }
 0x25d   :  { %v3961_v26 = vrot.slane %v3960_v18, 1  ;;  %v6412_v30 = vadd.f32 %v3807_v5, %v3561_v22  ;;  %v3562_v34 = vadd.f32 %v3509_v52, %v3265_v44  ;;  %v1879_v53 = vpop.f32.mrb[176].mxu1  ;;  %v2426_v33 = vpop.f32.mrb[176].mxu0 }
 0x25e   :  { %v3068_v60 = vrot.slane %v1879_v53, 2  ;;  %v3662_v48 = vrot.slane %v2426_v33, 4  ;;  %v1881_v36 = vpop.f32.mrb[177].mxu1  ;;  %v2428_v29 = vpop.f32.mrb[177].mxu0 }
 0x25f   :  { %v3962_v54 = vmax.f32 %v3960_v18, %v3961_v26  ;;  %v6414_v8 = vadd.f32 %v3806_v40, %v3562_v34  ;;  %v3365_v12 = vrot.slane %v1881_v36, 3  ;;  %v1883_v19 = vpop.f32.mrb[178].mxu1  ;;  %v2429_v17 = vpop.f32.mrb[178].mxu0  ;;  %v4734_v29 = vld [vmem:[%s7179_s0 + $0x2c0] ss:$8 sps:$4 sm:$0xff]  }
 0x260   :  { %v3211_v45 = vsel %vm3142_vm3, %v3067_v25, %v3068_v60  ;;  %v3805_v56 = vsel %vm3736_vm4, %v3661_v6, %v3662_v48  ;;  %v3069_v21 = vrot.slane %v1883_v19, 2  ;;  %v1885_v31 = vpop.f32.mrb[179].mxu1  ;;  %v3663_v58 = vrot.slane %v2429_v17, 4  ;;  %v2431_v1 = vpop.f32.mrb[179].mxu0  ;;  %v4733_v25 = vld [vmem:[%s7179_s0 + $0x2c4] ss:$8 sps:$4 sm:$0xff]  }
 0x261   :  { %v6421_v27 = vsel %vm4065_vm6, %v3945_v10, %v3962_v54  ;;  %v3266_v63 = vadd.f32 %v3211_v45, %v5760_v41  ;;  %v3508_v59 = vsel %vm3439_vm5, %v3364_v51, %v3365_v12  ;;  %v3366_v14 = vrot.slane %v1885_v31, 3 }
 0x262   :  { %v3210_v9 = vsel %vm3142_vm3, %v3068_v60, %v3069_v21  ;;  %v3804_v38 = vsel %vm3736_vm4, %v3662_v48, %v3663_v58  ;;  %2140 = vmatmul.mubr.bf16.gmra.mrb[28].mxu1 %v4732_v35  ;;  %2637 = vmatmul.mubr.bf16.gmra.mrb[28].mxu0 %v4732_v35 }
 0x263   :  { %v3563_v16 = vadd.f32 %v3508_v59, %v3266_v63  ;;  %v3267_v5 = vadd.f32 %v3210_v9, %v5772_v11  ;;  %v3507_v41 = vsel %vm3439_vm5, %v3365_v12, %v3366_v14  ;;  %4355 = vmatprep.mubr.msk.bf16.mxu1 %vm935_vm0, %v4733_v25  ;;  %4411 = vmatprep.mubr.msk.bf16.mxu0 %vm935_vm0, %v4733_v25  ;;  %v4735_v12 = vld [vmem:[%s7179_s0 + $0x2d4] ss:$8 sps:$4 sm:$0xff]  }
 0x265   :  { %v6441_v32 = vadd.f32 %v3805_v56, %v3563_v16  ;;  %v3564_v6 = vadd.f32 %v3507_v41, %v3267_v5  ;;  %v1889_v3 = vpop.f32.mrb[180].mxu1  ;;  %v2434_v39 = vpop.f32.mrb[180].mxu0 }
 0x266   :  { %v3070_v20 = vrot.slane %v1889_v3, 2  ;;  %v3664_v24 = vrot.slane %v2434_v39, 4  ;;  %v1891_v51 = vpop.f32.mrb[181].mxu1  ;;  %v2436_v11 = vpop.f32.mrb[181].mxu0 }
 0x267   :  { %v6443_v47 = vadd.f32 %v3804_v38, %v3564_v6  ;;  %v3367_v13 = vrot.slane %v1891_v51, 3  ;;  %v1893_v40 = vpop.f32.mrb[182].mxu1  ;;  %v2437_v55 = vpop.f32.mrb[182].mxu0  ;;  %v4736_v11 = vld [vmem:[%s7179_s0 + $0x2d0] ss:$8 sps:$4 sm:$0xff]  }
 0x268   :  { %v3209_v18 = vsel %vm3142_vm3, %v3069_v21, %v3070_v20  ;;  %v3803_v22 = vsel %vm3736_vm4, %v3663_v58, %v3664_v24  ;;  %v3071_v44 = vrot.slane %v1893_v40, 2  ;;  %v1895_v52 = vpop.f32.mrb[183].mxu1  ;;  %v3665_v42 = vrot.slane %v2437_v55, 4  ;;  %v2439_v26 = vpop.f32.mrb[183].mxu0  ;;  %v4737_v55 = vld [vmem:[%s7179_s0 + $0x2e4] ss:$8 sps:$4 sm:$0xff]  }
 0x269   :  { %v3963_v34 = vmax.f32 %v6388_v46, %v6443_v47  ;;  %v3268_v53 = vadd.f32 %v3209_v18, %v5782_v61  ;;  %v3506_v33 = vsel %vm3439_vm5, %v3366_v14, %v3367_v13  ;;  %v3368_v60 = vrot.slane %v1895_v52, 3 }
 0x26a   :  { %v3208_v48 = vsel %vm3142_vm3, %v3070_v20, %v3071_v44  ;;  %v3802_v36 = vsel %vm3736_vm4, %v3664_v24, %v3665_v42  ;;  %2150 = vmatmul.mubr.bf16.gmra.mrb[32].mxu1 %v4734_v29  ;;  %2645 = vmatmul.mubr.bf16.gmra.mrb[32].mxu0 %v4734_v29 }
 0x26b   :  { %v3565_v10 = vadd.f32 %v3506_v33, %v3268_v53  ;;  %v3269_v54 = vadd.f32 %v3208_v48, %v5794_v62  ;;  %v3505_v61 = vsel %vm3439_vm5, %v3367_v13, %v3368_v60  ;;  %4356 = vmatprep.mubr.msk.bf16.mxu1 %vm935_vm0, %v4735_v12  ;;  %4412 = vmatprep.mubr.msk.bf16.mxu0 %vm935_vm0, %v4735_v12 }
 0x26d   :  { %v6469_v19 = vadd.f32 %v3803_v22, %v3565_v10  ;;  %v3566_v17 = vadd.f32 %v3505_v61, %v3269_v54  ;;  %v1899_v45 = vpop.f32.mrb[184].mxu1  ;;  %v2442_v56 = vpop.f32.mrb[184].mxu0 }
 0x26e   :  { %v3072_v21 = vrot.slane %v1899_v45, 2  ;;  %v3666_v31 = vrot.slane %v2442_v56, 4  ;;  %v1901_v58 = vpop.f32.mrb[185].mxu1  ;;  %v2444_v62 = vpop.f32.mrb[185].mxu0 }
 0x26f   :  { %v3964_v1 = vmax.f32 %v6412_v30, %v6469_v19  ;;  %v6473_v63 = vadd.f32 %v3802_v36, %v3566_v17  ;;  %v3369_v59 = vrot.slane %v1901_v58, 3  ;;  %v1903_v14 = vpop.f32.mrb[186].mxu1  ;;  %v2445_v9 = vpop.f32.mrb[186].mxu0 }
 0x270   :  { %v3207_v38 = vsel %vm3142_vm3, %v3071_v44, %v3072_v21  ;;  %v3801_v35 = vsel %vm3736_vm4, %v3665_v42, %v3666_v31  ;;  %v3073_v16 = vrot.slane %v1903_v14, 2  ;;  %v1905_v5 = vpop.f32.mrb[187].mxu1  ;;  %v3667_v41 = vrot.slane %v2445_v9, 4  ;;  %v2447_v25 = vpop.f32.mrb[187].mxu0 }
 0x271   :  { %v3965_v6 = vmax.f32 %v6414_v8, %v6473_v63  ;;  %v3270_v3 = vadd.f32 %v3207_v38, %v5804_v2  ;;  %v3504_v39 = vsel %vm3439_vm5, %v3368_v60, %v3369_v59  ;;  %v3370_v20 = vrot.slane %v1905_v5, 3 }
 0x272   :  { %v3206_v24 = vsel %vm3142_vm3, %v3072_v21, %v3073_v16  ;;  %v3800_v51 = vsel %vm3736_vm4, %v3666_v31, %v3667_v41  ;;  %2160 = vmatmul.mubr.bf16.gmra.mrb[36].mxu1 %v4736_v11  ;;  %2653 = vmatmul.mubr.bf16.gmra.mrb[36].mxu0 %v4736_v11 }
 0x273   :  { %v3567_v13 = vadd.f32 %v3504_v39, %v3270_v3  ;;  %v3271_v40 = vadd.f32 %v3206_v24, %v5818_v15  ;;  %v3503_v2 = vsel %vm3439_vm5, %v3369_v59, %v3370_v20  ;;  %4357 = vmatprep.mubr.msk.bf16.mxu1 %vm935_vm0, %v4737_v55  ;;  %4413 = vmatprep.mubr.msk.bf16.mxu0 %vm935_vm0, %v4737_v55  ;;  %v4738_v59 = vld [vmem:[%s7179_s0 + $0x2e0] ss:$8 sps:$4 sm:$0xff]  }
 0x275   :  { %v6499_v18 = vadd.f32 %v3801_v35, %v3567_v13  ;;  %v3568_v22 = vadd.f32 %v3503_v2, %v3271_v40  ;;  %v1909_v44 = vpop.f32.mrb[188].mxu1  ;;  %v2450_v52 = vpop.f32.mrb[188].mxu0 }
 0x276   :  { %v3074_v42 = vrot.slane %v1909_v44, 2  ;;  %v3668_v26 = vrot.slane %v2450_v52, 4  ;;  %v1911_v53 = vpop.f32.mrb[189].mxu1  ;;  %v2452_v15 = vpop.f32.mrb[189].mxu0 }
 0x277   :  { %v3966_v33 = vmax.f32 %v6441_v32, %v6499_v18  ;;  %v3865_v60 = vadd.f32 %v3800_v51, %v3568_v22  ;;  %v3371_v48 = vrot.slane %v1911_v53, 3  ;;  %v1913_v36 = vpop.f32.mrb[190].mxu1  ;;  %v2453_v29 = vpop.f32.mrb[190].mxu0  ;;  %v4741_v22 = vld [vmem:[%s7179_s0 + $0x304] ss:$8 sps:$4 sm:$0xff]  }
 0x278   :  { %v3205_v10 = vsel %vm3142_vm3, %v3073_v16, %v3074_v42  ;;  %v3799_v54 = vsel %vm3736_vm4, %v3667_v41, %v3668_v26  ;;  %v3075_v61 = vrot.slane %v1913_v36, 2  ;;  %v1915_v12 = vpop.f32.mrb[191].mxu1  ;;  %v3669_v17 = vrot.slane %v2453_v29, 4  ;;  %v2455_v45 = vpop.f32.mrb[191].mxu0 }
 0x279   :  { %v6510_v56 = vmax.f32 %v3963_v34, %v3865_v60  ;;  %v3272_v32 = vadd.f32 %v3205_v10, %v5829_v57  ;;  %v3502_v21 = vsel %vm3439_vm5, %v3370_v20, %v3371_v48  ;;  %v3372_v31 = vrot.slane %v1915_v12, 3  ;;  %v4739_v34 = vld [vmem:[%s7179_s0 + $0x2f4] ss:$8 sps:$4 sm:$0xff]  }
 0x27a   :  { %v3204_v58 = vsel %vm3142_vm3, %v3074_v42, %v3075_v61  ;;  %v3798_v62 = vsel %vm3736_vm4, %v3668_v26, %v3669_v17  ;;  %2170 = vmatmul.mubr.bf16.gmra.mrb[40].mxu1 %v4738_v59  ;;  %2661 = vmatmul.mubr.bf16.gmra.mrb[40].mxu0 %v4738_v59 }
 0x27b   :  { %v3569_v46 = vadd.f32 %v3502_v21, %v3272_v32  ;;  %v3273_v47 = vadd.f32 %v3204_v58, %v5842_v43  ;;  %v3501_v57 = vsel %vm3439_vm5, %v3371_v48, %v3372_v31  ;;  %4358 = vmatprep.mubr.msk.bf16.mxu1 %vm935_vm0, %v4739_v34  ;;  %4414 = vmatprep.mubr.msk.bf16.mxu0 %vm935_vm0, %v4739_v34  ;;  %v4743_v21 = vld [vmem:[%s7179_s0 + $0x314] ss:$8 sps:$4 sm:$0xff]  }
 0x27d   :  { %v3866_v14 = vadd.f32 %v3799_v54, %v3569_v46  ;;  %v3570_v9 = vadd.f32 %v3501_v57, %v3273_v47  ;;  %v1919_v38 = vpop.f32.mrb[192].mxu1  ;;  %v2458_v35 = vpop.f32.mrb[192].mxu0 }
 0x27e   :  { %v3076_v16 = vrot.slane %v1919_v38, 2  ;;  %v3670_v5 = vrot.slane %v2458_v35, 4  ;;  %v1921_v41 = vpop.f32.mrb[193].mxu1  ;;  %v2460_v25 = vpop.f32.mrb[193].mxu0 }
 0x27f   :  { %v3968_v43 = vmax.f32 %v3964_v1, %v3866_v14  ;;  %v3867_v3 = vadd.f32 %v3798_v62, %v3570_v9  ;;  %v3373_v39 = vrot.slane %v1921_v41, 3  ;;  %v1923_v20 = vpop.f32.mrb[194].mxu1  ;;  %v2461_v24 = vpop.f32.mrb[194].mxu0  ;;  %v4740_v1 = vld [vmem:[%s7179_s0 + $0x2f0] ss:$8 sps:$4 sm:$0xff]  }
 0x280   :  { %v3203_v51 = vsel %vm3142_vm3, %v3075_v61, %v3076_v16  ;;  %v3797_v11 = vsel %vm3736_vm4, %v3669_v17, %v3670_v5  ;;  %v1924_v13 = vpop.f32.mrb[195].mxu1  ;;  %v2462_v40 = vpop.f32.mrb[195].mxu0 }
 0x281   :  { %v3971_v2 = vmax.f32 %v6510_v56, %v3968_v43  ;;  %v3969_v55 = vmax.f32 %v3965_v6, %v3867_v3  ;;  %v3274_v30 = vadd.f32 %v3203_v51, %v5850_v23  ;;  %v3500_v19 = vsel %vm3439_vm5, %v3372_v31, %v3373_v39  ;;  %v4744_v40 = vld [vmem:[%s7179_s0 + $0x310] ss:$8 sps:$4 sm:$0xff]  }
 0x282   :  { %2180 = vmatmul.mubr.bf16.gmra.mrb[44].mxu1 %v4740_v1  ;;  %2669 = vmatmul.mubr.bf16.gmra.mrb[44].mxu0 %v4740_v1 }
 0x283   :  { %v3571_v18 = vadd.f32 %v3500_v19, %v3274_v30  ;;  %4359 = vmatprep.mubr.msk.bf16.mxu1 %vm935_vm0, %v4741_v22  ;;  %4415 = vmatprep.mubr.msk.bf16.mxu0 %vm935_vm0, %v4741_v22  ;;  %v4745_v19 = vld [vmem:[%s7179_s0 + $0x324] ss:$8 sps:$4 sm:$0xff]  }
 0x285   :  { %v3868_v8 = vadd.f32 %v3797_v11, %v3571_v18  ;;  %v1927_v23 = vpop.f32.mrb[196].mxu1  ;;  %v2465_v63 = vpop.f32.mrb[196].mxu0 }
 0x286   :  { %v1929_v6 = vpop.f32.mrb[197].mxu1  ;;  %v3671_v44 = vrot.slane %v2465_v63, 4  ;;  %v2467_v52 = vpop.f32.mrb[197].mxu0  ;;  %v3077_v15 = vrot.slane %v1927_v23, 2 }
 0x287   :  { %v3970_v42 = vmax.f32 %v3966_v33, %v3868_v8  ;;  %v1931_v26 = vpop.f32.mrb[198].mxu1  ;;  %v2468_v53 = vpop.f32.mrb[198].mxu0  ;;  %v3374_v54 = vrot.slane %v1929_v6, 3  ;;  %v4742_v33 = vld [vmem:[%s7179_s0 + $0x300] ss:$8 sps:$4 sm:$0xff]  }
 0x288   :  { %v3078_v60 = vrot.slane %v1931_v26, 2  ;;  %v1933_v48 = vpop.f32.mrb[199].mxu1  ;;  %v3672_v36 = vrot.slane %v2468_v53, 4  ;;  %v2470_v29 = vpop.f32.mrb[199].mxu0 }
 0x289   :  { %v3972_v10 = vmax.f32 %v3969_v55, %v3970_v42  ;;  %v3375_v61 = vrot.slane %v1933_v48, 3 }
 0x28a   :  { %v3202_v12 = vsel %vm3142_vm3, %v3077_v15, %v3078_v60  ;;  %v3796_v17 = vsel %vm3736_vm4, %v3671_v44, %v3672_v36  ;;  %2190 = vmatmul.mubr.bf16.gmra.mrb[48].mxu1 %v4742_v33  ;;  %2677 = vmatmul.mubr.bf16.gmra.mrb[48].mxu0 %v4742_v33 }
 0x28b   :  { %v3973_v45 = vmax.f32 %v3971_v2, %v3972_v10  ;;  %v3275_v56 = vadd.f32 %v3202_v12, %v5874_v4  ;;  %v3499_v32 = vsel %vm3439_vm5, %v3374_v54, %v3375_v61  ;;  %4360 = vmatprep.mubr.msk.bf16.mxu1 %vm935_vm0, %v4743_v21  ;;  %4416 = vmatprep.mubr.msk.bf16.mxu0 %vm935_vm0, %v4743_v21 }
 0x28d   :  { %v3974_v31 = vrot.slane %v3973_v45, 4  ;;  %v3572_v58 = vadd.f32 %v3499_v32, %v3275_v56  ;;  %v1937_v62 = vpop.f32.mrb[200].mxu1  ;;  %v2473_v59 = vpop.f32.mrb[200].mxu0  ;;  %v4746_v32 = vld [vmem:[%s7179_s0 + $0x320] ss:$8 sps:$4 sm:$0xff]  }
 0x28e   :  { %v3079_v46 = vrot.slane %v1937_v62, 2  ;;  %v3673_v47 = vrot.slane %v2473_v59, 4  ;;  %v1939_v57 = vpop.f32.mrb[201].mxu1  ;;  %v2475_v34 = vpop.f32.mrb[201].mxu0 }
 0x28f   :  { %v3975_v4 = vmax.f32 %v3973_v45, %v3974_v31  ;;  %v6567_v14 = vadd.f32 %v3796_v17, %v3572_v58  ;;  %v3376_v9 = vrot.slane %v1939_v57, 3  ;;  %v1941_v38 = vpop.f32.mrb[202].mxu1  ;;  %v2476_v35 = vpop.f32.mrb[202].mxu0  ;;  %v4747_v31 = vld [vmem:[%s7179_s0 + $0x334] ss:$8 sps:$4 sm:$0xff]  }
 0x290   :  { %v3201_v16 = vsel %vm3142_vm3, %v3078_v60, %v3079_v46  ;;  %v3795_v5 = vsel %vm3736_vm4, %v3672_v36, %v3673_v47  ;;  %v3080_v41 = vrot.slane %v1941_v38, 2  ;;  %v1943_v25 = vpop.f32.mrb[203].mxu1  ;;  %v3674_v43 = vrot.slane %v2476_v35, 4  ;;  %v2478_v3 = vpop.f32.mrb[203].mxu0 }
 0x291   :  { %v3976_v39 = vrot.slane %v3975_v4, 2  ;;  %v3276_v20 = vadd.f32 %v3201_v16, %v5882_v7  ;;  %v3498_v24 = vsel %vm3439_vm5, %v3375_v61, %v3376_v9  ;;  %v3377_v51 = vrot.slane %v1943_v25, 3 }
 0x292   :  { %v3200_v11 = vsel %vm3142_vm3, %v3079_v46, %v3080_v41  ;;  %v3794_v13 = vsel %vm3736_vm4, %v3673_v47, %v3674_v43  ;;  %2198 = vmatmul.mubr.bf16.gmra.mrb[52].mxu1 %v4744_v40  ;;  %2684 = vmatmul.mubr.bf16.gmra.mrb[52].mxu0 %v4744_v40 }
 0x293   :  { %v3977_v2 = vmax.f32 %v3975_v4, %v3976_v39  ;;  %v3573_v55 = vadd.f32 %v3498_v24, %v3276_v20  ;;  %v3277_v7 = vadd.f32 %v3200_v11, %v5898_v0  ;;  %v3497_v30 = vsel %vm3439_vm5, %v3376_v9, %v3377_v51  ;;  %4361 = vmatprep.mubr.msk.bf16.mxu1 %vm935_vm0, %v4745_v19  ;;  %v7239_v20 = vld [vmem:[#allocation43_spill] sm:$0xff] }
 0x294   :  { %4417 = vmatprep.mubr.msk.bf16.mxu0 %vm935_vm0, %v4745_v19 }
 0x295   :  { %v3978_v1 = vrot.slane %v3977_v2, 1  ;;  %v6591_v18 = vadd.f32 %v3795_v5, %v3573_v55  ;;  %v3574_v22 = vadd.f32 %v3497_v30, %v3277_v7  ;;  %v1947_v8 = vpop.f32.mrb[204].mxu1  ;;  %v2481_v23 = vpop.f32.mrb[204].mxu0  ;;  %v7240_v7 = vld [vmem:[#allocation45_spill] sm:$0xff] }
 0x296   :  { %v3081_v63 = vrot.slane %v1947_v8, 2  ;;  %v3675_v0 = vrot.slane %v2481_v23, 4  ;;  %v1949_v6 = vpop.f32.mrb[205].mxu1  ;;  %v2483_v44 = vpop.f32.mrb[205].mxu0 }
 0x297   :  { %v3979_v52 = vmax.f32 %v3977_v2, %v3978_v1  ;;  %v6593_v42 = vadd.f32 %v3794_v13, %v3574_v22  ;;  %v3378_v26 = vrot.slane %v1949_v6, 3  ;;  %v1951_v53 = vpop.f32.mrb[206].mxu1  ;;  %v2484_v15 = vpop.f32.mrb[206].mxu0  ;;  %v4748_v2 = vld [vmem:[%s7179_s0 + $0x330] ss:$8 sps:$4 sm:$0xff]  }
 0x298   :  { %v3199_v60 = vsel %vm3142_vm3, %v3080_v41, %v3081_v63  ;;  %v3793_v48 = vsel %vm3736_vm4, %v3674_v43, %v3675_v0  ;;  %v3082_v36 = vrot.slane %v1951_v53, 2  ;;  %v1953_v29 = vpop.f32.mrb[207].mxu1  ;;  %v3676_v10 = vrot.slane %v2484_v15, 4  ;;  %v2486_v54 = vpop.f32.mrb[207].mxu0  ;;  %v4749_v1 = vld [vmem:[%s7179_s0 + $0x344] ss:$8 sps:$4 sm:$0xff]  }
 0x299   :  { %v6601_v61 = vsel %vm4067_vm7, %v6421_v27, %v3979_v52  ;;  %v3278_v12 = vadd.f32 %v3199_v60, %v5906_v49  ;;  %v3496_v17 = vsel %vm3439_vm5, %v3377_v51, %v3378_v26  ;;  %v3379_v33 = vrot.slane %v1953_v29, 3 }
 0x29a   :  { %v3198_v45 = vsel %vm3142_vm3, %v3081_v63, %v3082_v36  ;;  %v3792_v56 = vsel %vm3736_vm4, %v3675_v0, %v3676_v10  ;;  %2208 = vmatmul.mubr.bf16.gmra.mrb[56].mxu1 %v4746_v32  ;;  %2692 = vmatmul.mubr.bf16.gmra.mrb[56].mxu0 %v4746_v32 }
 0x29b   :  { %v3575_v27 = vadd.f32 %v3496_v17, %v3278_v12  ;;  %v3279_v21 = vadd.f32 %v3198_v45, %v5922_v50  ;;  %v3495_v49 = vsel %vm3439_vm5, %v3378_v26, %v3379_v33  ;;  %4362 = vmatprep.mubr.msk.bf16.mxu1 %vm935_vm0, %v4747_v31  ;;  %4418 = vmatprep.mubr.msk.bf16.mxu0 %vm935_vm0, %v4747_v31  ;;  %v7241_v45 = vld [vmem:[#allocation47_spill] sm:$0xff] }
 0x29c   :  { %v4750_v31 = vld [vmem:[%s7179_s0 + $0x340] ss:$8 sps:$4 sm:$0xff]  }
 0x29d   :  { %v6621_v58 = vadd.f32 %v3793_v48, %v3575_v27  ;;  %v3576_v62 = vadd.f32 %v3495_v49, %v3279_v21  ;;  %v1957_v59 = vpop.f32.mrb[208].mxu1  ;;  %v2489_v46 = vpop.f32.mrb[208].mxu0 }
 0x29e   :  { %v3083_v47 = vrot.slane %v1957_v59, 2  ;;  %v3677_v57 = vrot.slane %v2489_v46, 4  ;;  %v1959_v34 = vpop.f32.mrb[209].mxu1  ;;  %v2491_v50 = vpop.f32.mrb[209].mxu0  ;;  %v7242_v59 = vld [vmem:[#allocation49_spill] sm:$0xff] }
 0x29f   :  { %v6623_v4 = vadd.f32 %v3792_v56, %v3576_v62  ;;  %v3380_v9 = vrot.slane %v1959_v34, 3  ;;  %v1961_v38 = vpop.f32.mrb[210].mxu1  ;;  %v2492_v35 = vpop.f32.mrb[210].mxu0 }
 0x2a0   :  { %v3197_v16 = vsel %vm3142_vm3, %v3082_v36, %v3083_v47  ;;  %v3791_v5 = vsel %vm3736_vm4, %v3676_v10, %v3677_v57  ;;  %v3084_v41 = vrot.slane %v1961_v38, 2  ;;  %v1963_v25 = vpop.f32.mrb[211].mxu1  ;;  %v3678_v43 = vrot.slane %v2492_v35, 4  ;;  %v2494_v3 = vpop.f32.mrb[211].mxu0 }
 0x2a1   :  { %v3980_v39 = vmax.f32 %v6567_v14, %v6623_v4  ;;  %v3280_v24 = vadd.f32 %v3197_v16, %v7239_v20  ;;  %v3494_v51 = vsel %vm3439_vm5, %v3379_v33, %v3380_v9  ;;  %v3381_v11 = vrot.slane %v1963_v25, 3 }
 0x2a2   :  { %v3196_v13 = vsel %vm3142_vm3, %v3083_v47, %v3084_v41  ;;  %v3790_v40 = vsel %vm3736_vm4, %v3677_v57, %v3678_v43  ;;  %2218 = vmatmul.mubr.bf16.gmra.mrb[60].mxu1 %v4748_v2  ;;  %2700 = vmatmul.mubr.bf16.gmra.mrb[60].mxu0 %v4748_v2  ;;  %v4751_v57 = vld [vmem:[%s7179_s0 + $0x354] ss:$8 sps:$4 sm:$0xff]  }
 0x2a3   :  { %v3577_v55 = vadd.f32 %v3494_v51, %v3280_v24  ;;  %v3281_v30 = vadd.f32 %v3196_v13, %v7240_v7  ;;  %v3493_v19 = vsel %vm3439_vm5, %v3380_v9, %v3381_v11  ;;  %4363 = vmatprep.mubr.msk.bf16.mxu1 %vm935_vm0, %v4749_v1  ;;  %4419 = vmatprep.mubr.msk.bf16.mxu0 %vm935_vm0, %v4749_v1 }
 0x2a5   :  { %v6649_v22 = vadd.f32 %v3791_v5, %v3577_v55  ;;  %v3578_v8 = vadd.f32 %v3493_v19, %v3281_v30  ;;  %v1967_v23 = vpop.f32.mrb[212].mxu1  ;;  %v2497_v63 = vpop.f32.mrb[212].mxu0 }
 0x2a6   :  { %v3085_v0 = vrot.slane %v1967_v23, 2  ;;  %v3679_v6 = vrot.slane %v2497_v63, 4  ;;  %v1969_v44 = vpop.f32.mrb[213].mxu1  ;;  %v2499_v52 = vpop.f32.mrb[213].mxu0  ;;  %v4752_v63 = vld [vmem:[%s7179_s0 + $0x350] ss:$8 sps:$4 sm:$0xff]  }
 0x2a7   :  { %v3981_v26 = vmax.f32 %v6591_v18, %v6649_v22  ;;  %v6653_v53 = vadd.f32 %v3790_v40, %v3578_v8  ;;  %v3382_v15 = vrot.slane %v1969_v44, 3  ;;  %v1971_v60 = vpop.f32.mrb[214].mxu1  ;;  %v2500_v48 = vpop.f32.mrb[214].mxu0  ;;  %v7244_v18 = vld [vmem:[#allocation54_spill] sm:$0xff] }
 0x2a8   :  { %v3195_v36 = vsel %vm3142_vm3, %v3084_v41, %v3085_v0  ;;  %v3789_v29 = vsel %vm3736_vm4, %v3678_v43, %v3679_v6  ;;  %v3086_v10 = vrot.slane %v1971_v60, 2  ;;  %v1973_v54 = vpop.f32.mrb[215].mxu1  ;;  %v3680_v12 = vrot.slane %v2500_v48, 4  ;;  %v2502_v17 = vpop.f32.mrb[215].mxu0 }
 0x2a9   :  { %v3982_v33 = vmax.f32 %v6593_v42, %v6653_v53  ;;  %v3282_v56 = vadd.f32 %v3195_v36, %v7241_v45  ;;  %v3492_v32 = vsel %vm3439_vm5, %v3381_v11, %v3382_v15  ;;  %v3383_v27 = vrot.slane %v1973_v54, 3 }
 0x2aa   :  { %v3194_v21 = vsel %vm3142_vm3, %v3085_v0, %v3086_v10  ;;  %v3788_v49 = vsel %vm3736_vm4, %v3679_v6, %v3680_v12  ;;  %2228 = vmatmul.mubr.bf16.gmra.mrb[64].mxu1 %v4750_v31  ;;  %2708 = vmatmul.mubr.bf16.gmra.mrb[64].mxu0 %v4750_v31  ;;  %v4753_v0 = vld [vmem:[%s7179_s0 + $0x364] ss:$8 sps:$4 sm:$0xff]   ;;  %v4754_v31 = vld [vmem:[%s7179_s0 + $0x360] ss:$8 sps:$4 sm:$0xff]  }
 0x2ab   :  { %v3579_v62 = vadd.f32 %v3492_v32, %v3282_v56  ;;  %v3283_v46 = vadd.f32 %v3194_v21, %v7242_v59  ;;  %v3491_v47 = vsel %vm3439_vm5, %v3382_v15, %v3383_v27  ;;  %4364 = vmatprep.mubr.msk.bf16.mxu1 %vm935_vm0, %v4751_v57  ;;  %4420 = vmatprep.mubr.msk.bf16.mxu0 %vm935_vm0, %v4751_v57  ;;  %v4755_v59 = vld [vmem:[%s7179_s0 + $0x374] ss:$8 sps:$4 sm:$0xff]  }
 0x2ad   :  { %v6679_v34 = vadd.f32 %v3789_v29, %v3579_v62  ;;  %v3580_v50 = vadd.f32 %v3491_v47, %v3283_v46  ;;  %v1977_v9 = vpop.f32.mrb[216].mxu1  ;;  %v2505_v38 = vpop.f32.mrb[216].mxu0 }
 0x2ae   :  { %v3087_v35 = vrot.slane %v1977_v9, 2  ;;  %v3681_v16 = vrot.slane %v2505_v38, 4  ;;  %v1979_v5 = vpop.f32.mrb[217].mxu1  ;;  %v2507_v41 = vpop.f32.mrb[217].mxu0 }
 0x2af   :  { %v3983_v25 = vmax.f32 %v6621_v58, %v6679_v34  ;;  %v3877_v43 = vadd.f32 %v3788_v49, %v3580_v50  ;;  %v3384_v3 = vrot.slane %v1979_v5, 3  ;;  %v1981_v20 = vpop.f32.mrb[218].mxu1  ;;  %v2508_v24 = vpop.f32.mrb[218].mxu0  ;;  %v7243_v58 = vld [vmem:[#allocation51_spill] sm:$0xff] }
 0x2b0   :  { %v3193_v51 = vsel %vm3142_vm3, %v3086_v10, %v3087_v35  ;;  %v3787_v11 = vsel %vm3736_vm4, %v3680_v12, %v3681_v16  ;;  %v3088_v13 = vrot.slane %v1981_v20, 2  ;;  %v1983_v40 = vpop.f32.mrb[219].mxu1  ;;  %v3682_v2 = vrot.slane %v2508_v24, 4  ;;  %v2510_v55 = vpop.f32.mrb[219].mxu0 }
 0x2b1   :  { %v6690_v7 = vmax.f32 %v3980_v39, %v3877_v43  ;;  %v3284_v30 = vadd.f32 %v3193_v51, %v7243_v58  ;;  %v3490_v19 = vsel %vm3439_vm5, %v3383_v27, %v3384_v3  ;;  %v3385_v1 = vrot.slane %v1983_v40, 3 }
 0x2b2   :  { %v3192_v8 = vsel %vm3142_vm3, %v3087_v35, %v3088_v13  ;;  %v3786_v23 = vsel %vm3736_vm4, %v3681_v16, %v3682_v2  ;;  %2238 = vmatmul.mubr.bf16.gmra.mrb[68].mxu1 %v4752_v63  ;;  %2716 = vmatmul.mubr.bf16.gmra.mrb[68].mxu0 %v4752_v63 }
 0x2b3   :  { %v3581_v14 = vadd.f32 %v3490_v19, %v3284_v30  ;;  %v3285_v4 = vadd.f32 %v3192_v8, %v5994_v28  ;;  %v3489_v39 = vsel %vm3439_vm5, %v3384_v3, %v3385_v1  ;;  %4365 = vmatprep.mubr.msk.bf16.mxu1 %vm935_vm0, %v4753_v0  ;;  %4421 = vmatprep.mubr.msk.bf16.mxu0 %vm935_vm0, %v4753_v0 }
 0x2b5   :  { %v3878_v6 = vadd.f32 %v3787_v11, %v3581_v14  ;;  %v3582_v44 = vadd.f32 %v3489_v39, %v3285_v4  ;;  %v1987_v52 = vpop.f32.mrb[220].mxu1  ;;  %v2513_v15 = vpop.f32.mrb[220].mxu0 }
 0x2b6   :  { %v3089_v60 = vrot.slane %v1987_v52, 2  ;;  %v3683_v48 = vrot.slane %v2513_v15, 4  ;;  %v1989_v36 = vpop.f32.mrb[221].mxu1  ;;  %v2515_v29 = vpop.f32.mrb[221].mxu0 }
 0x2b7   :  { %v3985_v28 = vmax.f32 %v3981_v26, %v3878_v6  ;;  %v3879_v10 = vadd.f32 %v3786_v23, %v3582_v44  ;;  %v3386_v54 = vrot.slane %v1989_v36, 3  ;;  %v1991_v12 = vpop.f32.mrb[222].mxu1  ;;  %v2516_v17 = vpop.f32.mrb[222].mxu0  ;;  %v7246_v29 = vld [vmem:[#allocation3_spill] sm:$0xff] }
 0x2b8   :  { %v3191_v45 = vsel %vm3142_vm3, %v3088_v13, %v3089_v60  ;;  %v3785_v56 = vsel %vm3736_vm4, %v3682_v2, %v3683_v48  ;;  %v1992_v32 = vpop.f32.mrb[223].mxu1  ;;  %v2517_v27 = vpop.f32.mrb[223].mxu0  ;;  %v7245_v13 = vld [vmem:[#allocation2_spill] sm:$0xff] }
 0x2b9   :  { %v3988_v21 = vmax.f32 %v6690_v7, %v3985_v28  ;;  %v3986_v49 = vmax.f32 %v3982_v33, %v3879_v10  ;;  %v3286_v22 = vadd.f32 %v3191_v45, %v7244_v18  ;;  %v3488_v26 = vsel %vm3439_vm5, %v3385_v1, %v3386_v54  ;;  %v7247_v32 = vld [vmem:[#allocation4_spill] sm:$0xff] }
 0x2ba   :  { %2248 = vmatmul.mubr.bf16.gmra.mrb[72].mxu1 %v4754_v31  ;;  %2724 = vmatmul.mubr.bf16.gmra.mrb[72].mxu0 %v4754_v31 }
 0x2bb   :  { %v3583_v62 = vadd.f32 %v3488_v26, %v3286_v22  ;;  %4366 = vmatprep.mubr.msk.bf16.mxu1 %vm935_vm0, %v4755_v59  ;;  %4422 = vmatprep.mubr.msk.bf16.mxu0 %vm935_vm0, %v4755_v59 }
 0x2bd   :  { %v3880_v42 = vadd.f32 %v3785_v56, %v3583_v62  ;;  %v1995_v53 = vpop.f32.mrb[224].mxu1  ;;  %v2520_v33 = vpop.f32.mrb[224].mxu0 }
 0x2be   :  { %v1997_v46 = vpop.f32.mrb[225].mxu1  ;;  %v3684_v47 = vrot.slane %v2520_v33, 4  ;;  %v2522_v57 = vpop.f32.mrb[225].mxu0  ;;  %v3090_v38 = vrot.slane %v1995_v53, 2 }
 0x2bf   :  { %v3987_v34 = vmax.f32 %v3983_v25, %v3880_v42  ;;  %v1999_v50 = vpop.f32.mrb[226].mxu1  ;;  %v2523_v9 = vpop.f32.mrb[226].mxu0  ;;  %v3387_v3 = vrot.slane %v1997_v46, 3  ;;  %v4756_v25 = vld [vmem:[%s7179_s0 + $0x370] ss:$8 sps:$4 sm:$0xff]  }
 0x2c0   :  { %v3091_v35 = vrot.slane %v1999_v50, 2  ;;  %v2001_v16 = vpop.f32.mrb[227].mxu1  ;;  %v3685_v5 = vrot.slane %v2523_v9, 4  ;;  %v2525_v41 = vpop.f32.mrb[227].mxu0 }
 0x2c1   :  { %v3989_v43 = vmax.f32 %v3986_v49, %v3987_v34  ;;  %v3388_v20 = vrot.slane %v2001_v16, 3 }
 0x2c2   :  { %v3190_v24 = vsel %vm3142_vm3, %v3090_v38, %v3091_v35  ;;  %v3784_v51 = vsel %vm3736_vm4, %v3684_v47, %v3685_v5  ;;  %2258 = vmatmul.mubr.bf16.gmra.mrb[76].mxu1 %v4756_v25  ;;  %2732 = vmatmul.mubr.bf16.gmra.mrb[76].mxu0 %v4756_v25 }
 0x2c3   :  { %v3990_v11 = vmax.f32 %v3988_v21, %v3989_v43  ;;  %v3287_v40 = vadd.f32 %v3190_v24, %v7245_v13  ;;  %v3487_v2 = vsel %vm3439_vm5, %v3387_v3, %v3388_v20  ;;  %v7248_v43 = vld [vmem:[#allocation5_spill] sm:$0xff]  ;;  %v7249_v13 = vld [vmem:[#allocation6_spill] sm:$0xff] }
 0x2c5   :  { %v3991_v55 = vrot.slane %v3990_v11, 4  ;;  %v3584_v7 = vadd.f32 %v3487_v2, %v3287_v40  ;;  %v2005_v58 = vpop.f32.mrb[228].mxu1  ;;  %v2528_v30 = vpop.f32.mrb[228].mxu0 }
 0x2c6   :  { %v3092_v19 = vrot.slane %v2005_v58, 2  ;;  %v3686_v1 = vrot.slane %v2528_v30, 4  ;;  %v2007_v8 = vpop.f32.mrb[229].mxu1  ;;  %v2530_v23 = vpop.f32.mrb[229].mxu0 }
 0x2c7   :  { %v3992_v63 = vmax.f32 %v3990_v11, %v3991_v55  ;;  %v6742_v14 = vadd.f32 %v3784_v51, %v3584_v7  ;;  %v3389_v4 = vrot.slane %v2007_v8, 3  ;;  %v2009_v39 = vpop.f32.mrb[230].mxu1  ;;  %v2531_v0 = vpop.f32.mrb[230].mxu0 }
 0x2c8   :  { %v3189_v6 = vsel %vm3142_vm3, %v3091_v35, %v3092_v19  ;;  %v3783_v44 = vsel %vm3736_vm4, %v3685_v5, %v3686_v1  ;;  %v3093_v52 = vrot.slane %v2009_v39, 2  ;;  %v2011_v15 = vpop.f32.mrb[231].mxu1  ;;  %v3687_v60 = vrot.slane %v2531_v0, 4  ;;  %v2533_v48 = vpop.f32.mrb[231].mxu0 }
 0x2c9   :  { %v3993_v36 = vrot.slane %v3992_v63, 2  ;;  %v3288_v28 = vadd.f32 %v3189_v6, %v7246_v29  ;;  %v3486_v10 = vsel %vm3439_vm5, %v3388_v20, %v3389_v4  ;;  %v3390_v54 = vrot.slane %v2011_v15, 3 }
 0x2ca   :  { %v3188_v12 = vsel %vm3142_vm3, %v3092_v19, %v3093_v52  ;;  %v3782_v17 = vsel %vm3736_vm4, %v3686_v1, %v3687_v60 }
 0x2cb   :  { %v3994_v45 = vmax.f32 %v3992_v63, %v3993_v36  ;;  %v3585_v56 = vadd.f32 %v3486_v10, %v3288_v28  ;;  %v3289_v27 = vadd.f32 %v3188_v12, %v7247_v32  ;;  %v3485_v21 = vsel %vm3439_vm5, %v3389_v4, %v3390_v54  ;;  %v7250_v36 = vld [vmem:[#allocation7_spill] sm:$0xff] }
 0x2cd   :  { %v3995_v49 = vrot.slane %v3994_v45, 1  ;;  %v6758_v18 = vadd.f32 %v3783_v44, %v3585_v56  ;;  %v3586_v22 = vadd.f32 %v3485_v21, %v3289_v27  ;;  %v2015_v26 = vpop.f32.mrb[232].mxu1  ;;  %v2536_v31 = vpop.f32.mrb[232].mxu0 }
 0x2ce   :  { %v3094_v62 = vrot.slane %v2015_v26, 2  ;;  %v3688_v59 = vrot.slane %v2536_v31, 4  ;;  %v2017_v42 = vpop.f32.mrb[233].mxu1  ;;  %v2538_v53 = vpop.f32.mrb[233].mxu0 }
 0x2cf   :  { %v3996_v33 = vmax.f32 %v3994_v45, %v3995_v49  ;;  %v6760_v46 = vadd.f32 %v3782_v17, %v3586_v22  ;;  %v3391_v47 = vrot.slane %v2017_v42, 3  ;;  %v2019_v57 = vpop.f32.mrb[234].mxu1  ;;  %v2539_v34 = vpop.f32.mrb[234].mxu0  ;;  %v7251_v45 = vld [vmem:[#allocation8_spill] sm:$0xff] }
 0x2d0   :  { %v3187_v50 = vsel %vm3142_vm3, %v3093_v52, %v3094_v62  ;;  %v3781_v9 = vsel %vm3736_vm4, %v3687_v60, %v3688_v59  ;;  %v3095_v38 = vrot.slane %v2019_v57, 2  ;;  %v2021_v35 = vpop.f32.mrb[235].mxu1  ;;  %v3689_v16 = vrot.slane %v2539_v34, 4  ;;  %v2541_v5 = vpop.f32.mrb[235].mxu0 }
 0x2d1   :  { %v6768_v41 = vsel %vm1104_vm1, %v6601_v61, %v3996_v33  ;;  %v3290_v3 = vadd.f32 %v3187_v50, %v7248_v43  ;;  %v3484_v20 = vsel %vm3439_vm5, %v3390_v54, %v3391_v47  ;;  %v3392_v24 = vrot.slane %v2021_v35, 3  ;;  %v7252_v5 = vld [vmem:[#allocation9_spill] sm:$0xff] }
 0x2d2   :  { %v3186_v51 = vsel %vm3142_vm3, %v3094_v62, %v3095_v38  ;;  %v3780_v25 = vsel %vm3736_vm4, %v3688_v59, %v3689_v16 }
 0x2d3   :  { %v3587_v11 = vadd.f32 %v3484_v20, %v3290_v3  ;;  %v3291_v40 = vadd.f32 %v3186_v51, %v7249_v13  ;;  %v3483_v2 = vsel %vm3439_vm5, %v3391_v47, %v3392_v24 }
 0x2d5   :  { %v6780_v61 = vadd.f32 %v3781_v9, %v3587_v11  ;;  %v3588_v55 = vadd.f32 %v3483_v2, %v3291_v40  ;;  %v2025_v7 = vpop.f32.mrb[236].mxu1  ;;  %v2544_v58 = vpop.f32.mrb[236].mxu0 }
 0x2d6   :  { %v3096_v30 = vrot.slane %v2025_v7, 2  ;;  %v3690_v19 = vrot.slane %v2544_v58, 4  ;;  %v2027_v1 = vpop.f32.mrb[237].mxu1  ;;  %v2546_v8 = vpop.f32.mrb[237].mxu0 }
 0x2d7   :  { %v6782_v23 = vadd.f32 %v3780_v25, %v3588_v55  ;;  %v3393_v63 = vrot.slane %v2027_v1, 3  ;;  %v2029_v4 = vpop.f32.mrb[238].mxu1  ;;  %v2547_v39 = vpop.f32.mrb[238].mxu0  ;;  %v7253_v25 = vld [vmem:[#allocation10_spill] sm:$0xff] }
 0x2d8   :  { %v3185_v0 = vsel %vm3142_vm3, %v3095_v38, %v3096_v30  ;;  %v3779_v6 = vsel %vm3736_vm4, %v3689_v16, %v3690_v19  ;;  %v3097_v44 = vrot.slane %v2029_v4, 2  ;;  %v2031_v52 = vpop.f32.mrb[239].mxu1  ;;  %v3691_v15 = vrot.slane %v2547_v39, 4  ;;  %v2549_v60 = vpop.f32.mrb[239].mxu0 }
 0x2d9   :  { %v3997_v48 = vmax.f32 %v6742_v14, %v6782_v23  ;;  %v3292_v29 = vadd.f32 %v3185_v0, %v7250_v36  ;;  %v3482_v28 = vsel %vm3439_vm5, %v3392_v24, %v3393_v63  ;;  %v3394_v10 = vrot.slane %v2031_v52, 3  ;;  %v7254_v36 = vld [vmem:[#allocation11_spill] sm:$0xff] }
 0x2da   :  { %v3184_v54 = vsel %vm3142_vm3, %v3096_v30, %v3097_v44  ;;  %v3778_v12 = vsel %vm3736_vm4, %v3690_v19, %v3691_v15 }
 0x2db   :  { %v3589_v17 = vadd.f32 %v3482_v28, %v3292_v29  ;;  %v3293_v56 = vadd.f32 %v3184_v54, %v7251_v45  ;;  %v3481_v32 = vsel %vm3439_vm5, %v3393_v63, %v3394_v10 }
 0x2dd   :  { %v6800_v27 = vadd.f32 %v3779_v6, %v3589_v17  ;;  %v3590_v14 = vadd.f32 %v3481_v32, %v3293_v56  ;;  %v2035_v21 = vpop.f32.mrb[240].mxu1  ;;  %v2552_v49 = vpop.f32.mrb[240].mxu0  ;;  %v7255_v17 = vld [vmem:[#allocation12_spill] sm:$0xff] }
 0x2de   :  { %v3098_v22 = vrot.slane %v2035_v21, 2  ;;  %v3692_v26 = vrot.slane %v2552_v49, 4  ;;  %v2037_v31 = vpop.f32.mrb[241].mxu1  ;;  %v2554_v62 = vpop.f32.mrb[241].mxu0 }
 0x2df   :  { %v3998_v59 = vmax.f32 %v6758_v18, %v6800_v27  ;;  %v6804_v42 = vadd.f32 %v3778_v12, %v3590_v14  ;;  %v3395_v53 = vrot.slane %v2037_v31, 3  ;;  %v2039_v33 = vpop.f32.mrb[242].mxu1  ;;  %v2555_v47 = vpop.f32.mrb[242].mxu0 }
 0x2e0   :  { %v3183_v57 = vsel %vm3142_vm3, %v3097_v44, %v3098_v22  ;;  %v3777_v34 = vsel %vm3736_vm4, %v3691_v15, %v3692_v26  ;;  %v3099_v50 = vrot.slane %v2039_v33, 2  ;;  %v2041_v9 = vpop.f32.mrb[243].mxu1  ;;  %v3693_v38 = vrot.slane %v2555_v47, 4  ;;  %v2557_v35 = vpop.f32.mrb[243].mxu0 }
 0x2e1   :  { %v3999_v16 = vmax.f32 %v6760_v46, %v6804_v42  ;;  %v3294_v18 = vadd.f32 %v3183_v57, %v7252_v5  ;;  %v3480_v43 = vsel %vm3439_vm5, %v3394_v10, %v3395_v53  ;;  %v3396_v3 = vrot.slane %v2041_v9, 3  ;;  %v7256_v35 = vld [vmem:[#allocation13_spill] sm:$0xff] }
 0x2e2   :  { %v3182_v20 = vsel %vm3142_vm3, %v3098_v22, %v3099_v50  ;;  %v3776_v24 = vsel %vm3736_vm4, %v3692_v26, %v3693_v38 }
 0x2e3   :  { %v3591_v51 = vadd.f32 %v3480_v43, %v3294_v18  ;;  %v3295_v11 = vadd.f32 %v3182_v20, %v7253_v25  ;;  %v3479_v13 = vsel %vm3439_vm5, %v3395_v53, %v3396_v3 }
 0x2e5   :  { %v3888_v40 = vadd.f32 %v3777_v34, %v3591_v51  ;;  %v3592_v46 = vadd.f32 %v3479_v13, %v3295_v11  ;;  %v2045_v2 = vpop.f32.mrb[244].mxu1  ;;  %v2560_v55 = vpop.f32.mrb[244].mxu0 }
 0x2e6   :  { %v3100_v7 = vrot.slane %v2045_v2, 2  ;;  %v3694_v58 = vrot.slane %v2560_v55, 4  ;;  %v2047_v30 = vpop.f32.mrb[245].mxu1  ;;  %v2562_v19 = vpop.f32.mrb[245].mxu0 }
 0x2e7   :  { %v4000_v1 = vmax.f32 %v6780_v61, %v3888_v40  ;;  %v3889_v8 = vadd.f32 %v3776_v24, %v3592_v46  ;;  %v3397_v23 = vrot.slane %v2047_v30, 3  ;;  %v2049_v63 = vpop.f32.mrb[246].mxu1  ;;  %v2563_v4 = vpop.f32.mrb[246].mxu0 }
 0x2e8   :  { %v3181_v39 = vsel %vm3142_vm3, %v3099_v50, %v3100_v7  ;;  %v3775_v0 = vsel %vm3736_vm4, %v3693_v38, %v3694_v58  ;;  %v3101_v6 = vrot.slane %v2049_v63, 2  ;;  %v2051_v44 = vpop.f32.mrb[247].mxu1  ;;  %v3695_v52 = vrot.slane %v2563_v4, 4  ;;  %v2565_v15 = vpop.f32.mrb[247].mxu0  ;;  %v7257_v4 = vld [vmem:[#allocation14_spill] sm:$0xff] }
 0x2e9   :  { %v4001_v60 = vmax.f32 %v3997_v48, %v3889_v8  ;;  %v3296_v29 = vadd.f32 %v3181_v39, %v7254_v36  ;;  %v3478_v61 = vsel %vm3439_vm5, %v3396_v3, %v3397_v23  ;;  %v3398_v28 = vrot.slane %v2051_v44, 3 }
 0x2ea   :  { %v3180_v10 = vsel %vm3142_vm3, %v3100_v7, %v3101_v6  ;;  %v3774_v54 = vsel %vm3736_vm4, %v3694_v58, %v3695_v52 }
 0x2eb   :  { %v3593_v12 = vadd.f32 %v3478_v61, %v3296_v29  ;;  %v3297_v45 = vadd.f32 %v3180_v10, %v7255_v17  ;;  %v3477_v56 = vsel %vm3439_vm5, %v3397_v23, %v3398_v28 }
 0x2ed   :  { %v3890_v32 = vadd.f32 %v3775_v0, %v3593_v12  ;;  %v3594_v48 = vadd.f32 %v3477_v56, %v3297_v45  ;;  %v2055_v27 = vpop.f32.mrb[248].mxu1  ;;  %v2568_v14 = vpop.f32.mrb[248].mxu0 }
 0x2ee   :  { %v3102_v21 = vrot.slane %v2055_v27, 2  ;;  %v3696_v49 = vrot.slane %v2568_v14, 4  ;;  %v2057_v22 = vpop.f32.mrb[249].mxu1  ;;  %v2570_v26 = vpop.f32.mrb[249].mxu0 }
 0x2ef   :  { %v4002_v31 = vmax.f32 %v3998_v59, %v3890_v32  ;;  %v3891_v62 = vadd.f32 %v3774_v54, %v3594_v48  ;;  %v3399_v42 = vrot.slane %v2057_v22, 3  ;;  %v2059_v53 = vpop.f32.mrb[250].mxu1  ;;  %v2571_v33 = vpop.f32.mrb[250].mxu0 }
 0x2f0   :  { %v3179_v47 = vsel %vm3142_vm3, %v3101_v6, %v3102_v21  ;;  %v3773_v57 = vsel %vm3736_vm4, %v3695_v52, %v3696_v49  ;;  %v2060_v34 = vpop.f32.mrb[251].mxu1  ;;  %v2572_v50 = vpop.f32.mrb[251].mxu0  ;;  %v7258_v21 = vld [vmem:[#allocation15_spill] sm:$0xff]  ;;  %v7259_v33 = vld [vmem:[#allocation16_spill] sm:$0xff] }
 0x2f1   :  { %v4005_v9 = vmax.f32 %v4001_v60, %v4002_v31  ;;  %v4003_v38 = vmax.f32 %v3999_v16, %v3891_v62  ;;  %v3298_v5 = vadd.f32 %v3179_v47, %v7256_v35  ;;  %v3476_v18 = vsel %vm3439_vm5, %v3398_v28, %v3399_v42 }
 0x2f3   :  { %v3595_v59 = vadd.f32 %v3476_v18, %v3298_v5 }
 0x2f5   :  { %v3892_v43 = vadd.f32 %v3773_v57, %v3595_v59  ;;  %v2063_v3 = vpop.f32.mrb[252].mxu1  ;;  %v2575_v20 = vpop.f32.mrb[252].mxu0 }
 0x2f6   :  { %v2065_v24 = vpop.f32.mrb[253].mxu1  ;;  %v3697_v51 = vrot.slane %v2575_v20, 4  ;;  %v2577_v25 = vpop.f32.mrb[253].mxu0  ;;  %v3103_v46 = vrot.slane %v2063_v3, 2 }
 0x2f7   :  { %v4004_v11 = vmax.f32 %v4000_v1, %v3892_v43  ;;  %v2067_v13 = vpop.f32.mrb[254].mxu1  ;;  %v2578_v40 = vpop.f32.mrb[254].mxu0  ;;  %v3400_v30 = vrot.slane %v2065_v24, 3 }
 0x2f8   :  { %v3104_v2 = vrot.slane %v2067_v13, 2  ;;  %v2069_v55 = vpop.f32.mrb[255].mxu1  ;;  %v3698_v7 = vrot.slane %v2578_v40, 4  ;;  %v2580_v16 = vpop.f32.mrb[255].mxu0 }
 0x2f9   :  { %v4006_v58 = vmax.f32 %v4003_v38, %v4004_v11  ;;  %v3401_v19 = vrot.slane %v2069_v55, 3  ;;  %v7260_v16 = vld [vmem:[#allocation17_spill] sm:$0xff] }
 0x2fa   :  { %v3178_v8 = vsel %vm3142_vm3, %v3103_v46, %v3104_v2  ;;  %v3772_v23 = vsel %vm3736_vm4, %v3697_v51, %v3698_v7 }
 0x2fb   :  { %v4007_v63 = vmax.f32 %v4005_v9, %v4006_v58  ;;  %v3299_v39 = vadd.f32 %v3178_v8, %v7257_v4  ;;  %v3475_v1 = vsel %vm3439_vm5, %v3400_v30, %v3401_v19  ;;  %v7261_v4 = vld [vmem:[#allocation18_spill] sm:$0xff] }
 0x2fd   :  { %v4008_v0 = vrot.slane %v4007_v63, 4  ;;  %v3596_v6 = vadd.f32 %v3475_v1, %v3299_v39  ;;  %v2073_v44 = vpop.f32.mrb[0].mxu1  ;;  %v2583_v52 = vpop.f32.mrb[0].mxu0 }
 0x2fe   :  { %v3105_v15 = vrot.slane %v2073_v44, 2  ;;  %v3699_v60 = vrot.slane %v2583_v52, 4  ;;  %v2075_v36 = vpop.f32.mrb[1].mxu1  ;;  %v2585_v29 = vpop.f32.mrb[1].mxu0 }
 0x2ff   :  { %v4009_v61 = vmax.f32 %v4007_v63, %v4008_v0  ;;  %v6851_v28 = vadd.f32 %v3772_v23, %v3596_v6  ;;  %v3402_v10 = vrot.slane %v2075_v36, 3  ;;  %v2077_v54 = vpop.f32.mrb[2].mxu1  ;;  %v2586_v12 = vpop.f32.mrb[2].mxu0 }
 0x300   :  { %v3177_v17 = vsel %vm3142_vm3, %v3104_v2, %v3105_v15  ;;  %v3771_v45 = vsel %vm3736_vm4, %v3698_v7, %v3699_v60  ;;  %v3106_v56 = vrot.slane %v2077_v54, 2  ;;  %v2079_v32 = vpop.f32.mrb[3].mxu1  ;;  %v3700_v48 = vrot.slane %v2586_v12, 4  ;;  %v2588_v27 = vpop.f32.mrb[3].mxu0 }
 0x301   :  { %v4010_v14 = vrot.slane %v4009_v61, 2  ;;  %v3300_v49 = vadd.f32 %v3177_v17, %v7258_v21  ;;  %v3474_v22 = vsel %vm3439_vm5, %v3401_v19, %v3402_v10  ;;  %v3403_v26 = vrot.slane %v2079_v32, 3 }
 0x302   :  { %v3176_v31 = vsel %vm3142_vm3, %v3105_v15, %v3106_v56  ;;  %v3770_v62 = vsel %vm3736_vm4, %v3699_v60, %v3700_v48 }
 0x303   :  { %v4011_v42 = vmax.f32 %v4009_v61, %v4010_v14  ;;  %v3597_v53 = vadd.f32 %v3474_v22, %v3300_v49  ;;  %v3301_v47 = vadd.f32 %v3176_v31, %v7259_v33  ;;  %v3473_v57 = vsel %vm3439_vm5, %v3402_v10, %v3403_v26  ;;  %v7262_v14 = vld [vmem:[#allocation19_spill] sm:$0xff] }
 0x305   :  { %v4012_v34 = vrot.slane %v4011_v42, 1  ;;  %v6867_v50 = vadd.f32 %v3771_v45, %v3597_v53  ;;  %v3598_v9 = vadd.f32 %v3473_v57, %v3301_v47  ;;  %v2083_v38 = vpop.f32.mrb[4].mxu1  ;;  %v2591_v35 = vpop.f32.mrb[4].mxu0 }
 0x306   :  { %v3107_v5 = vrot.slane %v2083_v38, 2  ;;  %v3701_v18 = vrot.slane %v2591_v35, 4  ;;  %v2085_v59 = vpop.f32.mrb[5].mxu1  ;;  %v2593_v43 = vpop.f32.mrb[5].mxu0 }
 0x307   :  { %v4013_v3 = vmax.f32 %v4011_v42, %v4012_v34  ;;  %v6869_v20 = vadd.f32 %v3770_v62, %v3598_v9  ;;  %v3404_v24 = vrot.slane %v2085_v59, 3  ;;  %v2087_v51 = vpop.f32.mrb[6].mxu1  ;;  %v2594_v25 = vpop.f32.mrb[6].mxu0  ;;  %v7263_v42 = vld [vmem:[#allocation20_spill] sm:$0xff] }
 0x308   :  { %v3175_v11 = vsel %vm3142_vm3, %v3106_v56, %v3107_v5  ;;  %v3769_v13 = vsel %vm3736_vm4, %v3700_v48, %v3701_v18  ;;  %v3108_v40 = vrot.slane %v2087_v51, 2  ;;  %v2089_v46 = vpop.f32.mrb[7].mxu1  ;;  %v3702_v2 = vrot.slane %v2594_v25, 4  ;;  %v2596_v55 = vpop.f32.mrb[7].mxu0 }
 0x309   :  { %v6877_v7 = vsel %vm4070_vm8, %v6768_v41, %v4013_v3  ;;  %v3302_v58 = vadd.f32 %v3175_v11, %v7260_v16  ;;  %v3472_v30 = vsel %vm3439_vm5, %v3403_v26, %v3404_v24  ;;  %v3405_v19 = vrot.slane %v2089_v46, 3  ;;  %v7264_v55 = vld [vmem:[#allocation21_spill] sm:$0xff] }
 0x30a   :  { %v3174_v8 = vsel %vm3142_vm3, %v3107_v5, %v3108_v40  ;;  %v3768_v23 = vsel %vm3736_vm4, %v3701_v18, %v3702_v2 }
 0x30b   :  { %v3599_v63 = vadd.f32 %v3472_v30, %v3302_v58  ;;  %v3303_v39 = vadd.f32 %v3174_v8, %v7261_v4  ;;  %v3471_v1 = vsel %vm3439_vm5, %v3404_v24, %v3405_v19 }
 0x30d   :  { %v6889_v41 = vadd.f32 %v3769_v13, %v3599_v63  ;;  %v3600_v0 = vadd.f32 %v3471_v1, %v3303_v39  ;;  %v2093_v6 = vpop.f32.mrb[8].mxu1  ;;  %v2599_v44 = vpop.f32.mrb[8].mxu0 }
 0x30e   :  { %v3109_v52 = vrot.slane %v2093_v6, 2  ;;  %v3703_v15 = vrot.slane %v2599_v44, 4  ;;  %v2095_v60 = vpop.f32.mrb[9].mxu1  ;;  %v2601_v36 = vpop.f32.mrb[9].mxu0 }
 0x30f   :  { %v6891_v29 = vadd.f32 %v3768_v23, %v3600_v0  ;;  %v3406_v61 = vrot.slane %v2095_v60, 3  ;;  %v2097_v10 = vpop.f32.mrb[10].mxu1  ;;  %v2602_v54 = vpop.f32.mrb[10].mxu0  ;;  %v7265_v23 = vld [vmem:[#allocation22_spill] sm:$0xff] }
 0x310   :  { %v3173_v12 = vsel %vm3142_vm3, %v3108_v40, %v3109_v52  ;;  %v3767_v17 = vsel %vm3736_vm4, %v3702_v2, %v3703_v15  ;;  %v3110_v45 = vrot.slane %v2097_v10, 2  ;;  %v2099_v56 = vpop.f32.mrb[11].mxu1  ;;  %v3704_v32 = vrot.slane %v2602_v54, 4  ;;  %v2604_v48 = vpop.f32.mrb[11].mxu0 }
 0x311   :  { %v4014_v27 = vmax.f32 %v6851_v28, %v6891_v29  ;;  %v3304_v21 = vadd.f32 %v3173_v12, %v7262_v14  ;;  %v3470_v49 = vsel %vm3439_vm5, %v3405_v19, %v3406_v61  ;;  %v3407_v22 = vrot.slane %v2099_v56, 3  ;;  %v7266_v14 = vld [vmem:[#allocation23_spill] sm:$0xff] }
 0x312   :  { %v3172_v26 = vsel %vm3142_vm3, %v3109_v52, %v3110_v45  ;;  %v3766_v31 = vsel %vm3736_vm4, %v3703_v15, %v3704_v32 }
 0x313   :  { %v3601_v62 = vadd.f32 %v3470_v49, %v3304_v21  ;;  %v3305_v53 = vadd.f32 %v3172_v26, %v7263_v42  ;;  %v3469_v33 = vsel %vm3439_vm5, %v3406_v61, %v3407_v22 }
 0x315   :  { %v6909_v47 = vadd.f32 %v3767_v17, %v3601_v62  ;;  %v3602_v28 = vadd.f32 %v3469_v33, %v3305_v53  ;;  %v2103_v57 = vpop.f32.mrb[12].mxu1  ;;  %v2607_v34 = vpop.f32.mrb[12].mxu0  ;;  %v7267_v62 = vld [vmem:[#allocation24_spill] sm:$0xff] }
 0x316   :  { %v3111_v9 = vrot.slane %v2103_v57, 2  ;;  %v3705_v38 = vrot.slane %v2607_v34, 4  ;;  %v2105_v35 = vpop.f32.mrb[13].mxu1  ;;  %v2609_v5 = vpop.f32.mrb[13].mxu0 }
 0x317   :  { %v4015_v18 = vmax.f32 %v6867_v50, %v6909_v47  ;;  %v6913_v59 = vadd.f32 %v3766_v31, %v3602_v28  ;;  %v3408_v43 = vrot.slane %v2105_v35, 3  ;;  %v2107_v3 = vpop.f32.mrb[14].mxu1  ;;  %v2610_v24 = vpop.f32.mrb[14].mxu0 }
 0x318   :  { %v3171_v51 = vsel %vm3142_vm3, %v3110_v45, %v3111_v9  ;;  %v3765_v25 = vsel %vm3736_vm4, %v3704_v32, %v3705_v38  ;;  %v3112_v11 = vrot.slane %v2107_v3, 2  ;;  %v2109_v13 = vpop.f32.mrb[15].mxu1  ;;  %v3706_v40 = vrot.slane %v2610_v24, 4  ;;  %v2612_v46 = vpop.f32.mrb[15].mxu0 }
 0x319   :  { %v4016_v2 = vmax.f32 %v6869_v20, %v6913_v59  ;;  %v3306_v50 = vadd.f32 %v3171_v51, %v7264_v55  ;;  %v3468_v16 = vsel %vm3439_vm5, %v3407_v22, %v3408_v43  ;;  %v3409_v58 = vrot.slane %v2109_v13, 3  ;;  %v7268_v46 = vld [vmem:[#allocation25_spill] sm:$0xff] }
 0x31a   :  { %v3170_v30 = vsel %vm3142_vm3, %v3111_v9, %v3112_v11  ;;  %v3764_v19 = vsel %vm3736_vm4, %v3705_v38, %v3706_v40 }
 0x31b   :  { %v3603_v8 = vadd.f32 %v3468_v16, %v3306_v50  ;;  %v3307_v63 = vadd.f32 %v3170_v30, %v7265_v23  ;;  %v3467_v4 = vsel %vm3439_vm5, %v3408_v43, %v3409_v58 }
 0x31d   :  { %v3900_v39 = vadd.f32 %v3765_v25, %v3603_v8  ;;  %v3604_v20 = vadd.f32 %v3467_v4, %v3307_v63  ;;  %v2113_v1 = vpop.f32.mrb[16].mxu1  ;;  %v2615_v0 = vpop.f32.mrb[16].mxu0 }
 0x31e   :  { %v3113_v6 = vrot.slane %v2113_v1, 2  ;;  %v3707_v44 = vrot.slane %v2615_v0, 4  ;;  %v2115_v52 = vpop.f32.mrb[17].mxu1  ;;  %v2617_v15 = vpop.f32.mrb[17].mxu0 }
 0x31f   :  { %v4017_v60 = vmax.f32 %v6889_v41, %v3900_v39  ;;  %v3901_v36 = vadd.f32 %v3764_v19, %v3604_v20  ;;  %v3410_v29 = vrot.slane %v2115_v52, 3  ;;  %v2117_v61 = vpop.f32.mrb[18].mxu1  ;;  %v2618_v10 = vpop.f32.mrb[18].mxu0 }
 0x320   :  { %v3169_v54 = vsel %vm3142_vm3, %v3112_v11, %v3113_v6  ;;  %v3763_v12 = vsel %vm3736_vm4, %v3706_v40, %v3707_v44  ;;  %v3114_v17 = vrot.slane %v2117_v61, 2  ;;  %v2119_v45 = vpop.f32.mrb[19].mxu1  ;;  %v3708_v56 = vrot.slane %v2618_v10, 4  ;;  %v2620_v32 = vpop.f32.mrb[19].mxu0  ;;  %v7269_v10 = vld [vmem:[#allocation26_spill] sm:$0xff] }
 0x321   :  { %v4018_v48 = vmax.f32 %v4014_v27, %v3901_v36  ;;  %v3308_v21 = vadd.f32 %v3169_v54, %v7266_v14  ;;  %v3466_v41 = vsel %vm3439_vm5, %v3409_v58, %v3410_v29  ;;  %v3411_v49 = vrot.slane %v2119_v45, 3 }
 0x322   :  { %v3168_v22 = vsel %vm3142_vm3, %v3113_v6, %v3114_v17  ;;  %v3762_v26 = vsel %vm3736_vm4, %v3707_v44, %v3708_v56 }
 0x323   :  { %v3605_v31 = vadd.f32 %v3466_v41, %v3308_v21  ;;  %v3309_v42 = vadd.f32 %v3168_v22, %v7267_v62  ;;  %v3465_v53 = vsel %vm3439_vm5, %v3410_v29, %v3411_v49 }
 0x325   :  { %v3902_v33 = vadd.f32 %v3763_v12, %v3605_v31  ;;  %v3606_v27 = vadd.f32 %v3465_v53, %v3309_v42  ;;  %v2123_v47 = vpop.f32.mrb[20].mxu1  ;;  %v2623_v28 = vpop.f32.mrb[20].mxu0 }
 0x326   :  { %v3115_v57 = vrot.slane %v2123_v47, 2  ;;  %v3709_v34 = vrot.slane %v2623_v28, 4  ;;  %v2125_v9 = vpop.f32.mrb[21].mxu1  ;;  %v2625_v38 = vpop.f32.mrb[21].mxu0 }
 0x327   :  { %v4019_v35 = vmax.f32 %v4015_v18, %v3902_v33  ;;  %v3903_v5 = vadd.f32 %v3762_v26, %v3606_v27  ;;  %v3412_v59 = vrot.slane %v2125_v9, 3  ;;  %v2127_v43 = vpop.f32.mrb[22].mxu1  ;;  %v2626_v3 = vpop.f32.mrb[22].mxu0 }
 0x328   :  { %v3167_v24 = vsel %vm3142_vm3, %v3114_v17, %v3115_v57  ;;  %v3761_v51 = vsel %vm3736_vm4, %v3708_v56, %v3709_v34  ;;  %v2128_v25 = vpop.f32.mrb[23].mxu1  ;;  %v2627_v11 = vpop.f32.mrb[23].mxu0  ;;  %v7270_v57 = vld [vmem:[#allocation27_spill] sm:$0xff]  ;;  %v7271_v3 = vld [vmem:[#allocation28_spill] sm:$0xff] }
 0x329   :  { %v4022_v13 = vmax.f32 %v4018_v48, %v4019_v35  ;;  %v4020_v40 = vmax.f32 %v4016_v2, %v3903_v5  ;;  %v3310_v55 = vadd.f32 %v3167_v24, %v7268_v46  ;;  %v3464_v50 = vsel %vm3439_vm5, %v3411_v49, %v3412_v59 }
 0x32b   :  { %v3607_v18 = vadd.f32 %v3464_v50, %v3310_v55 }
 0x32d   :  { %v3904_v16 = vadd.f32 %v3761_v51, %v3607_v18  ;;  %v2131_v58 = vpop.f32.mrb[24].mxu1  ;;  %v2630_v30 = vpop.f32.mrb[24].mxu0 }
 0x32e   :  { %v2133_v19 = vpop.f32.mrb[25].mxu1  ;;  %v3710_v8 = vrot.slane %v2630_v30, 4  ;;  %v2632_v23 = vpop.f32.mrb[25].mxu0  ;;  %v3116_v20 = vrot.slane %v2131_v58, 2 }
 0x32f   :  { %v4021_v63 = vmax.f32 %v4017_v60, %v3904_v16  ;;  %v2135_v4 = vpop.f32.mrb[26].mxu1  ;;  %v2633_v39 = vpop.f32.mrb[26].mxu0  ;;  %v3413_v52 = vrot.slane %v2133_v19, 3 }
 0x330   :  { %v3117_v1 = vrot.slane %v2135_v4, 2  ;;  %v2137_v0 = vpop.f32.mrb[27].mxu1  ;;  %v3711_v6 = vrot.slane %v2633_v39, 4  ;;  %v2635_v2 = vpop.f32.mrb[27].mxu0 }
 0x331   :  { %v4023_v44 = vmax.f32 %v4020_v40, %v4021_v63  ;;  %v3414_v15 = vrot.slane %v2137_v0, 3  ;;  %v7272_v2 = vld [vmem:[#allocation29_spill] sm:$0xff] }
 0x332   :  { %v3166_v36 = vsel %vm3142_vm3, %v3116_v20, %v3117_v1  ;;  %v3760_v29 = vsel %vm3736_vm4, %v3710_v8, %v3711_v6 }
 0x333   :  { %v4024_v61 = vmax.f32 %v4022_v13, %v4023_v44  ;;  %v3311_v54 = vadd.f32 %v3166_v36, %v7269_v10  ;;  %v3463_v60 = vsel %vm3439_vm5, %v3413_v52, %v3414_v15  ;;  %v7273_v10 = vld [vmem:[#allocation30_spill] sm:$0xff] }
 0x335   :  { %v4025_v12 = vrot.slane %v4024_v61, 4  ;;  %v3608_v17 = vadd.f32 %v3463_v60, %v3311_v54  ;;  %v2141_v45 = vpop.f32.mrb[28].mxu1  ;;  %v2638_v56 = vpop.f32.mrb[28].mxu0 }
 0x336   :  { %v3118_v32 = vrot.slane %v2141_v45, 2  ;;  %v3712_v48 = vrot.slane %v2638_v56, 4  ;;  %v2143_v14 = vpop.f32.mrb[29].mxu1  ;;  %v2640_v21 = vpop.f32.mrb[29].mxu0 }
 0x337   :  { %v4026_v41 = vmax.f32 %v4024_v61, %v4025_v12  ;;  %v6960_v49 = vadd.f32 %v3760_v29, %v3608_v17  ;;  %v3415_v22 = vrot.slane %v2143_v14, 3  ;;  %v2145_v26 = vpop.f32.mrb[30].mxu1  ;;  %v2641_v31 = vpop.f32.mrb[30].mxu0 }
 0x338   :  { %v3165_v62 = vsel %vm3142_vm3, %v3117_v1, %v3118_v32  ;;  %v3759_v42 = vsel %vm3736_vm4, %v3711_v6, %v3712_v48  ;;  %v3119_v53 = vrot.slane %v2145_v26, 2  ;;  %v2147_v33 = vpop.f32.mrb[31].mxu1  ;;  %v3713_v27 = vrot.slane %v2641_v31, 4  ;;  %v2643_v47 = vpop.f32.mrb[31].mxu0 }
 0x339   :  { %v4027_v28 = vrot.slane %v4026_v41, 2  ;;  %v3312_v34 = vadd.f32 %v3165_v62, %v7270_v57  ;;  %v3462_v9 = vsel %vm3439_vm5, %v3414_v15, %v3415_v22  ;;  %v3416_v38 = vrot.slane %v2147_v33, 3 }
 0x33a   :  { %v3164_v35 = vsel %vm3142_vm3, %v3118_v32, %v3119_v53  ;;  %v3758_v5 = vsel %vm3736_vm4, %v3712_v48, %v3713_v27 }
 0x33b   :  { %v4028_v59 = vmax.f32 %v4026_v41, %v4027_v28  ;;  %v3609_v43 = vadd.f32 %v3462_v9, %v3312_v34  ;;  %v3313_v24 = vadd.f32 %v3164_v35, %v7271_v3  ;;  %v3461_v51 = vsel %vm3439_vm5, %v3415_v22, %v3416_v38  ;;  %v7274_v28 = vld [vmem:[#allocation31_spill] sm:$0xff] }
 0x33d   :  { %v4029_v25 = vrot.slane %v4028_v59, 1  ;;  %v6976_v11 = vadd.f32 %v3759_v42, %v3609_v43  ;;  %v3610_v13 = vadd.f32 %v3461_v51, %v3313_v24  ;;  %v2151_v40 = vpop.f32.mrb[32].mxu1  ;;  %v2646_v46 = vpop.f32.mrb[32].mxu0 }
 0x33e   :  { %v3120_v55 = vrot.slane %v2151_v40, 2  ;;  %v3714_v50 = vrot.slane %v2646_v46, 4  ;;  %v2153_v18 = vpop.f32.mrb[33].mxu1  ;;  %v2648_v16 = vpop.f32.mrb[33].mxu0 }
 0x33f   :  { %v4030_v58 = vmax.f32 %v4028_v59, %v4029_v25  ;;  %v6978_v30 = vadd.f32 %v3758_v5, %v3610_v13  ;;  %v3417_v19 = vrot.slane %v2153_v18, 3  ;;  %v2155_v8 = vpop.f32.mrb[34].mxu1  ;;  %v2649_v23 = vpop.f32.mrb[34].mxu0  ;;  %v7275_v59 = vld [vmem:[#allocation32_spill] sm:$0xff] }
 0x340   :  { %v3163_v63 = vsel %vm3142_vm3, %v3119_v53, %v3120_v55  ;;  %v3757_v4 = vsel %vm3736_vm4, %v3713_v27, %v3714_v50  ;;  %v3121_v39 = vrot.slane %v2155_v8, 2  ;;  %v2157_v20 = vpop.f32.mrb[35].mxu1  ;;  %v3715_v1 = vrot.slane %v2649_v23, 4  ;;  %v2651_v0 = vpop.f32.mrb[35].mxu0 }
 0x341   :  { %v6986_v6 = vsel %vm4072_vm9, %v6877_v7, %v4030_v58  ;;  %v3314_v44 = vadd.f32 %v3163_v63, %v7272_v2  ;;  %v3460_v52 = vsel %vm3439_vm5, %v3416_v38, %v3417_v19  ;;  %v3418_v15 = vrot.slane %v2157_v20, 3  ;;  %v7276_v0 = vld [vmem:[#allocation33_spill] sm:$0xff] }
 0x342   :  { %v3162_v36 = vsel %vm3142_vm3, %v3120_v55, %v3121_v39  ;;  %v3756_v29 = vsel %vm3736_vm4, %v3714_v50, %v3715_v1 }
 0x343   :  { %v3611_v61 = vadd.f32 %v3460_v52, %v3314_v44  ;;  %v3315_v54 = vadd.f32 %v3162_v36, %v7273_v10  ;;  %v3459_v60 = vsel %vm3439_vm5, %v3417_v19, %v3418_v15 }
 0x345   :  { %v6998_v7 = vadd.f32 %v3757_v4, %v3611_v61  ;;  %v3612_v12 = vadd.f32 %v3459_v60, %v3315_v54  ;;  %v2161_v17 = vpop.f32.mrb[36].mxu1  ;;  %v2654_v45 = vpop.f32.mrb[36].mxu0 }
 0x346   :  { %v3122_v56 = vrot.slane %v2161_v17, 2  ;;  %v3716_v32 = vrot.slane %v2654_v45, 4  ;;  %v2163_v48 = vpop.f32.mrb[37].mxu1  ;;  %v2656_v14 = vpop.f32.mrb[37].mxu0 }
 0x347   :  { %v7000_v21 = vadd.f32 %v3756_v29, %v3612_v12  ;;  %v3419_v41 = vrot.slane %v2163_v48, 3  ;;  %v2165_v22 = vpop.f32.mrb[38].mxu1  ;;  %v2657_v26 = vpop.f32.mrb[38].mxu0  ;;  %v7277_v29 = vld [vmem:[#allocation34_spill] sm:$0xff] }
 0x348   :  { %v3161_v31 = vsel %vm3142_vm3, %v3121_v39, %v3122_v56  ;;  %v3755_v62 = vsel %vm3736_vm4, %v3715_v1, %v3716_v32  ;;  %v3123_v42 = vrot.slane %v2165_v22, 2  ;;  %v2167_v53 = vpop.f32.mrb[39].mxu1  ;;  %v3717_v33 = vrot.slane %v2657_v26, 4  ;;  %v2659_v27 = vpop.f32.mrb[39].mxu0 }
 0x349   :  { %v4031_v47 = vmax.f32 %v6960_v49, %v7000_v21  ;;  %v3316_v57 = vadd.f32 %v3161_v31, %v7274_v28  ;;  %v3458_v34 = vsel %vm3439_vm5, %v3418_v15, %v3419_v41  ;;  %v3420_v9 = vrot.slane %v2167_v53, 3  ;;  %v7278_v28 = vld [vmem:[#allocation35_spill] sm:$0xff] }
 0x34a   :  { %v3160_v38 = vsel %vm3142_vm3, %v3122_v56, %v3123_v42  ;;  %v3754_v35 = vsel %vm3736_vm4, %v3716_v32, %v3717_v33 }
 0x34b   :  { %v3613_v5 = vadd.f32 %v3458_v34, %v3316_v57  ;;  %v3317_v43 = vadd.f32 %v3160_v38, %v7275_v59  ;;  %v3457_v3 = vsel %vm3439_vm5, %v3419_v41, %v3420_v9 }
 0x34d   :  { %v7018_v24 = vadd.f32 %v3755_v62, %v3613_v5  ;;  %v3614_v49 = vadd.f32 %v3457_v3, %v3317_v43  ;;  %v2171_v51 = vpop.f32.mrb[40].mxu1  ;;  %v2662_v25 = vpop.f32.mrb[40].mxu0  ;;  %v7279_v5 = vld [vmem:[#allocation36_spill] sm:$0xff] }
 0x34e   :  { %v3124_v13 = vrot.slane %v2171_v51, 2  ;;  %v3718_v40 = vrot.slane %v2662_v25, 4  ;;  %v2173_v46 = vpop.f32.mrb[41].mxu1  ;;  %v2664_v55 = vpop.f32.mrb[41].mxu0 }
 0x34f   :  { %v4032_v50 = vmax.f32 %v6976_v11, %v7018_v24  ;;  %v7022_v18 = vadd.f32 %v3754_v35, %v3614_v49  ;;  %v3421_v16 = vrot.slane %v2173_v46, 3  ;;  %v2175_v58 = vpop.f32.mrb[42].mxu1  ;;  %v2665_v19 = vpop.f32.mrb[42].mxu0 }
 0x350   :  { %v3159_v8 = vsel %vm3142_vm3, %v3123_v42, %v3124_v13  ;;  %v3753_v23 = vsel %vm3736_vm4, %v3717_v33, %v3718_v40  ;;  %v3125_v63 = vrot.slane %v2175_v58, 2  ;;  %v2177_v4 = vpop.f32.mrb[43].mxu1  ;;  %v3719_v39 = vrot.slane %v2665_v19, 4  ;;  %v2667_v20 = vpop.f32.mrb[43].mxu0 }
 0x351   :  { %v4033_v1 = vmax.f32 %v6978_v30, %v7022_v18  ;;  %v3318_v11 = vadd.f32 %v3159_v8, %v7276_v0  ;;  %v3456_v2 = vsel %vm3439_vm5, %v3420_v9, %v3421_v16  ;;  %v3422_v44 = vrot.slane %v2177_v4, 3  ;;  %v7280_v20 = vld [vmem:[#allocation37_spill] sm:$0xff] }
 0x352   :  { %v3158_v52 = vsel %vm3142_vm3, %v3124_v13, %v3125_v63  ;;  %v3752_v15 = vsel %vm3736_vm4, %v3718_v40, %v3719_v39 }
 0x353   :  { %v3615_v36 = vadd.f32 %v3456_v2, %v3318_v11  ;;  %v3319_v61 = vadd.f32 %v3158_v52, %v7277_v29  ;;  %v3455_v10 = vsel %vm3439_vm5, %v3421_v16, %v3422_v44 }
 0x355   :  { %v3912_v54 = vadd.f32 %v3753_v23, %v3615_v36  ;;  %v3616_v30 = vadd.f32 %v3455_v10, %v3319_v61  ;;  %v2181_v60 = vpop.f32.mrb[44].mxu1  ;;  %v2670_v12 = vpop.f32.mrb[44].mxu0 }
 0x356   :  { %v3126_v17 = vrot.slane %v2181_v60, 2  ;;  %v3720_v45 = vrot.slane %v2670_v12, 4  ;;  %v2183_v56 = vpop.f32.mrb[45].mxu1  ;;  %v2672_v32 = vpop.f32.mrb[45].mxu0 }
 0x357   :  { %v4034_v48 = vmax.f32 %v6998_v7, %v3912_v54  ;;  %v3913_v14 = vadd.f32 %v3752_v15, %v3616_v30  ;;  %v3423_v21 = vrot.slane %v2183_v56, 3  ;;  %v2185_v41 = vpop.f32.mrb[46].mxu1  ;;  %v2673_v22 = vpop.f32.mrb[46].mxu0 }
 0x358   :  { %v3157_v26 = vsel %vm3142_vm3, %v3125_v63, %v3126_v17  ;;  %v3751_v31 = vsel %vm3736_vm4, %v3719_v39, %v3720_v45  ;;  %v3127_v62 = vrot.slane %v2185_v41, 2  ;;  %v2187_v42 = vpop.f32.mrb[47].mxu1  ;;  %v3721_v53 = vrot.slane %v2673_v22, 4  ;;  %v2675_v33 = vpop.f32.mrb[47].mxu0  ;;  %v7281_v22 = vld [vmem:[#allocation38_spill] sm:$0xff] }
 0x359   :  { %v4035_v27 = vmax.f32 %v4031_v47, %v3913_v14  ;;  %v3320_v57 = vadd.f32 %v3157_v26, %v7278_v28  ;;  %v3454_v7 = vsel %vm3439_vm5, %v3422_v44, %v3423_v21  ;;  %v3424_v34 = vrot.slane %v2187_v42, 3 }
 0x35a   :  { %v3156_v9 = vsel %vm3142_vm3, %v3126_v17, %v3127_v62  ;;  %v3750_v38 = vsel %vm3736_vm4, %v3720_v45, %v3721_v53 }
 0x35b   :  { %v3617_v35 = vadd.f32 %v3454_v7, %v3320_v57  ;;  %v3321_v59 = vadd.f32 %v3156_v9, %v7279_v5  ;;  %v3453_v43 = vsel %vm3439_vm5, %v3423_v21, %v3424_v34 }
 0x35d   :  { %v3914_v3 = vadd.f32 %v3751_v31, %v3617_v35  ;;  %v3618_v47 = vadd.f32 %v3453_v43, %v3321_v59  ;;  %v2191_v24 = vpop.f32.mrb[48].mxu1  ;;  %v2678_v49 = vpop.f32.mrb[48].mxu0 }
 0x35e   :  { %v3128_v51 = vrot.slane %v2191_v24, 2  ;;  %v3722_v25 = vrot.slane %v2678_v49, 4  ;;  %v2193_v13 = vpop.f32.mrb[49].mxu1  ;;  %v2680_v40 = vpop.f32.mrb[49].mxu0 }
 0x35f   :  { %v4036_v46 = vmax.f32 %v4032_v50, %v3914_v3  ;;  %v3915_v55 = vadd.f32 %v3750_v38, %v3618_v47  ;;  %v3425_v18 = vrot.slane %v2193_v13, 3  ;;  %v2195_v16 = vpop.f32.mrb[50].mxu1  ;;  %v2681_v58 = vpop.f32.mrb[50].mxu0 }
 0x360   :  { %v3155_v19 = vsel %vm3142_vm3, %v3127_v62, %v3128_v51  ;;  %v3749_v8 = vsel %vm3736_vm4, %v3721_v53, %v3722_v25  ;;  %v2196_v23 = vpop.f32.mrb[51].mxu1  ;;  %v2682_v63 = vpop.f32.mrb[51].mxu0  ;;  %v7282_v51 = vld [vmem:[#allocation39_spill] sm:$0xff]  ;;  %v7283_v58 = vld [vmem:[#allocation40_spill] sm:$0xff] }
 0x361   :  { %v4039_v4 = vmax.f32 %v4035_v27, %v4036_v46  ;;  %v4037_v39 = vmax.f32 %v4033_v1, %v3915_v55  ;;  %v3322_v0 = vadd.f32 %v3155_v19, %v7280_v20  ;;  %v3452_v11 = vsel %vm3439_vm5, %v3424_v34, %v3425_v18 }
 0x363   :  { %v3619_v50 = vadd.f32 %v3452_v11, %v3322_v0 }
 0x365   :  { %v3916_v2 = vadd.f32 %v3749_v8, %v3619_v50  ;;  %v2199_v44 = vpop.f32.mrb[52].mxu1  ;;  %v2685_v52 = vpop.f32.mrb[52].mxu0 }
 0x366   :  { %v2201_v15 = vpop.f32.mrb[53].mxu1  ;;  %v3723_v36 = vrot.slane %v2685_v52, 4  ;;  %v2687_v29 = vpop.f32.mrb[53].mxu0  ;;  %v3129_v30 = vrot.slane %v2199_v44, 2 }
 0x367   :  { %v4038_v61 = vmax.f32 %v4034_v48, %v3916_v2  ;;  %v2203_v10 = vpop.f32.mrb[54].mxu1  ;;  %v2688_v54 = vpop.f32.mrb[54].mxu0  ;;  %v3426_v56 = vrot.slane %v2201_v15, 3 }
 0x368   :  { %v3130_v60 = vrot.slane %v2203_v10, 2  ;;  %v2205_v12 = vpop.f32.mrb[55].mxu1  ;;  %v3724_v17 = vrot.slane %v2688_v54, 4  ;;  %v2690_v1 = vpop.f32.mrb[55].mxu0 }
 0x369   :  { %v4040_v45 = vmax.f32 %v4037_v39, %v4038_v61  ;;  %v3427_v32 = vrot.slane %v2205_v12, 3  ;;  %v7284_v1 = vld [vmem:[#allocation41_spill] sm:$0xff] }
 0x36a   :  { %v3154_v14 = vsel %vm3142_vm3, %v3129_v30, %v3130_v60  ;;  %v3748_v21 = vsel %vm3736_vm4, %v3723_v36, %v3724_v17 }
 0x36b   :  { %v4041_v41 = vmax.f32 %v4039_v4, %v4040_v45  ;;  %v3323_v26 = vadd.f32 %v3154_v14, %v7281_v22  ;;  %v3451_v48 = vsel %vm3439_vm5, %v3426_v56, %v3427_v32  ;;  %v7285_v22 = vld [vmem:[#allocation42_spill] sm:$0xff] }
 0x36d   :  { %v4042_v31 = vrot.slane %v4041_v41, 4  ;;  %v3620_v62 = vadd.f32 %v3451_v48, %v3323_v26  ;;  %v2209_v42 = vpop.f32.mrb[56].mxu1  ;;  %v2693_v53 = vpop.f32.mrb[56].mxu0 }
 0x36e   :  { %v3131_v33 = vrot.slane %v2209_v42, 2  ;;  %v3725_v27 = vrot.slane %v2693_v53, 4  ;;  %v2211_v28 = vpop.f32.mrb[57].mxu1  ;;  %v2695_v57 = vpop.f32.mrb[57].mxu0 }
 0x36f   :  { %v4043_v7 = vmax.f32 %v4041_v41, %v4042_v31  ;;  %v7069_v34 = vadd.f32 %v3748_v21, %v3620_v62  ;;  %v3428_v9 = vrot.slane %v2211_v28, 3  ;;  %v2213_v38 = vpop.f32.mrb[58].mxu1  ;;  %v2696_v35 = vpop.f32.mrb[58].mxu0 }
 0x370   :  { %v3153_v5 = vsel %vm3142_vm3, %v3130_v60, %v3131_v33  ;;  %v3747_v59 = vsel %vm3736_vm4, %v3724_v17, %v3725_v27  ;;  %v3132_v43 = vrot.slane %v2213_v38, 2  ;;  %v2215_v3 = vpop.f32.mrb[59].mxu1  ;;  %v3726_v47 = vrot.slane %v2696_v35, 4  ;;  %v2698_v24 = vpop.f32.mrb[59].mxu0 }
 0x371   :  { %v4044_v49 = vrot.slane %v4043_v7, 2  ;;  %v3324_v25 = vadd.f32 %v3153_v5, %v7282_v51  ;;  %v3450_v13 = vsel %vm3439_vm5, %v3427_v32, %v3428_v9  ;;  %v3429_v40 = vrot.slane %v2215_v3, 3 }
 0x372   :  { %v3152_v46 = vsel %vm3142_vm3, %v3131_v33, %v3132_v43  ;;  %v3746_v55 = vsel %vm3736_vm4, %v3725_v27, %v3726_v47 }
 0x373   :  { %v4045_v18 = vmax.f32 %v4043_v7, %v4044_v49  ;;  %v3621_v16 = vadd.f32 %v3450_v13, %v3324_v25  ;;  %v3325_v19 = vadd.f32 %v3152_v46, %v7283_v58  ;;  %v3449_v8 = vsel %vm3439_vm5, %v3428_v9, %v3429_v40  ;;  %v7286_v49 = vld [vmem:[#allocation44_spill] sm:$0xff] }
 0x375   :  { %v4046_v23 = vrot.slane %v4045_v18, 1  ;;  %v7085_v63 = vadd.f32 %v3747_v59, %v3621_v16  ;;  %v3622_v4 = vadd.f32 %v3449_v8, %v3325_v19  ;;  %v2219_v39 = vpop.f32.mrb[60].mxu1  ;;  %v2701_v20 = vpop.f32.mrb[60].mxu0 }
 0x376   :  { %v3133_v0 = vrot.slane %v2219_v39, 2  ;;  %v3727_v11 = vrot.slane %v2701_v20, 4  ;;  %v2221_v50 = vpop.f32.mrb[61].mxu1  ;;  %v2703_v2 = vpop.f32.mrb[61].mxu0 }
 0x377   :  { %v4047_v44 = vmax.f32 %v4045_v18, %v4046_v23  ;;  %v7087_v52 = vadd.f32 %v3746_v55, %v3622_v4  ;;  %v3430_v15 = vrot.slane %v2221_v50, 3  ;;  %v2223_v36 = vpop.f32.mrb[62].mxu1  ;;  %v2704_v29 = vpop.f32.mrb[62].mxu0  ;;  %v7287_v18 = vld [vmem:[#allocation46_spill] sm:$0xff] }
 0x378   :  { %v3151_v61 = vsel %vm3142_vm3, %v3132_v43, %v3133_v0  ;;  %v3745_v10 = vsel %vm3736_vm4, %v3726_v47, %v3727_v11  ;;  %v3134_v54 = vrot.slane %v2223_v36, 2  ;;  %v2225_v30 = vpop.f32.mrb[63].mxu1  ;;  %v3728_v60 = vrot.slane %v2704_v29, 4  ;;  %v2706_v12 = vpop.f32.mrb[63].mxu0 }
 0x379   :  { %v7095_v17 = vsel %vm4074_vm10, %v6986_v6, %v4047_v44  ;;  %v3326_v45 = vadd.f32 %v3151_v61, %v7284_v1  ;;  %v3448_v56 = vsel %vm3439_vm5, %v3429_v40, %v3430_v15  ;;  %v3431_v32 = vrot.slane %v2225_v30, 3  ;;  %v7288_v12 = vld [vmem:[#allocation48_spill] sm:$0xff] }
 0x37a   :  { %v3150_v14 = vsel %vm3142_vm3, %v3133_v0, %v3134_v54  ;;  %v3744_v21 = vsel %vm3736_vm4, %v3727_v11, %v3728_v60 }
 0x37b   :  { %v3623_v41 = vadd.f32 %v3448_v56, %v3326_v45  ;;  %v3327_v26 = vadd.f32 %v3150_v14, %v7285_v22  ;;  %v3447_v48 = vsel %vm3439_vm5, %v3430_v15, %v3431_v32 }
 0x37d   :  { %v7107_v6 = vadd.f32 %v3745_v10, %v3623_v41  ;;  %v3624_v31 = vadd.f32 %v3447_v48, %v3327_v26  ;;  %v2229_v62 = vpop.f32.mrb[64].mxu1  ;;  %v2709_v42 = vpop.f32.mrb[64].mxu0 }
 0x37e   :  { %v3135_v53 = vrot.slane %v2229_v62, 2  ;;  %v3729_v33 = vrot.slane %v2709_v42, 4  ;;  %v2231_v27 = vpop.f32.mrb[65].mxu1  ;;  %v2711_v28 = vpop.f32.mrb[65].mxu0 }
 0x37f   :  { %v7109_v57 = vadd.f32 %v3744_v21, %v3624_v31  ;;  %v3432_v7 = vrot.slane %v2231_v27, 3  ;;  %v2233_v9 = vpop.f32.mrb[66].mxu1  ;;  %v2712_v38 = vpop.f32.mrb[66].mxu0  ;;  %v7289_v21 = vld [vmem:[#allocation50_spill] sm:$0xff] }
 0x380   :  { %v3149_v35 = vsel %vm3142_vm3, %v3134_v54, %v3135_v53  ;;  %v3743_v5 = vsel %vm3736_vm4, %v3728_v60, %v3729_v33  ;;  %v3136_v59 = vrot.slane %v2233_v9, 2  ;;  %v2235_v43 = vpop.f32.mrb[67].mxu1  ;;  %v3730_v3 = vrot.slane %v2712_v38, 4  ;;  %v2714_v47 = vpop.f32.mrb[67].mxu0 }
 0x381   :  { %v4048_v24 = vmax.f32 %v7069_v34, %v7109_v57  ;;  %v3328_v51 = vadd.f32 %v3149_v35, %v7286_v49  ;;  %v3446_v25 = vsel %vm3439_vm5, %v3431_v32, %v3432_v7  ;;  %v3433_v13 = vrot.slane %v2235_v43, 3  ;;  %v7290_v49 = vld [vmem:[#allocation52_spill] sm:$0xff] }
 0x382   :  { %v3148_v40 = vsel %vm3142_vm3, %v3135_v53, %v3136_v59  ;;  %v3742_v46 = vsel %vm3736_vm4, %v3729_v33, %v3730_v3 }
 0x383   :  { %v3625_v55 = vadd.f32 %v3446_v25, %v3328_v51  ;;  %v3329_v16 = vadd.f32 %v3148_v40, %v7287_v18  ;;  %v3445_v58 = vsel %vm3439_vm5, %v3432_v7, %v3433_v13 }
 0x385   :  { %v7127_v19 = vadd.f32 %v3743_v5, %v3625_v55  ;;  %v3626_v34 = vadd.f32 %v3445_v58, %v3329_v16  ;;  %v2239_v8 = vpop.f32.mrb[68].mxu1  ;;  %v2717_v23 = vpop.f32.mrb[68].mxu0  ;;  %v7291_v55 = vld [vmem:[#allocation53_spill] sm:$0xff] }
 0x386   :  { %v3137_v4 = vrot.slane %v2239_v8, 2  ;;  %v3731_v39 = vrot.slane %v2717_v23, 4  ;;  %v2241_v20 = vpop.f32.mrb[69].mxu1  ;;  %v2719_v0 = vpop.f32.mrb[69].mxu0 }
 0x387   :  { %v4049_v11 = vmax.f32 %v7085_v63, %v7127_v19  ;;  %v7131_v50 = vadd.f32 %v3742_v46, %v3626_v34  ;;  %v3434_v2 = vrot.slane %v2241_v20, 3  ;;  %v2243_v44 = vpop.f32.mrb[70].mxu1  ;;  %v2720_v15 = vpop.f32.mrb[70].mxu0 }
 0x388   :  { %v3147_v36 = vsel %vm3142_vm3, %v3136_v59, %v3137_v4  ;;  %v3741_v29 = vsel %vm3736_vm4, %v3730_v3, %v3731_v39  ;;  %v3138_v61 = vrot.slane %v2243_v44, 2  ;;  %v2245_v10 = vpop.f32.mrb[71].mxu1  ;;  %v3732_v54 = vrot.slane %v2720_v15, 4  ;;  %v2722_v30 = vpop.f32.mrb[71].mxu0 }
 0x389   :  { %v4050_v60 = vmax.f32 %v7087_v52, %v7131_v50  ;;  %v3330_v63 = vadd.f32 %v3147_v36, %v7288_v12  ;;  %v3444_v1 = vsel %vm3439_vm5, %v3433_v13, %v3434_v2  ;;  %v3435_v45 = vrot.slane %v2245_v10, 3  ;;  %v7292_v30 = vld [vmem:[#allocation55_spill] sm:$0xff] }
 0x38a   :  { %v3146_v56 = vsel %vm3142_vm3, %v3137_v4, %v3138_v61  ;;  %v3740_v32 = vsel %vm3736_vm4, %v3731_v39, %v3732_v54 }
 0x38b   :  { %v3627_v14 = vadd.f32 %v3444_v1, %v3330_v63  ;;  %v3331_v41 = vadd.f32 %v3146_v56, %v7289_v21  ;;  %v3443_v22 = vsel %vm3439_vm5, %v3434_v2, %v3435_v45 }
 0x38d   :  { %v3924_v26 = vadd.f32 %v3741_v29, %v3627_v14  ;;  %v3628_v52 = vadd.f32 %v3443_v22, %v3331_v41  ;;  %v2249_v48 = vpop.f32.mrb[72].mxu1  ;;  %v2725_v31 = vpop.f32.mrb[72].mxu0 }
 0x38e   :  { %v3139_v62 = vrot.slane %v2249_v48, 2  ;;  %v3733_v42 = vrot.slane %v2725_v31, 4  ;;  %v2251_v53 = vpop.f32.mrb[73].mxu1  ;;  %v2727_v33 = vpop.f32.mrb[73].mxu0 }
 0x38f   :  { %v4051_v27 = vmax.f32 %v7107_v6, %v3924_v26  ;;  %v3925_v28 = vadd.f32 %v3740_v32, %v3628_v52  ;;  %v3436_v57 = vrot.slane %v2251_v53, 3  ;;  %v2253_v7 = vpop.f32.mrb[74].mxu1  ;;  %v2728_v9 = vpop.f32.mrb[74].mxu0 }
 0x390   :  { %v3145_v38 = vsel %vm3142_vm3, %v3138_v61, %v3139_v62  ;;  %v3739_v35 = vsel %vm3736_vm4, %v3732_v54, %v3733_v42  ;;  %v3140_v5 = vrot.slane %v2253_v7, 2  ;;  %v2255_v59 = vpop.f32.mrb[75].mxu1  ;;  %v3734_v43 = vrot.slane %v2728_v9, 4  ;;  %v2730_v3 = vpop.f32.mrb[75].mxu0 }
 0x391   :  { %v4052_v47 = vmax.f32 %v4048_v24, %v3925_v28  ;;  %v3332_v51 = vadd.f32 %v3145_v38, %v7290_v49  ;;  %v3442_v6 = vsel %vm3439_vm5, %v3435_v45, %v3436_v57  ;;  %v3437_v25 = vrot.slane %v2255_v59, 3 }
 0x392   :  { %v3144_v13 = vsel %vm3142_vm3, %v3139_v62, %v3140_v5  ;;  %v3738_v40 = vsel %vm3736_vm4, %v3733_v42, %v3734_v43 }
 0x393   :  { %v3629_v46 = vadd.f32 %v3442_v6, %v3332_v51  ;;  %v3333_v18 = vadd.f32 %v3144_v13, %v7291_v55  ;;  %v3441_v16 = vsel %vm3439_vm5, %v3436_v57, %v3437_v25 }
 0x395   :  { %v3926_v58 = vadd.f32 %v3739_v35, %v3629_v46  ;;  %v3630_v24 = vadd.f32 %v3441_v16, %v3333_v18  ;;  %v2259_v19 = vpop.f32.mrb[76].mxu1  ;;  %v2733_v34 = vpop.f32.mrb[76].mxu0 }
 0x396   :  { %v3141_v8 = vrot.slane %v2259_v19, 2  ;;  %v3735_v23 = vrot.slane %v2733_v34, 4  ;;  %v2261_v4 = vpop.f32.mrb[77].mxu1  ;;  %v2735_v39 = vpop.f32.mrb[77].mxu0 }
 0x397   :  { %v4053_v20 = vmax.f32 %v4049_v11, %v3926_v58  ;;  %v3927_v0 = vadd.f32 %v3738_v40, %v3630_v24  ;;  %v3438_v50 = vrot.slane %v2261_v4, 3  ;;  %v2263_v2 = vpop.f32.mrb[78].mxu1  ;;  %v2736_v44 = vpop.f32.mrb[78].mxu0 }
 0x398   :  { %v3143_v15 = vsel %vm3142_vm3, %v3140_v5, %v3141_v8  ;;  %v3737_v36 = vsel %vm3736_vm4, %v3734_v43, %v3735_v23  ;;  %v2264_v29 = vpop.f32.mrb[79].mxu1  ;;  %v2737_v61 = vpop.f32.mrb[79].mxu0 }
 0x399   :  { %v4056_v10 = vmax.f32 %v4052_v47, %v4053_v20  ;;  %v4054_v54 = vmax.f32 %v4050_v60, %v3927_v0  ;;  %v3334_v12 = vadd.f32 %v3143_v15, %v7292_v30  ;;  %v3440_v63 = vsel %vm3439_vm5, %v3437_v25, %v3438_v50  ;;  %v4423_v60 = vld [vmem:[%s7180_s2] ss:$0 sm:$0xff] }
 0x39b   :  { %v3631_v11 = vadd.f32 %v3440_v63, %v3334_v12 }
 0x39d   :  { %v3928_v1 = vadd.f32 %v3737_v36, %v3631_v11 }
 0x39f   :  { %v4055_v45 = vmax.f32 %v4051_v27, %v3928_v1 }
 0x3a1   :  { %v4057_v56 = vmax.f32 %v4054_v54, %v4055_v45 }
 0x3a3   :  { %v4058_v32 = vmax.f32 %v4056_v10, %v4057_v56 }
 0x3a5   :  { %v4059_v14 = vrot.slane %v4058_v32, 4 }
 0x3a7   :  { %v4060_v21 = vmax.f32 %v4058_v32, %v4059_v14 }
 0x3a9   :  { %v4061_v41 = vrot.slane %v4060_v21, 2 }
 0x3ab   :  { %v4062_v22 = vmax.f32 %v4060_v21, %v4061_v41 }
 0x3ad   :  { %v4063_v26 = vrot.slane %v4062_v22, 1 }
 0x3af   :  { %v4064_v52 = vmax.f32 %v4062_v22, %v4063_v26 }
 0x3b1   :  { %v4077_v48 = vsel %vm4076_vm11, %v7095_v17, %v4064_v52 }
 0x3b2   :  { %v4085_v37 = vadd.f32 %v4423_v60, %v4077_v48 }
 0x3b4   :  { %4086 = vst [vmem:[%s7181_s3] sm:$0xff] %v4085_v37 }

// kernel: forward.5
= control target key start
LH: loop header
LB: loop body
LE: loop exit
PB: predicated region body
PF: predicated region fallthrough
CT: control target
= control target key end

     0   :  { %v2086_v3 = vmov 0.0|0.0   ;;  %vm2087_vm0 = vmmov 0   ;;  %v2088_v8 = vmov 0.0   ;;  %vm99_vm1 = vcmask 1043456   ;;  %s2093_s26 = smov 96   ;;  %s2715_s2 = inlined_call_operand.vmem [shape: f32[300,64], index: 2, kind: input, shape index: {}]   ;;  %s2716_s0 = inlined_call_operand.vmem [shape: f32[8,300], index: 0, kind: input, shape index: {}]   ;;  %s2717_s4 = inlined_call_operand.vmem [shape: f32[64,256], index: 4, kind: input, shape index: {}]   ;;  %s2718_s6 = inlined_call_operand.vmem [shape: f32[32,128], index: 6, kind: input, shape index: {}]   ;;  %s2719_s3 = inlined_call_operand.vmem [shape: f32[1,64], index: 3, kind: input, shape index: {}]   ;;  %s2720_s1 = inlined_call_operand.vmem [shape: f32[8,1], index: 1, kind: input, shape index: {}]   ;;  %s2721_s5 = inlined_call_operand.vmem [shape: f32[1,256], index: 5, kind: input, shape index: {}]   ;;  %s2722_s7 = inlined_call_operand.vmem [shape: f32[1,128], index: 7, kind: input, shape index: {}]   ;;  %s2723_s8 = inlined_call_operand.vmem [shape: f32[32,128], index: 8, kind: input, shape index: {}]   ;;  %s2724_s9 = inlined_call_operand.vmem [shape: f32[1,128], index: 9, kind: input, shape index: {}]   ;;  %s2725_s10 = inlined_call_operand.vmem [shape: f32[64,128], index: 10, kind: input, shape index: {}]   ;;  %s2726_s12 = inlined_call_operand.vmem [shape: f32[128,128], index: 12, kind: input, shape index: {}]   ;;  %s2727_s11 = inlined_call_operand.vmem [shape: f32[1,128], index: 11, kind: input, shape index: {}]   ;;  %s2728_s13 = inlined_call_operand.vmem [shape: f32[1,128], index: 13, kind: input, shape index: {}]   ;;  %s2729_s14 = inlined_call_operand.vmem [shape: f32[8,128], index: 14, kind: output, shape index: {}]  }
   0x1   :  { %v66_v0 = vld [vmem:[%s2715_s2 + $0x80] sm:$0xff]  ;;  %v67_v1 = vld [vmem:[%s2715_s2 + $0x88] sm:$0xff]  ;;  %1898 = vmatprep.subr.bf16.mxu1 %v2086_v3  ;;  %v68_v6 = vld [vmem:[%s2715_s2 + $0x90] sm:$0xff]  ;;  %1721 = vmatprep.mubr.msk.f32.mxu1 %vm2087_vm0, %v2088_v8  ;;  %vm2089_vm2 = vmmov 1   ;;  %vm95_vm4 = vcmask 359424   ;;  %vm271_vm5 = vcmask 523264  }
   0x2   :  { %v50_v2 = vld [vmem:[%s2715_s2] sm:$0xff]  ;;  %v1866_v4 = vpack.c.bf16 %v67_v1, %v66_v0  ;;  %v51_v5 = vld [vmem:[%s2715_s2 + $0x8] sm:$0xff]  ;;  %v69_v7 = vld [vmem:[%s2715_s2 + $0x98] sm:$0xff]  ;;  %vm351_vm6 = vcmask 261120   ;;  %vm1385_vm7 = vcmask 1041408   ;;  %vm1388_vm8 = vcmask 1045504  }
   0x3   :  { %v1868_v9 = vpack.c.bf16 %v51_v5, %v50_v2  ;;  %v1870_v10 = vpack.c.bf16 %v69_v7, %v68_v6  ;;  %v52_v11 = vld [vmem:[%s2715_s2 + $0x10] sm:$0xff]  ;;  %v53_v12 = vld [vmem:[%s2715_s2 + $0x18] sm:$0xff]  ;;  %v70_v13 = vld [vmem:[%s2715_s2 + $0xa0] sm:$0xff] }
   0x4   :  { %1867 = vmatprep.subr.bf16.mxu0 %v1866_v4  ;;  %v71_v14 = vld [vmem:[%s2715_s2 + $0xa8] sm:$0xff]  ;;  %v1872_v15 = vpack.c.bf16 %v53_v12, %v52_v11  ;;  %v54_v17 = vld [vmem:[%s2715_s2 + $0x20] sm:$0xff]  ;;  %v72_v19 = vld [vmem:[%s2715_s2 + $0xb0] sm:$0xff] }
   0x5   :  { %1869 = vmatpush3.bf16.msra.mxu0 %v1868_v9  ;;  %v1874_v16 = vpack.c.bf16 %v71_v14, %v70_v13  ;;  %v55_v18 = vld [vmem:[%s2715_s2 + $0x28] sm:$0xff]  ;;  %v73_v20 = vld [vmem:[%s2715_s2 + $0xb8] sm:$0xff]  ;;  %v56_v22 = vld [vmem:[%s2715_s2 + $0x30] sm:$0xff] }
   0x6   :  { %1871 = vmatprep.subr.bf16.mxu0 %v1870_v10  ;;  %v1876_v21 = vpack.c.bf16 %v55_v18, %v54_v17  ;;  %v1878_v23 = vpack.c.bf16 %v73_v20, %v72_v19  ;;  %v57_v24 = vld [vmem:[%s2715_s2 + $0x38] sm:$0xff]  ;;  %v82_v25 = vld [vmem:[%s2715_s2 + $0x100] sm:$0xff]  ;;  %v83_v26 = vld [vmem:[%s2715_s2 + $0x108] sm:$0xff] }
   0x7   :  { %v74_v27 = vld [vmem:[%s2715_s2 + $0xc0] sm:$0xff]  ;;  %v75_v28 = vld [vmem:[%s2715_s2 + $0xc8] sm:$0xff]  ;;  %v1899_v29 = vpack.c.bf16 %v83_v26, %v82_v25  ;;  %v84_v30 = vld [vmem:[%s2715_s2 + $0x110] sm:$0xff]  ;;  %v1880_v32 = vpack.c.bf16 %v57_v24, %v56_v22 }
   0x8   :  { %v85_v31 = vld [vmem:[%s2715_s2 + $0x118] sm:$0xff]  ;;  %v58_v33 = vld [vmem:[%s2715_s2 + $0x40] sm:$0xff]  ;;  %v59_v34 = vld [vmem:[%s2715_s2 + $0x48] sm:$0xff]  ;;  %v1882_v37 = vpack.c.bf16 %v75_v28, %v74_v27 }
   0x9   :  { %1873 = vmatpush3.bf16.msra.mxu0 %v1872_v15  ;;  %1900 = vmatpush3.bf16.msra.mxu1 %v1899_v29  ;;  %v1902_v35 = vpack.c.bf16 %v85_v31, %v84_v30  ;;  %v48_v36 = vld [vmem:[%s2716_s0 + $0x8] sm:$0xff]  ;;  %v76_v38 = vld [vmem:[%s2715_s2 + $0xd0] sm:$0xff]  ;;  %v86_v39 = vld [vmem:[%s2715_s2 + $0x120] sm:$0xff]  ;;  %v1884_v44 = vpack.c.bf16 %v59_v34, %v58_v33 }
   0xa   :  { %1875 = vmatprep.subr.bf16.mxu0 %v1874_v16  ;;  %1901 = vmatprep.subr.bf16.mxu1 %v2086_v3  ;;  %v87_v40 = vld [vmem:[%s2715_s2 + $0x128] sm:$0xf]  ;;  %v77_v41 = vld [vmem:[%s2715_s2 + $0xd8] sm:$0xff]  ;;  %v60_v45 = vld [vmem:[%s2715_s2 + $0x50] sm:$0xff] }
   0xb   :  { %167 = vmatprep.mubr.f32.mxu0 %v48_v36  ;;  %v244_v42 = vld [vmem:[%s2717_s4 + $0x8] sm:$0xff]  ;;  %v246_v43 = vld [vmem:[%s2717_s4 + $0x18] sm:$0xff]  ;;  %v78_v47 = vld [vmem:[%s2715_s2 + $0xe0] sm:$0xff]  ;;  %v1905_v48 = vpack.c.bf16 %v87_v40, %v86_v39  ;;  %v1886_v49 = vpack.c.bf16 %v77_v41, %v76_v38  ;;  %v2090_v38 = vmov 0   ;;  %v261_v41 = vlaneseq }
   0xc   :  { %v61_v46 = vld [vmem:[%s2715_s2 + $0x58] sm:$0xff]  ;;  %vm1906_vm3 = vmpackc.low %vm99_vm1, %vm2089_vm2  ;;  %v1908_v50 = vpack.c.bf16 %v246_v43, %v244_v42  ;;  %v243_v51 = vld [vmem:[%s2717_s4] sm:$0xff]  ;;  %2016 = vset.pattern.permute.xlu1 %v2090_v38  ;;  %2017 = vset.pattern.permute.xlu0 %v2090_v38 }
   0xd   :  { %1877 = vmatpush3.bf16.msra.mxu0 %v1876_v21  ;;  %1903 = vmatpush3.bf16.msra.mxu1 %v1902_v35  ;;  %v245_v52 = vld [vmem:[%s2717_s4 + $0x10] sm:$0xff]  ;;  %v79_v53 = vld [vmem:[%s2715_s2 + $0xe8] sm:$0xff]  ;;  %v250_v55 = vld [vmem:[%s2717_s4 + $0x38] sm:$0xff]  ;;  %v1888_v56 = vpack.c.bf16 %v61_v46, %v60_v45  ;;  %v2391_v42 = vshrl.u32 %v261_v41, 7 }
   0xe   :  { %1879 = vmatprep.subr.bf16.mxu0 %v1878_v23  ;;  %1904 = vmatprep.subr.bf16.mxu1 %v2086_v3  ;;  %v248_v54 = vld [vmem:[%s2717_s4 + $0x28] sm:$0xff]  ;;  %v62_v57 = vld [vmem:[%s2715_s2 + $0x60] sm:$0xff]  ;;  %v49_v59 = vld [vmem:[%s2716_s0 + $0x10] sm:$0xff]  ;;  %v1910_v60 = vpack.c.bf16 %v245_v52, %v243_v51  ;;  %v1890_v61 = vpack.c.bf16 %v79_v53, %v78_v47 }
   0xf   :  { %v63_v58 = vld [vmem:[%s2715_s2 + $0x68] sm:$0xff]  ;;  %v80_v62 = vld [vmem:[%s2715_s2 + $0xf0] sm:$0xff]  ;;  %v1912_v63 = vpack.c.bf16 %v250_v55, %v248_v54  ;;  %v247_v0 = vld [vmem:[%s2717_s4 + $0x20] sm:$0xff]  ;;  %v263_v43 = vsub.s32 0, %v2391_v42 }
  0x10   :  { %v249_v1 = vld [vmem:[%s2717_s4 + $0x30] sm:$0xff]  ;;  %v81_v2 = vld [vmem:[%s2715_s2 + $0xf8] sm:$0xff]  ;;  %v252_v4 = vld [vmem:[%s2717_s4 + $0x48] sm:$0xff]  ;;  %v1892_v6 = vpack.c.bf16 %v63_v58, %v62_v57 }
  0x11   :  { %1881 = vmatpush3.bf16.msra.mxu0 %v1880_v32  ;;  %1907 = vmatpush3.bf16.msk.msra.mxu1 %vm1906_vm3, %v1905_v48  ;;  %v254_v5 = vld [vmem:[%s2717_s4 + $0x58] sm:$0xff]  ;;  %v1914_v7 = vpack.c.bf16 %v249_v1, %v247_v0  ;;  %v1894_v9 = vpack.c.bf16 %v81_v2, %v80_v62  ;;  %v64_v10 = vld [vmem:[%s2715_s2 + $0x70] sm:$0xff]  ;;  %v47_v14 = vld [vmem:[%s2716_s0] sm:$0xff] }
  0x12   :  { %1883 = vmatprep.subr.bf16.mxu0 %v1882_v37  ;;  %1909 = vmatprep.subr.bf16.mxu1 %v1908_v50  ;;  %v65_v11 = vld [vmem:[%s2715_s2 + $0x78] sm:$0xff]  ;;  %v1916_v12 = vpack.c.bf16 %v254_v5, %v252_v4  ;;  %v251_v15 = vld [vmem:[%s2717_s4 + $0x40] sm:$0xff]  ;;  %v253_v16 = vld [vmem:[%s2717_s4 + $0x50] sm:$0xff] }
  0x13   :  { %v1896_v13 = vpack.c.bf16 %v65_v11, %v64_v10  ;;  %v1918_v17 = vpack.c.bf16 %v253_v16, %v251_v15  ;;  %v256_v18 = vld [vmem:[%s2717_s4 + $0x68] sm:$0xff]  ;;  %v258_v19 = vld [vmem:[%s2717_s4 + $0x78] sm:$0xff]  ;;  %v255_v21 = vld [vmem:[%s2717_s4 + $0x60] sm:$0xff] }
  0x14   :  { %1722 = vmatmul.mubr.msk.f32.vlgmr.msra.gmra.mrb[0].mxu1 %vm95_vm4, %v49_v59  ;;  %v1920_v20 = vpack.c.bf16 %v258_v19, %v256_v18  ;;  %v257_v22 = vld [vmem:[%s2717_s4 + $0x70] sm:$0xff]  ;;  %v347_v24 = vld [vmem:[%s2718_s6] sm:$0xff]  ;;  %v348_v25 = vld [vmem:[%s2718_s6 + $0x8] sm:$0xff] }
  0x15   :  { %1885 = vmatpush3.bf16.msra.mxu0 %v1884_v44  ;;  %1911 = vmatpush1.bf16.msra.mxu1 %v1910_v60  ;;  %v1922_v23 = vpack.c.bf16 %v257_v22, %v255_v21  ;;  %v2357_v26 = vpack.c.bf16 %v348_v25, %v347_v24  ;;  %v349_v27 = vld [vmem:[%s2718_s6 + $0x10] sm:$0xff]  ;;  %v350_v28 = vld [vmem:[%s2718_s6 + $0x18] sm:$0xff]  ;;  %v1586_v34 = vld [vmem:[%s2719_s3] ss:$0 sm:$0xff] }
  0x16   :  { %1887 = vmatprep.subr.bf16.mxu0 %v1886_v49  ;;  %1913 = vmatprep.subr.bf16.mxu1 %v1912_v63  ;;  %v2367_v29 = vpack.c.bf16 %v350_v28, %v349_v27  ;;  %v346_v39 = vld [vmem:[%s2720_s1] sm:$0x3] }
  0x17   :  { %339 = vmatprep.mubr.f32.mxu1 %v2088_v8  ;;  %460 = vperm.xlu1 %2016, %v346_v39   ;;  %v464_v40 = vsub.f32 1.0, %v346_v39  ;;  %v2397_v44 = vld [vmem:[%s2721_s5] sm:$0x3]  ;;  %s2091_s5 = smov 64  }
  0x18   :  { %v264_v47 = vrot.slane %v2397_v44, %v263_v43  ;;  %v2407_v50 = vld [vmem:[%s2722_s7] ss:$0 sm:$0xff]  ;;  %s2092_s7 = smov 32  }
  0x19   :  { %1889 = vmatpush3.bf16.msra.mxu0 %v1888_v56  ;;  %1915 = vmatpush1.bf16.msra.mxu1 %v1914_v7  ;;  %v871_v43 = vld [vmem:[%s2723_s8] sm:$0xff] }
  0x1a   :  { %1891 = vmatprep.subr.bf16.mxu0 %v1890_v61  ;;  %1917 = vmatprep.subr.bf16.mxu1 %v1916_v12 }
  0x1b   :  { %467 = vperm.xlu1 %2016, %v464_v40  }
  0x1d   :  { %1893 = vmatpush3.bf16.msra.mxu0 %v1892_v6  ;;  %1919 = vmatpush1.bf16.msra.mxu1 %v1918_v17  ;;  %v474_v17 = vld [vmem:[%s2720_s1 + $0x2] sm:$0x3] }
  0x1e   :  { %1895 = vmatprep.subr.bf16.mxu0 %v1894_v9  ;;  %1921 = vmatprep.subr.bf16.mxu1 %v1920_v20  ;;  %v593_v19 = vsub.f32 1.0, %v474_v17 }
  0x21   :  { %1897 = vmatpush3.bf16.msra.mxu0 %v1896_v13  ;;  %1923 = vmatpush1.bf16.msra.mxu1 %v1922_v23 }
  0x22   :  { %1942 = vmatprep.subr.bf16.mxu0 %v2086_v3  ;;  %1924 = vmatprep.subr.bf16.mxu1 %v2086_v3 }
  0x24   :  { %168 = vmatmul.mubr.f32.vlgmr.msra.gmra.mrb[0].mxu0 %v47_v14 }
  0x25   :  { %1765 = vmatprep.mubr.msk.f32.mxu0 %vm2087_vm0, %v2088_v8  ;;  %1944 = vmatpush3.bf16.msra.mxu0 %v2357_v26 }
  0x26   :  { %1945 = vmatprep.subr.bf16.mxu0 %v2086_v3 }
  0x29   :  { %1947 = vmatpush3.bf16.msra.mxu0 %v2367_v29 }
  0x2a   :  { %1954 = vmatprep.subr.bf16.mxu0 %v2086_v3 }
  0x96   :  { %v2414_v2 = vpop.permute.xlu1 %460 }
  0x9a   :  { %v468_v4 = vpop.permute.xlu1 %467 }
  0x9b   :  { %v470_v7 = vmul.f32 0.0, %v468_v4 }
  0xe7   :  { %v239_v30 = vpop.f32.mrb[0].mxu1 }
  0xe8   :  { %v1723_v31 = vpop.f32.mrb[1].mxu1 }
  0xf7   :  { %v1633_v32 = vpop.f32.mrb[0].mxu0 }
  0xf8   :  { %v1634_v33 = vpop.f32.mrb[1].mxu0 }
  0xf9   :  { %v1635_v35 = vadd.f32 %v1634_v33, %v1633_v32 }
  0xfb   :  { %v170_v36 = vadd.f32 %v1635_v35, %v1586_v34 }
  0xfd   :  { %v240_v37 = vadd.f32 %v239_v30, %v170_v36 }
  0xff   :  { %1589 = vmatmul.mubr.msk.f32.vlgmr.msra.gmra.mrb[2].mxu1 %vm271_vm5, %v240_v37 }
 0x100   :  { %1926 = vmatpush3.bf16.msra.mxu1 %v2357_v26  ;;  %1732 = vmatprep.mubr.msk.f32.mxu1 %vm2087_vm0, %v2088_v8 }
 0x101   :  { %1927 = vmatprep.subr.bf16.mxu1 %v2086_v3 }
 0x104   :  { %1929 = vmatpush3.bf16.msra.mxu1 %v2367_v29 }
 0x105   :  { %1930 = vmatprep.subr.bf16.mxu1 %v2086_v3 }
 0x107   :  { %1733 = vmatmul.mubr.f32.vlgmr.msra.gmra.mrb[4].mxu1 %v2088_v8 }
 0x108   :  { %1932 = vmatpush3.bf16.msra.mxu1 %v2357_v26  ;;  %1743 = vmatprep.mubr.msk.f32.mxu1 %vm2087_vm0, %v2088_v8 }
 0x109   :  { %1933 = vmatprep.subr.bf16.mxu1 %v2086_v3 }
 0x10c   :  { %1935 = vmatpush3.bf16.msra.mxu1 %v2367_v29 }
 0x10d   :  { %1936 = vmatprep.subr.bf16.mxu1 %v2086_v3 }
 0x1d2   :  { %v341_v45 = vpop.f32.mrb[2].mxu1 }
 0x1d3   :  { %v2399_v46 = vpop.f32.mrb[3].mxu1  ;;  %v2402_v48 = vadd.f32 %v341_v45, %v264_v47  ;;  %v872_v45 = vld [vmem:[%s2723_s8 + $0x8] sm:$0xff] }
 0x1da   :  { %v421_v49 = vpop.f32.mrb[4].mxu1 }
 0x1db   :  { %v425_v51 = vadd.f32 %v421_v49, %v2402_v48  ;;  %v1734_v52 = vpop.f32.mrb[5].mxu1 }
 0x1dc   :  { %v2456_v52 = vpack.c.bf16 %v872_v45, %v871_v43  ;;  %v752_v43 = vld [vmem:[%s2720_s1 + $0x6] sm:$0x3] }
 0x1dd   :  { %v433_v53 = vadd.f32 %v2407_v50, %v425_v51 }
 0x1df   :  { %2018 = vtanh.f32 %v433_v53  ;;  %v434_v55 = vsub.f32 0.0, %v433_v53 }
 0x1e1   :  { %v435_v56 = vmul.f32 1.442695, %v434_v55  ;;  %v874_v55 = vld [vmem:[%s2723_s8 + $0x18] sm:$0xff] }
 0x1e3   :  { %2020 = vpow2.f32 %v435_v56 }
 0x1e9   :  { %v2019_v54 = vpop.eup %2018 }
 0x1ea   :  { %443 = vrot.lane.b32.xlu0 %v2019_v54, %s2091_s5  ;;  %v873_v54 = vld [vmem:[%s2723_s8 + $0x10] sm:$0xff] }
 0x1eb   :  { %v2470_v56 = vpack.c.bf16 %v874_v55, %v873_v54  ;;  %v987_v54 = vsub.f32 1.0, %v752_v43 }
 0x1ed   :  { %v2021_v57 = vpop.eup %2020 }
 0x1ee   :  { %v437_v58 = vadd.f32 1.0, %v2021_v57 }
 0x1f0   :  { %2022 = vrcp.f32 %v437_v58  ;;  %v267_v58 = vsub.s32 1, %v2391_v42  ;;  %v2494_v42 = vld [vmem:[%s2724_s9] ss:$0 sm:$0xff] }
 0x1fa   :  { %v2023_v59 = vpop.eup %2022 }
 0x1fb   :  { %v441_v62 = vmul.f32 0.0, %v2023_v59 }
 0x25c   :  { %v444_v60 = vpop.permute.xlu0 %443 }
 0x25d   :  { %v446_v61 = vmul.f32 %v2023_v59, %v444_v60 }
 0x25f   :  { %448 = vrot.lane.b32.xlu0 %v446_v61, %s2092_s7 }
 0x2d1   :  { %v449_v63 = vpop.permute.xlu0 %448 }
 0x2d2   :  { %v451_v0 = vadd.f32 %v449_v63, %v441_v62  ;;  %v268_v62 = vrot.slane %v2397_v44, %v267_v58 }
 0x2d4   :  { %2024 = vtanh.f32 %v451_v0  ;;  %v472_v27 = vmul.f32 %v2414_v2, %v451_v0 }
 0x2d6   :  { %v473_v28 = vadd.f32 %v472_v27, %v470_v7 }
 0x2de   :  { %v2025_v1 = vpop.eup %2024 }
 0x2df   :  { %454 = vrot.lane.b32.xlu0 %v2025_v1, %s2091_s5  ;;  %v2489_v1 = vadd.f32 %v2399_v46, %v268_v62 }
 0x351   :  { %v455_v5 = vpop.permute.xlu0 %454 }
 0x352   :  { %v457_v6 = vmul.f32 %v2023_v59, %v455_v5 }
 0x354   :  { %v2417_v9 = vmul.f32 %v2414_v2, %v457_v6 }
 0x356   :  { %v471_v10 = vadd.f32 %v470_v7, %v2417_v9 }
 0x358   :  { %476 = vrot.lane.b32.xlu1 %v471_v10, %s2092_s7 }
 0x3ca   :  { %v477_v11 = vpop.permute.xlu1 %476 }
 0x3cb   :  { %1744 = vmatmul.mubr.msk.f32.vlgmr.msra.gmra.mrb[6].mxu1 %vm351_vm6, %v477_v11 }
 0x3cc   :  { %1938 = vmatpush3.bf16.msra.mxu1 %v2357_v26  ;;  %1754 = vmatprep.mubr.msk.f32.mxu1 %vm2087_vm0, %v2088_v8 }
 0x3cd   :  { %1939 = vmatprep.subr.bf16.mxu1 %v2086_v3 }
 0x3d0   :  { %1941 = vmatpush3.bf16.msra.mxu1 %v2367_v29  ;;  %v563_v29 = vrot.slane %v473_v28, 6 }
 0x3d1   :  { %1948 = vmatprep.subr.bf16.mxu1 %v2086_v3 }
 0x49e   :  { %v546_v12 = vpop.f32.mrb[6].mxu1 }
 0x49f   :  { %v551_v13 = vrot.slane %v546_v12, 6  ;;  %v1745_v14 = vpop.f32.mrb[7].mxu1 }
 0x4a1   :  { %v553_v15 = vadd.f32 %v551_v13, %v2402_v48 }
 0x4a3   :  { %v554_v16 = vadd.f32 %v2407_v50, %v553_v15 }
 0x4a5   :  { %2026 = vtanh.f32 %v554_v16  ;;  %v555_v20 = vsub.f32 0.0, %v554_v16 }
 0x4a7   :  { %v556_v21 = vmul.f32 1.442695, %v555_v20 }
 0x4a9   :  { %2028 = vpow2.f32 %v556_v21 }
 0x4af   :  { %v2027_v18 = vpop.eup %2026 }
 0x4b0   :  { %567 = vrot.lane.b32.xlu0 %v2027_v18, %s2091_s5 }
 0x4b3   :  { %v2029_v22 = vpop.eup %2028 }
 0x4b4   :  { %596 = vperm.xlu0 %2017, %v593_v19   ;;  %v558_v23 = vadd.f32 1.0, %v2029_v22 }
 0x4b6   :  { %2030 = vrcp.f32 %v558_v23 }
 0x4c0   :  { %v2031_v24 = vpop.eup %2030 }
 0x4c1   :  { %v565_v30 = vmul.f32 %v2031_v24, %v563_v29 }
 0x522   :  { %v568_v25 = vpop.permute.xlu0 %567 }
 0x523   :  { %v570_v26 = vmul.f32 %v2031_v24, %v568_v25 }
 0x525   :  { %572 = vrot.lane.b32.xlu1 %v570_v26, %s2092_s7 }
 0x533   :  { %v2437_v34 = vpop.permute.xlu0 %596 }
 0x534   :  { %v599_v35 = vmul.f32 %v2437_v34, %v471_v10  ;;  %v611_v36 = vmul.f32 %v2437_v34, %v473_v28 }
 0x597   :  { %v573_v31 = vpop.permute.xlu1 %572 }
 0x598   :  { %v575_v32 = vadd.f32 %v573_v31, %v565_v30 }
 0x59a   :  { %2032 = vtanh.f32 %v575_v32  ;;  %v606_v40 = vrot.slane %v575_v32, 2 }
 0x5a4   :  { %v2033_v33 = vpop.eup %2032 }
 0x5a5   :  { %578 = vrot.lane.b32.xlu1 %v2033_v33, %s2091_s5 }
 0x5a9   :  { %584 = vperm.xlu1 %2016, %v474_v17  }
 0x5ad   :  { %601 = vrot.lane.b32.xlu1 %v599_v35, %s2092_s7 }
 0x5b1   :  { %613 = vrot.lane.b32.xlu1 %v611_v36, %s2093_s26 }
 0x617   :  { %v579_v37 = vpop.permute.xlu1 %578 }
 0x618   :  { %v581_v38 = vmul.f32 %v2031_v24, %v579_v37 }
 0x61a   :  { %v588_v39 = vrot.slane %v581_v38, 2  ;;  %v617_v38 = vld [vmem:[%s2720_s1 + $0x4] sm:$0x3] }
 0x61c   :  { %589 = vrot.lane.b32.xlu0 %v588_v39, %s2092_s7 }
 0x620   :  { %607 = vrot.lane.b32.xlu0 %v606_v40, %s2093_s26  ;;  %v736_v40 = vsub.f32 1.0, %v617_v38 }
 0x628   :  { %v2445_v41 = vpop.permute.xlu1 %584 }
 0x62c   :  { %v602_v51 = vpop.permute.xlu1 %601 }
 0x630   :  { %v614_v11 = vpop.permute.xlu1 %613 }
 0x68e   :  { %v590_v47 = vpop.permute.xlu0 %589 }
 0x68f   :  { %v2454_v49 = vmul.f32 %v590_v47, %v2445_v41 }
 0x691   :  { %v2459_v53 = vadd.f32 %v602_v51, %v2454_v49 }
 0x692   :  { %v608_v4 = vpop.permute.xlu0 %607 }
 0x693   :  { %1755 = vmatmul.mubr.msk.f32.vlgmr.msra.gmra.mrb[8].mxu1 %vm351_vm6, %v2459_v53  ;;  %v610_v10 = vmul.f32 %v608_v4, %v2445_v41 }
 0x694   :  { %1950 = vmatpush3.bf16.msra.mxu1 %v2456_v52  ;;  %1776 = vmatprep.mubr.msk.f32.mxu1 %vm2087_vm0, %v2088_v8 }
 0x695   :  { %1951 = vmatprep.subr.bf16.mxu1 %v2086_v3  ;;  %v2499_v12 = vadd.f32 %v614_v11, %v610_v10 }
 0x697   :  { %v704_v13 = vrot.slane %v2499_v12, 4 }
 0x698   :  { %1953 = vmatpush3.bf16.msra.mxu1 %v2470_v56 }
 0x699   :  { %1960 = vmatprep.subr.bf16.mxu1 %v2086_v3 }
 0x69b   :  { %1777 = vmatmul.mubr.f32.vlgmr.msra.gmra.mrb[10].mxu1 %v2088_v8 }
 0x69c   :  { %1962 = vmatpush3.bf16.msra.mxu1 %v2456_v52  ;;  %1798 = vmatprep.mubr.msk.f32.mxu1 %vm2087_vm0, %v2088_v8 }
 0x69d   :  { %1963 = vmatprep.subr.bf16.mxu1 %v2086_v3 }
 0x6a0   :  { %1965 = vmatpush3.bf16.msra.mxu1 %v2470_v56 }
 0x6a1   :  { %1972 = vmatprep.subr.bf16.mxu1 %v2086_v3 }
 0x766   :  { %v687_v57 = vpop.f32.mrb[8].mxu1 }
 0x767   :  { %v692_v59 = vrot.slane %v687_v57, 4  ;;  %v1756_v60 = vpop.f32.mrb[9].mxu1 }
 0x769   :  { %v694_v61 = vadd.f32 %v692_v59, %v2402_v48 }
 0x76b   :  { %v695_v63 = vadd.f32 %v2407_v50, %v694_v61 }
 0x76d   :  { %2034 = vtanh.f32 %v695_v63  ;;  %v696_v15 = vsub.f32 0.0, %v695_v63 }
 0x76e   :  { %v941_v0 = vpop.f32.mrb[10].mxu1 }
 0x76f   :  { %v946_v5 = vrot.slane %v941_v0, 2  ;;  %v1778_v6 = vpop.f32.mrb[11].mxu1  ;;  %v697_v16 = vmul.f32 1.442695, %v696_v15 }
 0x771   :  { %v948_v7 = vadd.f32 %v946_v5, %v2489_v1 }
 0x773   :  { %v956_v44 = vadd.f32 %v2494_v42, %v948_v7 }
 0x775   :  { %2036 = vtanh.f32 %v956_v44  ;;  %v957_v17 = vsub.f32 0.0, %v956_v44 }
 0x776   :  { %2038 = vpow2.f32 %v697_v16 }
 0x777   :  { %v2035_v46 = vpop.eup %2034  ;;  %v958_v18 = vmul.f32 1.442695, %v957_v17 }
 0x778   :  { %710 = vrot.lane.b32.xlu0 %v2035_v46, %s2091_s5 }
 0x779   :  { %2040 = vpow2.f32 %v958_v18 }
 0x77c   :  { %705 = vrot.lane.b32.xlu0 %v704_v13, %s2092_s7 }
 0x77f   :  { %v2037_v14 = vpop.eup %2036 }
 0x780   :  { %966 = vrot.lane.b32.xlu1 %v2037_v14, %s2091_s5  ;;  %v2039_v19 = vpop.eup %2038 }
 0x781   :  { %v699_v20 = vadd.f32 1.0, %v2039_v19 }
 0x783   :  { %2042 = vrcp.f32 %v699_v20  ;;  %v2041_v21 = vpop.eup %2040 }
 0x784   :  { %v960_v22 = vadd.f32 1.0, %v2041_v21 }
 0x786   :  { %2044 = vrcp.f32 %v960_v22 }
 0x78d   :  { %v2043_v23 = vpop.eup %2042 }
 0x790   :  { %v2045_v26 = vpop.eup %2044 }
 0x791   :  { %v964_v33 = vmul.f32 0.0, %v2045_v26 }
 0x7ea   :  { %v711_v24 = vpop.permute.xlu0 %710 }
 0x7eb   :  { %v713_v25 = vmul.f32 %v2043_v23, %v711_v24 }
 0x7ed   :  { %715 = vrot.lane.b32.xlu1 %v713_v25, %s2092_s7 }
 0x7ee   :  { %v706_v29 = vpop.permute.xlu0 %705 }
 0x7ef   :  { %v708_v30 = vmul.f32 %v2043_v23, %v706_v29 }
 0x7f2   :  { %v967_v27 = vpop.permute.xlu1 %966 }
 0x7f3   :  { %v969_v28 = vmul.f32 %v2045_v26, %v967_v27 }
 0x7f5   :  { %971 = vrot.lane.b32.xlu0 %v969_v28, %s2092_s7 }
 0x85f   :  { %v716_v31 = vpop.permute.xlu1 %715 }
 0x860   :  { %v2507_v32 = vadd.f32 %v716_v31, %v708_v30 }
 0x862   :  { %2046 = vtanh.f32 %v2507_v32 }
 0x867   :  { %v972_v35 = vpop.permute.xlu0 %971 }
 0x868   :  { %v974_v36 = vadd.f32 %v972_v35, %v964_v33 }
 0x86a   :  { %2048 = vtanh.f32 %v974_v36  ;;  %v996_v58 = vrot.slane %v974_v36, 6 }
 0x86c   :  { %v2047_v37 = vpop.eup %2046 }
 0x86d   :  { %721 = vrot.lane.b32.xlu1 %v2047_v37, %s2091_s5 }
 0x871   :  { %727 = vperm.xlu1 %2016, %v617_v38  }
 0x874   :  { %v2049_v39 = vpop.eup %2048 }
 0x875   :  { %977 = vrot.lane.b32.xlu0 %v2049_v39, %s2091_s5 }
 0x879   :  { %739 = vperm.xlu0 %2017, %v736_v40  }
 0x87d   :  { %862 = vperm.xlu0 %2017, %v752_v43  }
 0x8df   :  { %v722_v45 = vpop.permute.xlu1 %721 }
 0x8e0   :  { %v724_v47 = vmul.f32 %v2043_v23, %v722_v45 }
 0x8e2   :  { %v731_v51 = vrot.slane %v724_v47, 4 }
 0x8e4   :  { %732 = vrot.lane.b32.xlu1 %v731_v51, %s2092_s7 }
 0x8e7   :  { %v978_v55 = vpop.permute.xlu0 %977 }
 0x8e8   :  { %v980_v57 = vmul.f32 %v2045_v26, %v978_v55  ;;  %990 = vperm.xlu1 %2016, %v987_v54  }
 0x8ea   :  { %v982_v59 = vrot.slane %v980_v57, 6 }
 0x8ec   :  { %983 = vrot.lane.b32.xlu0 %v982_v59, %s2092_s7  ;;  %997 = vrot.lane.b32.xlu1 %v996_v58, %s2093_s26 }
 0x8f0   :  { %v2521_v60 = vpop.permute.xlu1 %727 }
 0x8f8   :  { %v2523_v61 = vpop.permute.xlu0 %739 }
 0x8f9   :  { %v742_v0 = vmul.f32 %v2523_v61, %v2459_v53 }
 0x8fc   :  { %v2537_v5 = vpop.permute.xlu0 %862 }
 0x956   :  { %v733_v62 = vpop.permute.xlu1 %732 }
 0x957   :  { %v2526_v63 = vmul.f32 %v733_v62, %v2521_v60 }
 0x959   :  { %v743_v4 = vadd.f32 %v742_v0, %v2526_v63 }
 0x95b   :  { %1766 = vmatmul.mubr.msk.f32.vlgmr.msra.gmra.mrb[2].mxu0 %vm351_vm6, %v743_v4 }
 0x95c   :  { %1956 = vmatpush3.bf16.msra.mxu0 %v2456_v52  ;;  %1787 = vmatprep.mubr.msk.f32.mxu0 %vm2087_vm0, %v2088_v8 }
 0x95d   :  { %1957 = vmatprep.subr.bf16.mxu0 %v2086_v3 }
 0x95e   :  { %v984_v6 = vpop.permute.xlu0 %983 }
 0x95f   :  { %v2541_v53 = vmul.f32 %v984_v6, %v2537_v5 }
 0x960   :  { %1959 = vmatpush3.bf16.msra.mxu0 %v2470_v56 }
 0x961   :  { %1966 = vmatprep.subr.bf16.mxu0 %v2086_v3 }
 0x967   :  { %v991_v7 = vpop.permute.xlu1 %990 }
 0x968   :  { %v993_v10 = vmul.f32 0.0, %v991_v7 }
 0x96a   :  { %v994_v44 = vadd.f32 %v993_v10, %v2541_v53 }
 0x96b   :  { %v998_v11 = vpop.permute.xlu1 %997 }
 0x96c   :  { %v1000_v46 = vmul.f32 %v998_v11, %v2537_v5  ;;  %1788 = vmatmul.mubr.msk.f32.vlgmr.msra.gmra.mrb[4].mxu0 %vm351_vm6, %v994_v44  ;;  %v1115_v54 = vmul.f32 %v994_v44, %v2523_v61 }
 0x96d   :  { %1968 = vmatpush3.bf16.msra.mxu0 %v2456_v52  ;;  %1809 = vmatprep.mubr.msk.f32.mxu0 %vm2087_vm0, %v2088_v8 }
 0x96e   :  { %v1001_v13 = vadd.f32 %v1000_v46, %v993_v10  ;;  %1969 = vmatprep.subr.bf16.mxu0 %v2086_v3 }
 0x970   :  { %v1088_v14 = vrot.slane %v1001_v13, 4  ;;  %v1123_v40 = vmul.f32 %v1001_v13, %v2523_v61 }
 0x971   :  { %1971 = vmatpush3.bf16.msra.mxu0 %v2470_v56 }
 0x972   :  { %1089 = vrot.lane.b32.xlu1 %v1088_v14, %s2092_s7  ;;  %1984 = vmatprep.subr.bf16.mxu0 %v2086_v3 }
 0x9e4   :  { %v1090_v28 = vpop.permute.xlu1 %1089 }
 0xa2e   :  { %v2553_v15 = vpop.f32.mrb[2].mxu0 }
 0xa2f   :  { %v1767_v16 = vpop.f32.mrb[3].mxu0 }
 0xa3f   :  { %v1071_v17 = vpop.f32.mrb[4].mxu0 }
 0xa40   :  { %v1076_v18 = vrot.slane %v1071_v17, 4  ;;  %v1789_v19 = vpop.f32.mrb[5].mxu0  ;;  %v827_v17 = vrot.slane %v2553_v15, 2 }
 0xa42   :  { %v1078_v52 = vadd.f32 %v1076_v18, %v2489_v1 }
 0xa44   :  { %v1079_v20 = vadd.f32 %v2494_v42, %v1078_v52 }
 0xa46   :  { %2050 = vtanh.f32 %v1079_v20  ;;  %v1080_v22 = vsub.f32 0.0, %v1079_v20  ;;  %v829_v20 = vadd.f32 %v827_v17, %v2402_v48  ;;  %v750_v48 = vmul.f32 %v2523_v61, %v2499_v12  ;;  %v1390_v17 = vld [vmem:[%s2725_s10] sm:$0xff] }
 0xa48   :  { %v1081_v56 = vmul.f32 1.442695, %v1080_v22 }
 0xa4a   :  { %2052 = vpow2.f32 %v1081_v56  ;;  %v745_v56 = vrot.slane %v2507_v32, 4 }
 0xa50   :  { %v2051_v21 = vpop.eup %2050 }
 0xa51   :  { %1094 = vrot.lane.b32.xlu0 %v2051_v21, %s2091_s5  ;;  %v830_v21 = vadd.f32 %v2407_v50, %v829_v20 }
 0xa54   :  { %v2053_v23 = vpop.eup %2052 }
 0xa55   :  { %v1083_v24 = vadd.f32 1.0, %v2053_v23 }
 0xa57   :  { %2054 = vrcp.f32 %v1083_v24 }
 0xa61   :  { %v2055_v25 = vpop.eup %2054 }
 0xa62   :  { %v1092_v29 = vmul.f32 %v2055_v25, %v1090_v28 }
 0xac3   :  { %v1095_v26 = vpop.permute.xlu0 %1094 }
 0xac4   :  { %v1097_v27 = vmul.f32 %v2055_v25, %v1095_v26 }
 0xac6   :  { %1099 = vrot.lane.b32.xlu0 %v1097_v27, %s2092_s7 }
 0xb38   :  { %v1100_v30 = vpop.permute.xlu0 %1099 }
 0xb39   :  { %v1102_v31 = vadd.f32 %v1100_v30, %v1092_v29 }
 0xb3b   :  { %2056 = vtanh.f32 %v1102_v31  ;;  %v1118_v35 = vrot.slane %v1102_v31, 4 }
 0xb45   :  { %v2057_v33 = vpop.eup %2056 }
 0xb46   :  { %1105 = vrot.lane.b32.xlu1 %v2057_v33, %s2091_s5 }
 0xb4a   :  { %1119 = vrot.lane.b32.xlu1 %v1118_v35, %s2093_s26 }
 0xbb8   :  { %v1106_v36 = vpop.permute.xlu1 %1105 }
 0xbb9   :  { %v1108_v37 = vmul.f32 %v2055_v25, %v1106_v36  ;;  %v831_v36 = vsub.f32 0.0, %v830_v21 }
 0xbbb   :  { %v1110_v38 = vrot.slane %v1108_v37, 4  ;;  %v832_v37 = vmul.f32 1.442695, %v831_v36  ;;  %v1487_v36 = vld [vmem:[%s2726_s12 + $0x48] sm:$0xff] }
 0xbbc   :  { %v1120_v39 = vpop.permute.xlu1 %1119 }
 0xbbd   :  { %v1122_v43 = vmul.f32 %v1120_v39, %v2521_v60  ;;  %1111 = vrot.lane.b32.xlu0 %v1110_v38, %s2092_s7 }
 0xbbf   :  { %v1124_v45 = vadd.f32 %v1123_v40, %v1122_v43 }
 0xbc1   :  { %v1211_v47 = vrot.slane %v1124_v45, 6  ;;  %v1246_v12 = vmul.f32 %v1124_v45, %v2437_v34 }
 0xbc3   :  { %1212 = vrot.lane.b32.xlu1 %v1211_v47, %s2092_s7 }
 0xc2f   :  { %v1112_v51 = vpop.permute.xlu0 %1111 }
 0xc30   :  { %v2567_v55 = vmul.f32 %v1112_v51, %v2521_v60 }
 0xc32   :  { %v1116_v57 = vadd.f32 %v1115_v54, %v2567_v55 }
 0xc34   :  { %1799 = vmatmul.mubr.msk.f32.vlgmr.msra.gmra.mrb[12].mxu1 %vm351_vm6, %v1116_v57  ;;  %v1238_v30 = vmul.f32 %v1116_v57, %v2437_v34 }
 0xc35   :  { %1828 = vmatprep.mubr.msk.f32.mxu1 %vm2087_vm0, %v2088_v8  ;;  %v1213_v16 = vpop.permute.xlu1 %1212 }
 0xd07   :  { %v1194_v58 = vpop.f32.mrb[12].mxu1 }
 0xd08   :  { %v1199_v59 = vrot.slane %v1194_v58, 6  ;;  %v1800_v62 = vpop.f32.mrb[13].mxu1 }
 0xd0a   :  { %v1201_v0 = vadd.f32 %v1199_v59, %v2489_v1 }
 0xd0c   :  { %v1202_v4 = vadd.f32 %v2494_v42, %v1201_v0 }
 0xd0e   :  { %2058 = vtanh.f32 %v1202_v4  ;;  %v1203_v7 = vsub.f32 0.0, %v1202_v4 }
 0xd10   :  { %v1204_v10 = vmul.f32 1.442695, %v1203_v7 }
 0xd12   :  { %2060 = vpow2.f32 %v1204_v10 }
 0xd18   :  { %v2059_v6 = vpop.eup %2058 }
 0xd19   :  { %1217 = vrot.lane.b32.xlu0 %v2059_v6, %s2091_s5 }
 0xd1c   :  { %v2061_v44 = vpop.eup %2060 }
 0xd1d   :  { %v1206_v11 = vadd.f32 1.0, %v2061_v44 }
 0xd1f   :  { %2062 = vrcp.f32 %v1206_v11 }
 0xd29   :  { %v2063_v46 = vpop.eup %2062 }
 0xd2a   :  { %v1215_v18 = vmul.f32 %v2063_v46, %v1213_v16 }
 0xd8b   :  { %v1218_v13 = vpop.permute.xlu0 %1217 }
 0xd8c   :  { %v1220_v14 = vmul.f32 %v2063_v46, %v1218_v13 }
 0xd8e   :  { %1222 = vrot.lane.b32.xlu0 %v1220_v14, %s2092_s7 }
 0xe00   :  { %v1223_v19 = vpop.permute.xlu0 %1222 }
 0xe01   :  { %v1225_v52 = vadd.f32 %v1223_v19, %v1215_v18  ;;  %v1391_v18 = vld [vmem:[%s2725_s10 + $0x8] sm:$0xff]  ;;  %v1392_v19 = vld [vmem:[%s2725_s10 + $0x10] sm:$0xff] }
 0xe02   :  { %v1973_v20 = vpack.c.bf16 %v1391_v18, %v1390_v17 }
 0xe03   :  { %2064 = vtanh.f32 %v1225_v52  ;;  %v1241_v27 = vrot.slane %v1225_v52, 2 }
 0xe04   :  { %2066 = vtanh.f32 %v830_v21  ;;  %v1393_v21 = vld [vmem:[%s2725_s10 + $0x18] sm:$0xff]  ;;  %1974 = vmatpush3.bf16.msra.mxu1 %v1973_v20 }
 0xe05   :  { %2068 = vpow2.f32 %v832_v37  ;;  %1975 = vmatprep.subr.bf16.mxu1 %v2086_v3 }
 0xe0d   :  { %v2065_v22 = vpop.eup %2064 }
 0xe0e   :  { %1228 = vrot.lane.b32.xlu1 %v2065_v22, %s2091_s5  ;;  %v2067_v23 = vpop.eup %2066 }
 0xe0f   :  { %v2069_v38 = vpop.eup %2068 }
 0xe10   :  { %v834_v47 = vadd.f32 1.0, %v2069_v38  ;;  %v1488_v38 = vld [vmem:[%s2726_s12 + $0x50] sm:$0xff] }
 0xe12   :  { %746 = vrot.lane.b32.xlu1 %v745_v56, %s2093_s26  ;;  %v1976_v56 = vpack.c.bf16 %v1393_v21, %v1392_v19 }
 0xe14   :  { %1977 = vmatpush3.bf16.msra.mxu1 %v1976_v56 }
 0xe15   :  { %1978 = vmatprep.subr.bf16.mxu1 %v2086_v3 }
 0xe16   :  { %845 = vrot.lane.b32.xlu1 %v2067_v23, %s2091_s5  ;;  %v1394_v23 = vld [vmem:[%s2725_s10 + $0x20] sm:$0xff] }
 0xe80   :  { %v1229_v15 = vpop.permute.xlu1 %1228 }
 0xe81   :  { %v1231_v24 = vmul.f32 %v2063_v46, %v1229_v15  ;;  %v1395_v15 = vld [vmem:[%s2725_s10 + $0x28] sm:$0xff] }
 0xe83   :  { %v1233_v25 = vrot.slane %v1231_v24, 2  ;;  %v1979_v24 = vpack.c.bf16 %v1395_v15, %v1394_v23 }
 0xe84   :  { %v747_v26 = vpop.permute.xlu1 %746 }
 0xe85   :  { %v749_v50 = vmul.f32 %v747_v26, %v2521_v60  ;;  %1234 = vrot.lane.b32.xlu0 %v1233_v25, %s2092_s7  ;;  %1980 = vmatpush3.bf16.msra.mxu1 %v1979_v24  ;;  %v1396_v25 = vld [vmem:[%s2725_s10 + $0x30] sm:$0xff] }
 0xe86   :  { %1981 = vmatprep.subr.bf16.mxu1 %v2086_v3 }
 0xe87   :  { %v751_v28 = vadd.f32 %v750_v48, %v749_v50  ;;  %v1480_v48 = vld [vmem:[%s2726_s12 + $0x10] sm:$0xff] }
 0xe88   :  { %v846_v45 = vpop.permute.xlu1 %845 }
 0xe89   :  { %v839_v29 = vrot.slane %v751_v28, 2  ;;  %1242 = vrot.lane.b32.xlu0 %v1241_v27, %s2093_s26  ;;  %v1481_v27 = vld [vmem:[%s2726_s12 + $0x18] sm:$0xff] }
 0xe8b   :  { %840 = vrot.lane.b32.xlu1 %v839_v29, %s2092_s7  ;;  %v1988_v29 = vpack.c.bf16 %v1481_v27, %v1480_v48 }
 0xef7   :  { %v1235_v32 = vpop.permute.xlu0 %1234 }
 0xef8   :  { %v1237_v31 = vmul.f32 %v1235_v32, %v2445_v41 }
 0xefa   :  { %v1239_v33 = vadd.f32 %v1238_v30, %v1237_v31  ;;  %v1482_v30 = vld [vmem:[%s2726_s12 + $0x20] sm:$0xff] }
 0xefb   :  { %v1243_v35 = vpop.permute.xlu0 %1242 }
 0xefc   :  { %v1245_v60 = vmul.f32 %v1243_v35, %v2445_v41  ;;  %1810 = vmatmul.mubr.msk.f32.vlgmr.msra.gmra.mrb[6].mxu0 %vm351_vm6, %v1239_v33 }
 0xefd   :  { %1863 = vmatprep.mubr.msk.f32.mxu0 %vm2087_vm0, %v2088_v8  ;;  %v841_v62 = vpop.permute.xlu1 %840 }
 0xefe   :  { %v1247_v61 = vadd.f32 %v1246_v12, %v1245_v60  ;;  %v1484_v12 = vld [vmem:[%s2726_s12 + $0x30] sm:$0xff]  ;;  %v1485_v60 = vld [vmem:[%s2726_s12 + $0x38] sm:$0xff] }
 0xf00   :  { %1331 = vrot.lane.b32.xlu1 %v1247_v61, %s2092_s7  ;;  %v1994_v61 = vpack.c.bf16 %v1485_v60, %v1484_v12 }
 0xf72   :  { %v1332_v44 = vpop.permute.xlu1 %1331 }
 0xfcf   :  { %v1317_v39 = vpop.f32.mrb[6].mxu0 }
 0xfd0   :  { %v1321_v40 = vadd.f32 %v1317_v39, %v2489_v1  ;;  %v1811_v43 = vpop.f32.mrb[7].mxu0  ;;  %v1489_v39 = vld [vmem:[%s2726_s12 + $0x58] sm:$0xff] }
 0xfd1   :  { %v1490_v43 = vld [vmem:[%s2726_s12 + $0x60] sm:$0xff] }
 0xfd2   :  { %v1322_v34 = vadd.f32 %v2494_v42, %v1321_v40  ;;  %v2000_v40 = vpack.c.bf16 %v1489_v39, %v1488_v38 }
 0xfd4   :  { %2070 = vtanh.f32 %v1322_v34  ;;  %v1323_v54 = vsub.f32 0.0, %v1322_v34 }
 0xfd5   :  { %2072 = vrcp.f32 %v834_v47  ;;  %v1491_v47 = vld [vmem:[%s2726_s12 + $0x68] sm:$0xff] }
 0xfd6   :  { %v1324_v57 = vmul.f32 1.442695, %v1323_v54  ;;  %v2003_v34 = vpack.c.bf16 %v1491_v47, %v1490_v43 }
 0xfd8   :  { %2074 = vpow2.f32 %v1324_v57 }
 0xfde   :  { %v2071_v41 = vpop.eup %2070 }
 0xfdf   :  { %1336 = vrot.lane.b32.xlu0 %v2071_v41, %s2091_s5  ;;  %v2073_v8 = vpop.eup %2072 }
 0xfe0   :  { %v848_v51 = vmul.f32 %v2073_v8, %v846_v45  ;;  %v843_v4 = vmul.f32 %v2073_v8, %v841_v62 }
 0xfe2   :  { %v2075_v58 = vpop.eup %2074 }
 0xfe3   :  { %850 = vrot.lane.b32.xlu0 %v848_v51, %s2092_s7  ;;  %v1326_v59 = vadd.f32 1.0, %v2075_v58 }
 0xfe5   :  { %2076 = vrcp.f32 %v1326_v59 }
 0xfef   :  { %v2077_v1 = vpop.eup %2076 }
 0xff0   :  { %v1334_v11 = vmul.f32 %v2077_v1, %v1332_v44  ;;  %v1598_v44 = vld [vmem:[%s2727_s11] ss:$0 sm:$0xff] }
0x1051   :  { %v1337_v0 = vpop.permute.xlu0 %1336 }
0x1052   :  { %v1339_v42 = vmul.f32 %v2077_v1, %v1337_v0 }
0x1054   :  { %1341 = vrot.lane.b32.xlu0 %v1339_v42, %s2092_s7 }
0x1055   :  { %v851_v6 = vpop.permute.xlu0 %850 }
0x1056   :  { %v853_v7 = vadd.f32 %v851_v6, %v843_v4 }
0x1058   :  { %2078 = vtanh.f32 %v853_v7 }
0x1062   :  { %v2079_v10 = vpop.eup %2078 }
0x1063   :  { %856 = vrot.lane.b32.xlu1 %v2079_v10, %s2091_s5 }
0x10c6   :  { %v1342_v46 = vpop.permute.xlu0 %1341 }
0x10c7   :  { %v1344_v13 = vadd.f32 %v1342_v46, %v1334_v11 }
0x10c9   :  { %2080 = vtanh.f32 %v1344_v13 }
0x10d3   :  { %v2081_v14 = vpop.eup %2080 }
0x10d4   :  { %1347 = vrot.lane.b32.xlu0 %v2081_v14, %s2091_s5  ;;  %v1600_v14 = vld [vmem:[%s2728_s13] ss:$0 sm:$0xff] }
0x10d5   :  { %v857_v16 = vpop.permute.xlu1 %856 }
0x10d6   :  { %v859_v52 = vmul.f32 %v2073_v8, %v857_v16 }
0x10d8   :  { %v866_v22 = vrot.slane %v859_v52, 6  ;;  %1362 = vrot.lane.b32.xlu0 %v1237_v31, %s2092_s7  ;;  %v1483_v31 = vld [vmem:[%s2726_s12 + $0x28] sm:$0xff] }
0x10d9   :  { %v1991_v35 = vpack.c.bf16 %v1483_v31, %v1482_v30 }
0x10da   :  { %867 = vrot.lane.b32.xlu1 %v866_v22, %s2092_s7 }
0x10dc   :  { %1353 = vrot.lane.b32.xlu0 %v2417_v9, %s2092_s7  ;;  %v1397_v9 = vld [vmem:[%s2725_s10 + $0x38] sm:$0xff] }
0x10dd   :  { %v1982_v26 = vpack.c.bf16 %v1397_v9, %v1396_v25 }
0x10de   :  { %1367 = vrot.lane.b32.xlu1 %v2567_v55, %s2092_s7  ;;  %v1478_v55 = vld [vmem:[%s2726_s12] sm:$0xff] }
0x10df   :  { %1983 = vmatpush3.bf16.msra.mxu1 %v1982_v26 }
0x10e0   :  { %1372 = vrot.lane.b32.xlu0 %v2541_v53, %s2092_s7  ;;  %v1479_v53 = vld [vmem:[%s2726_s12 + $0x8] sm:$0xff] }
0x10e1   :  { %v1985_v50 = vpack.c.bf16 %v1479_v53, %v1478_v55 }
0x10e3   :  { %1986 = vmatpush3.bf16.msra.mxu0 %v1985_v50 }
0x10e4   :  { %1987 = vmatprep.subr.bf16.mxu0 %v2086_v3 }
0x10e7   :  { %1989 = vmatpush3.bf16.msra.mxu0 %v1988_v29 }
0x10e8   :  { %1990 = vmatprep.subr.bf16.mxu0 %v2086_v3 }
0x10eb   :  { %1992 = vmatpush3.bf16.msra.mxu0 %v1991_v35 }
0x10ec   :  { %1993 = vmatprep.subr.bf16.mxu0 %v2086_v3 }
0x10ef   :  { %1995 = vmatpush3.bf16.msra.mxu0 %v1994_v61 }
0x10f0   :  { %1996 = vmatprep.subr.bf16.mxu0 %v2086_v3 }
0x1146   :  { %v1348_v28 = vpop.permute.xlu0 %1347 }
0x1147   :  { %v1350_v32 = vmul.f32 %v2077_v1, %v1348_v28 }
0x1149   :  { %v1351_v33 = vmul.f32 %v1350_v32, %v2414_v2  ;;  %v1486_v2 = vld [vmem:[%s2726_s12 + $0x40] sm:$0xff] }
0x114a   :  { %v1997_v37 = vpack.c.bf16 %v1487_v36, %v1486_v2  ;;  %v1363_v41 = vpop.permute.xlu0 %1362 }
0x114b   :  { %1357 = vrot.lane.b32.xlu1 %v1351_v33, %s2091_s5  ;;  %v1365_v57 = vsel %vm351_vm6, %v2454_v49, %v1363_v41  ;;  %v1492_v49 = vld [vmem:[%s2726_s12 + $0x70] sm:$0xff] }
0x114c   :  { %1998 = vmatpush3.bf16.msra.mxu0 %v1997_v37  ;;  %v868_v45 = vpop.permute.xlu1 %867  ;;  %v1377_v62 = vrot.slane %v1365_v57, 6 }
0x114d   :  { %1999 = vmatprep.subr.bf16.mxu0 %v2086_v3  ;;  %v870_v58 = vmul.f32 %v868_v45, %v2537_v5 }
0x114e   :  { %v1354_v8 = vpop.permute.xlu0 %1353 }
0x1150   :  { %2001 = vmatpush3.bf16.msra.mxu0 %v2000_v40  ;;  %v1368_v51 = vpop.permute.xlu1 %1367 }
0x1151   :  { %2002 = vmatprep.subr.bf16.mxu0 %v2086_v3  ;;  %v1370_v59 = vsel %vm351_vm6, %v2526_v63, %v1368_v51  ;;  %v1493_v63 = vld [vmem:[%s2726_s12 + $0x78] sm:$0xff] }
0x1152   :  { %v1373_v54 = vpop.permute.xlu0 %1372  ;;  %v1380_v42 = vrot.slane %v1370_v59, 4  ;;  %v2006_v5 = vpack.c.bf16 %v1493_v63, %v1492_v49 }
0x1153   :  { %v1375_v1 = vsel %vm351_vm6, %v870_v58, %v1373_v54 }
0x1154   :  { %2004 = vmatpush3.bf16.msra.mxu0 %v2003_v34  ;;  %v1383_v4 = vrot.slane %v1375_v1, 2 }
0x1155   :  { %2005 = vmatprep.subr.bf16.mxu0 %v2086_v3 }
0x1158   :  { %2007 = vmatpush3.bf16.msra.mxu0 %v2006_v5 }
0x11bd   :  { %v1358_v0 = vpop.permute.xlu1 %1357 }
0x11be   :  { %v1360_v3 = vsel %vm351_vm6, %v1354_v8, %v1358_v0 }
0x11bf   :  { %v1386_v6 = vsel %vm1385_vm7, %v1360_v3, %v1377_v62 }
0x11c0   :  { %v1387_v7 = vsel %vm99_vm1, %v1386_v6, %v1380_v42 }
0x11c1   :  { %v1389_v10 = vsel %vm1388_vm8, %v1387_v7, %v1383_v4 }
0x11c2   :  { %1829 = vmatmul.mubr.msk.f32.vlgmr.msra.gmra.mrb[14].mxu1 %vm271_vm5, %v1389_v10 }
0x1295   :  { %v1474_v11 = vpop.f32.mrb[14].mxu1 }
0x1296   :  { %v1475_v46 = vadd.f32 %v1598_v44, %v1474_v11  ;;  %v1830_v13 = vpop.f32.mrb[15].mxu1 }
0x1298   :  { %1864 = vmatmul.mubr.f32.vlgmr.msra.gmra.mrb[8].mxu0 %v1475_v46 }
0x136b   :  { %v1567_v16 = vpop.f32.mrb[8].mxu0 }
0x136c   :  { %v1568_v17 = vadd.f32 %v1600_v14, %v1567_v16  ;;  %v1865_v18 = vpop.f32.mrb[9].mxu0 }
0x136e   :  { %1571 = vmax.xlane.f32.xlu1 %v1568_v17 }
0x13fb   :  { %v1572_v19 = vpop.xlane.xlu1 %1571 }
0x13fc   :  { %v1573_v52 = vsub.f32 %v1568_v17, %v1572_v19 }
0x13fe   :  { %v1574_v20 = vmul.f32 1.442695, %v1573_v52 }
0x1400   :  { %2082 = vpow2.f32 %v1574_v20 }
0x140a   :  { %v2083_v21 = vpop.eup %2082 }
0x140b   :  { %1576 = vadd.xlane.f32.xlu0 %v2083_v21 }
0x1498   :  { %v1577_v22 = vpop.xlane.xlu0 %1576 }
0x1499   :  { %2084 = vlog2.f32 %v1577_v22 }
0x14a3   :  { %v2085_v56 = vpop.eup %2084 }
0x14a4   :  { %v1579_v23 = vmul.f32 0.6931472, %v2085_v56 }
0x14a6   :  { %v1580_v15 = vsub.f32 %v1573_v52, %v1579_v23 }
0x14a8   :  { %1581 = vst [vmem:[%s2729_s14] sm:$0xff] %v1580_v15 }

</bundles_post_ra>
